<compile_context>
chip_gen: v7x
topology: tpu7x:2x2x1
jax: 0.10.0
libtpu: 0.0.40
codegen_flags: <defaults>
</compile_context>

<pallas_src>
import functools

import numpy as np
import jax
import jax.numpy as jnp
from jax import lax
from jax.experimental import pallas as pl
from jax.experimental.pallas import tpu as pltpu

EPS = 1e-5
NUM_GROUPS = 32
TIME_DIM = 1280
LANE = 128


def _round_up(n, m):
    return (n + m - 1) // m * m


def _silu(x):
    return x * (1.0 / (1.0 + jnp.exp(-x)))


# ----------------------------- in-kernel helpers -------------------------------

def _group_norm_silu(h, gamma, beta, m, mt, cnt):
    # h: (HW, C) f32.  Per-channel sums via XLU reduction; per-group combine via tiny
    # (1,C)@(C,G) membership matmuls.  All statistics in f32; variance clamped >= 0.
    cs = jnp.sum(h, axis=0, keepdims=True)                               # (1, C)
    css = jnp.sum(h * h, axis=0, keepdims=True)                          # (1, C)
    gsum = jnp.dot(cs, m, preferred_element_type=jnp.float32)            # (1, G)
    gsq = jnp.dot(css, m, preferred_element_type=jnp.float32)            # (1, G)
    mean_g = gsum * (1.0 / cnt)
    var_g = jnp.maximum(gsq * (1.0 / cnt) - mean_g * mean_g, 0.0)
    inv_g = lax.rsqrt(var_g + EPS)
    mean_c = jnp.dot(mean_g, mt, preferred_element_type=jnp.float32)     # (1, C)
    inv_c = jnp.dot(inv_g, mt, preferred_element_type=jnp.float32)       # (1, C)
    hn = (h - mean_c) * (inv_c * gamma) + beta
    return _silu(hn)


def _conv3x3(a_bf, ae_ref, w_ref, bias, not_first, not_last, H, W, pad_rows):
    """3x3 'same' conv on flattened spatial rows.

    a_bf:   (HW, Cin) bf16 activation
    ae_ref: (HW + 2*pad_rows, Cin) bf16 VMEM scratch (zero halo rows top/bottom)
    w_ref:  (9, Cin, Cout) bf16 weights, tap index = kh*3 + kw
    bias:   (1, Cout) f32
    Each tap is a row-slice of the zero-extended scratch (spatial shift as data movement,
    no HWxHW matmuls); the two column masks kill the horizontal row-wrap.
    """
    HW = H * W
    cin = a_bf.shape[1]
    cout = bias.shape[1]

    zero = jnp.zeros((pad_rows, cin), a_bf.dtype)
    ae_ref[0:pad_rows, :] = zero                                         # top halo
    ae_ref[pad_rows + HW:pad_rows + HW + pad_rows, :] = zero             # bottom halo
    ae_ref[pad_rows:pad_rows + HW, :] = a_bf                             # interior (aligned)

    acc = jnp.zeros((HW, cout), jnp.float32)
    for kh in range(3):
        for kw in range(3):
            t = (kh - 1) * W + (kw - 1)
            sh = ae_ref[pad_rows + t:pad_rows + t + HW, :]               # shifted rows (bf16)
            if kw == 0:
                sh = sh * not_first                                      # reading w-1 invalid at w==0
            elif kw == 2:
                sh = sh * not_last                                       # reading w+1 invalid at w==W-1
            acc = acc + jnp.dot(sh, w_ref[kh * 3 + kw],
                                preferred_element_type=jnp.float32)
    return acc + bias


# ----------------------------- fused kernel ------------------------------------

def _make_kernel(H, W, cnt0, cnt1, pad_rows, use_res_conv):
    HW = H * W

    def kernel(*refs):
        if use_res_conv:
            (x_ref, temb_ref, g0_ref, be0_ref, m0_ref, m0t_ref, w0_ref, b0_ref,
             g1_ref, be1_ref, m1_ref, m1t_ref, w1_ref, b1_ref,
             wres_ref, bres_ref, o_ref, ae0_ref, ae1_ref) = refs
        else:
            (x_ref, temb_ref, g0_ref, be0_ref, m0_ref, m0t_ref, w0_ref, b0_ref,
             g1_ref, be1_ref, m1_ref, m1t_ref, w1_ref, b1_ref,
             o_ref, ae0_ref, ae1_ref) = refs
            wres_ref = bres_ref = None

        x_bf = x_ref[0]                                                  # (HW, Cin_p) bf16
        x = x_bf.astype(jnp.float32)

        # column-validity masks for the horizontal taps (shared by both convs)
        wpos = lax.broadcasted_iota(jnp.int32, (HW, 1), 0) % W
        not_first = (wpos != 0).astype(jnp.bfloat16)
        not_last = (wpos != W - 1).astype(jnp.bfloat16)

        # s0: GroupNorm -> SiLU -> Conv3x3, then add hoisted time embedding
        a0 = _group_norm_silu(x, g0_ref[...], be0_ref[...],
                              m0_ref[...], m0t_ref[...], cnt0)
        h1 = _conv3x3(a0.astype(jnp.bfloat16), ae0_ref, w0_ref, b0_ref[...],
                      not_first, not_last, H, W, pad_rows)
        h1 = h1 + temb_ref[0]                                            # (1, Cout_p) broadcast

        # s1: GroupNorm -> SiLU -> Conv3x3
        a1 = _group_norm_silu(h1, g1_ref[...], be1_ref[...],
                              m1_ref[...], m1t_ref[...], cnt1)
        h2 = _conv3x3(a1.astype(jnp.bfloat16), ae1_ref, w1_ref, b1_ref[...],
                      not_first, not_last, H, W, pad_rows)

        # residual: 1x1 conv when dim_in != dim_out, pure pass-through otherwise
        if use_res_conv:
            res = jnp.dot(x_bf, wres_ref[...],
                          preferred_element_type=jnp.float32) + bres_ref[...]
        else:
            res = x

        o_ref[0] = (res + h2).astype(o_ref.dtype)

    return kernel


# ----------------------------- wrapper / glue -----------------------------------

def init_params(key, dim_in, dim_out):
    ks = jax.random.split(key, 12)
    n = lambda k, shape, scale: scale * jax.random.normal(k, shape, jnp.float32)
    p = {
        "wt":  n(ks[0], (TIME_DIM, dim_out), 0.02),     # Linear weight (in, out)
        "bt":  n(ks[1], (1, dim_out), 0.02),
        "g0":  1.0 + n(ks[2], (1, dim_in), 0.1),
        "be0": n(ks[3], (1, dim_in), 0.1),
        "w0":  n(ks[4], (3, 3, dim_in, dim_out), 0.05),  # HWIO
        "b0":  n(ks[5], (1, dim_out), 0.05),
        "g1":  1.0 + n(ks[6], (1, dim_out), 0.1),
        "be1": n(ks[7], (1, dim_out), 0.1),
        "w1":  n(ks[8], (3, 3, dim_out, dim_out), 0.05),  # HWIO
        "b1":  n(ks[9], (1, dim_out), 0.05),
    }
    if dim_in != dim_out:
        p["wres"] = n(ks[10], (1, 1, dim_in, dim_out), 0.05)   # HWIO 1x1
        p["bres"] = n(ks[11], (1, dim_out), 0.05)
    return p


def resnet_time_embed_forward(x_nchw, time, params):
    B, Cin, H, W = x_nchw.shape
    Cout = params["b0"].shape[1]
    HW = H * W
    assert Cin % NUM_GROUPS == 0 and Cout % NUM_GROUPS == 0
    assert W % 8 == 0, "W must be a multiple of 8 (sublane alignment of the conv halo)"
    Cin_p = _round_up(Cin, LANE)
    Cout_p = _round_up(Cout, LANE)
    pad_rows = _round_up(W + 1, 8)
    use_res_conv = "wres" in params

    def pad_last(a, tgt):
        p = tgt - a.shape[-1]
        return a if p == 0 else jnp.pad(a, [(0, 0)] * (a.ndim - 1) + [(0, p)])

    def pad_last2(a, t1, t2):
        p1, p2 = t1 - a.shape[-2], t2 - a.shape[-1]
        if p1 == 0 and p2 == 0:
            return a
        return jnp.pad(a, [(0, 0)] * (a.ndim - 2) + [(0, p1), (0, p2)])

    # activations: NCHW -> (B, HW, Cin_p), bf16 (halves DMA, MXU operand dtype)
    x_flat = jnp.transpose(x_nchw, (0, 2, 3, 1)).reshape(B, HW, Cin)
    x_flat = pad_last(x_flat, Cin_p).astype(jnp.bfloat16)

    # time embedding hoisted out of the kernel: one batched XLA matmul, f32
    temb = _silu(time) @ params["wt"] + params["bt"]                     # (B, Cout)
    temb = pad_last(temb, Cout_p).reshape(B, 1, Cout_p)

    # group-membership matrices; padded channels belong to no group (all-zero rows)
    m0 = np.zeros((Cin_p, NUM_GROUPS), np.float32)
    m0[np.arange(Cin), np.arange(Cin) // (Cin // NUM_GROUPS)] = 1.0
    m1 = np.zeros((Cout_p, NUM_GROUPS), np.float32)
    m1[np.arange(Cout), np.arange(Cout) // (Cout // NUM_GROUPS)] = 1.0
    m0 = jnp.asarray(m0)
    m1 = jnp.asarray(m1)

    w0 = pad_last2(params["w0"].reshape(9, Cin, Cout), Cin_p, Cout_p).astype(jnp.bfloat16)
    w1 = pad_last2(params["w1"].reshape(9, Cout, Cout), Cout_p, Cout_p).astype(jnp.bfloat16)

    inputs = [x_flat, temb,
              pad_last(params["g0"], Cin_p), pad_last(params["be0"], Cin_p),
              m0, m0.T, w0, pad_last(params["b0"], Cout_p),
              pad_last(params["g1"], Cout_p), pad_last(params["be1"], Cout_p),
              m1, m1.T, w1, pad_last(params["b1"], Cout_p)]
    if use_res_conv:
        wres = pad_last2(params["wres"].reshape(Cin, Cout), Cin_p, Cout_p).astype(jnp.bfloat16)
        inputs += [wres, pad_last(params["bres"], Cout_p)]

    def bcast_spec(a):
        nd = a.ndim
        # NOTE: constant-index inputs could be single-buffered (pl.Buffered(1)) to halve
        # their VMEM footprint when scaling up; at these sizes double-buffering is fine.
        return pl.BlockSpec(a.shape, lambda b, _nd=nd: (0,) * _nd)

    in_specs = [pl.BlockSpec((1, HW, Cin_p), lambda b: (b, 0, 0)),
                pl.BlockSpec((1, 1, Cout_p), lambda b: (b, 0, 0))]
    in_specs += [bcast_spec(a) for a in inputs[2:]]

    cnt0 = float((Cin // NUM_GROUPS) * HW)
    cnt1 = float((Cout // NUM_GROUPS) * HW)
    kernel = _make_kernel(H, W, cnt0, cnt1, pad_rows, use_res_conv)

    out_pad = pl.pallas_call(
        kernel,
        out_shape=jax.ShapeDtypeStruct((B, HW, Cout_p), jnp.float32),
        grid=(B,),
        in_specs=in_specs,
        out_specs=pl.BlockSpec((1, HW, Cout_p), lambda b: (b, 0, 0)),
        scratch_shapes=[pltpu.VMEM((HW + 2 * pad_rows, Cin_p), jnp.bfloat16),
                        pltpu.VMEM((HW + 2 * pad_rows, Cout_p), jnp.bfloat16)],
        compiler_params=pltpu.CompilerParams(dimension_semantics=("parallel",)),
    )(*inputs)

    out = out_pad[:, :, :Cout].reshape(B, H, W, Cout)
    return jnp.transpose(out, (0, 3, 1, 2))


# ----------------------------- pure-JAX reference -------------------------------
# Mirrors the kernel's compute precision: MXU operands (activations / conv & residual
# weights and the streamed x) are rounded to bf16, accumulation stays in f32.

def reference_forward(x, time, params):
    bf = lambda a: a.astype(jnp.bfloat16).astype(jnp.float32)
    x = bf(x)
    t = jax.nn.silu(time) @ params["wt"] + params["bt"]                  # (B, Cout) f32

    def group_norm(h, gamma, beta):
        B, C, H, W = h.shape
        hg = h.reshape(B, NUM_GROUPS, -1)
        mean = hg.mean(axis=2, keepdims=True)
        var = hg.var(axis=2, keepdims=True)
        hn = ((hg - mean) / jnp.sqrt(var + EPS)).reshape(B, C, H, W)
        return hn * gamma[0][None, :, None, None] + beta[0][None, :, None, None]

    def conv(h, w_hwio, bias, pad):
        out = lax.conv_general_dilated(
            bf(h), bf(w_hwio), window_strides=(1, 1), padding=[(pad, pad)] * 2,
            dimension_numbers=("NCHW", "HWIO", "NCHW"),
            preferred_element_type=jnp.float32)
        return out + bias[0][None, :, None, None]

    a0 = jax.nn.silu(group_norm(x, params["g0"], params["be0"]))
    h1 = conv(a0, params["w0"], params["b0"], 1) + t[:, :, None, None]
    a1 = jax.nn.silu(group_norm(h1, params["g1"], params["be1"]))
    h2 = conv(a1, params["w1"], params["b1"], 1)
    if "wres" in params:
        res = conv(x, params["wres"], params["bres"], 0)
    else:
        res = x
    return res + h2


# ----------------------------- main ----------------------------------------------

def _run_case(key, dim_in, dim_out, B, H, W):
    kx, kt, kp = jax.random.split(key, 3)
    x = jax.random.normal(kx, (B, dim_in, H, W), jnp.float32)            # NCHW, as in PyTorch
    time = jax.random.normal(kt, (B, TIME_DIM), jnp.float32)
    params = init_params(kp, dim_in, dim_out)

    out = jax.block_until_ready(jax.jit(resnet_time_embed_forward)(x, time, params))
    ref = jax.block_until_ready(reference_forward(x, time, params))

    assert out.shape == (B, dim_out, H, W), out.shape
    if not bool(jnp.allclose(out, ref, rtol=1e-2, atol=1e-2)):
        err = float(jnp.max(jnp.abs(out - ref)))
        raise AssertionError(
            f"kernel mismatch ({dim_in}->{dim_out}, {H}x{W}): max abs err = {err}")


if __name__ == "__main__":
    key = jax.random.PRNGKey(0)
    k1, k2 = jax.random.split(key)
    _run_case(k1, dim_in=32, dim_out=64, B=2, H=16, W=16)   # residual 1x1-conv path
    _run_case(k2, dim_in=64, dim_out=64, B=1, H=8, W=8)     # identity residual (statically skipped)
    print("KERNEL_OK")
</pallas_src>

<mosaic_0001>
module attributes {stable_mosaic.version = 11 : i64} {
  func.func @kernel(%arg0: i32, %arg1: memref<1x256x128xbf16, #tpu.memory_space<vmem>>, %arg2: memref<1x1x128xf32, #tpu.memory_space<vmem>>, %arg3: memref<1x128xf32, #tpu.memory_space<vmem>>, %arg4: memref<1x128xf32, #tpu.memory_space<vmem>>, %arg5: memref<128x32xf32, #tpu.memory_space<vmem>>, %arg6: memref<32x128xf32, #tpu.memory_space<vmem>>, %arg7: memref<9x128x128xbf16, #tpu.memory_space<vmem>>, %arg8: memref<1x128xf32, #tpu.memory_space<vmem>>, %arg9: memref<1x128xf32, #tpu.memory_space<vmem>>, %arg10: memref<1x128xf32, #tpu.memory_space<vmem>>, %arg11: memref<128x32xf32, #tpu.memory_space<vmem>>, %arg12: memref<32x128xf32, #tpu.memory_space<vmem>>, %arg13: memref<9x128x128xbf16, #tpu.memory_space<vmem>>, %arg14: memref<1x128xf32, #tpu.memory_space<vmem>>, %arg15: memref<128x128xbf16, #tpu.memory_space<vmem>>, %arg16: memref<1x128xf32, #tpu.memory_space<vmem>>, %arg17: memref<1x256x128xf32, #tpu.memory_space<vmem>>, %arg18: memref<304x128xbf16, #tpu.memory_space<vmem>>, %arg19: memref<304x128xbf16, #tpu.memory_space<vmem>>) attributes {dimension_semantics = [#tpu.dimension_semantics<parallel>], iteration_bounds = array<i64: 2>, scalar_prefetch = 0 : i64, scratch_operands = 2 : i64, tpu.core_type = #tpu.core_type<tc>, window_params = [{transform_indices = @transform_0, window_bounds = array<i64: 1, 256, 128>}, {transform_indices = @transform_1, window_bounds = array<i64: 1, 1, 128>}, {pipeline_mode = #tpu.pipeline_mode<synchronous>, transform_indices = @transform_2, window_bounds = array<i64: 1, 128>}, {pipeline_mode = #tpu.pipeline_mode<synchronous>, transform_indices = @transform_3, window_bounds = array<i64: 1, 128>}, {pipeline_mode = #tpu.pipeline_mode<synchronous>, transform_indices = @transform_4, window_bounds = array<i64: 128, 32>}, {pipeline_mode = #tpu.pipeline_mode<synchronous>, transform_indices = @transform_5, window_bounds = array<i64: 32, 128>}, {pipeline_mode = #tpu.pipeline_mode<synchronous>, transform_indices = @transform_6, window_bounds = array<i64: 9, 128, 128>}, {pipeline_mode = #tpu.pipeline_mode<synchronous>, transform_indices = @transform_7, window_bounds = array<i64: 1, 128>}, {pipeline_mode = #tpu.pipeline_mode<synchronous>, transform_indices = @transform_8, window_bounds = array<i64: 1, 128>}, {pipeline_mode = #tpu.pipeline_mode<synchronous>, transform_indices = @transform_9, window_bounds = array<i64: 1, 128>}, {pipeline_mode = #tpu.pipeline_mode<synchronous>, transform_indices = @transform_10, window_bounds = array<i64: 128, 32>}, {pipeline_mode = #tpu.pipeline_mode<synchronous>, transform_indices = @transform_11, window_bounds = array<i64: 32, 128>}, {pipeline_mode = #tpu.pipeline_mode<synchronous>, transform_indices = @transform_12, window_bounds = array<i64: 9, 128, 128>}, {pipeline_mode = #tpu.pipeline_mode<synchronous>, transform_indices = @transform_13, window_bounds = array<i64: 1, 128>}, {pipeline_mode = #tpu.pipeline_mode<synchronous>, transform_indices = @transform_14, window_bounds = array<i64: 128, 128>}, {pipeline_mode = #tpu.pipeline_mode<synchronous>, transform_indices = @transform_15, window_bounds = array<i64: 1, 128>}, {transform_indices = @transform_16, window_bounds = array<i64: 1, 256, 128>}]} {
    %c0 = arith.constant 0 : index
    %c0_0 = arith.constant 0 : index
    %c0_1 = arith.constant 0 : index
    %0 = vector.load %arg1[%c0, %c0_0, %c0_1] : memref<1x256x128xbf16, #tpu.memory_space<vmem>>, vector<1x256x128xbf16>
    %1 = vector.shape_cast %0 : vector<1x256x128xbf16> to vector<256x128xbf16>
    %2 = arith.extf %1 : vector<256x128xbf16> to vector<256x128xf32>
    %3 = tpu.iota {dimensions = array<i32: 0>} : vector<256x1xi32>
    %c16_i32 = arith.constant 16 : i32
    %c0_i32 = arith.constant 0 : i32
    %4 = arith.cmpi eq, %c16_i32, %c0_i32 : i32
    %c1_i32 = arith.constant 1 : i32
    %5 = arith.select %4, %c1_i32, %c16_i32 : i32
    %6 = vector.broadcast %5 : i32 to vector<256x1xi32>
    %7 = arith.remsi %3, %6 : vector<256x1xi32>
    %c0_i32_2 = arith.constant 0 : i32
    %8 = vector.broadcast %c0_i32_2 : i32 to vector<256x1xi32>
    %9 = arith.cmpi ne, %7, %8 : vector<256x1xi32>
    %c0_i32_3 = arith.constant 0 : i32
    %10 = vector.broadcast %c0_i32_3 : i32 to vector<256x1xi32>
    %11 = arith.cmpi slt, %7, %10 : vector<256x1xi32>
    %c0_i32_4 = arith.constant 0 : i32
    %12 = arith.cmpi slt, %5, %c0_i32_4 : i32
    %13 = vector.broadcast %12 : i1 to vector<256x1xi1>
    %14 = vector.broadcast %13 : vector<256x1xi1> to vector<256x1xi1>
    %15 = arith.xori %11, %14 : vector<256x1xi1>
    %16 = arith.andi %15, %9 : vector<256x1xi1>
    %17 = vector.broadcast %5 : i32 to vector<256x1xi32>
    %18 = arith.addi %7, %17 : vector<256x1xi32>
    %19 = arith.select %16, %18, %7 : vector<256x1xi1>, vector<256x1xi32>
    %c0_i32_5 = arith.constant 0 : i32
    %20 = vector.broadcast %c0_i32_5 : i32 to vector<256x1xi32>
    %21 = arith.cmpi ne, %19, %20 : vector<256x1xi32>
    %22 = arith.extui %21 : vector<256x1xi1> to vector<256x1xi32>
    %23 = arith.sitofp %22 : vector<256x1xi32> to vector<256x1xf32>
    %24 = arith.truncf %23 : vector<256x1xf32> to vector<256x1xbf16>
    %c15_i32 = arith.constant 15 : i32
    %25 = vector.broadcast %c15_i32 : i32 to vector<256x1xi32>
    %26 = arith.cmpi ne, %19, %25 : vector<256x1xi32>
    %27 = arith.extui %26 : vector<256x1xi1> to vector<256x1xi32>
    %28 = arith.sitofp %27 : vector<256x1xi32> to vector<256x1xf32>
    %29 = arith.truncf %28 : vector<256x1xf32> to vector<256x1xbf16>
    %c0_6 = arith.constant 0 : index
    %c0_7 = arith.constant 0 : index
    %30 = vector.load %arg3[%c0_6, %c0_7] : memref<1x128xf32, #tpu.memory_space<vmem>>, vector<1x128xf32>
    %c0_8 = arith.constant 0 : index
    %c0_9 = arith.constant 0 : index
    %31 = vector.load %arg4[%c0_8, %c0_9] : memref<1x128xf32, #tpu.memory_space<vmem>>, vector<1x128xf32>
    %c0_10 = arith.constant 0 : index
    %c0_11 = arith.constant 0 : index
    %32 = vector.load %arg5[%c0_10, %c0_11] : memref<128x32xf32, #tpu.memory_space<vmem>>, vector<128x32xf32>
    %c0_12 = arith.constant 0 : index
    %c0_13 = arith.constant 0 : index
    %33 = vector.load %arg6[%c0_12, %c0_13] : memref<32x128xf32, #tpu.memory_space<vmem>>, vector<32x128xf32>
    %cst = arith.constant dense<0.000000e+00> : vector<128xf32>
    %34 = vector.multi_reduction <add>, %2, %cst [0] : vector<256x128xf32> to vector<128xf32>
    %35 = vector.shape_cast %34 : vector<128xf32> to vector<1x128xf32>
    %36 = arith.mulf %2, %2 : vector<256x128xf32>
    %cst_14 = arith.constant dense<0.000000e+00> : vector<128xf32>
    %37 = vector.multi_reduction <add>, %36, %cst_14 [0] : vector<256x128xf32> to vector<128xf32>
    %38 = vector.shape_cast %37 : vector<128xf32> to vector<1x128xf32>
    %cst_15 = arith.constant dense<0.000000e+00> : vector<1x32xf32>
    %39 = tpu.matmul %35, %32, %cst_15 {dimension_numbers = #tpu.dot_dimension_numbers<[1], [0], [0], [1], [0, 0, 1, 1], [], []>} : vector<1x128xf32>, vector<128x32xf32>, vector<1x32xf32> -> vector<1x32xf32>
    %cst_16 = arith.constant dense<0.000000e+00> : vector<1x32xf32>
    %40 = tpu.matmul %38, %32, %cst_16 {dimension_numbers = #tpu.dot_dimension_numbers<[1], [0], [0], [1], [0, 0, 1, 1], [], []>} : vector<1x128xf32>, vector<128x32xf32>, vector<1x32xf32> -> vector<1x32xf32>
    %cst_17 = arith.constant 3.906250e-03 : f32
    %41 = vector.broadcast %cst_17 : f32 to vector<1x32xf32>
    %42 = arith.mulf %39, %41 : vector<1x32xf32>
    %cst_18 = arith.constant 3.906250e-03 : f32
    %43 = vector.broadcast %cst_18 : f32 to vector<1x32xf32>
    %44 = arith.mulf %40, %43 : vector<1x32xf32>
    %45 = arith.mulf %42, %42 : vector<1x32xf32>
    %46 = arith.subf %44, %45 : vector<1x32xf32>
    %cst_19 = arith.constant 0.000000e+00 : f32
    %47 = vector.broadcast %cst_19 : f32 to vector<1x32xf32>
    %48 = arith.maximumf %46, %47 : vector<1x32xf32>
    %cst_20 = arith.constant 9.99999974E-6 : f32
    %49 = vector.broadcast %cst_20 : f32 to vector<1x32xf32>
    %50 = arith.addf %48, %49 : vector<1x32xf32>
    %51 = math.rsqrt %50 : vector<1x32xf32>
    %cst_21 = arith.constant dense<0.000000e+00> : vector<1x128xf32>
    %52 = tpu.matmul %42, %33, %cst_21 {dimension_numbers = #tpu.dot_dimension_numbers<[1], [0], [0], [1], [0, 0, 1, 1], [], []>} : vector<1x32xf32>, vector<32x128xf32>, vector<1x128xf32> -> vector<1x128xf32>
    %cst_22 = arith.constant dense<0.000000e+00> : vector<1x128xf32>
    %53 = tpu.matmul %51, %33, %cst_22 {dimension_numbers = #tpu.dot_dimension_numbers<[1], [0], [0], [1], [0, 0, 1, 1], [], []>} : vector<1x32xf32>, vector<32x128xf32>, vector<1x128xf32> -> vector<1x128xf32>
    %54 = vector.broadcast %52 : vector<1x128xf32> to vector<256x128xf32>
    %55 = arith.subf %2, %54 : vector<256x128xf32>
    %56 = arith.mulf %53, %30 : vector<1x128xf32>
    %57 = vector.broadcast %56 : vector<1x128xf32> to vector<256x128xf32>
    %58 = arith.mulf %55, %57 : vector<256x128xf32>
    %59 = vector.broadcast %31 : vector<1x128xf32> to vector<256x128xf32>
    %60 = arith.addf %58, %59 : vector<256x128xf32>
    %cst_23 = arith.constant 0.000000e+00 : f32
    %61 = vector.broadcast %cst_23 : f32 to vector<256x128xf32>
    %62 = arith.subf %61, %60 : vector<256x128xf32>
    %63 = math.exp %62 : vector<256x128xf32>
    %cst_24 = arith.constant 1.000000e+00 : f32
    %64 = vector.broadcast %cst_24 : f32 to vector<256x128xf32>
    %65 = arith.addf %64, %63 : vector<256x128xf32>
    %cst_25 = arith.constant 1.000000e+00 : f32
    %66 = vector.broadcast %cst_25 : f32 to vector<256x128xf32>
    %67 = arith.divf %66, %65 : vector<256x128xf32>
    %68 = arith.mulf %60, %67 : vector<256x128xf32>
    %69 = arith.truncf %68 : vector<256x128xf32> to vector<256x128xbf16>
    %c0_26 = arith.constant 0 : index
    %c0_27 = arith.constant 0 : index
    %70 = vector.load %arg8[%c0_26, %c0_27] : memref<1x128xf32, #tpu.memory_space<vmem>>, vector<1x128xf32>
    %cst_28 = arith.constant 0.000000e+00 : bf16
    %71 = vector.broadcast %cst_28 : bf16 to vector<24x128xbf16>
    %c0_29 = arith.constant 0 : index
    %c0_30 = arith.constant 0 : index
    %72 = vector.load %arg18[%c0_29, %c0_30] : memref<304x128xbf16, #tpu.memory_space<vmem>>, vector<24x128xbf16>
    tpu.vector_store %arg18[%c0_29, %c0_30], %71 {strides = array<i32>} : memref<304x128xbf16, #tpu.memory_space<vmem>>, vector<24x128xbf16>,
    %c280 = arith.constant 280 : index
    %c0_31 = arith.constant 0 : index
    %73 = vector.load %arg18[%c280, %c0_31] : memref<304x128xbf16, #tpu.memory_space<vmem>>, vector<24x128xbf16>
    tpu.vector_store %arg18[%c280, %c0_31], %71 {strides = array<i32>} : memref<304x128xbf16, #tpu.memory_space<vmem>>, vector<24x128xbf16>,
    %c24 = arith.constant 24 : index
    %c0_32 = arith.constant 0 : index
    %74 = vector.load %arg18[%c24, %c0_32] : memref<304x128xbf16, #tpu.memory_space<vmem>>, vector<256x128xbf16>
    tpu.vector_store %arg18[%c24, %c0_32], %69 {strides = array<i32>} : memref<304x128xbf16, #tpu.memory_space<vmem>>, vector<256x128xbf16>,
    %cst_33 = arith.constant 0.000000e+00 : f32
    %75 = vector.broadcast %cst_33 : f32 to vector<256x128xf32>
    %c7 = arith.constant 7 : index
    %c0_34 = arith.constant 0 : index
    %76 = vector.load %arg18[%c7, %c0_34] : memref<304x128xbf16, #tpu.memory_space<vmem>>, vector<256x128xbf16>
    %77 = vector.broadcast %24 : vector<256x1xbf16> to vector<256x128xbf16>
    %78 = arith.mulf %76, %77 : vector<256x128xbf16>
    %c0_35 = arith.constant 0 : index
    %c0_36 = arith.constant 0 : index
    %c0_37 = arith.constant 0 : index
    %79 = vector.load %arg7[%c0_35, %c0_36, %c0_37] : memref<9x128x128xbf16, #tpu.memory_space<vmem>>, vector<1x128x128xbf16>
    %80 = vector.shape_cast %79 : vector<1x128x128xbf16> to vector<128x128xbf16>
    %cst_38 = arith.constant dense<0.000000e+00> : vector<256x128xf32>
    %81 = tpu.matmul %78, %80, %cst_38 {dimension_numbers = #tpu.dot_dimension_numbers<[1], [0], [0], [1], [0, 0, 1, 1], [], []>} : vector<256x128xbf16>, vector<128x128xbf16>, vector<256x128xf32> -> vector<256x128xf32>
    %82 = arith.addf %75, %81 : vector<256x128xf32>
    %c8 = arith.constant 8 : index
    %c0_39 = arith.constant 0 : index
    %83 = vector.load %arg18[%c8, %c0_39] : memref<304x128xbf16, #tpu.memory_space<vmem>>, vector<256x128xbf16>
    %c1 = arith.constant 1 : index
    %c0_40 = arith.constant 0 : index
    %c0_41 = arith.constant 0 : index
    %84 = vector.load %arg7[%c1, %c0_40, %c0_41] : memref<9x128x128xbf16, #tpu.memory_space<vmem>>, vector<1x128x128xbf16>
    %85 = vector.shape_cast %84 : vector<1x128x128xbf16> to vector<128x128xbf16>
    %cst_42 = arith.constant dense<0.000000e+00> : vector<256x128xf32>
    %86 = tpu.matmul %83, %85, %cst_42 {dimension_numbers = #tpu.dot_dimension_numbers<[1], [0], [0], [1], [0, 0, 1, 1], [], []>} : vector<256x128xbf16>, vector<128x128xbf16>, vector<256x128xf32> -> vector<256x128xf32>
    %87 = arith.addf %82, %86 : vector<256x128xf32>
    %c9 = arith.constant 9 : index
    %c0_43 = arith.constant 0 : index
    %88 = vector.load %arg18[%c9, %c0_43] : memref<304x128xbf16, #tpu.memory_space<vmem>>, vector<256x128xbf16>
    %89 = vector.broadcast %29 : vector<256x1xbf16> to vector<256x128xbf16>
    %90 = arith.mulf %88, %89 : vector<256x128xbf16>
    %c2 = arith.constant 2 : index
    %c0_44 = arith.constant 0 : index
    %c0_45 = arith.constant 0 : index
    %91 = vector.load %arg7[%c2, %c0_44, %c0_45] : memref<9x128x128xbf16, #tpu.memory_space<vmem>>, vector<1x128x128xbf16>
    %92 = vector.shape_cast %91 : vector<1x128x128xbf16> to vector<128x128xbf16>
    %cst_46 = arith.constant dense<0.000000e+00> : vector<256x128xf32>
    %93 = tpu.matmul %90, %92, %cst_46 {dimension_numbers = #tpu.dot_dimension_numbers<[1], [0], [0], [1], [0, 0, 1, 1], [], []>} : vector<256x128xbf16>, vector<128x128xbf16>, vector<256x128xf32> -> vector<256x128xf32>
    %94 = arith.addf %87, %93 : vector<256x128xf32>
    %c23 = arith.constant 23 : index
    %c0_47 = arith.constant 0 : index
    %95 = vector.load %arg18[%c23, %c0_47] : memref<304x128xbf16, #tpu.memory_space<vmem>>, vector<256x128xbf16>
    %96 = vector.broadcast %24 : vector<256x1xbf16> to vector<256x128xbf16>
    %97 = arith.mulf %95, %96 : vector<256x128xbf16>
    %c3 = arith.constant 3 : index
    %c0_48 = arith.constant 0 : index
    %c0_49 = arith.constant 0 : index
    %98 = vector.load %arg7[%c3, %c0_48, %c0_49] : memref<9x128x128xbf16, #tpu.memory_space<vmem>>, vector<1x128x128xbf16>
    %99 = vector.shape_cast %98 : vector<1x128x128xbf16> to vector<128x128xbf16>
    %cst_50 = arith.constant dense<0.000000e+00> : vector<256x128xf32>
    %100 = tpu.matmul %97, %99, %cst_50 {dimension_numbers = #tpu.dot_dimension_numbers<[1], [0], [0], [1], [0, 0, 1, 1], [], []>} : vector<256x128xbf16>, vector<128x128xbf16>, vector<256x128xf32> -> vector<256x128xf32>
    %101 = arith.addf %94, %100 : vector<256x128xf32>
    %c24_51 = arith.constant 24 : index
    %c0_52 = arith.constant 0 : index
    %102 = vector.load %arg18[%c24_51, %c0_52] : memref<304x128xbf16, #tpu.memory_space<vmem>>, vector<256x128xbf16>
    %c4 = arith.constant 4 : index
    %c0_53 = arith.constant 0 : index
    %c0_54 = arith.constant 0 : index
    %103 = vector.load %arg7[%c4, %c0_53, %c0_54] : memref<9x128x128xbf16, #tpu.memory_space<vmem>>, vector<1x128x128xbf16>
    %104 = vector.shape_cast %103 : vector<1x128x128xbf16> to vector<128x128xbf16>
    %cst_55 = arith.constant dense<0.000000e+00> : vector<256x128xf32>
    %105 = tpu.matmul %102, %104, %cst_55 {dimension_numbers = #tpu.dot_dimension_numbers<[1], [0], [0], [1], [0, 0, 1, 1], [], []>} : vector<256x128xbf16>, vector<128x128xbf16>, vector<256x128xf32> -> vector<256x128xf32>
    %106 = arith.addf %101, %105 : vector<256x128xf32>
    %c25 = arith.constant 25 : index
    %c0_56 = arith.constant 0 : index
    %107 = vector.load %arg18[%c25, %c0_56] : memref<304x128xbf16, #tpu.memory_space<vmem>>, vector<256x128xbf16>
    %108 = vector.broadcast %29 : vector<256x1xbf16> to vector<256x128xbf16>
    %109 = arith.mulf %107, %108 : vector<256x128xbf16>
    %c5 = arith.constant 5 : index
    %c0_57 = arith.constant 0 : index
    %c0_58 = arith.constant 0 : index
    %110 = vector.load %arg7[%c5, %c0_57, %c0_58] : memref<9x128x128xbf16, #tpu.memory_space<vmem>>, vector<1x128x128xbf16>
    %111 = vector.shape_cast %110 : vector<1x128x128xbf16> to vector<128x128xbf16>
    %cst_59 = arith.constant dense<0.000000e+00> : vector<256x128xf32>
    %112 = tpu.matmul %109, %111, %cst_59 {dimension_numbers = #tpu.dot_dimension_numbers<[1], [0], [0], [1], [0, 0, 1, 1], [], []>} : vector<256x128xbf16>, vector<128x128xbf16>, vector<256x128xf32> -> vector<256x128xf32>
    %113 = arith.addf %106, %112 : vector<256x128xf32>
    %c39 = arith.constant 39 : index
    %c0_60 = arith.constant 0 : index
    %114 = vector.load %arg18[%c39, %c0_60] : memref<304x128xbf16, #tpu.memory_space<vmem>>, vector<256x128xbf16>
    %115 = vector.broadcast %24 : vector<256x1xbf16> to vector<256x128xbf16>
    %116 = arith.mulf %114, %115 : vector<256x128xbf16>
    %c6 = arith.constant 6 : index
    %c0_61 = arith.constant 0 : index
    %c0_62 = arith.constant 0 : index
    %117 = vector.load %arg7[%c6, %c0_61, %c0_62] : memref<9x128x128xbf16, #tpu.memory_space<vmem>>, vector<1x128x128xbf16>
    %118 = vector.shape_cast %117 : vector<1x128x128xbf16> to vector<128x128xbf16>
    %cst_63 = arith.constant dense<0.000000e+00> : vector<256x128xf32>
    %119 = tpu.matmul %116, %118, %cst_63 {dimension_numbers = #tpu.dot_dimension_numbers<[1], [0], [0], [1], [0, 0, 1, 1], [], []>} : vector<256x128xbf16>, vector<128x128xbf16>, vector<256x128xf32> -> vector<256x128xf32>
    %120 = arith.addf %113, %119 : vector<256x128xf32>
    %c40 = arith.constant 40 : index
    %c0_64 = arith.constant 0 : index
    %121 = vector.load %arg18[%c40, %c0_64] : memref<304x128xbf16, #tpu.memory_space<vmem>>, vector<256x128xbf16>
    %c7_65 = arith.constant 7 : index
    %c0_66 = arith.constant 0 : index
    %c0_67 = arith.constant 0 : index
    %122 = vector.load %arg7[%c7_65, %c0_66, %c0_67] : memref<9x128x128xbf16, #tpu.memory_space<vmem>>, vector<1x128x128xbf16>
    %123 = vector.shape_cast %122 : vector<1x128x128xbf16> to vector<128x128xbf16>
    %cst_68 = arith.constant dense<0.000000e+00> : vector<256x128xf32>
    %124 = tpu.matmul %121, %123, %cst_68 {dimension_numbers = #tpu.dot_dimension_numbers<[1], [0], [0], [1], [0, 0, 1, 1], [], []>} : vector<256x128xbf16>, vector<128x128xbf16>, vector<256x128xf32> -> vector<256x128xf32>
    %125 = arith.addf %120, %124 : vector<256x128xf32>
    %c41 = arith.constant 41 : index
    %c0_69 = arith.constant 0 : index
    %126 = vector.load %arg18[%c41, %c0_69] : memref<304x128xbf16, #tpu.memory_space<vmem>>, vector<256x128xbf16>
    %127 = vector.broadcast %29 : vector<256x1xbf16> to vector<256x128xbf16>
    %128 = arith.mulf %126, %127 : vector<256x128xbf16>
    %c8_70 = arith.constant 8 : index
    %c0_71 = arith.constant 0 : index
    %c0_72 = arith.constant 0 : index
    %129 = vector.load %arg7[%c8_70, %c0_71, %c0_72] : memref<9x128x128xbf16, #tpu.memory_space<vmem>>, vector<1x128x128xbf16>
    %130 = vector.shape_cast %129 : vector<1x128x128xbf16> to vector<128x128xbf16>
    %cst_73 = arith.constant dense<0.000000e+00> : vector<256x128xf32>
    %131 = tpu.matmul %128, %130, %cst_73 {dimension_numbers = #tpu.dot_dimension_numbers<[1], [0], [0], [1], [0, 0, 1, 1], [], []>} : vector<256x128xbf16>, vector<128x128xbf16>, vector<256x128xf32> -> vector<256x128xf32>
    %132 = arith.addf %125, %131 : vector<256x128xf32>
    %133 = vector.broadcast %70 : vector<1x128xf32> to vector<256x128xf32>
    %134 = arith.addf %132, %133 : vector<256x128xf32>
    %c0_74 = arith.constant 0 : index
    %c0_75 = arith.constant 0 : index
    %c0_76 = arith.constant 0 : index
    %135 = vector.load %arg2[%c0_74, %c0_75, %c0_76] : memref<1x1x128xf32, #tpu.memory_space<vmem>>, vector<1x1x128xf32>
    %136 = vector.shape_cast %135 : vector<1x1x128xf32> to vector<1x128xf32>
    %137 = vector.broadcast %136 : vector<1x128xf32> to vector<256x128xf32>
    %138 = arith.addf %134, %137 : vector<256x128xf32>
    %c0_77 = arith.constant 0 : index
    %c0_78 = arith.constant 0 : index
    %139 = vector.load %arg9[%c0_77, %c0_78] : memref<1x128xf32, #tpu.memory_space<vmem>>, vector<1x128xf32>
    %c0_79 = arith.constant 0 : index
    %c0_80 = arith.constant 0 : index
    %140 = vector.load %arg10[%c0_79, %c0_80] : memref<1x128xf32, #tpu.memory_space<vmem>>, vector<1x128xf32>
    %c0_81 = arith.constant 0 : index
    %c0_82 = arith.constant 0 : index
    %141 = vector.load %arg11[%c0_81, %c0_82] : memref<128x32xf32, #tpu.memory_space<vmem>>, vector<128x32xf32>
    %c0_83 = arith.constant 0 : index
    %c0_84 = arith.constant 0 : index
    %142 = vector.load %arg12[%c0_83, %c0_84] : memref<32x128xf32, #tpu.memory_space<vmem>>, vector<32x128xf32>
    %cst_85 = arith.constant dense<0.000000e+00> : vector<128xf32>
    %143 = vector.multi_reduction <add>, %138, %cst_85 [0] : vector<256x128xf32> to vector<128xf32>
    %144 = vector.shape_cast %143 : vector<128xf32> to vector<1x128xf32>
    %145 = arith.mulf %138, %138 : vector<256x128xf32>
    %cst_86 = arith.constant dense<0.000000e+00> : vector<128xf32>
    %146 = vector.multi_reduction <add>, %145, %cst_86 [0] : vector<256x128xf32> to vector<128xf32>
    %147 = vector.shape_cast %146 : vector<128xf32> to vector<1x128xf32>
    %cst_87 = arith.constant dense<0.000000e+00> : vector<1x32xf32>
    %148 = tpu.matmul %144, %141, %cst_87 {dimension_numbers = #tpu.dot_dimension_numbers<[1], [0], [0], [1], [0, 0, 1, 1], [], []>} : vector<1x128xf32>, vector<128x32xf32>, vector<1x32xf32> -> vector<1x32xf32>
    %cst_88 = arith.constant dense<0.000000e+00> : vector<1x32xf32>
    %149 = tpu.matmul %147, %141, %cst_88 {dimension_numbers = #tpu.dot_dimension_numbers<[1], [0], [0], [1], [0, 0, 1, 1], [], []>} : vector<1x128xf32>, vector<128x32xf32>, vector<1x32xf32> -> vector<1x32xf32>
    %cst_89 = arith.constant 0.001953125 : f32
    %150 = vector.broadcast %cst_89 : f32 to vector<1x32xf32>
    %151 = arith.mulf %148, %150 : vector<1x32xf32>
    %cst_90 = arith.constant 0.001953125 : f32
    %152 = vector.broadcast %cst_90 : f32 to vector<1x32xf32>
    %153 = arith.mulf %149, %152 : vector<1x32xf32>
    %154 = arith.mulf %151, %151 : vector<1x32xf32>
    %155 = arith.subf %153, %154 : vector<1x32xf32>
    %cst_91 = arith.constant 0.000000e+00 : f32
    %156 = vector.broadcast %cst_91 : f32 to vector<1x32xf32>
    %157 = arith.maximumf %155, %156 : vector<1x32xf32>
    %cst_92 = arith.constant 9.99999974E-6 : f32
    %158 = vector.broadcast %cst_92 : f32 to vector<1x32xf32>
    %159 = arith.addf %157, %158 : vector<1x32xf32>
    %160 = math.rsqrt %159 : vector<1x32xf32>
    %cst_93 = arith.constant dense<0.000000e+00> : vector<1x128xf32>
    %161 = tpu.matmul %151, %142, %cst_93 {dimension_numbers = #tpu.dot_dimension_numbers<[1], [0], [0], [1], [0, 0, 1, 1], [], []>} : vector<1x32xf32>, vector<32x128xf32>, vector<1x128xf32> -> vector<1x128xf32>
    %cst_94 = arith.constant dense<0.000000e+00> : vector<1x128xf32>
    %162 = tpu.matmul %160, %142, %cst_94 {dimension_numbers = #tpu.dot_dimension_numbers<[1], [0], [0], [1], [0, 0, 1, 1], [], []>} : vector<1x32xf32>, vector<32x128xf32>, vector<1x128xf32> -> vector<1x128xf32>
    %163 = vector.broadcast %161 : vector<1x128xf32> to vector<256x128xf32>
    %164 = arith.subf %138, %163 : vector<256x128xf32>
    %165 = arith.mulf %162, %139 : vector<1x128xf32>
    %166 = vector.broadcast %165 : vector<1x128xf32> to vector<256x128xf32>
    %167 = arith.mulf %164, %166 : vector<256x128xf32>
    %168 = vector.broadcast %140 : vector<1x128xf32> to vector<256x128xf32>
    %169 = arith.addf %167, %168 : vector<256x128xf32>
    %cst_95 = arith.constant 0.000000e+00 : f32
    %170 = vector.broadcast %cst_95 : f32 to vector<256x128xf32>
    %171 = arith.subf %170, %169 : vector<256x128xf32>
    %172 = math.exp %171 : vector<256x128xf32>
    %cst_96 = arith.constant 1.000000e+00 : f32
    %173 = vector.broadcast %cst_96 : f32 to vector<256x128xf32>
    %174 = arith.addf %173, %172 : vector<256x128xf32>
    %cst_97 = arith.constant 1.000000e+00 : f32
    %175 = vector.broadcast %cst_97 : f32 to vector<256x128xf32>
    %176 = arith.divf %175, %174 : vector<256x128xf32>
    %177 = arith.mulf %169, %176 : vector<256x128xf32>
    %178 = arith.truncf %177 : vector<256x128xf32> to vector<256x128xbf16>
    %c0_98 = arith.constant 0 : index
    %c0_99 = arith.constant 0 : index
    %179 = vector.load %arg14[%c0_98, %c0_99] : memref<1x128xf32, #tpu.memory_space<vmem>>, vector<1x128xf32>
    %cst_100 = arith.constant 0.000000e+00 : bf16
    %180 = vector.broadcast %cst_100 : bf16 to vector<24x128xbf16>
    %c0_101 = arith.constant 0 : index
    %c0_102 = arith.constant 0 : index
    %181 = vector.load %arg19[%c0_101, %c0_102] : memref<304x128xbf16, #tpu.memory_space<vmem>>, vector<24x128xbf16>
    tpu.vector_store %arg19[%c0_101, %c0_102], %180 {strides = array<i32>} : memref<304x128xbf16, #tpu.memory_space<vmem>>, vector<24x128xbf16>,
    %c280_103 = arith.constant 280 : index
    %c0_104 = arith.constant 0 : index
    %182 = vector.load %arg19[%c280_103, %c0_104] : memref<304x128xbf16, #tpu.memory_space<vmem>>, vector<24x128xbf16>
    tpu.vector_store %arg19[%c280_103, %c0_104], %180 {strides = array<i32>} : memref<304x128xbf16, #tpu.memory_space<vmem>>, vector<24x128xbf16>,
    %c24_105 = arith.constant 24 : index
    %c0_106 = arith.constant 0 : index
    %183 = vector.load %arg19[%c24_105, %c0_106] : memref<304x128xbf16, #tpu.memory_space<vmem>>, vector<256x128xbf16>
    tpu.vector_store %arg19[%c24_105, %c0_106], %178 {strides = array<i32>} : memref<304x128xbf16, #tpu.memory_space<vmem>>, vector<256x128xbf16>,
    %cst_107 = arith.constant 0.000000e+00 : f32
    %184 = vector.broadcast %cst_107 : f32 to vector<256x128xf32>
    %c7_108 = arith.constant 7 : index
    %c0_109 = arith.constant 0 : index
    %185 = vector.load %arg19[%c7_108, %c0_109] : memref<304x128xbf16, #tpu.memory_space<vmem>>, vector<256x128xbf16>
    %186 = vector.broadcast %24 : vector<256x1xbf16> to vector<256x128xbf16>
    %187 = arith.mulf %185, %186 : vector<256x128xbf16>
    %c0_110 = arith.constant 0 : index
    %c0_111 = arith.constant 0 : index
    %c0_112 = arith.constant 0 : index
    %188 = vector.load %arg13[%c0_110, %c0_111, %c0_112] : memref<9x128x128xbf16, #tpu.memory_space<vmem>>, vector<1x128x128xbf16>
    %189 = vector.shape_cast %188 : vector<1x128x128xbf16> to vector<128x128xbf16>
    %cst_113 = arith.constant dense<0.000000e+00> : vector<256x128xf32>
    %190 = tpu.matmul %187, %189, %cst_113 {dimension_numbers = #tpu.dot_dimension_numbers<[1], [0], [0], [1], [0, 0, 1, 1], [], []>} : vector<256x128xbf16>, vector<128x128xbf16>, vector<256x128xf32> -> vector<256x128xf32>
    %191 = arith.addf %184, %190 : vector<256x128xf32>
    %c8_114 = arith.constant 8 : index
    %c0_115 = arith.constant 0 : index
    %192 = vector.load %arg19[%c8_114, %c0_115] : memref<304x128xbf16, #tpu.memory_space<vmem>>, vector<256x128xbf16>
    %c1_116 = arith.constant 1 : index
    %c0_117 = arith.constant 0 : index
    %c0_118 = arith.constant 0 : index
    %193 = vector.load %arg13[%c1_116, %c0_117, %c0_118] : memref<9x128x128xbf16, #tpu.memory_space<vmem>>, vector<1x128x128xbf16>
    %194 = vector.shape_cast %193 : vector<1x128x128xbf16> to vector<128x128xbf16>
    %cst_119 = arith.constant dense<0.000000e+00> : vector<256x128xf32>
    %195 = tpu.matmul %192, %194, %cst_119 {dimension_numbers = #tpu.dot_dimension_numbers<[1], [0], [0], [1], [0, 0, 1, 1], [], []>} : vector<256x128xbf16>, vector<128x128xbf16>, vector<256x128xf32> -> vector<256x128xf32>
    %196 = arith.addf %191, %195 : vector<256x128xf32>
    %c9_120 = arith.constant 9 : index
    %c0_121 = arith.constant 0 : index
    %197 = vector.load %arg19[%c9_120, %c0_121] : memref<304x128xbf16, #tpu.memory_space<vmem>>, vector<256x128xbf16>
    %198 = vector.broadcast %29 : vector<256x1xbf16> to vector<256x128xbf16>
    %199 = arith.mulf %197, %198 : vector<256x128xbf16>
    %c2_122 = arith.constant 2 : index
    %c0_123 = arith.constant 0 : index
    %c0_124 = arith.constant 0 : index
    %200 = vector.load %arg13[%c2_122, %c0_123, %c0_124] : memref<9x128x128xbf16, #tpu.memory_space<vmem>>, vector<1x128x128xbf16>
    %201 = vector.shape_cast %200 : vector<1x128x128xbf16> to vector<128x128xbf16>
    %cst_125 = arith.constant dense<0.000000e+00> : vector<256x128xf32>
    %202 = tpu.matmul %199, %201, %cst_125 {dimension_numbers = #tpu.dot_dimension_numbers<[1], [0], [0], [1], [0, 0, 1, 1], [], []>} : vector<256x128xbf16>, vector<128x128xbf16>, vector<256x128xf32> -> vector<256x128xf32>
    %203 = arith.addf %196, %202 : vector<256x128xf32>
    %c23_126 = arith.constant 23 : index
    %c0_127 = arith.constant 0 : index
    %204 = vector.load %arg19[%c23_126, %c0_127] : memref<304x128xbf16, #tpu.memory_space<vmem>>, vector<256x128xbf16>
    %205 = vector.broadcast %24 : vector<256x1xbf16> to vector<256x128xbf16>
    %206 = arith.mulf %204, %205 : vector<256x128xbf16>
    %c3_128 = arith.constant 3 : index
    %c0_129 = arith.constant 0 : index
    %c0_130 = arith.constant 0 : index
    %207 = vector.load %arg13[%c3_128, %c0_129, %c0_130] : memref<9x128x128xbf16, #tpu.memory_space<vmem>>, vector<1x128x128xbf16>
    %208 = vector.shape_cast %207 : vector<1x128x128xbf16> to vector<128x128xbf16>
    %cst_131 = arith.constant dense<0.000000e+00> : vector<256x128xf32>
    %209 = tpu.matmul %206, %208, %cst_131 {dimension_numbers = #tpu.dot_dimension_numbers<[1], [0], [0], [1], [0, 0, 1, 1], [], []>} : vector<256x128xbf16>, vector<128x128xbf16>, vector<256x128xf32> -> vector<256x128xf32>
    %210 = arith.addf %203, %209 : vector<256x128xf32>
    %c24_132 = arith.constant 24 : index
    %c0_133 = arith.constant 0 : index
    %211 = vector.load %arg19[%c24_132, %c0_133] : memref<304x128xbf16, #tpu.memory_space<vmem>>, vector<256x128xbf16>
    %c4_134 = arith.constant 4 : index
    %c0_135 = arith.constant 0 : index
    %c0_136 = arith.constant 0 : index
    %212 = vector.load %arg13[%c4_134, %c0_135, %c0_136] : memref<9x128x128xbf16, #tpu.memory_space<vmem>>, vector<1x128x128xbf16>
    %213 = vector.shape_cast %212 : vector<1x128x128xbf16> to vector<128x128xbf16>
    %cst_137 = arith.constant dense<0.000000e+00> : vector<256x128xf32>
    %214 = tpu.matmul %211, %213, %cst_137 {dimension_numbers = #tpu.dot_dimension_numbers<[1], [0], [0], [1], [0, 0, 1, 1], [], []>} : vector<256x128xbf16>, vector<128x128xbf16>, vector<256x128xf32> -> vector<256x128xf32>
    %215 = arith.addf %210, %214 : vector<256x128xf32>
    %c25_138 = arith.constant 25 : index
    %c0_139 = arith.constant 0 : index
    %216 = vector.load %arg19[%c25_138, %c0_139] : memref<304x128xbf16, #tpu.memory_space<vmem>>, vector<256x128xbf16>
    %217 = vector.broadcast %29 : vector<256x1xbf16> to vector<256x128xbf16>
    %218 = arith.mulf %216, %217 : vector<256x128xbf16>
    %c5_140 = arith.constant 5 : index
    %c0_141 = arith.constant 0 : index
    %c0_142 = arith.constant 0 : index
    %219 = vector.load %arg13[%c5_140, %c0_141, %c0_142] : memref<9x128x128xbf16, #tpu.memory_space<vmem>>, vector<1x128x128xbf16>
    %220 = vector.shape_cast %219 : vector<1x128x128xbf16> to vector<128x128xbf16>
    %cst_143 = arith.constant dense<0.000000e+00> : vector<256x128xf32>
    %221 = tpu.matmul %218, %220, %cst_143 {dimension_numbers = #tpu.dot_dimension_numbers<[1], [0], [0], [1], [0, 0, 1, 1], [], []>} : vector<256x128xbf16>, vector<128x128xbf16>, vector<256x128xf32> -> vector<256x128xf32>
    %222 = arith.addf %215, %221 : vector<256x128xf32>
    %c39_144 = arith.constant 39 : index
    %c0_145 = arith.constant 0 : index
    %223 = vector.load %arg19[%c39_144, %c0_145] : memref<304x128xbf16, #tpu.memory_space<vmem>>, vector<256x128xbf16>
    %224 = vector.broadcast %24 : vector<256x1xbf16> to vector<256x128xbf16>
    %225 = arith.mulf %223, %224 : vector<256x128xbf16>
    %c6_146 = arith.constant 6 : index
    %c0_147 = arith.constant 0 : index
    %c0_148 = arith.constant 0 : index
    %226 = vector.load %arg13[%c6_146, %c0_147, %c0_148] : memref<9x128x128xbf16, #tpu.memory_space<vmem>>, vector<1x128x128xbf16>
    %227 = vector.shape_cast %226 : vector<1x128x128xbf16> to vector<128x128xbf16>
    %cst_149 = arith.constant dense<0.000000e+00> : vector<256x128xf32>
    %228 = tpu.matmul %225, %227, %cst_149 {dimension_numbers = #tpu.dot_dimension_numbers<[1], [0], [0], [1], [0, 0, 1, 1], [], []>} : vector<256x128xbf16>, vector<128x128xbf16>, vector<256x128xf32> -> vector<256x128xf32>
    %229 = arith.addf %222, %228 : vector<256x128xf32>
    %c40_150 = arith.constant 40 : index
    %c0_151 = arith.constant 0 : index
    %230 = vector.load %arg19[%c40_150, %c0_151] : memref<304x128xbf16, #tpu.memory_space<vmem>>, vector<256x128xbf16>
    %c7_152 = arith.constant 7 : index
    %c0_153 = arith.constant 0 : index
    %c0_154 = arith.constant 0 : index
    %231 = vector.load %arg13[%c7_152, %c0_153, %c0_154] : memref<9x128x128xbf16, #tpu.memory_space<vmem>>, vector<1x128x128xbf16>
    %232 = vector.shape_cast %231 : vector<1x128x128xbf16> to vector<128x128xbf16>
    %cst_155 = arith.constant dense<0.000000e+00> : vector<256x128xf32>
    %233 = tpu.matmul %230, %232, %cst_155 {dimension_numbers = #tpu.dot_dimension_numbers<[1], [0], [0], [1], [0, 0, 1, 1], [], []>} : vector<256x128xbf16>, vector<128x128xbf16>, vector<256x128xf32> -> vector<256x128xf32>
    %234 = arith.addf %229, %233 : vector<256x128xf32>
    %c41_156 = arith.constant 41 : index
    %c0_157 = arith.constant 0 : index
    %235 = vector.load %arg19[%c41_156, %c0_157] : memref<304x128xbf16, #tpu.memory_space<vmem>>, vector<256x128xbf16>
    %236 = vector.broadcast %29 : vector<256x1xbf16> to vector<256x128xbf16>
    %237 = arith.mulf %235, %236 : vector<256x128xbf16>
    %c8_158 = arith.constant 8 : index
    %c0_159 = arith.constant 0 : index
    %c0_160 = arith.constant 0 : index
    %238 = vector.load %arg13[%c8_158, %c0_159, %c0_160] : memref<9x128x128xbf16, #tpu.memory_space<vmem>>, vector<1x128x128xbf16>
    %239 = vector.shape_cast %238 : vector<1x128x128xbf16> to vector<128x128xbf16>
    %cst_161 = arith.constant dense<0.000000e+00> : vector<256x128xf32>
    %240 = tpu.matmul %237, %239, %cst_161 {dimension_numbers = #tpu.dot_dimension_numbers<[1], [0], [0], [1], [0, 0, 1, 1], [], []>} : vector<256x128xbf16>, vector<128x128xbf16>, vector<256x128xf32> -> vector<256x128xf32>
    %241 = arith.addf %234, %240 : vector<256x128xf32>
    %242 = vector.broadcast %179 : vector<1x128xf32> to vector<256x128xf32>
    %243 = arith.addf %241, %242 : vector<256x128xf32>
    %c0_162 = arith.constant 0 : index
    %c0_163 = arith.constant 0 : index
    %244 = vector.load %arg15[%c0_162, %c0_163] : memref<128x128xbf16, #tpu.memory_space<vmem>>, vector<128x128xbf16>
    %cst_164 = arith.constant dense<0.000000e+00> : vector<256x128xf32>
    %245 = tpu.matmul %1, %244, %cst_164 {dimension_numbers = #tpu.dot_dimension_numbers<[1], [0], [0], [1], [0, 0, 1, 1], [], []>} : vector<256x128xbf16>, vector<128x128xbf16>, vector<256x128xf32> -> vector<256x128xf32>
    %c0_165 = arith.constant 0 : index
    %c0_166 = arith.constant 0 : index
    %246 = vector.load %arg16[%c0_165, %c0_166] : memref<1x128xf32, #tpu.memory_space<vmem>>, vector<1x128xf32>
    %247 = vector.broadcast %246 : vector<1x128xf32> to vector<256x128xf32>
    %248 = arith.addf %245, %247 : vector<256x128xf32>
    %249 = arith.addf %248, %243 : vector<256x128xf32>
    %c0_167 = arith.constant 0 : index
    %c0_168 = arith.constant 0 : index
    %c0_169 = arith.constant 0 : index
    %250 = vector.load %arg17[%c0_167, %c0_168, %c0_169] : memref<1x256x128xf32, #tpu.memory_space<vmem>>, vector<1x256x128xf32>
    %251 = vector.shape_cast %250 : vector<1x256x128xf32> to vector<256x128xf32>
    %252 = vector.shape_cast %249 : vector<256x128xf32> to vector<1x256x128xf32>
    tpu.vector_store %arg17[%c0_167, %c0_168, %c0_169], %252 {strides = array<i32>} : memref<1x256x128xf32, #tpu.memory_space<vmem>>, vector<1x256x128xf32>,
    return
  }
  func.func @transform_0(%arg0: i32) -> (i32, i32, i32) {
    %c0_i32 = arith.constant 0 : i32
    %c0_i32_0 = arith.constant 0 : i32
    %c0_i32_1 = arith.constant 0 : i32
    return %arg0, %c0_i32, %c0_i32_0 : i32, i32, i32
  }
  func.func @transform_1(%arg0: i32) -> (i32, i32, i32) {
    %c0_i32 = arith.constant 0 : i32
    %c0_i32_0 = arith.constant 0 : i32
    %c0_i32_1 = arith.constant 0 : i32
    return %arg0, %c0_i32, %c0_i32_0 : i32, i32, i32
  }
  func.func @transform_2(%arg0: i32) -> (i32, i32) {
    %c0_i32 = arith.constant 0 : i32
    %c0_i32_0 = arith.constant 0 : i32
    %c0_i32_1 = arith.constant 0 : i32
    return %c0_i32, %c0_i32_0 : i32, i32
  }
  func.func @transform_3(%arg0: i32) -> (i32, i32) {
    %c0_i32 = arith.constant 0 : i32
    %c0_i32_0 = arith.constant 0 : i32
    %c0_i32_1 = arith.constant 0 : i32
    return %c0_i32, %c0_i32_0 : i32, i32
  }
  func.func @transform_4(%arg0: i32) -> (i32, i32) {
    %c0_i32 = arith.constant 0 : i32
    %c0_i32_0 = arith.constant 0 : i32
    %c0_i32_1 = arith.constant 0 : i32
    return %c0_i32, %c0_i32_0 : i32, i32
  }
  func.func @transform_5(%arg0: i32) -> (i32, i32) {
    %c0_i32 = arith.constant 0 : i32
    %c0_i32_0 = arith.constant 0 : i32
    %c0_i32_1 = arith.constant 0 : i32
    return %c0_i32, %c0_i32_0 : i32, i32
  }
  func.func @transform_6(%arg0: i32) -> (i32, i32, i32) {
    %c0_i32 = arith.constant 0 : i32
    %c0_i32_0 = arith.constant 0 : i32
    %c0_i32_1 = arith.constant 0 : i32
    %c0_i32_2 = arith.constant 0 : i32
    return %c0_i32, %c0_i32_0, %c0_i32_1 : i32, i32, i32
  }
  func.func @transform_7(%arg0: i32) -> (i32, i32) {
    %c0_i32 = arith.constant 0 : i32
    %c0_i32_0 = arith.constant 0 : i32
    %c0_i32_1 = arith.constant 0 : i32
    return %c0_i32, %c0_i32_0 : i32, i32
  }
  func.func @transform_8(%arg0: i32) -> (i32, i32) {
    %c0_i32 = arith.constant 0 : i32
    %c0_i32_0 = arith.constant 0 : i32
    %c0_i32_1 = arith.constant 0 : i32
    return %c0_i32, %c0_i32_0 : i32, i32
  }
  func.func @transform_9(%arg0: i32) -> (i32, i32) {
    %c0_i32 = arith.constant 0 : i32
    %c0_i32_0 = arith.constant 0 : i32
    %c0_i32_1 = arith.constant 0 : i32
    return %c0_i32, %c0_i32_0 : i32, i32
  }
  func.func @transform_10(%arg0: i32) -> (i32, i32) {
    %c0_i32 = arith.constant 0 : i32
    %c0_i32_0 = arith.constant 0 : i32
    %c0_i32_1 = arith.constant 0 : i32
    return %c0_i32, %c0_i32_0 : i32, i32
  }
  func.func @transform_11(%arg0: i32) -> (i32, i32) {
    %c0_i32 = arith.constant 0 : i32
    %c0_i32_0 = arith.constant 0 : i32
    %c0_i32_1 = arith.constant 0 : i32
    return %c0_i32, %c0_i32_0 : i32, i32
  }
  func.func @transform_12(%arg0: i32) -> (i32, i32, i32) {
    %c0_i32 = arith.constant 0 : i32
    %c0_i32_0 = arith.constant 0 : i32
    %c0_i32_1 = arith.constant 0 : i32
    %c0_i32_2 = arith.constant 0 : i32
    return %c0_i32, %c0_i32_0, %c0_i32_1 : i32, i32, i32
  }
  func.func @transform_13(%arg0: i32) -> (i32, i32) {
    %c0_i32 = arith.constant 0 : i32
    %c0_i32_0 = arith.constant 0 : i32
    %c0_i32_1 = arith.constant 0 : i32
    return %c0_i32, %c0_i32_0 : i32, i32
  }
  func.func @transform_14(%arg0: i32) -> (i32, i32) {
    %c0_i32 = arith.constant 0 : i32
    %c0_i32_0 = arith.constant 0 : i32
    %c0_i32_1 = arith.constant 0 : i32
    return %c0_i32, %c0_i32_0 : i32, i32
  }
  func.func @transform_15(%arg0: i32) -> (i32, i32) {
    %c0_i32 = arith.constant 0 : i32
    %c0_i32_0 = arith.constant 0 : i32
    %c0_i32_1 = arith.constant 0 : i32
    return %c0_i32, %c0_i32_0 : i32, i32
  }
  func.func @transform_16(%arg0: i32) -> (i32, i32, i32) {
    %c0_i32 = arith.constant 0 : i32
    %c0_i32_0 = arith.constant 0 : i32
    %c0_i32_1 = arith.constant 0 : i32
    return %arg0, %c0_i32, %c0_i32_0 : i32, i32, i32
  }
}

</mosaic_0001>

<bundles_post_ra>
// kernel: resnet_time_embed_forward.1
= control target key start
LH: loop header
LB: loop body
LE: loop exit
PB: predicated region body
PF: predicated region fallthrough
CT: control target
= control target key end

     0   :  { %s18437_s0 = inlined_call_operand.vmem [shape: bf16[2,256,128], index: 0, kind: input, shape index: {}]   ;;  %s18438_s1 = inlined_call_operand.vmem [shape: f32[2,1,128], index: 1, kind: input, shape index: {}]   ;;  %s18439_s2 = inlined_call_operand.vmem [shape: f32[1,128], index: 2, kind: input, shape index: {}]   ;;  %s18440_s3 = inlined_call_operand.vmem [shape: f32[1,128], index: 3, kind: input, shape index: {}]   ;;  %s18441_s4 = inlined_call_operand.vmem [shape: f32[128,32], index: 4, kind: input, shape index: {}]   ;;  %s18442_s5 = inlined_call_operand.vmem [shape: f32[32,128], index: 5, kind: input, shape index: {}]   ;;  %s18443_s6 = inlined_call_operand.vmem [shape: bf16[9,128,128], index: 6, kind: input, shape index: {}]   ;;  %s18444_s7 = inlined_call_operand.vmem [shape: f32[1,128], index: 7, kind: input, shape index: {}]   ;;  %s18445_s8 = inlined_call_operand.vmem [shape: f32[1,128], index: 8, kind: input, shape index: {}]   ;;  %s18446_s9 = inlined_call_operand.vmem [shape: f32[1,128], index: 9, kind: input, shape index: {}]   ;;  %s18447_s10 = inlined_call_operand.vmem [shape: f32[128,32], index: 10, kind: input, shape index: {}]   ;;  %s18448_s11 = inlined_call_operand.vmem [shape: f32[32,128], index: 11, kind: input, shape index: {}]   ;;  %s18449_s12 = inlined_call_operand.vmem [shape: bf16[9,128,128], index: 12, kind: input, shape index: {}]   ;;  %s18450_s13 = inlined_call_operand.vmem [shape: f32[1,128], index: 13, kind: input, shape index: {}]   ;;  %s18451_s14 = inlined_call_operand.vmem [shape: bf16[128,128], index: 14, kind: input, shape index: {}]   ;;  %s18452_s15 = inlined_call_operand.vmem [shape: f32[1,128], index: 15, kind: input, shape index: {}]   ;;  %s18453_s16 = inlined_call_operand.hbm [shape: f32[2,256,128], index: 16, kind: output, shape index: {}]  }
   0x1   :  { %18589 = sst [smem:[#allocation66_spill]] %s18437_s0 }
   0x2   :  { %21 = vsyncpa [#allocation5], 0 }
   0x3   :  { %23 = vsyncpa [#allocation5 + $0x1], 0  ;;  %s14663_s21 = smov 0   ;;  %s14665_s22 = smov 0  }
   0x4   :  { %s14667_s23 = smov 0   ;;  %s14669_s24 = smov 0  }
   0x5 LB: > { %18590 = sst [smem:[#allocation7_spill]] %s14564_s23  ;;  %s14684_s25 = sadd.s32 4294967295, %s14568_s24   ;;  %s14568_s24 = sphi %s14669_s24, %s18933_s24   ;;  %s14564_s23 = sphi %s14667_s23, %s18935_s23   ;;  %s14560_s22 = sphi %s14665_s22, %s18937_s22   ;;  %s14556_s21 = sphi %s14663_s21, %s18936_s21  }
   0x6   : > { %s11116_s26 = sadd.s32 4294967294, %s14568_s24   ;;  %s14688_s27 = sadd.s32 1, %s14568_s24  }
   0x7   : > { %18591 = sst [smem:[#allocation8_spill]] %s14688_s27  ;;  %s382_s28 = sadd.s32 1, %s14564_s23 }
   0x8   : > { %s379_s29 = ssub.s32 %s14568_s24, %s14688_s27  ;;  %p392_p0 = scmp.ne.s32.totalorder %s14564_s23, %s14560_s22 }
   0x9   : > { %p380_p1 = scmp.eq.s32.totalorder %s379_s29, 0  ;;  %p393_p2 = scmp.eq.s32.totalorder %s14684_s25, 1 }
   0xa   : > { %p398_p3 = scmp.ne.s32.totalorder %s14560_s22, %s14556_s21  ;;  %p399_p4 = scmp.eq.s32.totalorder %s11116_s26, 1 }
   0xb   : > { %s14699_s30 = scalar_select %p380_p1, %s14564_s23, %s382_s28  }
   0xc   : > { %p14701_p5 = por %p393_p2, %p392_p0  ;;  %p14705_p6 = por %p399_p4, %p398_p3 }
   0xd   : > { %18592 = sst [smem:[#allocation9_spill]] %s14699_s30  ;;  %p11119_p7 = scmp.ge.s32.totalorder %s14568_s24, 1 }
   0xe   : > { %s18594_s17 = scalar_select %p14705_p6, 1, 0 }
   0xf   : > { %p473_p8 = scmp.lt.s32.totalorder %s14568_s24, 3 }
  0x10   : > { %18595 = sst [smem:[#allocation10_spill]] %s18594_s17 }
  0x11   : > { %p474_p9 = pnand %p11119_p7, %p473_p8 }
  0x13   : > { %477 = sbr.rel (%p474_p9) target bundleno = 2828 (0xb0c), region = 84 }
  0x1a   : > { %v1242_v0 = vld [vmem:[%s18441_s4] sm:$0xff]  ;;  %v1243_v1 = vld [vmem:[%s18441_s4 + $0x8] sm:$0xff]  ;;  %v1244_v2 = vld [vmem:[%s18441_s4 + $0x10] sm:$0xff]  ;;  %v18458_v3 = vmov 0.0|0.0   ;;  %p526_p10 = scmp.lt.s32.totalorder %s14684_s25, 1  ;;  %vm14571_vm0 = vmmov 0  }
  0x1b   : > { %13236 = vmatprep.subr.bf16.mxu0 %v18458_v3  ;;  %v13237_v4 = vpack.c.bf16 %v1243_v1, %v1242_v0  ;;  %13260 = vmatprep.subr.bf16.mxu1 %v18458_v3  ;;  %v1245_v5 = vld [vmem:[%s18441_s4 + $0x18] sm:$0xff]  ;;  %v18460_v6 = vmov 0.0   ;;  %v1246_v8 = vld [vmem:[%s18441_s4 + $0x20] sm:$0xff]  ;;  %v1247_v9 = vld [vmem:[%s18441_s4 + $0x28] sm:$0xff]  ;;  %s18596_s27 = sld [smem:[#allocation66_spill]]  ;;  %vm1515_vm1 = vcmask 261120  }
  0x1c   : > { %12172 = vmatprep.mubr.msk.f32.mxu0 %vm14571_vm0, %v18460_v6  ;;  %12207 = vmatprep.mubr.msk.f32.mxu1 %vm14571_vm0, %v18460_v6  ;;  %v13240_v7 = vpack.c.bf16 %v1245_v5, %v1244_v2  ;;  %s14731_s18 = scalar_select %p526_p10, %s14684_s25, 1  ;;  %v13243_v10 = vpack.c.bf16 %v1247_v9, %v1246_v8  ;;  %v1248_v11 = vld [vmem:[%s18441_s4 + $0x30] sm:$0xff]  ;;  %v1249_v12 = vld [vmem:[%s18441_s4 + $0x38] sm:$0xff]  ;;  %v1250_v15 = vld [vmem:[%s18441_s4 + $0x40] sm:$0xff]  ;;  %vm2117_vm9 = vsmask.f32 3328 }
  0x1d   : > { %13238 = vmatpush3.bf16.msra.mxu0 %v13237_v4  ;;  %13262 = vmatpush3.bf16.msra.mxu1 %v13237_v4  ;;  %v13246_v14 = vpack.c.bf16 %v1249_v12, %v1248_v11  ;;  %v1251_v17 = vld [vmem:[%s18441_s4 + $0x48] sm:$0xff]  ;;  %v1252_v21 = vld [vmem:[%s18441_s4 + $0x50] sm:$0xff]  ;;  %v1253_v22 = vld [vmem:[%s18441_s4 + $0x58] sm:$0xff]  ;;  %vm2604_vm11 = vsmask.f32 4352  ;;  %s523_s30 = sand.u32 1, %s14560_s22  }
  0x1e   : > { %13239 = vmatprep.subr.bf16.mxu0 %v18458_v3  ;;  %13263 = vmatprep.subr.bf16.mxu1 %v18458_v3  ;;  %s11594_s26 = sshll.u32 %s14731_s18, 7  ;;  %v13249_v24 = vpack.c.bf16 %v1251_v17, %v1250_v15  ;;  %v1254_v28 = vld [vmem:[%s18441_s4 + $0x60] sm:$0xff]  ;;  %v1255_v29 = vld [vmem:[%s18441_s4 + $0x68] sm:$0xff]  ;;  %v13252_v32 = vpack.c.bf16 %v1253_v22, %v1252_v21  ;;  %v1256_v36 = vld [vmem:[%s18441_s4 + $0x70] sm:$0xff]  ;;  %s14575_s20 = smov [#allocation4]  }
  0x1f   : > { %v1257_v37 = vld [vmem:[%s18441_s4 + $0x78] sm:$0xff]  ;;  %v13255_v42 = vpack.c.bf16 %v1255_v29, %v1254_v28 }
  0x20   : > { %v13258_v51 = vpack.c.bf16 %v1257_v37, %v1256_v36 }
  0x21   : > { %s14745_s17 = scalar_lea.vmem %s18596_s27, %s11594_s26  ;;  %13241 = vmatpush3.bf16.msra.mxu0 %v13240_v7  ;;  %13265 = vmatpush3.bf16.msra.mxu1 %v13240_v7  ;;  %s533_s27 = scalar_lea.vmem %s18438_s1, %s14731_s18 }
  0x22   : > { %13242 = vmatprep.subr.bf16.mxu0 %v18458_v3  ;;  %13266 = vmatprep.subr.bf16.mxu1 %v18458_v3  ;;  %v535_v13 = vld [vmem:[%s14745_s17] sm:$0xff]   ;;  %v537_v16 = vld [vmem:[%s14745_s17 + $0x8] sm:$0xff]   ;;  %v539_v20 = vld [vmem:[%s14745_s17 + $0x10] sm:$0xff]   ;;  %s11595_s26 = sshll.u32 %s14684_s25, 12  ;;  %s18396_s25 = scalar_lea.sflag [#allocation5], %s523_s30 }
  0x23   : > { %v14765_v18 = vunpack.c.l.bf16 %v535_v13  ;;  %v14767_v19 = vunpack.c.h.bf16 %v535_v13  ;;  %v14776_v23 = vunpack.c.l.bf16 %v537_v16  ;;  %v14780_v25 = vunpack.c.h.bf16 %v537_v16  ;;  %v541_v27 = vld [vmem:[%s14745_s17 + $0x18] sm:$0xff]   ;;  %v543_v35 = vld [vmem:[%s14745_s17 + $0x20] sm:$0xff]   ;;  %v545_v46 = vld [vmem:[%s14745_s17 + $0x28] sm:$0xff]   ;;  %s18387_s23 = scalar_lea.hbm %s18453_s16, %s11595_s26 }
  0x24   : > { %v14791_v30 = vunpack.c.l.bf16 %v539_v20  ;;  %v14796_v33 = vunpack.c.h.bf16 %v539_v20  ;;  %v14806_v38 = vunpack.c.l.bf16 %v541_v27  ;;  %v14815_v43 = vunpack.c.h.bf16 %v541_v27  ;;  %v547_v56 = vld [vmem:[%s14745_s17 + $0x30] sm:$0xff]   ;;  %v549_v1 = vld [vmem:[%s14745_s17 + $0x38] sm:$0xff]   ;;  %v551_v12 = vld [vmem:[%s14745_s17 + $0x40] sm:$0xff]  }
  0x25   : > { %13244 = vmatpush3.bf16.msra.mxu0 %v13243_v10  ;;  %13268 = vmatpush3.bf16.msra.mxu1 %v13243_v10  ;;  %v1262_v26 = vadd.f32 %v14767_v19, %v14765_v18  ;;  %v1299_v40 = vmul.f32 %v14765_v18, %v14765_v18  ;;  %v1300_v41 = vmul.f32 %v14767_v19, %v14767_v19  ;;  %v14821_v47 = vunpack.c.l.bf16 %v543_v35  ;;  %v555_v36 = vld [vmem:[%s14745_s17 + $0x50] sm:$0xff]  }
  0x26   : > { %13245 = vmatprep.subr.bf16.mxu0 %v18458_v3  ;;  %13269 = vmatprep.subr.bf16.mxu1 %v18458_v3  ;;  %v1301_v45 = vmul.f32 %v14776_v23, %v14776_v23  ;;  %v1302_v49 = vmul.f32 %v14780_v25, %v14780_v25  ;;  %v14828_v52 = vunpack.c.h.bf16 %v543_v35  ;;  %v1303_v54 = vmul.f32 %v14791_v30, %v14791_v30 }
  0x27   : > { %v1263_v31 = vadd.f32 %v1262_v26, %v14776_v23  ;;  %v1331_v50 = vadd.f32 %v1300_v41, %v1299_v40  ;;  %v14834_v57 = vunpack.c.l.bf16 %v545_v46  ;;  %v1304_v59 = vmul.f32 %v14796_v33, %v14796_v33 }
  0x28   : > { %v14839_v61 = vunpack.c.h.bf16 %v545_v46  ;;  %v1305_v63 = vmul.f32 %v14806_v38, %v14806_v38  ;;  %v14847_v2 = vunpack.c.l.bf16 %v547_v56  ;;  %v1306_v5 = vmul.f32 %v14815_v43, %v14815_v43 }
  0x29   : > { %13247 = vmatpush3.bf16.msra.mxu0 %v13246_v14  ;;  %13271 = vmatpush3.bf16.msra.mxu1 %v13246_v14  ;;  %v1264_v34 = vadd.f32 %v1263_v31, %v14780_v25  ;;  %v1332_v55 = vadd.f32 %v1331_v50, %v1301_v45  ;;  %v14852_v8 = vunpack.c.h.bf16 %v547_v56  ;;  %v1307_v10 = vmul.f32 %v14821_v47, %v14821_v47 }
  0x2a   : > { %13248 = vmatprep.subr.bf16.mxu0 %v18458_v3  ;;  %13272 = vmatprep.subr.bf16.mxu1 %v18458_v3  ;;  %v14858_v13 = vunpack.c.l.bf16 %v549_v1  ;;  %v1308_v15 = vmul.f32 %v14828_v52, %v14828_v52  ;;  %v14863_v17 = vunpack.c.h.bf16 %v549_v1  ;;  %v1309_v21 = vmul.f32 %v14834_v57, %v14834_v57 }
  0x2b   : > { %v1265_v39 = vadd.f32 %v1264_v34, %v14791_v30  ;;  %v1333_v60 = vadd.f32 %v1332_v55, %v1302_v49  ;;  %v14869_v26 = vunpack.c.l.bf16 %v551_v12  ;;  %v1310_v28 = vmul.f32 %v14839_v61, %v14839_v61 }
  0x2c   : > { %v14874_v31 = vunpack.c.h.bf16 %v551_v12  ;;  %v1311_v34 = vmul.f32 %v14847_v2, %v14847_v2  ;;  %v1312_v40 = vmul.f32 %v14852_v8, %v14852_v8  ;;  %v1313_v45 = vmul.f32 %v14858_v13, %v14858_v13 }
  0x2d   : > { %13250 = vmatpush3.bf16.msra.mxu0 %v13249_v24  ;;  %13274 = vmatpush3.bf16.msra.mxu1 %v13249_v24  ;;  %v1266_v44 = vadd.f32 %v1265_v39, %v14796_v33  ;;  %v1334_v0 = vadd.f32 %v1333_v60, %v1303_v54  ;;  %v553_v24 = vld [vmem:[%s14745_s17 + $0x48] sm:$0xff]   ;;  %v14891_v49 = vunpack.c.l.bf16 %v555_v36  ;;  %v14896_v54 = vunpack.c.h.bf16 %v555_v36 }
  0x2e   : > { %13251 = vmatprep.subr.bf16.mxu0 %v18458_v3  ;;  %13275 = vmatprep.subr.bf16.mxu1 %v18458_v3  ;;  %v14880_v37 = vunpack.c.l.bf16 %v553_v24  ;;  %v1315_v56 = vmul.f32 %v14869_v26, %v14869_v26 }
  0x2f   : > { %v1267_v48 = vadd.f32 %v1266_v44, %v14806_v38  ;;  %v1335_v7 = vadd.f32 %v1334_v0, %v1304_v59  ;;  %v559_v59 = vld [vmem:[%s14745_s17 + $0x60] sm:$0xff]  }
  0x31   : > { %13253 = vmatpush3.bf16.msra.mxu0 %v13252_v32  ;;  %13277 = vmatpush3.bf16.msra.mxu1 %v13252_v32  ;;  %v1268_v53 = vadd.f32 %v1267_v48, %v14815_v43  ;;  %v1336_v11 = vadd.f32 %v1335_v7, %v1305_v63  ;;  %v557_v48 = vld [vmem:[%s14745_s17 + $0x58] sm:$0xff]   ;;  %v1316_v63 = vmul.f32 %v14874_v31, %v14874_v31 }
  0x32   : > { %13254 = vmatprep.subr.bf16.mxu0 %v18458_v3  ;;  %13278 = vmatprep.subr.bf16.mxu1 %v18458_v3  ;;  %v14902_v60 = vunpack.c.l.bf16 %v557_v48  ;;  %v14907_v1 = vunpack.c.h.bf16 %v557_v48 }
  0x33   : > { %v1269_v58 = vadd.f32 %v1268_v53, %v14821_v47  ;;  %v1337_v16 = vadd.f32 %v1336_v11, %v1306_v5  ;;  %v1317_v5 = vmul.f32 %v14880_v37, %v14880_v37 }
  0x35   : > { %13256 = vmatpush3.bf16.msra.mxu0 %v13255_v42  ;;  %13280 = vmatpush3.bf16.msra.mxu1 %v13255_v42  ;;  %v1270_v62 = vadd.f32 %v1269_v58, %v14828_v52  ;;  %v1338_v22 = vadd.f32 %v1337_v16, %v1307_v10  ;;  %v14885_v42 = vunpack.c.h.bf16 %v553_v24  ;;  %v14913_v10 = vunpack.c.l.bf16 %v559_v59 }
  0x36   : > { %13257 = vmatprep.subr.bf16.mxu0 %v18458_v3  ;;  %13281 = vmatprep.subr.bf16.mxu1 %v18458_v3 }
  0x37   : > { %v1271_v4 = vadd.f32 %v1270_v62, %v14834_v57  ;;  %v1339_v29 = vadd.f32 %v1338_v22, %v1308_v15  ;;  %v1318_v12 = vmul.f32 %v14885_v42, %v14885_v42  ;;  %v14918_v15 = vunpack.c.h.bf16 %v559_v59  ;;  %v563_v22 = vld [vmem:[%s14745_s17 + $0x70] sm:$0xff]  }
  0x39   : > { %13259 = vmatpush3.bf16.msra.mxu0 %v13258_v51  ;;  %13283 = vmatpush3.bf16.msra.mxu1 %v13258_v51  ;;  %v1272_v9 = vadd.f32 %v1271_v4, %v14839_v61  ;;  %v1340_v35 = vadd.f32 %v1339_v29, %v1309_v21  ;;  %v1314_v51 = vmul.f32 %v14863_v17, %v14863_v17 }
  0x3a   : > { %13284 = vmatprep.subr.bf16.mxu0 %v18458_v3  ;;  %13296 = vmatprep.subr.bf16.mxu1 %v18458_v3 }
  0x3b   : > { %v1273_v14 = vadd.f32 %v1272_v9, %v14847_v2  ;;  %v1341_v41 = vadd.f32 %v1340_v35, %v1310_v28  ;;  %v561_v9 = vld [vmem:[%s14745_s17 + $0x68] sm:$0xff]   ;;  %v1320_v28 = vmul.f32 %v14896_v54, %v14896_v54  ;;  %v1321_v35 = vmul.f32 %v14902_v60, %v14902_v60 }
  0x3c   : > { %v14924_v24 = vunpack.c.l.bf16 %v561_v9 }
  0x3d   : > { %v1274_v20 = vadd.f32 %v1273_v14, %v14852_v8  ;;  %v1342_v46 = vadd.f32 %v1341_v41, %v1311_v34 }
  0x3f   : > { %v1275_v27 = vadd.f32 %v1274_v20, %v14858_v13  ;;  %v1343_v53 = vadd.f32 %v1342_v46, %v1312_v40  ;;  %v1319_v20 = vmul.f32 %v14891_v49, %v14891_v49  ;;  %v14935_v40 = vunpack.c.l.bf16 %v563_v22 }
  0x40   : > { %v14940_v46 = vunpack.c.h.bf16 %v563_v22 }
  0x41   : > { %v1276_v32 = vadd.f32 %v1275_v27, %v14863_v17  ;;  %v1344_v58 = vadd.f32 %v1343_v53, %v1313_v45 }
  0x43   : > { %v1277_v39 = vadd.f32 %v1276_v32, %v14869_v26  ;;  %v1345_v0 = vadd.f32 %v1344_v58, %v1314_v51  ;;  %v14929_v32 = vunpack.c.h.bf16 %v561_v9 }
  0x45   : > { %v1278_v44 = vadd.f32 %v1277_v39, %v14874_v31  ;;  %v1346_v7 = vadd.f32 %v1345_v0, %v1315_v56  ;;  %v565_v39 = vld [vmem:[%s14745_s17 + $0x78] sm:$0xff]   ;;  %v1324_v56 = vmul.f32 %v14918_v15, %v14918_v15 }
  0x46   : > { %v14945_v53 = vunpack.c.l.bf16 %v565_v39  ;;  %v14950_v59 = vunpack.c.h.bf16 %v565_v39 }
  0x47   : > { %v1279_v50 = vadd.f32 %v1278_v44, %v14880_v37  ;;  %v1347_v14 = vadd.f32 %v1346_v7, %v1316_v63  ;;  %v1322_v44 = vmul.f32 %v14907_v1, %v14907_v1  ;;  %v1325_v63 = vmul.f32 %v14924_v24, %v14924_v24 }
  0x48   : > { %v1329_v22 = vmul.f32 %v14945_v53, %v14945_v53 }
  0x49   : > { %v1280_v55 = vadd.f32 %v1279_v50, %v14885_v42  ;;  %v1348_v21 = vadd.f32 %v1347_v14, %v1317_v5  ;;  %v1323_v50 = vmul.f32 %v14913_v10, %v14913_v10  ;;  %v1326_v5 = vmul.f32 %v14929_v32, %v14929_v32 }
  0x4b   : > { %v1281_v62 = vadd.f32 %v1280_v55, %v14891_v49  ;;  %v1349_v29 = vadd.f32 %v1348_v21, %v1318_v12 }
  0x4d   : > { %v1282_v4 = vadd.f32 %v1281_v62, %v14896_v54  ;;  %v1350_v36 = vadd.f32 %v1349_v29, %v1319_v20  ;;  %v1330_v29 = vmul.f32 %v14950_v59, %v14950_v59 }
  0x4f   : > { %v1283_v11 = vadd.f32 %v1282_v4, %v14902_v60  ;;  %v1351_v45 = vadd.f32 %v1350_v36, %v1320_v28  ;;  %v1259_v36 = vld [vmem:[%s18442_s5 + $0x8] sm:$0xff] }
  0x51   : > { %v1284_v16 = vadd.f32 %v1283_v11, %v14907_v1  ;;  %v1352_v51 = vadd.f32 %v1351_v45, %v1321_v35  ;;  %v1327_v11 = vmul.f32 %v14935_v40, %v14935_v40  ;;  %v1258_v35 = vld [vmem:[%s18442_s5] sm:$0xff] }
  0x53   : > { %v1285_v27 = vadd.f32 %v1284_v16, %v14913_v10  ;;  %v1353_v58 = vadd.f32 %v1352_v51, %v1322_v44  ;;  %v1328_v16 = vmul.f32 %v14940_v46, %v14940_v46 }
  0x55   : > { %v1286_v34 = vadd.f32 %v1285_v27, %v14918_v15  ;;  %v1354_v0 = vadd.f32 %v1353_v58, %v1323_v50 }
  0x57   : > { %v1287_v41 = vadd.f32 %v1286_v34, %v14924_v24  ;;  %v1355_v7 = vadd.f32 %v1354_v0, %v1324_v56  ;;  %v1260_v0 = vld [vmem:[%s18442_s5 + $0x10] sm:$0xff] }
  0x59   : > { %v1288_v48 = vadd.f32 %v1287_v41, %v14929_v32  ;;  %v1356_v12 = vadd.f32 %v1355_v7, %v1325_v63 }
  0x5b   : > { %v1289_v55 = vadd.f32 %v1288_v48, %v14935_v40  ;;  %v1357_v20 = vadd.f32 %v1356_v12, %v1326_v5  ;;  %v13285_v48 = vpack.c.bf16 %v1259_v36, %v1258_v35  ;;  %v14012_v35 = vld [vmem:[%s18443_s6 + $0x50] sm:$0xff]   ;;  %v14013_v36 = vld [vmem:[%s18443_s6 + $0x58] sm:$0xff]  }
  0x5d   : > { %v1290_v62 = vadd.f32 %v1289_v55, %v14940_v46  ;;  %v1358_v27 = vadd.f32 %v1357_v20, %v1327_v11 }
  0x5f   : > { %v1291_v4 = vadd.f32 %v1290_v62, %v14945_v53  ;;  %v1359_v34 = vadd.f32 %v1358_v27, %v1328_v16 }
  0x61   : > { %v1292_v9 = vadd.f32 %v1291_v4, %v14950_v59  ;;  %v1360_v41 = vadd.f32 %v1359_v34, %v1329_v22  ;;  %v1261_v4 = vld [vmem:[%s18442_s5 + $0x18] sm:$0xff]  ;;  %v14011_v34 = vld [vmem:[%s18443_s6 + $0x48] sm:$0xff]  }
  0x62   : > { %v13288_v5 = vpack.c.bf16 %v1261_v4, %v1260_v0  ;;  %v14018_v0 = vld [vmem:[%s18443_s6] sm:$0xff]  }
  0x63   : > { %v1293_v14 = vrot.slane %v1292_v9, 4  ;;  %v1361_v45 = vadd.f32 %v1360_v41, %v1330_v29  ;;  %v14010_v29 = vld [vmem:[%s18443_s6 + $0x40] sm:$0xff]   ;;  %v14015_v41 = vld [vmem:[%s18443_s6 + $0x68] sm:$0xff]  }
  0x65   : > { %v1294_v21 = vadd.f32 %v1293_v14, %v1292_v9  ;;  %v1362_v51 = vrot.slane %v1361_v45, 4 }
  0x67   : > { %v1295_v28 = vrot.slane %v1294_v21, 2  ;;  %v1363_v55 = vadd.f32 %v1362_v51, %v1361_v45  ;;  %v14017_v45 = vld [vmem:[%s18443_s6 + $0x78] sm:$0xff]  }
  0x69   : > { %v1296_v39 = vadd.f32 %v1295_v28, %v1294_v21  ;;  %v1364_v56 = vrot.slane %v1363_v55, 2 }
  0x6b   : > { %v1297_v44 = vrot.slane %v1296_v39, 1  ;;  %v1365_v58 = vadd.f32 %v1364_v56, %v1363_v55 }
  0x6d   : > { %v1298_v50 = vadd.f32 %v1297_v44, %v1296_v39  ;;  %v1366_v62 = vrot.slane %v1365_v58, 1  ;;  %v14014_v39 = vld [vmem:[%s18443_s6 + $0x60] sm:$0xff]   ;;  %v14016_v44 = vld [vmem:[%s18443_s6 + $0x70] sm:$0xff]  }
  0x6f   : > { %12173 = vmatmul.mubr.f32.vlgmr.msra.gmra.mrb[0].mxu0 %v1298_v50  ;;  %v1367_v63 = vadd.f32 %v1366_v62, %v1365_v58  ;;  %v599_v50 = vlaneseq }
  0x70   : > { %13286 = vmatpush3.bf16.msra.mxu0 %v13285_v48  ;;  %12218 = vmatprep.mubr.msk.f32.mxu0 %vm14571_vm0, %v18460_v6 }
  0x71   : > { %13287 = vmatprep.subr.bf16.mxu0 %v18458_v3  ;;  %12208 = vmatmul.mubr.f32.vlgmr.msra.gmra.mrb[0].mxu1 %v1367_v63  ;;  %v15014_v51 = vshrl.u32 %v599_v50, 7 }
  0x72   : > { %12696 = vmatprep.mubr.msk.f32.mxu1 %vm14571_vm0, %v18460_v6 }
  0x73   : > { %18597 = vst [vmem:[#allocation11_spill] sm:$0xff] %v15014_v51  ;;  %v602_v55 = vadd.s32 16, %v15014_v51  ;;  %v603_v56 = vadd.s32 24, %v15014_v51  ;;  %v604_v58 = vadd.s32 32, %v15014_v51  ;;  %v601_v62 = vadd.s32 8, %v15014_v51 }
  0x74   : > { %13289 = vmatpush3.bf16.msra.mxu0 %v13288_v5  ;;  %v605_v63 = vadd.s32 40, %v15014_v51 }
  0x75   : > { %13290 = vmatprep.subr.bf16.mxu0 %v18458_v3  ;;  %v650_v4 = vand.u32 15, %v602_v55 }
  0x77   : > { %vm1018_vm2 = vcmp.ne.s32.totalorder %v650_v4, 0 }
 0x142   : > { %v1434_v7 = vpop.f32.mrb[0].mxu0 }
 0x143   : > { %v1508_v9 = vmul.f32 0.00390625, %v1434_v7  ;;  %v12174_v11 = vpop.f32.mrb[1].mxu0  ;;  %v664_v7 = vand.u32 15, %v604_v58 }
 0x144   : > { %v1504_v14 = vpop.f32.mrb[0].mxu1  ;;  %v671_v11 = vand.u32 15, %v605_v63 }
 0x145   : > { %12219 = vmatmul.mubr.msk.f32.vlgmr.msra.gmra.mrb[2].mxu0 %vm1515_vm1, %v1508_v9  ;;  %v1510_v12 = vmul.f32 %v1508_v9, %v1508_v9  ;;  %v1509_v16 = vmul.f32 0.00390625, %v1504_v14  ;;  %v12209_v20 = vpop.f32.mrb[1].mxu1  ;;  %v643_v9 = vand.u32 15, %v601_v62  ;;  %vm1020_vm3 = vcmp.ne.s32.totalorder %v664_v7, 0 }
 0x146   : > { %13292 = vmatpush3.bf16.msra.mxu0 %v13285_v48  ;;  %12229 = vmatprep.mubr.msk.f32.mxu0 %vm14571_vm0, %v18460_v6  ;;  %v14573_v48 = vmov 0   ;;  %vm1133_vm6 = vcmp.ne.s32.totalorder %v671_v11, 15  ;;  %v11125_v14 = vsel %vm1020_vm3, 1.0, %v18460_v6  ;;  %vm2034_vm3 = vcmask 1043456  }
 0x147   : > { %13293 = vmatprep.subr.bf16.mxu0 %v18458_v3  ;;  %v1511_v21 = vsub.f32 %v1509_v16, %v1510_v12  ;;  %2014 = vst [vmem:[#allocation2] sm:$0xff] %v14573_v48  ;;  %2015 = vst [vmem:[#allocation2 + $0x8] sm:$0xf] %v14573_v48  ;;  %vm1129_vm5 = vcmp.ne.s32.totalorder %v643_v9, 15  ;;  %v11124_v12 = vsel %vm1018_vm2, 1.0, %v18460_v6  ;;  %v610_v9 = vadd.s32 80, %v15014_v51 }
 0x148   : > { %2016 = vst [vmem:[#allocation2 + $0x88] sm:$0xf0] %v14573_v48  ;;  %2017 = vst [vmem:[#allocation2 + $0x90] sm:$0xff] %v14573_v48  ;;  %v11139_v20 = vsel %vm1129_vm5, 1.0, %v18460_v6 }
 0x149   : > { %v1512_v22 = vmax.f32 %v1511_v21, 0.0  ;;  %6894 = vst [vmem:[#allocation3] sm:$0xff] %v14573_v48  ;;  %6895 = vst [vmem:[#allocation3 + $0x8] sm:$0xf] %v14573_v48  ;;  %v11141_v21 = vsel %vm1133_vm6, 1.0, %v18460_v6 }
 0x14a   : > { %13295 = vmatpush3.bf16.msra.mxu0 %v13288_v5  ;;  %6896 = vst [vmem:[#allocation3 + $0x88] sm:$0xf0] %v14573_v48  ;;  %6897 = vst [vmem:[#allocation3 + $0x90] sm:$0xff] %v14573_v48  ;;  %v657_v5 = vand.u32 15, %v603_v56 }
 0x14b   : > { %v1513_v27 = vadd.f32 1e-05, %v1512_v22  ;;  %12232 = vmatprep.subr.bf16.mxu0 %v14010_v29  ;;  %v18463_v22 = vmov 1.0  }
 0x14c   : > { %vm1131_vm4 = vcmp.ne.s32.totalorder %v657_v5, 15 }
 0x14d   : > { %14194 = vrsqrt.f32 %v1513_v27  ;;  %v11140_v16 = vsel %vm1131_vm4, 1.0, %v18460_v6  ;;  %v1113_v27 = vpack.c.bf16 %v18463_v22, %v11124_v12 }
 0x14f   : > { %v2130_v50 = vshll.u32 %v1113_v27, 16 }
 0x151   : > { %v2132_v12 = vrot.slane %v2130_v50, 5 }
 0x157   : > { %v14195_v28 = vpop.eup %14194 }
 0x158   : > { %12230 = vmatmul.mubr.msk.f32.vlgmr.msra.gmra.mrb[4].mxu0 %vm1515_vm1, %v14195_v28  ;;  %v606_v28 = vadd.s32 48, %v15014_v51 }
 0x159   : > { %12233 = vmatpush3.bf16.msra.mxu0 %v14010_v29  ;;  %v1114_v29 = vpack.c.bf16 %v18463_v22, %v11125_v14 }
 0x15a   : > { %12234 = vmatprep.subr.bf16.mxu0 %v14011_v34  ;;  %v678_v48 = vand.u32 15, %v606_v28 }
 0x15b   : > { %v2136_v55 = vshrl.u32 %v1114_v29, 16  ;;  %v2139_v56 = vshll.u32 %v1114_v29, 16 }
 0x15c   : > { %vm1022_vm7 = vcmp.ne.s32.totalorder %v678_v48, 0 }
 0x15d   : > { %12235 = vmatpush3.bf16.msra.mxu0 %v14011_v34  ;;  %v1225_v34 = vpack.c.bf16 %v11140_v16, %v18463_v22  ;;  %v2138_v14 = vrot.slane %v2136_v55, 4  ;;  %v2141_v16 = vrot.slane %v2139_v56, 5  ;;  %v11126_v3 = vsel %vm1022_vm7, 1.0, %v18460_v6 }
 0x15e   : > { %12236 = vmatprep.subr.bf16.mxu0 %v14012_v35  ;;  %v1115_v50 = vpack.c.bf16 %v18463_v22, %v11126_v3 }
 0x15f   : > { %v2992_v58 = vshrl.u32 %v1225_v34, 16  ;;  %v2995_v63 = vshll.u32 %v1225_v34, 16  ;;  %v706_v34 = vand.u32 15, %v610_v9  ;;  %v15045_v48 = vor.u32 %v2141_v16, %v2138_v14 }
 0x161   : > { %12237 = vmatpush3.bf16.msra.mxu0 %v14012_v35  ;;  %v1224_v35 = vpack.c.bf16 %v11139_v20, %v18463_v22  ;;  %v2994_v20 = vrot.slane %v2992_v58, 3  ;;  %v2997_v28 = vrot.slane %v2995_v63, 4  ;;  %vm1026_vm10 = vcmp.ne.s32.totalorder %v706_v34, 0  ;;  %v15055_v63 = vld [vmem:[#allocation2] sm:$0xf0] }
 0x162   : > { %12238 = vmatprep.subr.bf16.mxu0 %v14013_v36  ;;  %18603 = vst [vmem:[#allocation17_spill] sm:$0xff] %v15055_v63  ;;  %v11128_v14 = vsel %vm1026_vm10, 1.0, %v18460_v6 }
 0x163   : > { %v2984_v62 = vshrl.u32 %v1224_v35, 16  ;;  %v2987_v5 = vshll.u32 %v1224_v35, 16  ;;  %v15039_v35 = vsub.s32 0, %v15014_v51  ;;  %v15051_v58 = vor.u32 %v2997_v28, %v2994_v20 }
 0x164   : > { %v15082_v28 = vadd.s32 240, %v15014_v51 }
 0x165   : > { %12239 = vmatpush3.bf16.msra.mxu0 %v14013_v36  ;;  %v1226_v36 = vpack.c.bf16 %v11141_v21, %v18463_v22  ;;  %v2986_v21 = vrot.slane %v2984_v62, 3  ;;  %v2989_v29 = vrot.slane %v2987_v5, 4  ;;  %18598 = vst [vmem:[#allocation12_spill] sm:$0xff] %v15039_v35  ;;  %18601 = vst [vmem:[#allocation15_spill] sm:$0xff] %v15051_v58 }
 0x166   : > { %12240 = vmatprep.subr.bf16.mxu0 %v14014_v39  ;;  %18607 = vst [vmem:[#allocation21_spill] sm:$0xff] %v15082_v28 }
 0x167   : > { %v3004_v4 = vshll.u32 %v1226_v36, 16  ;;  %v15049_v56 = vor.u32 %v2989_v29, %v2986_v21 }
 0x169   : > { %12241 = vmatpush3.bf16.msra.mxu0 %v14014_v39  ;;  %18600 = vst [vmem:[#allocation14_spill] sm:$0xff] %v15049_v56  ;;  %v15069_v20 = vmul.bf16 %v15049_v56, %v15055_v63 }
 0x16a   : > { %12242 = vmatprep.subr.bf16.mxu0 %v14015_v41 }
 0x16b   : > { %18604 = vst [vmem:[#allocation18_spill] sm:$0xff] %v15069_v20 }
 0x16d   : > { %12243 = vmatpush3.bf16.msra.mxu0 %v14015_v41  ;;  %v608_v41 = vadd.s32 64, %v15014_v51 }
 0x16e   : > { %12244 = vmatprep.subr.bf16.mxu0 %v14016_v44 }
 0x16f   : > { %v692_v7 = vand.u32 15, %v608_v41  ;;  %v612_v41 = vadd.s32 96, %v15014_v51 }
 0x171   : > { %12245 = vmatpush3.bf16.msra.mxu0 %v14016_v44  ;;  %vm1024_vm8 = vcmp.ne.s32.totalorder %v692_v7, 0  ;;  %v720_v3 = vand.u32 15, %v612_v41 }
 0x172   : > { %12246 = vmatprep.subr.bf16.mxu0 %v14017_v45  ;;  %v11127_v55 = vsel %vm1024_vm8, 1.0, %v18460_v6 }
 0x173   : > { %v1116_v5 = vpack.c.bf16 %v18463_v22, %v11127_v55  ;;  %vm15087_vm12 = vcmp.ne.s32.totalorder %v720_v3, 0 }
 0x175   : > { %12247 = vmatpush3.bf16.msra.mxu0 %v14017_v45  ;;  %v2127_v45 = vshrl.u32 %v1113_v27, 16  ;;  %v2154_v34 = vshrl.u32 %v1116_v5, 16  ;;  %v2157_v41 = vshll.u32 %v1116_v5, 16 }
 0x176   : > { %12280 = vmatprep.subr.bf16.mxu0 %v14018_v0  ;;  %v3001_v0 = vshrl.u32 %v1226_v36, 16 }
 0x177   : > { %v2129_v11 = vrot.slane %v2127_v45, 4  ;;  %v614_v45 = vadd.s32 112, %v15014_v51 }
 0x178   : > { %v3003_v27 = vrot.slane %v3001_v0, 3  ;;  %v616_v0 = vadd.s32 128, %v15014_v51 }
 0x179   : > { %v15041_v36 = vor.u32 %v2132_v12, %v2129_v11  ;;  %v734_v7 = vand.u32 15, %v614_v45  ;;  %v2145_v11 = vshrl.u32 %v1115_v50, 16  ;;  %v2148_v12 = vshll.u32 %v1115_v50, 16 }
 0x17a   : > { %v1117_v45 = vpack.c.bf16 %v18463_v22, %v11128_v14  ;;  %v2159_v22 = vrot.slane %v2157_v41, 5 }
 0x17b   : > { %18599 = vst [vmem:[#allocation13_spill] sm:$0xff] %v15041_v36  ;;  %v15074_v21 = vsel %vm2117_vm9, %v15041_v36, %v15045_v48  ;;  %v2147_v6 = vrot.slane %v2145_v11, 4  ;;  %vm15095_vm13 = vcmp.ne.s32.totalorder %v734_v7, 0 }
 0x17c   : > { %18605 = vst [vmem:[#allocation19_spill] sm:$0xff] %v15074_v21  ;;  %v2166_v56 = vshll.u32 %v1117_v45, 16 }
 0x218   : > { %v1585_v39 = vpop.f32.mrb[2].mxu0 }
 0x219   : > { %v12220_v44 = vpop.f32.mrb[3].mxu0  ;;  %v15063_v9 = vrot.slane %v1585_v39, %v15039_v35 }
 0x21a   : > { %v3006_v44 = vrot.slane %v3004_v4, 4  ;;  %v15059_v4 = vadd.s32 144, %v15014_v51 }
 0x21b   : > { %v1682_v5 = vsub.f32 %v14869_v26, %v15063_v9  ;;  %v1683_v3 = vsub.f32 %v14874_v31, %v15063_v9  ;;  %v1684_v14 = vsub.f32 %v14880_v37, %v15063_v9  ;;  %v1685_v55 = vsub.f32 %v14885_v42, %v15063_v9 }
 0x21c   : > { %v15053_v62 = vor.u32 %v3006_v44, %v3003_v27  ;;  %v636_v27 = vand.u32 15, %v15014_v51  ;;  %v748_v44 = vand.u32 15, %v616_v0  ;;  %v1686_v11 = vsub.f32 %v14891_v49, %v15063_v9  ;;  %v15200_v0 = vld [vmem:[%s18440_s3] ss:$0 sm:$0xff] }
 0x21d   : > { %v1687_v7 = vsub.f32 %v14896_v54, %v15063_v9  ;;  %v1689_v26 = vsub.f32 %v14907_v1, %v15063_v9  ;;  %v1690_v31 = vsub.f32 %v14913_v10, %v15063_v9  ;;  %v1691_v37 = vsub.f32 %v14918_v15, %v15063_v9 }
 0x21e   : > { %18602 = vst [vmem:[#allocation16_spill] sm:$0xff] %v15053_v62  ;;  %v15079_v39 = vsel %vm2604_vm11, %v15051_v58, %v15053_v62  ;;  %v2150_v62 = vrot.slane %v2148_v12, 5  ;;  %v1688_v12 = vsub.f32 %v14902_v60, %v15063_v9  ;;  %vm1016_vm14 = vcmp.ne.s32.totalorder %v636_v27, 0 }
 0x21f   : > { %18606 = vst [vmem:[#allocation20_spill] sm:$0xff] %v15079_v39  ;;  %v1692_v42 = vsub.f32 %v14924_v24, %v15063_v9  ;;  %v1693_v49 = vsub.f32 %v14929_v32, %v15063_v9  ;;  %v1694_v54 = vsub.f32 %v14935_v40, %v15063_v9  ;;  %v1695_v60 = vsub.f32 %v14940_v46, %v15063_v9  ;;  %v1240_v40 = vld [vmem:[%s18439_s2] sm:$0x1] }
 0x220   : > { %v1696_v1 = vsub.f32 %v14945_v53, %v15063_v9  ;;  %v1697_v10 = vsub.f32 %v14950_v59, %v15063_v9  ;;  %v18612_v27 = vmov 0.0   ;;  %v2151_v24 = vor.u32 %v2150_v62, %v2147_v6 }
 0x221   : > { %v11123_v32 = vsel %vm1016_vm14, 1.0, %v18612_v27  ;;  %v2156_v15 = vrot.slane %v2154_v34, 4  ;;  %vm15149_vm15 = vcmp.ne.s32.totalorder %v748_v44, 0  ;;  %v18615_v39 = vmov 1.0  }
 0x222   : > { %v15156_v20 = vpack.c.bf16 %v18615_v39, %v11123_v32  ;;  %v2163_v59 = vshrl.u32 %v1117_v45, 16  ;;  %v11129_v44 = vsel %vm15087_vm12, 1.0, %v18612_v27  ;;  %v2168_v45 = vrot.slane %v2166_v56, 5 }
 0x223   : > { %v15180_v50 = vor.u32 %v2159_v22, %v2156_v15  ;;  %v15187_v62 = vpack.c.bf16 %v18615_v39, %v11129_v44 }
 0x224   : > { %v2119_v41 = vshrl.u32 %v15156_v20, 16  ;;  %v2165_v34 = vrot.slane %v2163_v59, 4 }
 0x225   : > { %v2172_v28 = vshrl.u32 %v15187_v62, 16 }
 0x22b   : > { %v1658_v46 = vpop.f32.mrb[4].mxu0 }
 0x22c   : > { %v1698_v16 = vmul.f32 %v1658_v46, %v1240_v40  ;;  %v12231_v58 = vpop.f32.mrb[5].mxu0  ;;  %v15178_v40 = vsel %vm2117_vm9, %v15045_v48, %v2151_v24  ;;  %v11130_v46 = vsel %vm15095_vm13, 1.0, %v18612_v27 }
 0x22d   : > { %18616 = vst [vmem:[#allocation22_spill] sm:$0xff] %v15178_v40 }
 0x22e   : > { %v15174_v32 = vrot.slane %v1698_v16, %v15039_v35 }
 0x230   : > { %v15190_v16 = vmul.f32 %v15174_v32, %v1682_v5  ;;  %v15193_v58 = vmul.f32 %v15174_v32, %v1683_v3  ;;  %v1721_v22 = vmul.f32 %v15174_v32, %v1684_v14  ;;  %v1722_v48 = vmul.f32 %v15174_v32, %v1685_v55 }
 0x231   : > { %v1723_v56 = vmul.f32 %v15174_v32, %v1686_v11  ;;  %v1724_v15 = vmul.f32 %v15174_v32, %v1687_v7  ;;  %v1725_v59 = vmul.f32 %v15174_v32, %v1688_v12  ;;  %v1726_v5 = vmul.f32 %v15174_v32, %v1689_v26 }
 0x232   : > { %18617 = vst [vmem:[#allocation23_spill] sm:$0xff] %v15193_v58  ;;  %v1727_v3 = vmul.f32 %v15174_v32, %v1690_v31  ;;  %v1728_v44 = vmul.f32 %v15174_v32, %v1691_v37  ;;  %v1729_v14 = vmul.f32 %v15174_v32, %v1692_v42  ;;  %v1730_v55 = vmul.f32 %v15174_v32, %v1693_v49 }
 0x233   : > { %v1731_v6 = vmul.f32 %v15174_v32, %v1694_v54  ;;  %v1732_v53 = vmul.f32 %v15174_v32, %v1695_v60  ;;  %v1733_v11 = vmul.f32 %v15174_v32, %v1696_v1  ;;  %v1734_v7 = vmul.f32 %v15174_v32, %v1697_v10 }
 0x234   : > { %v15215_v12 = vadd.f32 %v15200_v0, %v1721_v22  ;;  %v15218_v26 = vadd.f32 %v15200_v0, %v1722_v48  ;;  %v15221_v31 = vadd.f32 %v15200_v0, %v1723_v56  ;;  %v15224_v37 = vadd.f32 %v15200_v0, %v1724_v15 }
 0x235   : > { %v15227_v42 = vadd.f32 %v15200_v0, %v1725_v59  ;;  %v2122_v49 = vshll.u32 %v15156_v20, 16  ;;  %v15231_v54 = vpack.c.bf16 %v18615_v39, %v11130_v46  ;;  %v15236_v60 = vsel %vm15149_vm15, 1.0, %v18612_v27 }
 0x236   : > { %v15239_v1 = vadd.f32 %v15200_v0, %v1726_v5  ;;  %v15242_v10 = vadd.f32 %v15200_v0, %v1727_v3  ;;  %v15246_v22 = vsel %vm2117_vm9, %v2151_v24, %v15180_v50  ;;  %v15248_v48 = vor.u32 %v2168_v45, %v2165_v34 }
 0x237   : > { %18618 = vst [vmem:[#allocation24_spill] sm:$0xff] %v15246_v22  ;;  %v1791_v20 = vsub.f32 0.0, %v15215_v12  ;;  %v1792_v46 = vsub.f32 0.0, %v15218_v26  ;;  %v2175_v56 = vshll.u32 %v15187_v62, 16  ;;  %v15255_v15 = vadd.f32 %v15200_v0, %v1728_v44 }
 0x238   : > { %v1793_v59 = vsub.f32 0.0, %v15221_v31  ;;  %v1794_v5 = vsub.f32 0.0, %v15224_v37  ;;  %v2121_v3 = vrot.slane %v2119_v41, 4  ;;  %v15260_v24 = vadd.f32 %v15200_v0, %v1729_v14 }
 0x239   : > { %v15263_v34 = vadd.f32 %v15200_v0, %v1730_v55  ;;  %v15266_v45 = vadd.f32 %v15200_v0, %v1731_v6  ;;  %v1795_v29 = vsub.f32 0.0, %v15227_v42  ;;  %v15270_v62 = vadd.f32 %v15200_v0, %v1732_v53 }
 0x23a   : > { %v15273_v44 = vadd.f32 %v15200_v0, %v1733_v11  ;;  %v1796_v35 = vsub.f32 0.0, %v15239_v1  ;;  %v1797_v41 = vsub.f32 0.0, %v15242_v10  ;;  %v1841_v14 = vmul.f32 1.442695, %v1791_v20 }
 0x23b   : > { %v1843_v22 = vmul.f32 1.442695, %v1792_v46  ;;  %v1845_v40 = vmul.f32 1.442695, %v1793_v59  ;;  %v18619_v55 = vsub.f32 %v14765_v18, %v15063_v9  ;;  %v1798_v63 = vsub.f32 0.0, %v15255_v15 }
 0x23c   : > { %v1847_v21 = vmul.f32 1.442695, %v1794_v5  ;;  %v18620_v53 = vsub.f32 %v14767_v19, %v15063_v9  ;;  %v2124_v36 = vrot.slane %v2122_v49, 5  ;;  %v15287_v51 = vadd.f32 %v15200_v0, %v1734_v7 }
 0x23d   : > { %v1703_v6 = vmul.f32 %v15174_v32, %v18619_v55  ;;  %v1799_v20 = vsub.f32 0.0, %v15260_v24  ;;  %14196 = vpow2.f32 %v1841_v14  ;;  %v1849_v46 = vmul.f32 1.442695, %v1795_v29 }
 0x23e   : > { %v1704_v11 = vmul.f32 %v15174_v32, %v18620_v53  ;;  %v1800_v18 = vsub.f32 0.0, %v15263_v34  ;;  %v1801_v59 = vsub.f32 0.0, %v15266_v45  ;;  %14198 = vpow2.f32 %v1843_v22 }
 0x23f   : > { %v1851_v55 = vmul.f32 1.442695, %v1796_v35  ;;  %v1802_v5 = vsub.f32 0.0, %v15270_v62  ;;  %v1803_v19 = vsub.f32 0.0, %v15273_v44  ;;  %14200 = vpow2.f32 %v1845_v40 }
 0x240   : > { %v1853_v53 = vmul.f32 1.442695, %v1797_v41  ;;  %v18621_v49 = vand.u32 15, %v15059_v4  ;;  %14202 = vpow2.f32 %v1847_v21  ;;  %v1855_v29 = vmul.f32 1.442695, %v1798_v63 }
 0x241   : > { %v18624_v14 = vsub.f32 %v14776_v23, %v15063_v9  ;;  %v18625_v35 = vsub.f32 %v14780_v25, %v15063_v9  ;;  %14204 = vpow2.f32 %v1849_v46  ;;  %v1857_v40 = vmul.f32 1.442695, %v1799_v20 }
 0x242   : > { %vm15296_vm2 = vcmp.ne.s32.totalorder %v18621_v49, 0  ;;  %v18626_v4 = vsub.f32 %v14791_v30, %v15063_v9  ;;  %v18627_v63 = vsub.f32 %v14796_v33, %v15063_v9  ;;  %v1804_v23 = vsub.f32 0.0, %v15287_v51 }
 0x243   : > { %v1705_v22 = vmul.f32 %v15174_v32, %v18624_v14  ;;  %v1706_v58 = vmul.f32 %v15174_v32, %v18625_v35  ;;  %14206 = vpow2.f32 %v1851_v55  ;;  %v1859_v49 = vmul.f32 1.442695, %v1800_v18 }
 0x244   : > { %v1707_v41 = vmul.f32 %v15174_v32, %v18626_v4  ;;  %v1708_v21 = vmul.f32 %v15174_v32, %v18627_v63  ;;  %v2181_v25 = vshrl.u32 %v15231_v54, 16  ;;  %14208 = vpow2.f32 %v1853_v53 }
 0x245   : > { %v1861_v14 = vmul.f32 1.442695, %v1801_v59  ;;  %v15321_v20 = vsel %vm2117_vm9, %v15180_v50, %v15248_v48  ;;  %v2184_v30 = vshll.u32 %v15231_v54, 16  ;;  %14210 = vpow2.f32 %v1855_v29 }
 0x246   : > { %18628 = vst [vmem:[#allocation25_spill] sm:$0xff] %v15321_v20  ;;  %v1863_v46 = vmul.f32 1.442695, %v1802_v5  ;;  %v15325_v33 = vadd.f32 %v15200_v0, %v1703_v6  ;;  %v15327_v35 = vrot.slane %v2172_v28, 4  ;;  %14212 = vpow2.f32 %v1857_v40 }
 0x247   : > { %v1865_v18 = vmul.f32 1.442695, %v1803_v19  ;;  %v18629_v55 = vsub.f32 %v14806_v38, %v15063_v9  ;;  %v15333_v53 = vrot.slane %v2175_v56, 5  ;;  %14214 = vpow2.f32 %v1859_v49  ;;  %v14197_v5 = vpop.eup %14196 }
 0x248   : > { %v1867_v50 = vmul.f32 1.442695, %v1804_v23  ;;  %v15336_v54 = vadd.f32 %v15200_v0, %v1704_v11  ;;  %v18630_v6 = vsub.f32 %v14815_v43, %v15063_v9  ;;  %14216 = vpow2.f32 %v1861_v14  ;;  %v14199_v56 = vpop.eup %14198 }
 0x249   : > { %v1709_v59 = vmul.f32 %v15174_v32, %v18629_v55  ;;  %v15342_v19 = vor.u32 %v2124_v36, %v2121_v3  ;;  %v15344_v29 = vrot.slane %v2181_v25, 4  ;;  %v15348_v38 = vpack.c.bf16 %v18615_v39, %v15236_v60  ;;  %v14201_v63 = vpop.eup %14200 }
 0x24a   : > { %v1710_v28 = vmul.f32 %v15174_v32, %v18630_v6  ;;  %14218 = vpow2.f32 %v1863_v46  ;;  %v1887_v40 = vadd.f32 1.0, %v14197_v5  ;;  %v1773_v11 = vsub.f32 0.0, %v15325_v33  ;;  %v14203_v49 = vpop.eup %14202 }
 0x24b   : > { %18631 = vst [vmem:[#allocation26_spill] sm:$0xff] %v15342_v19  ;;  %v18632_v43 = vsub.f32 %v14821_v47, %v15063_v9  ;;  %14220 = vpow2.f32 %v1865_v18  ;;  %v1888_v36 = vadd.f32 1.0, %v14199_v56  ;;  %v18633_v3 = vsub.f32 %v14828_v52, %v15063_v9  ;;  %v14205_v46 = vpop.eup %14204 }
 0x24c   : > { %v15359_v60 = vrot.slane %v2184_v30, 5  ;;  %14222 = vpow2.f32 %v1867_v50  ;;  %v1889_v25 = vadd.f32 1.0, %v14201_v63  ;;  %v1774_v14 = vsub.f32 0.0, %v15336_v54 }
 0x24d   : > { %v1711_v4 = vmul.f32 %v15174_v32, %v18632_v43  ;;  %v1712_v23 = vmul.f32 %v15174_v32, %v18633_v3  ;;  %v15365_v47 = vsel %vm15296_vm2, 1.0, %v18612_v27  ;;  %v1890_v18 = vadd.f32 1.0, %v14203_v49  ;;  %v14207_v30 = vpop.eup %14206 }
 0x24e   : > { %14224 = vrcp.f32 %v1887_v40  ;;  %v15368_v55 = vadd.f32 %v15200_v0, %v1705_v22  ;;  %v15371_v52 = vadd.f32 %v15200_v0, %v1706_v58  ;;  %v1891_v6 = vadd.f32 1.0, %v14205_v46  ;;  %v14209_v7 = vpop.eup %14208 }
 0x24f   : > { %14226 = vrcp.f32 %v1888_v36  ;;  %v15373_v50 = vmul.f32 1.442695, %v1773_v11  ;;  %v15376_v5 = vadd.f32 %v15200_v0, %v1707_v41  ;;  %v1892_v56 = vadd.f32 1.0, %v14207_v30  ;;  %v14211_v40 = vpop.eup %14210 }
 0x250   : > { %14228 = vrcp.f32 %v1889_v25  ;;  %v15379_v43 = vadd.f32 %v15200_v0, %v1708_v21  ;;  %v18634_v22 = vsub.f32 %v14834_v57, %v15063_v9  ;;  %v1893_v63 = vadd.f32 1.0, %v14209_v7  ;;  %v14213_v3 = vpop.eup %14212 }
 0x251   : > { %14230 = vrcp.f32 %v1890_v18  ;;  %v15386_v11 = vadd.f32 %v15200_v0, %v1709_v59  ;;  %v18636_v41 = vsub.f32 %v14839_v61, %v15063_v9  ;;  %v1894_v49 = vadd.f32 1.0, %v14211_v40  ;;  %v14215_v25 = vpop.eup %14214 }
 0x252   : > { %v1713_v58 = vmul.f32 %v15174_v32, %v18634_v22  ;;  %14232 = vrcp.f32 %v1891_v6  ;;  %v1775_v21 = vsub.f32 0.0, %v15368_v55  ;;  %v1776_v57 = vsub.f32 0.0, %v15371_v52  ;;  %v14217_v30 = vpop.eup %14216 }
 0x253   : > { %18635 = vst [vmem:[#allocation27_spill] sm:$0xff] %v15386_v11  ;;  %v1714_v36 = vmul.f32 %v15174_v32, %v18636_v41  ;;  %v1895_v46 = vadd.f32 1.0, %v14213_v3  ;;  %14234 = vrcp.f32 %v1892_v56  ;;  %v15395_v18 = vadd.f32 %v15200_v0, %v1710_v28 }
 0x254   : > { %v18638_v59 = vsub.f32 %v14847_v2, %v15063_v9  ;;  %v1896_v7 = vadd.f32 1.0, %v14215_v25  ;;  %14236 = vrcp.f32 %v1893_v63  ;;  %v1777_v6 = vsub.f32 0.0, %v15376_v5  ;;  %v14219_v56 = vpop.eup %14218 }
 0x255   : > { %18637 = vst [vmem:[#allocation28_spill] sm:$0xff] %v15395_v18  ;;  %v18639_v22 = vsub.f32 %v14852_v8, %v15063_v9  ;;  %v1897_v28 = vadd.f32 1.0, %v14217_v30  ;;  %14238 = vrcp.f32 %v1894_v49  ;;  %v1778_v41 = vsub.f32 0.0, %v15379_v43  ;;  %v14221_v3 = vpop.eup %14220 }
 0x256   : > { %v15401_v61 = vmul.f32 %v15174_v32, %v18638_v59  ;;  %v1779_v2 = vsub.f32 0.0, %v15386_v11  ;;  %v1898_v59 = vadd.f32 1.0, %v14219_v56  ;;  %14240 = vrcp.f32 %v1895_v46  ;;  %v14223_v8 = vpop.eup %14222 }
 0x257   : > { %v15408_v40 = vmul.f32 %v15174_v32, %v18639_v22  ;;  %v15413_v63 = vadd.f32 %v15200_v0, %v1711_v4  ;;  %v15416_v25 = vadd.f32 %v15200_v0, %v1712_v23  ;;  %v1899_v20 = vadd.f32 1.0, %v14221_v3 }
 0x258   : > { %14242 = vrcp.f32 %v1896_v7  ;;  %v1780_v22 = vsub.f32 0.0, %v15395_v18  ;;  %v15420_v49 = vadd.f32 %v15200_v0, %v1713_v58  ;;  %v14225_v30 = vpop.eup %14224  ;;  %v1900_v27 = vadd.f32 1.0, %v14223_v8 }
 0x259   : > { %18640 = vst [vmem:[#allocation29_spill] sm:$0xff] %v15413_v63  ;;  %18641 = vst [vmem:[#allocation30_spill] sm:$0xff] %v15416_v25  ;;  %14244 = vrcp.f32 %v1897_v28  ;;  %v15423_v56 = vadd.f32 %v15200_v0, %v1714_v36  ;;  %v18644_v4 = vsub.f32 %v14858_v13, %v15063_v9  ;;  %v14227_v46 = vpop.eup %14226  ;;  %v1807_v7 = vmul.f32 1.442695, %v1774_v14 }
 0x25a   : > { %18642 = vst [vmem:[#allocation31_spill] sm:$0xff] %v15420_v49  ;;  %14246 = vrcp.f32 %v1898_v59  ;;  %v1809_v3 = vmul.f32 1.442695, %v1775_v21  ;;  %v18645_v58 = vsub.f32 %v14863_v17, %v15063_v9  ;;  %v14229_v28 = vpop.eup %14228  ;;  %v1811_v36 = vmul.f32 1.442695, %v1776_v57 }
 0x25b   : > { %18643 = vst [vmem:[#allocation32_spill] sm:$0xff] %v15423_v56  ;;  %v15429_v23 = vmul.f32 %v15174_v32, %v18644_v4  ;;  %14248 = vrcp.f32 %v1899_v20  ;;  %v1781_v8 = vsub.f32 0.0, %v15413_v63  ;;  %v1782_v13 = vsub.f32 0.0, %v15416_v25  ;;  %v14231_v4 = vpop.eup %14230 }
 0x25c   : > { %v15435_v18 = vmul.f32 %v15174_v32, %v18645_v58  ;;  %14250 = vrcp.f32 %v1900_v27  ;;  %v1813_v11 = vmul.f32 1.442695, %v1777_v6  ;;  %v1815_v59 = vmul.f32 1.442695, %v1778_v41  ;;  %v14233_v21 = vpop.eup %14232 }
 0x25d   : > { %v1783_v14 = vsub.f32 0.0, %v15420_v49  ;;  %14252 = vpow2.f32 %v15373_v50  ;;  %v1817_v17 = vmul.f32 1.442695, %v1779_v2  ;;  %v1819_v9 = vmul.f32 1.442695, %v1780_v22  ;;  %v14235_v58 = vpop.eup %14234 }
 0x25e   : > { %v1784_v32 = vsub.f32 0.0, %v15423_v56  ;;  %v1985_v20 = vmul.f32 %v14229_v28, %v15221_v31  ;;  %v1986_v57 = vmul.f32 %v14231_v4, %v15224_v37  ;;  %v1987_v25 = vmul.f32 %v14233_v21, %v15227_v42  ;;  %v14237_v27 = vpop.eup %14236 }
 0x25f   : > { %14254 = vpow2.f32 %v1807_v7  ;;  %v1988_v6 = vmul.f32 %v14235_v58, %v15239_v1  ;;  %v1821_v41 = vmul.f32 1.442695, %v1781_v8  ;;  %v1823_v49 = vmul.f32 1.442695, %v1782_v13  ;;  %v14239_v63 = vpop.eup %14238 }
 0x260   : > { %14256 = vpow2.f32 %v1809_v3  ;;  %v1989_v50 = vmul.f32 %v14237_v27, %v15242_v10  ;;  %v1825_v2 = vmul.f32 1.442695, %v1783_v14  ;;  %v1983_v22 = vmul.f32 %v14225_v30, %v15215_v12  ;;  %v14241_v56 = vpop.eup %14240 }
 0x261   : > { %14258 = vpow2.f32 %v1811_v36  ;;  %v1990_v31 = vmul.f32 %v14239_v63, %v15255_v15  ;;  %v2008_v37 = vpack.c.bf16 %v1988_v6, %v1987_v25  ;;  %v1984_v42 = vmul.f32 %v14227_v46, %v15218_v26 }
 0x262   : > { %14260 = vpow2.f32 %v1813_v11  ;;  %v14243_v7 = vpop.eup %14242  ;;  %v1991_v1 = vmul.f32 %v14241_v56, %v15260_v24  ;;  %v1827_v3 = vmul.f32 1.442695, %v1784_v32  ;;  %v2007_v28 = vpack.c.bf16 %v1986_v57, %v1985_v20 }
 0x263   : > { %14262 = vpow2.f32 %v1815_v59  ;;  %v14245_v8 = vpop.eup %14244  ;;  %v1992_v10 = vmul.f32 %v14243_v7, %v15263_v34  ;;  %v2009_v36 = vpack.c.bf16 %v1990_v31, %v1989_v50  ;;  %v2056_v13 = vrot.slane %v2008_v37, 4 }
 0x264   : > { %14264 = vpow2.f32 %v1817_v17  ;;  %v14247_v12 = vpop.eup %14246  ;;  %v1993_v30 = vmul.f32 %v14245_v8, %v15266_v45  ;;  %v2006_v15 = vpack.c.bf16 %v1984_v42, %v1983_v22  ;;  %v2054_v11 = vrot.slane %v2007_v28, 4 }
 0x265   : > { %14266 = vpow2.f32 %v1819_v9  ;;  %v14249_v63 = vpop.eup %14248  ;;  %v1994_v26 = vmul.f32 %v14247_v12, %v15270_v62  ;;  %v2010_v25 = vpack.c.bf16 %v1992_v10, %v1991_v1  ;;  %v2058_v24 = vrot.slane %v2009_v36, 4  ;;  %v18646_v12 = vld [vmem:[#allocation23_spill] sm:$0xff] }
 0x266   : > { %14268 = vpow2.f32 %v1821_v41  ;;  %v14251_v56 = vpop.eup %14250  ;;  %v1995_v46 = vmul.f32 %v14249_v63, %v15273_v44  ;;  %v15455_v34 = vrot.slane %v2006_v15, 4  ;;  %v15458_v4 = vsel %vm2034_vm3, %v2054_v11, %v2056_v13 }
 0x267   : > { %14270 = vpow2.f32 %v1823_v49  ;;  %v14253_v59 = vpop.eup %14252  ;;  %v1996_v45 = vmul.f32 %v14251_v56, %v15287_v51  ;;  %v2011_v14 = vpack.c.bf16 %v1994_v26, %v1993_v30  ;;  %v2060_v21 = vrot.slane %v2010_v25, 4  ;;  %2094 = vst [vmem:[#allocation2 + $0x60] sm:$0xff] %v15458_v4 }
 0x268   : > { %14272 = vpow2.f32 %v1825_v2  ;;  %v1869_v17 = vadd.f32 1.0, %v14253_v59  ;;  %v15464_v44 = vadd.f32 %v15200_v0, %v15401_v61  ;;  %v15468_v49 = vsel %vm2034_vm3, %v15455_v34, %v2054_v11 }
 0x269   : > { %v14255_v62 = vpop.eup %14254  ;;  %14274 = vpow2.f32 %v1827_v3  ;;  %v2012_v32 = vpack.c.bf16 %v1996_v45, %v1995_v46  ;;  %v15471_v51 = vsel %vm2034_vm3, %v2058_v24, %v2060_v21  ;;  %v2062_v58 = vrot.slane %v2011_v14, 4  ;;  %2093 = vst [vmem:[#allocation2 + $0x58] sm:$0xff] %v15468_v49 }
 0x26a   : > { %v14257_v9 = vpop.eup %14256  ;;  %v1870_v20 = vadd.f32 1.0, %v14255_v62  ;;  %2096 = vst [vmem:[#allocation2 + $0x70] sm:$0xff] %v15471_v51  ;;  %14276 = vrcp.f32 %v1869_v17  ;;  %v15477_v61 = vadd.f32 %v15200_v0, %v15408_v40  ;;  %v15480_v6 = vsel %vm2034_vm3, %v2056_v13, %v2058_v24  ;;  %v18647_v24 = vld [vmem:[#allocation11_spill] sm:$0xff] }
 0x26b   : > { %v14259_v57 = vpop.eup %14258  ;;  %v1871_v27 = vadd.f32 1.0, %v14257_v9  ;;  %v15483_v50 = vsel %vm2034_vm3, %v2060_v21, %v2062_v58  ;;  %v2064_v2 = vrot.slane %v2012_v32, 4  ;;  %2095 = vst [vmem:[#allocation2 + $0x68] sm:$0xff] %v15480_v6  ;;  %v15489_v40 = vadd.f32 %v15200_v0, %v15429_v23  ;;  %v2100_v32 = vld [vmem:[#allocation2] sm:$0xf8] }
 0x26c   : > { %v14261_v41 = vpop.eup %14260  ;;  %14278 = vrcp.f32 %v1870_v20  ;;  %v1872_v22 = vadd.f32 1.0, %v14259_v57  ;;  %2097 = vst [vmem:[#allocation2 + $0x78] sm:$0xff] %v15483_v50  ;;  %v15493_v42 = vor.u32 %v15333_v53, %v15327_v35  ;;  %v15498_v28 = vadd.f32 %v15200_v0, %v15435_v18 }
 0x26d   : > { %v14263_v31 = vpop.eup %14262  ;;  %14280 = vrcp.f32 %v1871_v27  ;;  %v1873_v37 = vadd.f32 1.0, %v14261_v41  ;;  %v2065_v1 = vsel %vm2034_vm3, %v2062_v58, %v2064_v2  ;;  %2099 = vst [vmem:[#allocation2 + $0x88] sm:$0xf] %v2064_v2  ;;  %v1785_v23 = vsub.f32 0.0, %v15464_v44 }
 0x26e   : > { %v14265_v7 = vpop.eup %14264  ;;  %14282 = vrcp.f32 %v1872_v22  ;;  %v1874_v3 = vadd.f32 1.0, %v14263_v31  ;;  %2098 = vst [vmem:[#allocation2 + $0x80] sm:$0xff] %v2065_v1  ;;  %v15503_v35 = vadd.f32 %v15200_v0, %v15190_v16  ;;  %v1786_v13 = vsub.f32 0.0, %v15477_v61 }
 0x26f   : > { %v14267_v8 = vpop.eup %14266  ;;  %14284 = vrcp.f32 %v1873_v37  ;;  %v1875_v10 = vadd.f32 1.0, %v14265_v7  ;;  %v15508_v30 = vadd.f32 %v15200_v0, %v18646_v12  ;;  %v1787_v11 = vsub.f32 0.0, %v15489_v40  ;;  %v18648_v7 = vld [vmem:[#allocation13_spill] sm:$0xff] }
 0x270   : > { %v14269_v53 = vpop.eup %14268  ;;  %14286 = vrcp.f32 %v1874_v3  ;;  %v1876_v36 = vadd.f32 1.0, %v14267_v8  ;;  %v2190_v63 = vshrl.u32 %v15348_v38, 16  ;;  %v1788_v25 = vsub.f32 0.0, %v15498_v28 }
 0x271   : > { %v14271_v18 = vpop.eup %14270  ;;  %14288 = vrcp.f32 %v1875_v10  ;;  %v1877_v15 = vadd.f32 1.0, %v14269_v53  ;;  %v620_v56 = vadd.s32 160, %v18647_v24  ;;  %v1829_v45 = vmul.f32 1.442695, %v1785_v23 }
 0x272   : > { %v14273_v26 = vpop.eup %14272  ;;  %14290 = vrcp.f32 %v1876_v36  ;;  %v1878_v16 = vadd.f32 1.0, %v14271_v18  ;;  %v1789_v0 = vsub.f32 0.0, %v15503_v35  ;;  %v1831_v21 = vmul.f32 1.442695, %v1786_v13 }
 0x273   : > { %v14275_v46 = vpop.eup %14274  ;;  %14292 = vrcp.f32 %v1877_v15  ;;  %v1879_v59 = vadd.f32 1.0, %v14273_v26  ;;  %v1790_v62 = vsub.f32 0.0, %v15508_v30  ;;  %v1833_v9 = vmul.f32 1.442695, %v1787_v11 }
 0x274   : > { %14294 = vrcp.f32 %v1878_v16  ;;  %v1880_v14 = vadd.f32 1.0, %v14275_v46  ;;  %v14277_v17 = vpop.eup %14276  ;;  %v2193_v58 = vshll.u32 %v15348_v38, 16  ;;  %v15519_v20 = vpack.c.bf16 %v18615_v39, %v15365_v47 }
 0x275   : > { %14296 = vrcp.f32 %v1879_v59  ;;  %v1965_v27 = vmul.f32 %v14277_v17, %v15325_v33  ;;  %v1835_v41 = vmul.f32 1.442695, %v1788_v25  ;;  %v776_v2 = vand.u32 15, %v620_v56  ;;  %v18653_v56 = vld [vmem:[#allocation28_spill] sm:$0xff] }
 0x276   : > { %v14279_v57 = vpop.eup %14278  ;;  %14298 = vrcp.f32 %v1880_v14  ;;  %v1837_v37 = vmul.f32 1.442695, %v1789_v0  ;;  %v15526_v1 = vsel %vm2117_vm9, %v15342_v19, %v18648_v7  ;;  %v1839_v3 = vmul.f32 1.442695, %v1790_v62  ;;  %v18655_v0 = vld [vmem:[#allocation29_spill] sm:$0xff] }
 0x277   : > { %v14281_v22 = vpop.eup %14280  ;;  %v1966_v31 = vmul.f32 %v14279_v57, %v15336_v54  ;;  %14300 = vpow2.f32 %v1829_v45  ;;  %v15530_v33 = vmul.bf16 %v15342_v19, %v2100_v32  ;;  %v15535_v54 = vor.u32 %v15359_v60, %v15344_v29  ;;  %v18652_v60 = vld [vmem:[#allocation27_spill] sm:$0xff]  ;;  %v18656_v57 = vld [vmem:[#allocation30_spill] sm:$0xff] }
 0x278   : > { %v14283_v38 = vpop.eup %14282  ;;  %v1967_v47 = vmul.f32 %v14281_v22, %v15368_v55  ;;  %14302 = vpow2.f32 %v1831_v21  ;;  %v15541_v55 = vsel %vm2117_vm9, %v15248_v48, %v15493_v42  ;;  %vm15543_vm4 = vcmp.ne.s32.totalorder %v776_v2, 0  ;;  %v18657_v2 = vld [vmem:[#allocation19_spill] sm:$0xff] }
 0x279   : > { %v14285_v8 = vpop.eup %14284  ;;  %v1997_v10 = vpack.c.bf16 %v1966_v31, %v1965_v27  ;;  %v1968_v23 = vmul.f32 %v14283_v38, %v15371_v52  ;;  %14304 = vpow2.f32 %v1833_v9  ;;  %18649 = vst [vmem:[#allocation23_spill] sm:$0xff] %v15541_v55  ;;  %v15551_v26 = vrot.slane %v2193_v58, 5 }
 0x27a   : > { %v14287_v53 = vpop.eup %14286  ;;  %v1969_v36 = vmul.f32 %v14285_v8, %v15376_v5  ;;  %14306 = vpow2.f32 %v1835_v41  ;;  %v15549_v5 = vrot.slane %v2190_v63, 4  ;;  %v18654_v59 = vmov 0.0  }
 0x27b   : > { %v14289_v12 = vpop.eup %14288  ;;  %v2035_v52 = vrot.slane %v1997_v10, 4  ;;  %v1998_v18 = vpack.c.bf16 %v1968_v23, %v1967_v47  ;;  %v1970_v15 = vmul.f32 %v14287_v53, %v15379_v43  ;;  %14308 = vpow2.f32 %v1837_v37  ;;  %v18658_v37 = vld [vmem:[#allocation31_spill] sm:$0xff]  ;;  %v18659_v23 = vld [vmem:[#allocation32_spill] sm:$0xff] }
 0x27c   : > { %v14291_v29 = vpop.eup %14290  ;;  %v1971_v11 = vmul.f32 %v14289_v12, %v18652_v60  ;;  %14310 = vpow2.f32 %v1839_v3  ;;  %v11133_v45 = vsel %vm15543_vm4, 1.0, %v18654_v59  ;;  %v2606_v21 = vshrl.u32 %v15530_v33, 16 }
 0x27d   : > { %v14293_v48 = vpop.eup %14292  ;;  %2083 = vst [vmem:[#allocation2 + $0x8] sm:$0xf0] %v2035_v52  ;;  %v2036_v16 = vrot.slane %v1998_v18, 4  ;;  %v1999_v25 = vpack.c.bf16 %v1970_v15, %v1969_v36  ;;  %v1972_v46 = vmul.f32 %v14291_v29, %v18653_v56  ;;  %v2199_v62 = vshrl.u32 %v15519_v20, 16 }
 0x27e   : > { %v14295_v43 = vpop.eup %14294  ;;  %v1973_v14 = vmul.f32 %v14293_v48, %v18655_v0  ;;  %v15571_v38 = vpack.c.bf16 %v18615_v39, %v11133_v45 }
 0x27f   : > { %v14297_v17 = vpop.eup %14296  ;;  %v15562_v9 = vsel %vm2034_vm3, %v2035_v52, %v2036_v16  ;;  %v2038_v32 = vrot.slane %v1999_v25, 4  ;;  %v2000_v58 = vpack.c.bf16 %v1972_v46, %v1971_v11  ;;  %v1974_v27 = vmul.f32 %v14295_v43, %v18656_v57 }
 0x280   : > { %v14299_v41 = vpop.eup %14298  ;;  %2084 = vst [vmem:[#allocation2 + $0x10] sm:$0xff] %v15562_v9  ;;  %v2280_v22 = vmul.bf16 %v18657_v2, %v15562_v9  ;;  %v2349_v31 = vrot.slane %v15562_v9, 4  ;;  %v1975_v7 = vmul.f32 %v14297_v17, %v18658_v37 }
 0x281   : > { %v14301_v47 = vpop.eup %14300  ;;  %v15574_v3 = vsel %vm2034_vm3, %v2036_v16, %v2038_v32  ;;  %v2040_v8 = vrot.slane %v2000_v58, 4  ;;  %v2001_v10 = vpack.c.bf16 %v1974_v27, %v1973_v14  ;;  %v1976_v53 = vmul.f32 %v14299_v41, %v18659_v23  ;;  %v18660_v41 = vld [vmem:[#allocation17_spill] sm:$0xff] }
 0x282   : > { %v14303_v36 = vpop.eup %14302  ;;  %2085 = vst [vmem:[#allocation2 + $0x18] sm:$0xff] %v15574_v3  ;;  %v2351_v13 = vrot.slane %v15574_v3, 4  ;;  %v1881_v12 = vadd.f32 1.0, %v14301_v47  ;;  %v2623_v52 = vshrl.u32 %v2280_v22, 16  ;;  %v2626_v18 = vshll.u32 %v2280_v22, 16  ;;  %v14019_v47 = vld [vmem:[%s18443_s6 + $0x8] sm:$0xff]  }
 0x283   : > { %v14305_v15 = vpop.eup %14304  ;;  %v15580_v29 = vsel %vm2034_vm3, %v2038_v32, %v2040_v8  ;;  %v2042_v60 = vrot.slane %v2001_v10, 4  ;;  %v2002_v11 = vpack.c.bf16 %v1976_v53, %v1975_v7  ;;  %v1882_v48 = vadd.f32 1.0, %v14303_v36 }
 0x284   : > { %v14307_v16 = vpop.eup %14306  ;;  %v15582_v25 = vld [vmem:[#allocation2 + $0x8] sm:$0xff]  ;;  %v2352_v56 = vsel %vm2034_vm3, %v2349_v31, %v2351_v13  ;;  %2086 = vst [vmem:[#allocation2 + $0x20] sm:$0xff] %v15580_v29  ;;  %v2353_v46 = vrot.slane %v15580_v29, 4  ;;  %14312 = vrcp.f32 %v1881_v12  ;;  %v1883_v45 = vadd.f32 1.0, %v14305_v15  ;;  %v14454_v15 = vld [vmem:[%s18443_s6] sm:$0xff]  }
 0x285   : > { %v14309_v43 = vpop.eup %14308  ;;  %v2347_v0 = vrot.slane %v15582_v25, 4  ;;  %v15589_v14 = vsel %vm2034_vm3, %v2040_v8, %v2042_v60  ;;  %v15591_v17 = vrot.slane %v2002_v11, 4  ;;  %14314 = vrcp.f32 %v1882_v48  ;;  %v18662_v11 = vld [vmem:[#allocation22_spill] sm:$0xff] }
 0x286   : > { %v14311_v32 = vpop.eup %14310  ;;  %v2354_v58 = vsel %vm2034_vm3, %v2351_v13, %v2353_v46  ;;  %2087 = vst [vmem:[#allocation2 + $0x28] sm:$0xff] %v15589_v14  ;;  %v2355_v57 = vrot.slane %v15589_v14, 4  ;;  %v1884_v27 = vadd.f32 1.0, %v14307_v16  ;;  %14316 = vrcp.f32 %v1883_v45  ;;  %v14020_v16 = vld [vmem:[%s18443_s6 + $0x10] sm:$0xff]  }
 0x287   : > { %v18661_v22 = vrot.slane %v18660_v41, 4  ;;  %v2350_v7 = vsel %vm2034_vm3, %v2347_v0, %v2349_v31  ;;  %v15605_v8 = vsel %vm2034_vm3, %v2042_v60, %v15591_v17  ;;  %v1885_v10 = vadd.f32 1.0, %v14309_v43 }
 0x288   : > { %v2356_v23 = vsel %vm2034_vm3, %v2353_v46, %v2355_v57  ;;  %2088 = vst [vmem:[#allocation2 + $0x30] sm:$0xff] %v15605_v8  ;;  %v18488_v53 = vrot.slane %v15605_v8, 4  ;;  %14318 = vrcp.f32 %v1884_v27  ;;  %v1886_v36 = vadd.f32 1.0, %v14311_v32  ;;  %v18664_v46 = vld [vmem:[#allocation25_spill] sm:$0xff] }
 0x289   : > { %v2348_v37 = vsel %vm2034_vm3, %v18661_v22, %v2347_v0  ;;  %14320 = vrcp.f32 %v1885_v10  ;;  %v2625_v31 = vrot.slane %v2623_v52, 3  ;;  %v2628_v13 = vrot.slane %v2626_v18, 4  ;;  %v18663_v52 = vld [vmem:[#allocation24_spill] sm:$0xff] }
 0x28a   : > { %12248 = vmatprep.mubr.bf16.mxu0 %v2348_v37  ;;  %v2202_v12 = vshll.u32 %v15519_v20, 16  ;;  %v15617_v60 = vsel %vm2034_vm3, %v2355_v57, %v18488_v53  ;;  %14322 = vrcp.f32 %v1886_v36  ;;  %v2281_v48 = vmul.bf16 %v18662_v11, %v15574_v3 }
 0x28b   : > { %12249 = vmatmul.mubr.bf16.vlgmr.msra.gmra.mrb[8].mxu0 %v2350_v7  ;;  %v2282_v18 = vmul.bf16 %v18663_v52, %v15580_v29  ;;  %v15630_v45 = vor.u32 %v15551_v26, %v15549_v5  ;;  %v2201_v43 = vrot.slane %v2199_v62, 4  ;;  %v2208_v0 = vshrl.u32 %v15571_v38, 16 }
 0x28c   : > { %12281 = vmatpush3.bf16.msra.mxu0 %v14454_v15  ;;  %12252 = vmatprep.mubr.bf16.mxu0 %v2352_v56  ;;  %v2283_v56 = vmul.bf16 %v18664_v46, %v15589_v14  ;;  %v2632_v32 = vshrl.u32 %v2281_v48, 16  ;;  %v2635_v57 = vshll.u32 %v2281_v48, 16  ;;  %v15635_v22 = vor.u32 %v2628_v13, %v2625_v31  ;;  %v14021_v48 = vld [vmem:[%s18443_s6 + $0x18] sm:$0xff]  }
 0x28d   : > { %12282 = vmatprep.subr.bf16.mxu0 %v14019_v47  ;;  %v2641_v27 = vshrl.u32 %v2282_v18, 16  ;;  %v2644_v41 = vshll.u32 %v2282_v18, 16  ;;  %v2211_v10 = vshll.u32 %v15571_v38, 16  ;;  %v2204_v18 = vrot.slane %v2202_v12, 5 }
 0x28e   : > { %v2650_v37 = vshrl.u32 %v2283_v56, 16  ;;  %v2653_v7 = vshll.u32 %v2283_v56, 16  ;;  %v14313_v36 = vpop.eup %14312  ;;  %v2634_v15 = vrot.slane %v2632_v32, 3  ;;  %v2637_v5 = vrot.slane %v2635_v57, 4 }
 0x28f   : > { %v2643_v26 = vrot.slane %v2641_v27, 3  ;;  %v2646_v53 = vrot.slane %v2644_v41, 4  ;;  %v14315_v20 = vpop.eup %14314  ;;  %v1977_v62 = vmul.f32 %v14313_v36, %v15464_v44  ;;  %v2284_v32 = vmul.bf16 %v15541_v55, %v15605_v8 }
 0x290   : > { %12283 = vmatpush3.bf16.msra.mxu0 %v14019_v47  ;;  %v2652_v31 = vrot.slane %v2650_v37, 3  ;;  %v2655_v13 = vrot.slane %v2653_v7, 4  ;;  %v14317_v56 = vpop.eup %14316  ;;  %v1978_v38 = vmul.f32 %v14315_v20, %v15477_v61  ;;  %v2638_v63 = vor.u32 %v2637_v5, %v2634_v15 }
 0x291   : > { %12284 = vmatprep.subr.bf16.mxu0 %v14020_v16  ;;  %v2647_v47 = vor.u32 %v2646_v53, %v2643_v26  ;;  %v1979_v57 = vmul.f32 %v14317_v56, %v15489_v40  ;;  %v2210_v44 = vrot.slane %v2208_v0, 4  ;;  %v2213_v41 = vrot.slane %v2211_v10, 5  ;;  %v14022_v40 = vld [vmem:[%s18443_s6 + $0x20] sm:$0xff]  }
 0x292   : > { %v2656_v27 = vor.u32 %v2655_v13, %v2652_v31  ;;  %v14319_v36 = vpop.eup %14318  ;;  %v2003_v37 = vpack.c.bf16 %v1978_v38, %v1977_v62  ;;  %v15648_v12 = vsel %vm2604_vm11, %v15635_v22, %v2638_v63  ;;  %v2659_v53 = vshrl.u32 %v2284_v32, 16 }
 0x293   : > { %12253 = vmatmul.mubr.bf16.gmra.mrb[12].mxu0 %v2354_v58  ;;  %v15651_v61 = vsel %vm2604_vm11, %v2638_v63, %v2647_v47  ;;  %v14321_v7 = vpop.eup %14320  ;;  %v1980_v58 = vmul.f32 %v14319_v36, %v15498_v28  ;;  %v15663_v0 = vsel %vm2117_vm9, %v15493_v42, %v15535_v54  ;;  %v2205_v26 = vor.u32 %v2204_v18, %v2201_v43 }
 0x294   : > { %12256 = vmatprep.mubr.bf16.mxu0 %v2356_v23  ;;  %12285 = vmatpush3.bf16.msra.mxu0 %v14020_v16  ;;  %v15658_v23 = vsel %vm2604_vm11, %v2647_v47, %v2656_v27  ;;  %v2662_v16 = vshll.u32 %v2284_v32, 16  ;;  %18665 = vst [vmem:[#allocation11_spill] sm:$0xff] %v15663_v0  ;;  %v14323_v63 = vpop.eup %14322  ;;  %v2046_v10 = vrot.slane %v2003_v37, 4  ;;  %v1981_v15 = vmul.f32 %v14321_v7, %v15503_v35 }
 0x295   : > { %12286 = vmatprep.subr.bf16.mxu0 %v14021_v48  ;;  %v2661_v5 = vrot.slane %v2659_v53, 3  ;;  %v2004_v28 = vpack.c.bf16 %v1980_v58, %v1979_v57  ;;  %v1982_v20 = vmul.f32 %v14323_v63, %v15508_v30  ;;  %v622_v31 = vadd.s32 176, %v18647_v24 }
 0x296   : > { %v2664_v62 = vrot.slane %v2662_v16, 4  ;;  %v15670_v13 = vsel %vm2034_vm3, %v15591_v17, %v2046_v10  ;;  %v15674_v42 = vrot.slane %v2606_v21, 3  ;;  %v15679_v35 = vsel %vm2117_vm9, %v15535_v54, %v15630_v45  ;;  %v14023_v17 = vld [vmem:[%s18443_s6 + $0x28] sm:$0xff]  }
 0x297   : > { %18666 = vst [vmem:[#allocation13_spill] sm:$0xff] %v15679_v35  ;;  %v15681_v43 = vor.u32 %v2213_v41, %v2210_v44  ;;  %2089 = vst [vmem:[#allocation2 + $0x38] sm:$0xff] %v15670_v13  ;;  %v2359_v30 = vrot.slane %v15670_v13, 4  ;;  %v2048_v18 = vrot.slane %v2004_v28, 4  ;;  %v2005_v56 = vpack.c.bf16 %v1982_v20, %v1981_v15 }
 0x298   : > { %12287 = vmatpush3.bf16.msra.mxu0 %v14021_v48  ;;  %v2665_v21 = vor.u32 %v2664_v62, %v2661_v5  ;;  %v18667_v48 = vshll.u32 %v15530_v33, 16  ;;  %v2285_v54 = vmul.bf16 %v15663_v0, %v15670_v13  ;;  %v15696_v47 = vsel %vm2117_vm9, %v15630_v45, %v2205_v26  ;;  %v15805_v0 = vld [vmem:[#allocation2 + $0x80] sm:$0xf] }
 0x299   : > { %12288 = vmatprep.subr.bf16.mxu0 %v14022_v40  ;;  %18668 = vst [vmem:[#allocation27_spill] sm:$0xff] %v15696_v47  ;;  %v624_v32 = vadd.s32 192, %v18647_v24  ;;  %v18669_v57 = vrot.slane %v15605_v8, 4  ;;  %v15704_v41 = vsel %vm2034_vm3, %v2046_v10, %v2048_v18  ;;  %v2050_v33 = vrot.slane %v2005_v56, 4  ;;  %v14025_v56 = vld [vmem:[%s18443_s6 + $0x38] sm:$0xff]  }
 0x29a   : > { %v15690_v38 = vrot.slane %v18667_v48, 4  ;;  %v15707_v36 = vsel %vm2604_vm11, %v2656_v27, %v2665_v21  ;;  %2090 = vst [vmem:[#allocation2 + $0x40] sm:$0xff] %v15704_v41  ;;  %v2361_v45 = vrot.slane %v15704_v41, 4  ;;  %v2668_v37 = vshrl.u32 %v2285_v54, 16  ;;  %v14024_v27 = vld [vmem:[%s18443_s6 + $0x30] sm:$0xff]  }
 0x29b   : > { %12257 = vmatmul.mubr.bf16.gmra.mrb[16].mxu0 %v15617_v60  ;;  %v2360_v44 = vsel %vm2034_vm3, %v18669_v57, %v2359_v30  ;;  %v2671_v53 = vshll.u32 %v2285_v54, 16  ;;  %v2286_v60 = vmul.bf16 %v15679_v35, %v15704_v41  ;;  %v15714_v7 = vsel %vm2034_vm3, %v2048_v18, %v2050_v33 }
 0x29c   : > { %12260 = vmatprep.mubr.bf16.mxu0 %v2360_v44  ;;  %12289 = vmatpush3.bf16.msra.mxu0 %v14022_v40  ;;  %v15718_v58 = vsel %vm2034_vm3, %v2050_v33, %v15455_v34  ;;  %v15725_v40 = vsel %vm2117_vm9, %v2205_v26, %v15681_v43  ;;  %v790_v16 = vand.u32 15, %v622_v31  ;;  %v2362_v63 = vsel %vm2034_vm3, %v2359_v30, %v2361_v45 }
 0x29d   : > { %12290 = vmatprep.subr.bf16.mxu0 %v14023_v17  ;;  %18670 = vst [vmem:[#allocation28_spill] sm:$0xff] %v15725_v40  ;;  %2091 = vst [vmem:[#allocation2 + $0x48] sm:$0xff] %v15714_v7  ;;  %v2363_v10 = vrot.slane %v15714_v7, 4  ;;  %v2365_v34 = vrot.slane %v15718_v58, 4  ;;  %v2670_v15 = vrot.slane %v2668_v37, 3  ;;  %v2673_v5 = vrot.slane %v2671_v53, 4 }
 0x29e   : > { %2092 = vst [vmem:[#allocation2 + $0x50] sm:$0xff] %v15718_v58  ;;  %v2677_v28 = vshrl.u32 %v2286_v60, 16  ;;  %v2680_v20 = vshll.u32 %v2286_v60, 16  ;;  %v2287_v62 = vmul.bf16 %v15696_v47, %v15714_v7  ;;  %v2288_v30 = vmul.bf16 %v15725_v40, %v15718_v58 }
 0x29f   : > { %v2364_v26 = vsel %vm2034_vm3, %v2361_v45, %v2363_v10  ;;  %v2366_v31 = vsel %vm2034_vm3, %v2363_v10, %v2365_v34  ;;  %v804_v18 = vand.u32 15, %v624_v32  ;;  %v2674_v48 = vor.u32 %v2673_v5, %v2670_v15  ;;  %v18671_v5 = vld [vmem:[#allocation15_spill] sm:$0xff] }
 0x2a0   : > { %12291 = vmatpush3.bf16.msra.mxu0 %v14023_v17  ;;  %v2679_v54 = vrot.slane %v2677_v28, 3  ;;  %v2682_v57 = vrot.slane %v2680_v20, 4  ;;  %v2686_v44 = vshrl.u32 %v2287_v62, 16  ;;  %v2689_v33 = vshll.u32 %v2287_v62, 16  ;;  %v18672_v28 = vld [vmem:[#allocation14_spill] sm:$0xff] }
 0x2a1   : > { %12292 = vmatprep.subr.bf16.mxu0 %v14024_v27  ;;  %v2695_v37 = vshrl.u32 %v2288_v30, 16  ;;  %v2698_v53 = vshll.u32 %v2288_v30, 16  ;;  %vm1038_vm5 = vcmp.ne.s32.totalorder %v790_v16, 0  ;;  %v15742_v17 = vsel %vm2604_vm11, %v2665_v21, %v2674_v48  ;;  %v15753_v21 = vld [vmem:[%s18443_s6 + $0x80] sm:$0xff]  }
 0x2a2   : > { %v2683_v45 = vor.u32 %v2682_v57, %v2679_v54  ;;  %v2688_v60 = vrot.slane %v2686_v44, 3  ;;  %v626_v32 = vadd.s32 208, %v18647_v24  ;;  %v2691_v10 = vrot.slane %v2689_v33, 4  ;;  %v18676_v33 = vld [vmem:[#allocation18_spill] sm:$0xff] }
 0x2a3   : > { %12261 = vmatmul.mubr.bf16.gmra.mrb[20].mxu0 %v2362_v63  ;;  %v2697_v40 = vrot.slane %v2695_v37, 3  ;;  %v2700_v15 = vrot.slane %v2698_v53, 4  ;;  %v15748_v20 = vsel %vm2604_vm11, %v18672_v28, %v18671_v5  ;;  %v11134_v63 = vsel %vm1038_vm5, 1.0, %v18654_v59  ;;  %v18677_v53 = vld [vmem:[#allocation20_spill] sm:$0xff] }
 0x2a4   : > { %12264 = vmatprep.mubr.bf16.mxu0 %v2364_v26  ;;  %12293 = vmatpush3.bf16.msra.mxu0 %v14024_v27  ;;  %18673 = vst [vmem:[#allocation29_spill] sm:$0xff] %v15748_v20  ;;  %v15756_v16 = vsel %vm2604_vm11, %v2674_v48, %v2683_v45  ;;  %vm15759_vm6 = vcmp.ne.s32.totalorder %v804_v18, 0  ;;  %v15764_v62 = vadd.s32 224, %v18647_v24  ;;  %v2367_v26 = vrot.slane %v15468_v49, 4 }
 0x2a5   : > { %12294 = vmatprep.subr.bf16.mxu0 %v14025_v56  ;;  %v2369_v30 = vrot.slane %v15458_v4, 4  ;;  %v2692_v54 = vor.u32 %v2691_v10, %v2688_v60  ;;  %v15768_v57 = vor.u32 %v2700_v15, %v2697_v40  ;;  %v2279_v48 = vmul.bf16 %v15526_v1, %v15582_v25  ;;  %v18678_v40 = vld [vmem:[#allocation21_spill] sm:$0xff] }
 0x2a6   : > { %v818_v44 = vand.u32 15, %v626_v32  ;;  %v3144_v18 = vmul.bf16 %v15748_v20, %v15582_v25  ;;  %v3178_v37 = vshrl.u32 %v18676_v33, 16  ;;  %v3145_v5 = vmul.bf16 %v18677_v53, %v15562_v9 }
 0x2a7   : > { %v15778_v49 = vsel %vm2604_vm11, %v2683_v45, %v2692_v54  ;;  %v15782_v4 = vsel %vm2604_vm11, %v2692_v54, %v15768_v57  ;;  %v1123_v25 = vpack.c.bf16 %v18615_v39, %v11134_v63  ;;  %v11135_v9 = vsel %vm15759_vm6, 1.0, %v18654_v59 }
 0x2a8   : > { %12295 = vmatpush3.bf16.msra.mxu0 %v14025_v56  ;;  %v2370_v56 = vsel %vm2034_vm3, %v2367_v26, %v2369_v30  ;;  %v3181_v10 = vshll.u32 %v18676_v33, 16  ;;  %v3186_v15 = vshrl.u32 %v3144_v18, 16  ;;  %v2368_v54 = vsel %vm2034_vm3, %v2365_v34, %v2367_v26 }
 0x2a9   : > { %12328 = vmatprep.subr.bf16.mxu0 %v15753_v21  ;;  %v2614_v60 = vshrl.u32 %v2279_v48, 16  ;;  %v2617_v32 = vshll.u32 %v2279_v48, 16  ;;  %vm15796_vm7 = vcmp.ne.s32.totalorder %v818_v44, 0  ;;  %v3180_v63 = vrot.slane %v3178_v37, 4 }
 0x2aa   : > { %v3183_v27 = vrot.slane %v3181_v10, 5  ;;  %v3188_v20 = vrot.slane %v3186_v15, 4  ;;  %v3189_v28 = vshll.u32 %v3144_v18, 16  ;;  %v3195_v47 = vshrl.u32 %v3145_v5, 16 }
 0x2ab   : > { %12265 = vmatmul.mubr.bf16.gmra.mrb[24].mxu0 %v2366_v31  ;;  %v2371_v45 = vrot.slane %v15480_v6, 4  ;;  %v2373_v33 = vrot.slane %v15471_v51, 4  ;;  %v3198_v35 = vshll.u32 %v3145_v5, 16  ;;  %v607_v31 = vadd.s32 56, %v18647_v24 }
 0x2ac   : > { %12268 = vmatprep.mubr.bf16.mxu0 %v2368_v54  ;;  %v2375_v34 = vrot.slane %v15483_v50, 4  ;;  %v3191_v26 = vrot.slane %v3189_v28, 5  ;;  %v3197_v48 = vrot.slane %v3195_v47, 4  ;;  %v609_v44 = vadd.s32 72, %v18647_v24 }
 0x2ad   : > { %v2217_v37 = vshrl.u32 %v1123_v25, 16  ;;  %v2220_v10 = vshll.u32 %v1123_v25, 16  ;;  %v3184_v15 = vor.u32 %v3183_v27, %v3180_v63  ;;  %v3200_v18 = vrot.slane %v3198_v35, 5 }
 0x2ae   : > { %v2616_v54 = vrot.slane %v2614_v60, 3  ;;  %v2619_v55 = vrot.slane %v2617_v32, 4  ;;  %v3192_v6 = vor.u32 %v3191_v26, %v3188_v20  ;;  %v685_v46 = vand.u32 15, %v607_v31 }
 0x2af   : > { %v15807_v51 = vor.u32 %v3200_v18, %v3197_v48  ;;  %v699_v5 = vand.u32 15, %v609_v44  ;;  %v611_v52 = vadd.s32 88, %v18647_v24  ;;  %v613_v50 = vadd.s32 104, %v18647_v24 }
 0x2b0   : > { %v2372_v47 = vsel %vm2034_vm3, %v2369_v30, %v2371_v45  ;;  %v2374_v28 = vsel %vm2034_vm3, %v2371_v45, %v2373_v33  ;;  %v2377_v11 = vrot.slane %v15805_v0, 4  ;;  %v15815_v25 = vpack.c.bf16 %v18615_v39, %v11135_v9 }
 0x2b1   : > { %v15818_v35 = vsel %vm2117_vm9, %v3184_v15, %v3192_v6  ;;  %v15822_v20 = vsel %vm2117_vm9, %v3192_v6, %v15807_v51  ;;  %vm1135_vm8 = vcmp.ne.s32.totalorder %v685_v46, 15  ;;  %vm1137_vm10 = vcmp.ne.s32.totalorder %v699_v5, 15 }
 0x2b2   : > { %v2376_v30 = vsel %vm2034_vm3, %v2373_v33, %v2375_v34  ;;  %v2620_v60 = vor.u32 %v2619_v55, %v2616_v54  ;;  %v15825_v32 = vrot.slane %v2217_v37, 4  ;;  %v15827_v45 = vrot.slane %v2220_v10, 5 }
 0x2b3   : > { %12269 = vmatmul.mubr.bf16.gmra.mrb[28].mxu0 %v2370_v56  ;;  %v11142_v9 = vsel %vm1135_vm8, 1.0, %v18654_v59  ;;  %v11143_v56 = vsel %vm1137_vm10, 1.0, %v18654_v59  ;;  %v713_v63 = vand.u32 15, %v611_v52  ;;  %v727_v27 = vand.u32 15, %v613_v50 }
 0x2b4   : > { %12272 = vmatprep.mubr.bf16.mxu0 %v2372_v47  ;;  %v2226_v31 = vshrl.u32 %v15815_v25, 16  ;;  %v15835_v46 = vsel %vm15796_vm7, 1.0, %v18654_v59  ;;  %v1227_v33 = vpack.c.bf16 %v11142_v9, %v18615_v39  ;;  %v1228_v55 = vpack.c.bf16 %v11143_v56, %v18615_v39 }
 0x2b5   : > { %v2378_v26 = vsel %vm2034_vm3, %v2375_v34, %v2377_v11  ;;  %vm1139_vm12 = vcmp.ne.s32.totalorder %v713_v63, 15  ;;  %vm1141_vm13 = vcmp.ne.s32.totalorder %v727_v27, 15  ;;  %v615_v48 = vadd.s32 120, %v18647_v24 }
 0x2b6   : > { %v18681_v52 = vor.u32 %v15690_v38, %v15674_v42  ;;  %v15847_v53 = vsel %vm2604_vm11, %v2620_v60, %v15635_v22  ;;  %v3010_v37 = vshrl.u32 %v1227_v33, 16  ;;  %v617_v10 = vadd.s32 136, %v18647_v24 }
 0x2b7   : > { %v3013_v15 = vshll.u32 %v1227_v33, 16  ;;  %v3019_v18 = vshrl.u32 %v1228_v55, 16  ;;  %v3022_v54 = vshll.u32 %v1228_v55, 16  ;;  %v11144_v11 = vsel %vm1139_vm12, 1.0, %v18654_v59 }
 0x2b8   : > { %v2621_v44 = vsel %vm2604_vm11, %v18681_v52, %v2620_v60  ;;  %v3012_v34 = vrot.slane %v3010_v37, 3  ;;  %v1229_v6 = vpack.c.bf16 %v11144_v11, %v18615_v39  ;;  %v11145_v5 = vsel %vm1141_vm13, 1.0, %v18654_v59 }
 0x2b9   : > { %v741_v42 = vand.u32 15, %v615_v48  ;;  %v3015_v38 = vrot.slane %v3013_v15, 4  ;;  %v3021_v50 = vrot.slane %v3019_v18, 3  ;;  %v3024_v47 = vrot.slane %v3022_v54, 4 }
 0x2ba   : > { %v1230_v22 = vpack.c.bf16 %v11145_v5, %v18615_v39  ;;  %v3028_v60 = vshrl.u32 %v1229_v6, 16  ;;  %v3031_v9 = vshll.u32 %v1229_v6, 16  ;;  %v755_v56 = vand.u32 15, %v617_v10 }
 0x2bb   : > { %12273 = vmatmul.mubr.bf16.gmra.mrb[32].mxu0 %v2374_v28  ;;  %vm1143_vm14 = vcmp.ne.s32.totalorder %v741_v42, 15  ;;  %v3016_v63 = vor.u32 %v3015_v38, %v3012_v34  ;;  %v3025_v27 = vor.u32 %v3024_v47, %v3021_v50  ;;  %v18682_v28 = vld [vmem:[#allocation16_spill] sm:$0xff]  ;;  %v619_v38 = vadd.s32 152, %v18647_v24 }
 0x2bc   : > { %12276 = vmatprep.mubr.bf16.mxu0 %v2376_v30  ;;  %v3037_v33 = vshrl.u32 %v1230_v22, 16  ;;  %v3040_v55 = vshll.u32 %v1230_v22, 16  ;;  %v3030_v52 = vrot.slane %v3028_v60, 3  ;;  %v3033_v37 = vrot.slane %v3031_v9, 4 }
 0x2bd   : > { %v11146_v11 = vsel %vm1143_vm14, 1.0, %v18654_v59  ;;  %vm1145_vm15 = vcmp.ne.s32.totalorder %v755_v56, 15  ;;  %v15857_v48 = vsel %vm2604_vm11, %v18682_v28, %v3016_v63  ;;  %v15860_v15 = vsel %vm2604_vm11, %v3016_v63, %v3025_v27 }
 0x2be   : > { %18683 = vst [vmem:[#allocation30_spill] sm:$0xff] %v15857_v48  ;;  %18684 = vst [vmem:[#allocation19_spill] sm:$0xff] %v15860_v15  ;;  %v3039_v30 = vrot.slane %v3037_v33, 3  ;;  %v3042_v18 = vrot.slane %v3040_v55, 4  ;;  %v3146_v10 = vmul.bf16 %v15857_v48, %v15574_v3  ;;  %v3147_v54 = vmul.bf16 %v15860_v15, %v15580_v29 }
 0x2bf   : > { %v3034_v34 = vor.u32 %v3033_v37, %v3030_v52  ;;  %v1231_v6 = vpack.c.bf16 %v11146_v11, %v18615_v39  ;;  %v11147_v42 = vsel %vm1145_vm15, 1.0, %v18654_v59  ;;  %v621_v50 = vadd.s32 168, %v18647_v24 }
 0x2c0   : > { %v3043_v5 = vor.u32 %v3042_v18, %v3039_v30  ;;  %v3204_v47 = vshrl.u32 %v3146_v10, 16  ;;  %v3207_v22 = vshll.u32 %v3146_v10, 16  ;;  %v3213_v60 = vshrl.u32 %v3147_v54, 16 }
 0x2c1   : > { %v3216_v9 = vshll.u32 %v3147_v54, 16  ;;  %v15871_v3 = vsel %vm2604_vm11, %v3025_v27, %v3034_v34  ;;  %v3046_v56 = vshrl.u32 %v1231_v6, 16  ;;  %v3049_v63 = vshll.u32 %v1231_v6, 16 }
 0x2c2   : > { %18685 = vst [vmem:[#allocation31_spill] sm:$0xff] %v15871_v3  ;;  %v15874_v29 = vsel %vm2604_vm11, %v3034_v34, %v3043_v5  ;;  %v3206_v33 = vrot.slane %v3204_v47, 4  ;;  %v3209_v55 = vrot.slane %v3207_v22, 5  ;;  %v3215_v52 = vrot.slane %v3213_v60, 4 }
 0x2c3   : > { %12277 = vmatmul.mubr.bf16.gmra.mrb[36].mxu0 %v2378_v26  ;;  %18686 = vst [vmem:[#allocation32_spill] sm:$0xff] %v15874_v29  ;;  %v3218_v37 = vrot.slane %v3216_v9, 5  ;;  %v3148_v11 = vmul.bf16 %v15871_v3, %v15589_v14  ;;  %v3149_v28 = vmul.bf16 %v15874_v29, %v15605_v8  ;;  %v3048_v26 = vrot.slane %v3046_v56, 3  ;;  %v14027_v9 = vld [vmem:[%s18443_s6 + $0x88] sm:$0xff]  }
 0x2c4   : > { %12296 = vmatprep.mubr.bf16.mxu0 %v2621_v44  ;;  %v3051_v30 = vrot.slane %v3049_v63, 4  ;;  %v3210_v27 = vor.u32 %v3209_v55, %v3206_v33  ;;  %v1232_v10 = vpack.c.bf16 %v11147_v42, %v18615_v39  ;;  %v769_v54 = vand.u32 15, %v619_v38 }
 0x2c5   : > { %v3219_v18 = vor.u32 %v3218_v37, %v3215_v52  ;;  %v3222_v34 = vshrl.u32 %v3148_v11, 16  ;;  %v3225_v6 = vshll.u32 %v3148_v11, 16  ;;  %v3231_v44 = vshrl.u32 %v3149_v28, 16 }
 0x2c6   : > { %v3234_v47 = vshll.u32 %v3149_v28, 16  ;;  %v15883_v22 = vsel %vm2117_vm9, %v15807_v51, %v3210_v27  ;;  %v3052_v60 = vor.u32 %v3051_v30, %v3048_v26  ;;  %v3055_v8 = vshrl.u32 %v1232_v10, 16 }
 0x2c7   : > { %v15886_v14 = vsel %vm2117_vm9, %v3210_v27, %v3219_v18  ;;  %v3224_v56 = vrot.slane %v3222_v34, 4  ;;  %v3227_v42 = vrot.slane %v3225_v6, 5  ;;  %v3233_v38 = vrot.slane %v3231_v44, 4 }
 0x2c8   : > { %v3236_v63 = vrot.slane %v3234_v47, 5  ;;  %v18687_v33 = vand.u32 15, %v18678_v40  ;;  %v15898_v51 = vsel %vm2604_vm11, %v3043_v5, %v3052_v60  ;;  %v3057_v52 = vrot.slane %v3055_v8, 3 }
 0x2c9   : > { %18690 = vst [vmem:[#allocation17_spill] sm:$0xff] %v15898_v51  ;;  %v3058_v37 = vshll.u32 %v1232_v10, 16  ;;  %vm1147_vm4 = vcmp.ne.s32.totalorder %v769_v54, 15  ;;  %v3228_v11 = vor.u32 %v3227_v42, %v3224_v56  ;;  %v3150_v26 = vmul.bf16 %v15898_v51, %v15670_v13 }
 0x2ca   : > { %vm15893_vm2 = vcmp.ne.s32.totalorder %v18687_v33, 0  ;;  %v3237_v28 = vor.u32 %v3236_v63, %v3233_v38  ;;  %v11148_v30 = vsel %vm1147_vm4, 1.0, %v18654_v59  ;;  %v1125_v40 = vpack.c.bf16 %v18615_v39, %v15835_v46 }
 0x2cb   : > { %12297 = vmatmul.mubr.bf16.vlgmr.msra.gmra.mrb[8].mxu0 %v15847_v53  ;;  %v3060_v5 = vrot.slane %v3058_v37, 4  ;;  %v1233_v27 = vpack.c.bf16 %v11148_v30, %v18615_v39  ;;  %v783_v10 = vand.u32 15, %v621_v50  ;;  %v14028_v53 = vld [vmem:[%s18443_s6 + $0x90] sm:$0xff]   ;;  %v15913_v13 = vsel %vm2117_vm9, %v3219_v18, %v3228_v11 }
 0x2cc   : > { %12329 = vmatpush3.bf16.msra.mxu0 %v15753_v21  ;;  %12300 = vmatprep.mubr.bf16.mxu0 %v15648_v12  ;;  %v15916_v54 = vsel %vm2117_vm9, %v3228_v11, %v3237_v28  ;;  %v3240_v21 = vshrl.u32 %v3150_v26, 16  ;;  %v3243_v12 = vshll.u32 %v3150_v26, 16  ;;  %v18691_v44 = vand.u32 15, %v15764_v62  ;;  %v14029_v62 = vld [vmem:[%s18443_s6 + $0x98] sm:$0xff]  }
 0x2cd   : > { %12330 = vmatprep.subr.bf16.mxu0 %v14027_v9  ;;  %v3061_v34 = vor.u32 %v3060_v5, %v3057_v52  ;;  %v3064_v6 = vshrl.u32 %v1233_v27, 16  ;;  %v3067_v46 = vshll.u32 %v1233_v27, 16  ;;  %vm1149_vm5 = vcmp.ne.s32.totalorder %v783_v10, 15 }
 0x2ce   : > { %vm15920_vm6 = vcmp.ne.s32.totalorder %v18691_v44, 0  ;;  %v3242_v47 = vrot.slane %v3240_v21, 4  ;;  %v3245_v8 = vrot.slane %v3243_v12, 5  ;;  %v11149_v18 = vsel %vm1149_vm5, 1.0, %v18654_v59 }
 0x2cf   : > { %v15926_v56 = vsel %vm2604_vm11, %v3052_v60, %v3061_v34  ;;  %v3066_v42 = vrot.slane %v3064_v6, 3  ;;  %v3069_v38 = vrot.slane %v3067_v46, 4  ;;  %v1234_v63 = vpack.c.bf16 %v11149_v18, %v18615_v39 }
 0x2d0   : > { %12331 = vmatpush3.bf16.msra.mxu0 %v14027_v9  ;;  %18694 = vst [vmem:[#allocation15_spill] sm:$0xff] %v15926_v56  ;;  %v15934_v33 = vor.u32 %v15827_v45, %v15825_v32  ;;  %v2229_v52 = vshll.u32 %v15815_v25, 16  ;;  %v3246_v37 = vor.u32 %v3245_v8, %v3242_v47  ;;  %v3151_v60 = vmul.bf16 %v15926_v56, %v15704_v41 }
 0x2d1   : > { %12332 = vmatprep.subr.bf16.mxu0 %v14028_v53  ;;  %v2235_v9 = vshrl.u32 %v1125_v40, 16  ;;  %v3070_v11 = vor.u32 %v3069_v38, %v3066_v42  ;;  %v3073_v26 = vshrl.u32 %v1234_v63, 16  ;;  %v3076_v30 = vshll.u32 %v1234_v63, 16 }
 0x2d2   : > { %v11137_v5 = vsel %vm15920_vm6, 1.0, %v18654_v59  ;;  %v15944_v27 = vsel %vm2117_vm9, %v3237_v28, %v3246_v37  ;;  %v3249_v32 = vshrl.u32 %v3151_v60, 16  ;;  %v3252_v45 = vshll.u32 %v3151_v60, 16  ;;  %v14030_v28 = vld [vmem:[%s18443_s6 + $0xa0] sm:$0xff]  }
 0x2d3   : > { %12301 = vmatmul.mubr.bf16.gmra.mrb[12].mxu0 %v15651_v61  ;;  %v2238_v10 = vshll.u32 %v1125_v40, 16  ;;  %v15948_v41 = vsel %vm2604_vm11, %v3061_v34, %v3070_v11  ;;  %v3075_v21 = vrot.slane %v3073_v26, 3  ;;  %v3078_v12 = vrot.slane %v3076_v30, 4 }
 0x2d4   : > { %12304 = vmatprep.mubr.bf16.mxu0 %v15658_v23  ;;  %12333 = vmatpush3.bf16.msra.mxu0 %v14028_v53  ;;  %18695 = vst [vmem:[#allocation18_spill] sm:$0xff] %v15948_v41  ;;  %v11138_v61 = vsel %vm15893_vm2, 1.0, %v18654_v59  ;;  %v3251_v6 = vrot.slane %v3249_v32, 4  ;;  %v3254_v46 = vrot.slane %v3252_v45, 5  ;;  %v3152_v23 = vmul.bf16 %v15948_v41, %v15714_v7 }
 0x2d5   : > { %12334 = vmatprep.subr.bf16.mxu0 %v14029_v62  ;;  %v2228_v40 = vrot.slane %v2226_v31, 4  ;;  %v2231_v53 = vrot.slane %v2229_v52, 5  ;;  %v1126_v34 = vpack.c.bf16 %v18615_v39, %v11137_v5  ;;  %v15961_v44 = vor.u32 %v3078_v12, %v3075_v21  ;;  %v14031_v31 = vld [vmem:[%s18443_s6 + $0xa8] sm:$0xff]  }
 0x2d6   : > { %v15966_v55 = vsel %vm2117_vm9, %v15681_v43, %v15934_v33  ;;  %v3255_v50 = vor.u32 %v3254_v46, %v3251_v6  ;;  %v3258_v47 = vshrl.u32 %v3152_v23, 16  ;;  %v3261_v8 = vshll.u32 %v3152_v23, 16 }
 0x2d7   : > { %18696 = vst [vmem:[#allocation21_spill] sm:$0xff] %v15966_v55  ;;  %v1127_v18 = vpack.c.bf16 %v18615_v39, %v11138_v61  ;;  %v2237_v7 = vrot.slane %v2235_v9, 4  ;;  %v2240_v42 = vrot.slane %v2238_v10, 5  ;;  %v15971_v25 = vsel %vm2604_vm11, %v3070_v11, %v15961_v44 }
 0x2d8   : > { %12335 = vmatpush3.bf16.msra.mxu0 %v14029_v62  ;;  %18697 = vst [vmem:[#allocation16_spill] sm:$0xff] %v15971_v25  ;;  %v15977_v43 = vsel %vm2117_vm9, %v3246_v37, %v3255_v50  ;;  %v3260_v38 = vrot.slane %v3258_v47, 4  ;;  %v3263_v63 = vrot.slane %v3261_v8, 5  ;;  %v3153_v52 = vmul.bf16 %v15971_v25, %v15718_v58  ;;  %v15981_v62 = vld [vmem:[#allocation2 + $0x58] sm:$0xff]  ;;  %v14032_v58 = vld [vmem:[%s18443_s6 + $0xb0] sm:$0xff]  }
 0x2d9   : > { %12336 = vmatprep.subr.bf16.mxu0 %v14030_v28  ;;  %v2289_v60 = vmul.bf16 %v15981_v62, %v15966_v55  ;;  %v2232_v9 = vor.u32 %v2231_v53, %v2228_v40  ;;  %v2244_v11 = vshrl.u32 %v1126_v34, 16  ;;  %v2247_v26 = vshll.u32 %v1126_v34, 16 }
 0x2da   : > { %v3264_v30 = vor.u32 %v3263_v63, %v3260_v38  ;;  %v3267_v5 = vshrl.u32 %v3153_v52, 16  ;;  %v3270_v32 = vshll.u32 %v3153_v52, 16  ;;  %v2253_v37 = vshrl.u32 %v1127_v18, 16  ;;  %v16024_v52 = vld [vmem:[%s18443_s6 + $0xc0] sm:$0xff]  }
 0x2db   : > { %12305 = vmatmul.mubr.bf16.gmra.mrb[16].mxu0 %v15707_v36  ;;  %v2256_v45 = vshll.u32 %v1127_v18, 16  ;;  %v2241_v10 = vor.u32 %v2240_v42, %v2237_v7  ;;  %v2704_v61 = vshrl.u32 %v2289_v60, 16  ;;  %v2707_v6 = vshll.u32 %v2289_v60, 16  ;;  %v16014_v42 = vld [vmem:[#allocation2 + $0x68] sm:$0xff] }
 0x2dc   : > { %12308 = vmatprep.mubr.bf16.mxu0 %v15742_v17  ;;  %12337 = vmatpush3.bf16.msra.mxu0 %v14030_v28  ;;  %v15991_v21 = vsel %vm2117_vm9, %v3255_v50, %v3264_v30  ;;  %v3269_v12 = vrot.slane %v3267_v5, 4  ;;  %v3272_v36 = vrot.slane %v3270_v32, 5  ;;  %v15995_v46 = vsel %vm2117_vm9, %v15934_v33, %v2232_v9  ;;  %v14033_v50 = vld [vmem:[%s18443_s6 + $0xb8] sm:$0xff]   ;;  %v16009_v33 = vld [vmem:[#allocation2 + $0x60] sm:$0xff] }
 0x2dd   : > { %12338 = vmatprep.subr.bf16.mxu0 %v14031_v31  ;;  %18698 = vst [vmem:[#allocation33_spill] sm:$0xff] %v15995_v46  ;;  %v2246_v23 = vrot.slane %v2244_v11, 4  ;;  %v2249_v17 = vrot.slane %v2247_v26, 5  ;;  %v2255_v40 = vrot.slane %v2253_v37, 4  ;;  %v2258_v53 = vrot.slane %v2256_v45, 5  ;;  %v16034_v37 = vld [vmem:[#allocation2 + $0x70] sm:$0xff] }
 0x2de   : > { %v15997_v28 = vor.u32 %v3272_v36, %v3269_v12  ;;  %v16000_v34 = vsel %vm2117_vm9, %v2232_v9, %v2241_v10  ;;  %v2290_v8 = vmul.bf16 %v16009_v33, %v15995_v46  ;;  %v2706_v18 = vrot.slane %v2704_v61, 3  ;;  %v16041_v36 = vld [vmem:[#allocation2 + $0x78] sm:$0xff] }
 0x2df   : > { %18699 = vst [vmem:[#allocation34_spill] sm:$0xff] %v16000_v34  ;;  %v2709_v7 = vrot.slane %v2707_v6, 4  ;;  %v2250_v38 = vor.u32 %v2249_v17, %v2246_v23  ;;  %v16018_v63 = vor.u32 %v2258_v53, %v2255_v40 }
 0x2e0   : > { %12339 = vmatpush3.bf16.msra.mxu0 %v14031_v31  ;;  %v16007_v47 = vsel %vm2117_vm9, %v3264_v30, %v15997_v28  ;;  %v2291_v31 = vmul.bf16 %v16014_v42, %v16000_v34  ;;  %v2716_v60 = vshll.u32 %v2290_v8, 16 }
 0x2e1   : > { %12340 = vmatprep.subr.bf16.mxu0 %v14032_v58  ;;  %18700 = vst [vmem:[#allocation35_spill] sm:$0xff] %v16018_v63  ;;  %v2710_v9 = vor.u32 %v2709_v7, %v2706_v18  ;;  %v16027_v30 = vsel %vm2117_vm9, %v2241_v10, %v2250_v38  ;;  %v16031_v5 = vsel %vm2117_vm9, %v2250_v38, %v16018_v63 }
 0x2e2   : > { %v2722_v11 = vshrl.u32 %v2291_v31, 16  ;;  %v2725_v26 = vshll.u32 %v2291_v31, 16  ;;  %18701 = vst [vmem:[#allocation36_spill] sm:$0xff] %v16027_v30  ;;  %18702 = vst [vmem:[#allocation37_spill] sm:$0xff] %v16031_v5  ;;  %v2718_v32 = vrot.slane %v2716_v60, 4  ;;  %v2292_v45 = vmul.bf16 %v16034_v37, %v16027_v30 }
 0x2e3   : > { %12309 = vmatmul.mubr.bf16.gmra.mrb[20].mxu0 %v15756_v16  ;;  %v2713_v16 = vshrl.u32 %v2290_v8, 16  ;;  %v2711_v10 = vsel %vm2604_vm11, %v15768_v57, %v2710_v9  ;;  %v2293_v61 = vmul.bf16 %v16041_v36, %v16031_v5 }
 0x2e4   : > { %12312 = vmatprep.mubr.bf16.mxu0 %v15778_v49  ;;  %12341 = vmatpush3.bf16.msra.mxu0 %v14032_v58  ;;  %v2724_v58 = vrot.slane %v2722_v11, 3  ;;  %v2727_v12 = vrot.slane %v2725_v26, 4  ;;  %v2731_v23 = vshrl.u32 %v2292_v45, 16  ;;  %v2734_v17 = vshll.u32 %v2292_v45, 16 }
 0x2e5   : > { %12342 = vmatprep.subr.bf16.mxu0 %v14033_v50  ;;  %v2715_v49 = vrot.slane %v2713_v16, 3  ;;  %v2740_v53 = vshrl.u32 %v2293_v61, 16 }
 0x2e6   : > { %v2728_v40 = vor.u32 %v2727_v12, %v2724_v58  ;;  %v2733_v57 = vrot.slane %v2731_v23, 3  ;;  %v2736_v18 = vrot.slane %v2734_v17, 4  ;;  %v625_v12 = vadd.s32 200, %v18647_v24 }
 0x2e7   : > { %v2719_v6 = vor.u32 %v2718_v32, %v2715_v49  ;;  %v2742_v31 = vrot.slane %v2740_v53, 3  ;;  %v623_v49 = vadd.s32 184, %v18647_v24 }
 0x2e8   : > { %12343 = vmatpush3.bf16.msra.mxu0 %v14033_v50  ;;  %v2743_v50 = vshll.u32 %v2293_v61, 16  ;;  %v2737_v16 = vor.u32 %v2736_v18, %v2733_v57  ;;  %v811_v17 = vand.u32 15, %v625_v12 }
 0x2e9   : > { %12376 = vmatprep.subr.bf16.mxu0 %v16024_v52  ;;  %v2720_v8 = vsel %vm2604_vm11, %v2710_v9, %v2719_v6  ;;  %v2729_v7 = vsel %vm2604_vm11, %v2719_v6, %v2728_v40  ;;  %v627_v6 = vadd.s32 216, %v18647_v24 }
 0x2ea   : > { %v2745_v38 = vrot.slane %v2743_v50, 4  ;;  %v2738_v32 = vsel %vm2604_vm11, %v2728_v40, %v2737_v16  ;;  %v14035_v50 = vld [vmem:[%s18443_s6 + $0xc8] sm:$0xff]   ;;  %vm1153_vm8 = vcmp.ne.s32.totalorder %v811_v17, 15 }
 0x2eb   : > { %12313 = vmatmul.mubr.bf16.gmra.mrb[24].mxu0 %v15782_v4  ;;  %v2294_v4 = vmul.bf16 %v16018_v63, %v15805_v0  ;;  %v825_v40 = vand.u32 15, %v627_v6  ;;  %v11151_v18 = vsel %vm1153_vm8, 1.0, %v18654_v59  ;;  %v14039_v17 = vld [vmem:[%s18443_s6 + $0xe8] sm:$0xff]  }
 0x2ec   : > { %12316 = vmatprep.mubr.bf16.mxu0 %v2711_v10  ;;  %v2746_v26 = vor.u32 %v2745_v38, %v2742_v31  ;;  %v797_v10 = vand.u32 15, %v623_v49 }
 0x2ed   : > { %v2749_v60 = vshrl.u32 %v2294_v4, 16  ;;  %v2752_v11 = vshll.u32 %v2294_v4, 16  ;;  %v629_v4 = vadd.s32 232, %v18647_v24  ;;  %vm1155_vm10 = vcmp.ne.s32.totalorder %v825_v40, 15 }
 0x2ee   : > { %v2747_v9 = vsel %vm2604_vm11, %v2737_v16, %v2746_v26  ;;  %vm1151_vm7 = vcmp.ne.s32.totalorder %v797_v10, 15  ;;  %v11152_v31 = vsel %vm1155_vm10, 1.0, %v18654_v59 }
 0x2ef   : > { %v2751_v45 = vrot.slane %v2749_v60, 3  ;;  %v2754_v0 = vrot.slane %v2752_v11, 4  ;;  %v11150_v23 = vsel %vm1151_vm7, 1.0, %v18654_v59  ;;  %v839_v38 = vand.u32 15, %v629_v4 }
 0x2f0   : > { %v1235_v53 = vpack.c.bf16 %v11150_v23, %v18615_v39 }
 0x2f1   : > { %v2755_v58 = vor.u32 %v2754_v0, %v2751_v45  ;;  %vm1157_vm12 = vcmp.ne.s32.totalorder %v839_v38, 15 }
 0x2f2   : > { %v3082_v57 = vshrl.u32 %v1235_v53, 16  ;;  %v11153_v0 = vsel %vm1157_vm12, 1.0, %v18654_v59 }
 0x2f3   : > { %12317 = vmatmul.mubr.bf16.gmra.mrb[28].mxu0 %v2720_v8  ;;  %v2756_v61 = vsel %vm2604_vm11, %v2746_v26, %v2755_v58  ;;  %v631_v8 = vadd.s32 248, %v18647_v24 }
 0x2f4   : > { %12320 = vmatprep.mubr.bf16.mxu0 %v2729_v7  ;;  %v14036_v7 = vld [vmem:[%s18443_s6 + $0xd0] sm:$0xff]   ;;  %v3084_v24 = vrot.slane %v3082_v57, 3 }
 0x2f5   : > { %v853_v16 = vand.u32 15, %v631_v8 }
 0x2f7   : > { %vm1159_vm13 = vcmp.ne.s32.totalorder %v853_v16, 15  ;;  %v14041_v16 = vld [vmem:[%s18443_s6 + $0xf8] sm:$0xff]  }
 0x2f8   : > { %v11154_v10 = vsel %vm1159_vm13, 1.0, %v18654_v59 }
 0x2f9   : > { %v1239_v23 = vpack.c.bf16 %v11154_v10, %v18615_v39 }
 0x2fb   : > { %12321 = vmatmul.mubr.bf16.gmra.mrb[32].mxu0 %v2738_v32  ;;  %v3118_v8 = vshrl.u32 %v1239_v23, 16  ;;  %v3121_v57 = vshll.u32 %v1239_v23, 16 }
 0x2fc   : > { %12324 = vmatprep.mubr.bf16.mxu0 %v2747_v9  ;;  %v14038_v9 = vld [vmem:[%s18443_s6 + $0xe0] sm:$0xff]  }
 0x2fd   : > { %v3123_v38 = vrot.slane %v3121_v57, 4 }
 0x303   : > { %12325 = vmatmul.mubr.bf16.gmra.mrb[36].mxu0 %v2756_v61 }
 0x304   : > { %12344 = vmatprep.mubr.bf16.mxu0 %v15818_v35  ;;  %v3085_v35 = vshll.u32 %v1235_v53, 16 }
 0x306   : > { %v3087_v60 = vrot.slane %v3085_v35, 4 }
 0x308   : > { %v3088_v11 = vor.u32 %v3087_v60, %v3084_v24 }
 0x30b   : > { %12345 = vmatmul.mubr.bf16.vlgmr.msra.gmra.mrb[8].mxu0 %v15822_v20  ;;  %v1236_v20 = vpack.c.bf16 %v11151_v18, %v18615_v39 }
 0x30c   : > { %12377 = vmatpush3.bf16.msra.mxu0 %v16024_v52  ;;  %12348 = vmatprep.mubr.bf16.mxu0 %v15883_v22  ;;  %v1237_v52 = vpack.c.bf16 %v11152_v31, %v18615_v39  ;;  %v14037_v22 = vld [vmem:[%s18443_s6 + $0xd8] sm:$0xff]  }
 0x30d   : > { %12378 = vmatprep.subr.bf16.mxu0 %v14035_v50  ;;  %v3091_v26 = vshrl.u32 %v1236_v20, 16  ;;  %v3094_v49 = vshll.u32 %v1236_v20, 16 }
 0x30e   : > { %v3100_v32 = vshrl.u32 %v1237_v52, 16  ;;  %v3103_v45 = vshll.u32 %v1237_v52, 16 }
 0x30f   : > { %v3093_v58 = vrot.slane %v3091_v26, 3  ;;  %v3096_v12 = vrot.slane %v3094_v49, 4  ;;  %v16119_v26 = vld [vmem:[%s18443_s6 + $0x100] sm:$0xff]  }
 0x310   : > { %12379 = vmatpush3.bf16.msra.mxu0 %v14035_v50  ;;  %v3102_v61 = vrot.slane %v3100_v32, 3  ;;  %v3105_v6 = vrot.slane %v3103_v45, 4 }
 0x311   : > { %12380 = vmatprep.subr.bf16.mxu0 %v14036_v7 }
 0x312   : > { %v3106_v4 = vor.u32 %v3105_v6, %v3102_v61 }
 0x313   : > { %12349 = vmatmul.mubr.bf16.gmra.mrb[12].mxu0 %v15886_v14  ;;  %v16085_v14 = vsel %vm2604_vm11, %v15961_v44, %v3088_v11  ;;  %v3097_v44 = vor.u32 %v3096_v12, %v3093_v58 }
 0x314   : > { %12352 = vmatprep.mubr.bf16.mxu0 %v15913_v13  ;;  %12381 = vmatpush3.bf16.msra.mxu0 %v14036_v7  ;;  %18703 = vst [vmem:[#allocation38_spill] sm:$0xff] %v16085_v14  ;;  %v1238_v13 = vpack.c.bf16 %v11153_v0, %v18615_v39  ;;  %v3154_v40 = vmul.bf16 %v15981_v62, %v16085_v14  ;;  %v14040_v39 = vld [vmem:[%s18443_s6 + $0xf0] sm:$0xff]  }
 0x315   : > { %12382 = vmatprep.subr.bf16.mxu0 %v14037_v22  ;;  %v16100_v62 = vsel %vm2604_vm11, %v3088_v11, %v3097_v44  ;;  %v16103_v31 = vsel %vm2604_vm11, %v3097_v44, %v3106_v4 }
 0x316   : > { %v3109_v53 = vshrl.u32 %v1238_v13, 16  ;;  %v3112_v50 = vshll.u32 %v1238_v13, 16  ;;  %v3276_v35 = vshrl.u32 %v3154_v40, 16  ;;  %v3279_v18 = vshll.u32 %v3154_v40, 16  ;;  %18704 = vst [vmem:[#allocation39_spill] sm:$0xff] %v16100_v62  ;;  %18705 = vst [vmem:[#allocation40_spill] sm:$0xff] %v16103_v31 }
 0x317   : > { %v3155_v24 = vmul.bf16 %v16009_v33, %v16100_v62  ;;  %v3156_v52 = vmul.bf16 %v16014_v42, %v16103_v31  ;;  %v3586_v40 = vld [vmem:[#allocation2 + $0x8] sm:$0xf8] }
 0x318   : > { %12383 = vmatpush3.bf16.msra.mxu0 %v14037_v22  ;;  %v3114_v7 = vrot.slane %v3112_v50, 4  ;;  %v3278_v60 = vrot.slane %v3276_v35, 4  ;;  %v3281_v20 = vrot.slane %v3279_v18, 5 }
 0x319   : > { %12384 = vmatprep.subr.bf16.mxu0 %v14038_v9  ;;  %v3285_v33 = vshrl.u32 %v3155_v24, 16  ;;  %v3288_v49 = vshll.u32 %v3155_v24, 16  ;;  %v3294_v32 = vshrl.u32 %v3156_v52, 16  ;;  %v3297_v45 = vshll.u32 %v3156_v52, 16 }
 0x31b   : > { %12353 = vmatmul.mubr.bf16.gmra.mrb[16].mxu0 %v15916_v54  ;;  %v3111_v54 = vrot.slane %v3109_v53, 3  ;;  %v3287_v42 = vrot.slane %v3285_v33, 4  ;;  %v3296_v12 = vrot.slane %v3294_v32, 4  ;;  %v3299_v13 = vrot.slane %v3297_v45, 5  ;;  %v16146_v33 = vld [vmem:[#allocation2 + $0x20] sm:$0xff] }
 0x31c   : > { %12356 = vmatprep.mubr.bf16.mxu0 %v15944_v27  ;;  %12385 = vmatpush3.bf16.msra.mxu0 %v14038_v9  ;;  %v3120_v27 = vrot.slane %v3118_v8, 3  ;;  %v3290_v9 = vrot.slane %v3288_v49, 5 }
 0x31d   : > { %12386 = vmatprep.subr.bf16.mxu0 %v14039_v17  ;;  %v3115_v22 = vor.u32 %v3114_v7, %v3111_v54  ;;  %v3300_v44 = vor.u32 %v3299_v13, %v3296_v12  ;;  %v18709_v13 = vld [vmem:[#allocation22_spill] sm:$0xff] }
 0x31e   : > { %v16114_v11 = vor.u32 %v3123_v38, %v3120_v27  ;;  %v3291_v6 = vor.u32 %v3290_v9, %v3287_v42 }
 0x31f   : > { %v16122_v0 = vsel %vm2604_vm11, %v3106_v4, %v3115_v22  ;;  %v2982_v4 = vld [vmem:[#allocation2 + $0x80] sm:$0x1f] }
 0x320   : > { %12387 = vmatpush3.bf16.msra.mxu0 %v14039_v17  ;;  %18706 = vst [vmem:[#allocation41_spill] sm:$0xff] %v16114_v11  ;;  %18707 = vst [vmem:[#allocation42_spill] sm:$0xff] %v16122_v0  ;;  %v3157_v10 = vmul.bf16 %v16034_v37, %v16122_v0  ;;  %v16136_v37 = vld [vmem:[#allocation2 + $0x10] sm:$0xff] }
 0x321   : > { %12388 = vmatprep.subr.bf16.mxu0 %v14040_v39  ;;  %v3604_v54 = vmul.bf16 %v16136_v37, %v15526_v1 }
 0x322   : > { %v3303_v23 = vshrl.u32 %v3157_v10, 16  ;;  %v3306_v17 = vshll.u32 %v3157_v10, 16 }
 0x323   : > { %12357 = vmatmul.mubr.bf16.gmra.mrb[20].mxu0 %v15977_v43  ;;  %v3282_v43 = vor.u32 %v3281_v20, %v3278_v60  ;;  %v16144_v60 = vld [vmem:[#allocation2 + $0x18] sm:$0xff]  ;;  %v3646_v52 = vshrl.u32 %v3604_v54, 16 }
 0x324   : > { %12360 = vmatprep.mubr.bf16.mxu0 %v15991_v21  ;;  %12389 = vmatpush3.bf16.msra.mxu0 %v14040_v39  ;;  %v16126_v21 = vsel %vm2604_vm11, %v3115_v22, %v16114_v11  ;;  %v3305_v8 = vrot.slane %v3303_v23, 4  ;;  %v3308_v57 = vrot.slane %v3306_v17, 5  ;;  %v3159_v39 = vmul.bf16 %v16114_v11, %v2982_v4 }
 0x325   : > { %12390 = vmatprep.subr.bf16.mxu0 %v14041_v16  ;;  %18708 = vst [vmem:[#allocation43_spill] sm:$0xff] %v16126_v21  ;;  %v3283_v58 = vsel %vm2117_vm9, %v15997_v28, %v3282_v43  ;;  %v3158_v61 = vmul.bf16 %v16041_v36, %v16126_v21  ;;  %v3292_v28 = vsel %vm2117_vm9, %v3282_v43, %v3291_v6  ;;  %v3649_v22 = vshll.u32 %v3604_v54, 16 }
 0x326   : > { %v3301_v36 = vsel %vm2117_vm9, %v3291_v6, %v3300_v44  ;;  %v3309_v27 = vor.u32 %v3308_v57, %v3305_v8  ;;  %v3321_v38 = vshrl.u32 %v3159_v39, 16  ;;  %v3605_v43 = vmul.bf16 %v16144_v60, %v18657_v2 }
 0x327   : > { %v3312_v53 = vshrl.u32 %v3158_v61, 16  ;;  %v3315_v50 = vshll.u32 %v3158_v61, 16  ;;  %v3651_v12 = vrot.slane %v3649_v22, 4  ;;  %v3606_v61 = vmul.bf16 %v16146_v33, %v18709_v13 }
 0x328   : > { %12391 = vmatpush3.bf16.msra.mxu0 %v14041_v16  ;;  %v3324_v16 = vshll.u32 %v3159_v39, 16  ;;  %v3310_v32 = vsel %vm2117_vm9, %v3300_v44, %v3309_v27  ;;  %v3323_v45 = vrot.slane %v3321_v38, 4  ;;  %v3655_v23 = vshrl.u32 %v3605_v43, 16  ;;  %v16154_v44 = vld [vmem:[#allocation2 + $0x28] sm:$0xff]  ;;  %v18710_v39 = vld [vmem:[#allocation24_spill] sm:$0xff] }
 0x329   : > { %12424 = vmatprep.subr.bf16.mxu0 %v16119_v26  ;;  %v3314_v35 = vrot.slane %v3312_v53, 4  ;;  %v3317_v18 = vrot.slane %v3315_v50, 5  ;;  %v3658_v17 = vshll.u32 %v3605_v43, 16  ;;  %v3664_v50 = vshrl.u32 %v3606_v61, 16  ;;  %v16166_v43 = vld [vmem:[#allocation2 + $0x40] sm:$0xff] }
 0x32a   : > { %v3326_v42 = vrot.slane %v3324_v16, 5  ;;  %v3667_v4 = vshll.u32 %v3606_v61, 16  ;;  %v3657_v8 = vrot.slane %v3655_v23, 3 }
 0x32b   : > { %12361 = vmatmul.mubr.bf16.gmra.mrb[24].mxu0 %v16007_v47  ;;  %v3603_v47 = vmul.bf16 %v3586_v40, %v15342_v19  ;;  %v3318_v20 = vor.u32 %v3317_v18, %v3314_v35  ;;  %v3660_v57 = vrot.slane %v3658_v17, 4  ;;  %v3666_v18 = vrot.slane %v3664_v50, 3  ;;  %v18713_v17 = vld [vmem:[#allocation11_spill] sm:$0xff]  ;;  %v16180_v50 = vld [vmem:[#allocation2 + $0x88] sm:$0xff] }
 0x32c   : > { %12364 = vmatprep.mubr.bf16.mxu0 %v3283_v58  ;;  %v3648_v58 = vrot.slane %v3646_v52, 3  ;;  %v3327_v6 = vor.u32 %v3326_v42, %v3323_v45  ;;  %v3669_v54 = vrot.slane %v3667_v4, 4  ;;  %v16164_v52 = vld [vmem:[#allocation2 + $0x38] sm:$0xff]  ;;  %v18712_v45 = vld [vmem:[#allocation23_spill] sm:$0xff]  ;;  %18714 = vst [vmem:[#allocation44_spill] sm:$0xff] %v16180_v50 }
 0x32d   : > { %v3638_v7 = vshrl.u32 %v3603_v47, 16  ;;  %v3641_v24 = vshll.u32 %v3603_v47, 16  ;;  %v3319_v10 = vsel %vm2117_vm9, %v3309_v27, %v3318_v20  ;;  %v16156_v47 = vld [vmem:[#allocation2 + $0x30] sm:$0xff]  ;;  %v3661_v38 = vor.u32 %v3660_v57, %v3657_v8 }
 0x32e   : > { %v3652_v53 = vor.u32 %v3651_v12, %v3648_v58  ;;  %v3609_v42 = vmul.bf16 %v16164_v52, %v18712_v45  ;;  %v16174_v12 = vld [vmem:[#allocation2 + $0x80] sm:$0xff]  ;;  %v16188_v8 = vld [vmem:[#allocation2 + $0x90] sm:$0xf] }
 0x32f   : > { %v3640_v49 = vrot.slane %v3638_v7, 3  ;;  %v3643_v9 = vrot.slane %v3641_v24, 4  ;;  %v18711_v7 = vld [vmem:[#allocation25_spill] sm:$0xff]  ;;  %18715 = vst [vmem:[#allocation45_spill] sm:$0xff] %v16188_v8 }
 0x330   : > { %v3608_v27 = vmul.bf16 %v16156_v47, %v18711_v7  ;;  %v3691_v4 = vshrl.u32 %v3609_v42, 16 }
 0x331   : > { %v3644_v40 = vor.u32 %v3643_v9, %v3640_v49  ;;  %v3662_v9 = vsel %vm2604_vm11, %v3652_v53, %v3661_v38 }
 0x332   : > { %v3682_v22 = vshrl.u32 %v3608_v27, 16  ;;  %v3685_v49 = vshll.u32 %v3608_v27, 16  ;;  %v5339_v27 = vrot.slane %v16180_v50, 4 }
 0x333   : > { %12365 = vmatmul.mubr.bf16.gmra.mrb[28].mxu0 %v3292_v28  ;;  %v3328_v28 = vsel %vm2117_vm9, %v3318_v20, %v3327_v6  ;;  %v3653_v35 = vsel %vm2604_vm11, %v3644_v40, %v3652_v53  ;;  %v3670_v20 = vor.u32 %v3669_v54, %v3666_v18  ;;  %v3610_v40 = vmul.bf16 %v16166_v43, %v18713_v17  ;;  %v14044_v53 = vld [vmem:[%s18443_s6 + $0x110] sm:$0xff]  }
 0x334   : > { %12368 = vmatprep.mubr.bf16.mxu0 %v3301_v36  ;;  %v3607_v36 = vmul.bf16 %v16154_v44, %v18710_v39  ;;  %v3684_v6 = vrot.slane %v3682_v22, 3  ;;  %v3687_v23 = vrot.slane %v3685_v49, 4  ;;  %v14045_v22 = vld [vmem:[%s18443_s6 + $0x118] sm:$0xff]  }
 0x335   : > { %v3671_v61 = vsel %vm2604_vm11, %v3661_v38, %v3670_v20  ;;  %v3700_v18 = vshrl.u32 %v3610_v40, 16  ;;  %v3703_v54 = vshll.u32 %v3610_v40, 16  ;;  %v16193_v38 = vld [vmem:[#allocation2 + $0x50] sm:$0xff] }
 0x336   : > { %v3673_v16 = vshrl.u32 %v3607_v36, 16  ;;  %v3676_v24 = vshll.u32 %v3607_v36, 16  ;;  %v3694_v36 = vshll.u32 %v3609_v42, 16  ;;  %v18719_v40 = vld [vmem:[#allocation27_spill] sm:$0xff] }
 0x338   : > { %v3678_v58 = vrot.slane %v3676_v24, 4  ;;  %v3693_v24 = vrot.slane %v3691_v4, 3  ;;  %v3612_v4 = vmul.bf16 %v16193_v38, %v18719_v40 }
 0x33b   : > { %12369 = vmatmul.mubr.bf16.gmra.mrb[32].mxu0 %v3310_v32  ;;  %v14043_v32 = vld [vmem:[%s18443_s6 + $0x108] sm:$0xff]  }
 0x33c   : > { %12372 = vmatprep.mubr.bf16.mxu0 %v3319_v10  ;;  %v3675_v10 = vrot.slane %v3673_v16, 3  ;;  %v5341_v16 = vrot.slane %v16188_v8, 4 }
 0x33e   : > { %v3679_v57 = vor.u32 %v3678_v58, %v3675_v10  ;;  %v18717_v10 = vld [vmem:[#allocation13_spill] sm:$0xff]  ;;  %v16207_v58 = vsel %vm2034_vm3, %v5339_v27, %v5341_v16  ;;  %v3718_v16 = vshrl.u32 %v3612_v4, 16 }
 0x33f   : > { %18718 = vst [vmem:[#allocation47_spill] sm:$0xff] %v16207_v58  ;;  %v16215_v58 = vld [vmem:[#allocation2 + $0x58] sm:$0xff] }
 0x340   : > { %v3680_v42 = vsel %vm2604_vm11, %v3670_v20, %v3679_v57  ;;  %v14046_v20 = vld [vmem:[%s18443_s6 + $0x120] sm:$0xff]  }
 0x343   : > { %12373 = vmatmul.mubr.bf16.gmra.mrb[36].mxu0 %v3328_v28  ;;  %v16186_v28 = vrot.slane %v16174_v12, 4 }
 0x344   : > { %12392 = vmatprep.mubr.bf16.mxu0 %v3653_v35  ;;  %v3688_v35 = vor.u32 %v3687_v23, %v3684_v6  ;;  %v3702_v6 = vrot.slane %v3700_v18, 3  ;;  %v3705_v23 = vrot.slane %v3703_v54, 4 }
 0x345   : > { %v16201_v49 = vsel %vm2034_vm3, %v16186_v28, %v5339_v27 }
 0x346   : > { %18716 = vst [vmem:[#allocation46_spill] sm:$0xff] %v16201_v49  ;;  %v3706_v27 = vor.u32 %v3705_v23, %v3702_v6  ;;  %v3720_v6 = vrot.slane %v3718_v16, 3 }
 0x34b   : > { %12393 = vmatmul.mubr.bf16.vlgmr.msra.gmra.mrb[8].mxu0 %v3662_v9  ;;  %v3696_v9 = vrot.slane %v3694_v36, 4 }
 0x34c   : > { %12425 = vmatpush3.bf16.msra.mxu0 %v16119_v26  ;;  %12396 = vmatprep.mubr.bf16.mxu0 %v3671_v61  ;;  %v16190_v26 = vld [vmem:[#allocation2 + $0x48] sm:$0xff]  ;;  %v3689_v61 = vsel %vm2604_vm11, %v3679_v57, %v3688_v35  ;;  %v16217_v57 = vld [vmem:[#allocation2 + $0x60] sm:$0xff] }
 0x34d   : > { %12426 = vmatprep.subr.bf16.mxu0 %v14043_v32  ;;  %v3697_v36 = vor.u32 %v3696_v9, %v3693_v24  ;;  %v18720_v24 = vld [vmem:[#allocation28_spill] sm:$0xff] }
 0x34e   : > { %v3613_v9 = vmul.bf16 %v16215_v58, %v18720_v24  ;;  %v16231_v24 = vld [vmem:[#allocation2 + $0x68] sm:$0xff] }
 0x34f   : > { %v3698_v18 = vsel %vm2604_vm11, %v3688_v35, %v3697_v36  ;;  %v14048_v35 = vld [vmem:[%s18443_s6 + $0x130] sm:$0xff]  }
 0x350   : > { %12427 = vmatpush3.bf16.msra.mxu0 %v14043_v32  ;;  %v3611_v32 = vmul.bf16 %v16190_v26, %v18717_v10 }
 0x351   : > { %12428 = vmatprep.subr.bf16.mxu0 %v14044_v53 }
 0x352   : > { %v3709_v59 = vshrl.u32 %v3611_v32, 16  ;;  %v3712_v49 = vshll.u32 %v3611_v32, 16  ;;  %v3707_v32 = vsel %vm2604_vm11, %v3697_v36, %v3706_v27  ;;  %v16233_v36 = vld [vmem:[#allocation2 + $0x70] sm:$0xff] }
 0x353   : > { %12397 = vmatmul.mubr.bf16.gmra.mrb[12].mxu0 %v3680_v42  ;;  %v3721_v42 = vshll.u32 %v3612_v4, 16  ;;  %v3730_v4 = vshll.u32 %v3613_v9, 16 }
 0x354   : > { %12400 = vmatprep.mubr.bf16.mxu0 %v3689_v61  ;;  %12429 = vmatpush3.bf16.msra.mxu0 %v14044_v53  ;;  %v14047_v53 = vld [vmem:[%s18443_s6 + $0x128] sm:$0xff]   ;;  %v3711_v54 = vrot.slane %v3709_v59, 3  ;;  %v3714_v61 = vrot.slane %v3712_v49, 4  ;;  %v3727_v49 = vshrl.u32 %v3613_v9, 16 }
 0x355   : > { %12430 = vmatprep.subr.bf16.mxu0 %v14045_v22  ;;  %v3723_v23 = vrot.slane %v3721_v42, 4 }
 0x356   : > { %v3715_v59 = vor.u32 %v3714_v61, %v3711_v54  ;;  %v3729_v42 = vrot.slane %v3727_v49, 3  ;;  %v3615_v54 = vmul.bf16 %v16231_v24, %v15995_v46 }
 0x357   : > { %v3724_v8 = vor.u32 %v3723_v23, %v3720_v6 }
 0x358   : > { %12431 = vmatpush3.bf16.msra.mxu0 %v14045_v22  ;;  %v3614_v22 = vmul.bf16 %v16217_v57, %v15966_v55  ;;  %v3716_v16 = vsel %vm2604_vm11, %v3706_v27, %v3715_v59  ;;  %v14050_v27 = vld [vmem:[%s18443_s6 + $0x140] sm:$0xff]   ;;  %v3748_v49 = vshll.u32 %v3615_v54, 16  ;;  %v16247_v55 = vld [vmem:[#allocation2 + $0x78] sm:$0xff] }
 0x359   : > { %12432 = vmatprep.subr.bf16.mxu0 %v14046_v20  ;;  %v3725_v61 = vsel %vm2604_vm11, %v3715_v59, %v3724_v8 }
 0x35a   : > { %v3736_v50 = vshrl.u32 %v3614_v22, 16 }
 0x35b   : > { %12401 = vmatmul.mubr.bf16.gmra.mrb[16].mxu0 %v3698_v18  ;;  %v3739_v18 = vshll.u32 %v3614_v22, 16  ;;  %v3745_v22 = vshrl.u32 %v3615_v54, 16  ;;  %v3618_v54 = vmul.bf16 %v16174_v12, %v16031_v5 }
 0x35c   : > { %12404 = vmatprep.mubr.bf16.mxu0 %v3707_v32  ;;  %12433 = vmatpush3.bf16.msra.mxu0 %v14046_v20  ;;  %v14049_v20 = vld [vmem:[%s18443_s6 + $0x138] sm:$0xff]   ;;  %v3732_v32 = vrot.slane %v3730_v4, 4  ;;  %v3738_v9 = vrot.slane %v3736_v50, 3 }
 0x35d   : > { %12434 = vmatprep.subr.bf16.mxu0 %v14047_v53  ;;  %v3741_v6 = vrot.slane %v3739_v18, 4  ;;  %v3747_v59 = vrot.slane %v3745_v22, 3  ;;  %v3750_v18 = vrot.slane %v3748_v49, 4  ;;  %v16255_v22 = vld [vmem:[#allocation2 + $0x88] sm:$0xf] }
 0x35e   : > { %v3733_v23 = vor.u32 %v3732_v32, %v3729_v42 }
 0x35f   : > { %v3742_v4 = vor.u32 %v3741_v6, %v3738_v9  ;;  %v3751_v9 = vor.u32 %v3750_v18, %v3747_v59 }
 0x360   : > { %12435 = vmatpush3.bf16.msra.mxu0 %v14047_v53  ;;  %v3616_v53 = vmul.bf16 %v16233_v36, %v16000_v34  ;;  %v3734_v50 = vsel %vm2604_vm11, %v3724_v8, %v3733_v23  ;;  %v3772_v34 = vshrl.u32 %v3618_v54, 16  ;;  %v3775_v8 = vshll.u32 %v3618_v54, 16 }
 0x361   : > { %12436 = vmatprep.subr.bf16.mxu0 %v14048_v35  ;;  %v3752_v49 = vsel %vm2604_vm11, %v3742_v4, %v3751_v9 }
 0x362   : > { %v3754_v46 = vshrl.u32 %v3616_v53, 16 }
 0x363   : > { %12405 = vmatmul.mubr.bf16.gmra.mrb[20].mxu0 %v3716_v16  ;;  %v3757_v16 = vshll.u32 %v3616_v53, 16 }
 0x364   : > { %12408 = vmatprep.mubr.bf16.mxu0 %v3725_v61  ;;  %12437 = vmatpush3.bf16.msra.mxu0 %v14048_v35  ;;  %v3617_v35 = vmul.bf16 %v16247_v55, %v16027_v30  ;;  %v3743_v61 = vsel %vm2604_vm11, %v3733_v23, %v3742_v4  ;;  %v3756_v42 = vrot.slane %v3754_v46, 3  ;;  %v3619_v46 = vmul.bf16 %v16255_v22, %v16018_v63 }
 0x365   : > { %12438 = vmatprep.subr.bf16.mxu0 %v14049_v20  ;;  %v3759_v32 = vrot.slane %v3757_v16, 4  ;;  %v3774_v16 = vrot.slane %v3772_v34, 3  ;;  %v4082_v34 = vrot.slane %v16136_v37, 4 }
 0x366   : > { %v3763_v6 = vshrl.u32 %v3617_v35, 16  ;;  %v3781_v18 = vshrl.u32 %v3619_v46, 16 }
 0x367   : > { %v3760_v53 = vor.u32 %v3759_v32, %v3756_v42 }
 0x368   : > { %12439 = vmatpush3.bf16.msra.mxu0 %v14049_v20  ;;  %v3766_v20 = vshll.u32 %v3617_v35, 16  ;;  %v3765_v30 = vrot.slane %v3763_v6, 3  ;;  %v3784_v35 = vshll.u32 %v3619_v46, 16  ;;  %v3783_v54 = vrot.slane %v3781_v18, 3  ;;  %v16263_v6 = vld [vmem:[#allocation2 + $0x8] sm:$0xf0] }
 0x369   : > { %12472 = vmatprep.subr.bf16.mxu0 %v14050_v27  ;;  %v3761_v23 = vsel %vm2604_vm11, %v3751_v9, %v3760_v53  ;;  %v4081_v9 = vrot.slane %v16263_v6, 4 }
 0x36a   : > { %v3786_v5 = vrot.slane %v3784_v35, 4  ;;  %v14054_v35 = vld [vmem:[%s18443_s6 + $0x160] sm:$0xff]  }
 0x36b   : > { %12409 = vmatmul.mubr.bf16.gmra.mrb[24].mxu0 %v3734_v50  ;;  %v3768_v50 = vrot.slane %v3766_v20, 4 }
 0x36c   : > { %12412 = vmatprep.mubr.bf16.mxu0 %v3743_v61  ;;  %v3777_v61 = vrot.slane %v3775_v8, 4  ;;  %v3787_v20 = vor.u32 %v3786_v5, %v3783_v54  ;;  %v4083_v8 = vsel %vm2034_vm3, %v4081_v9, %v4082_v34  ;;  %v14055_v54 = vld [vmem:[%s18443_s6 + $0x168] sm:$0xff]   ;;  %v14056_v9 = vld [vmem:[%s18443_s6 + $0x170] sm:$0xff]  }
 0x36d   : > { %v3769_v59 = vor.u32 %v3768_v50, %v3765_v30  ;;  %v14051_v50 = vld [vmem:[%s18443_s6 + $0x148] sm:$0xff]  }
 0x36e   : > { %v3778_v42 = vor.u32 %v3777_v61, %v3774_v16  ;;  %v4088_v16 = vrot.slane %v16154_v44, 4  ;;  %v4090_v61 = vrot.slane %v16156_v47, 4 }
 0x36f   : > { %v3770_v32 = vsel %vm2604_vm11, %v3760_v53, %v3769_v59  ;;  %v16270_v53 = vrot.slane %v16144_v60, 4 }
 0x370   : > { %v3779_v4 = vsel %vm2604_vm11, %v3769_v59, %v3778_v42  ;;  %v3788_v30 = vsel %vm2604_vm11, %v3778_v42, %v3787_v20  ;;  %v14053_v59 = vld [vmem:[%s18443_s6 + $0x158] sm:$0xff]   ;;  %v4092_v42 = vrot.slane %v16164_v52, 4 }
 0x371   : > { %v4085_v5 = vsel %vm2034_vm3, %v4082_v34, %v16270_v53  ;;  %v4096_v34 = vrot.slane %v16190_v26, 4 }
 0x373   : > { %12413 = vmatmul.mubr.bf16.gmra.mrb[28].mxu0 %v3752_v49  ;;  %v4086_v49 = vrot.slane %v16146_v33, 4 }
 0x374   : > { %12416 = vmatprep.mubr.bf16.mxu0 %v3761_v23  ;;  %v14052_v23 = vld [vmem:[%s18443_s6 + $0x150] sm:$0xff]  }
 0x375   : > { %v16280_v46 = vsel %vm2034_vm3, %v16270_v53, %v4086_v49  ;;  %v16292_v18 = vsel %vm2034_vm3, %v4086_v49, %v4088_v16 }
 0x37b   : > { %12417 = vmatmul.mubr.bf16.gmra.mrb[32].mxu0 %v3770_v32  ;;  %v4094_v32 = vrot.slane %v16166_v43, 4 }
 0x37c   : > { %12420 = vmatprep.mubr.bf16.mxu0 %v3779_v4  ;;  %v16308_v4 = vsel %vm2034_vm3, %v4090_v61, %v4092_v42 }
 0x37d   : > { %18722 = vst [vmem:[#allocation49_spill] sm:$0xff] %v16308_v4  ;;  %v16312_v20 = vsel %vm2034_vm3, %v4092_v42, %v4094_v32  ;;  %v16324_v49 = vsel %vm2034_vm3, %v4094_v32, %v4096_v34  ;;  %v4106_v42 = vrot.slane %v16233_v36, 4  ;;  %v18728_v32 = vld [vmem:[#allocation14_spill] sm:$0xff] }
 0x37e   : > { %18723 = vst [vmem:[#allocation50_spill] sm:$0xff] %v16312_v20  ;;  %18724 = vst [vmem:[#allocation51_spill] sm:$0xff] %v16324_v49 }
 0x383   : > { %12421 = vmatmul.mubr.bf16.gmra.mrb[36].mxu0 %v3788_v30  ;;  %v4098_v30 = vrot.slane %v16193_v38, 4 }
 0x384   : > { %12440 = vmatprep.mubr.bf16.mxu0 %v4083_v8  ;;  %v14057_v8 = vld [vmem:[%s18443_s6 + $0x178] sm:$0xff]  }
 0x38b   : > { %12441 = vmatmul.mubr.bf16.vlgmr.msra.gmra.mrb[8].mxu0 %v4085_v5  ;;  %v16334_v5 = vld [vmem:[%s18443_s6 + $0x180] sm:$0xff]  }
 0x38c   : > { %12473 = vmatpush3.bf16.msra.mxu0 %v14050_v27  ;;  %12444 = vmatprep.mubr.bf16.mxu0 %v16280_v46  ;;  %v16296_v27 = vsel %vm2034_vm3, %v4088_v16, %v4090_v61  ;;  %v4102_v16 = vrot.slane %v16217_v57, 4 }
 0x38d   : > { %12474 = vmatprep.subr.bf16.mxu0 %v14051_v50  ;;  %18721 = vst [vmem:[#allocation48_spill] sm:$0xff] %v16296_v27 }
 0x390   : > { %12475 = vmatpush3.bf16.msra.mxu0 %v14051_v50  ;;  %v16328_v50 = vsel %vm2034_vm3, %v4096_v34, %v4098_v30 }
 0x391   : > { %12476 = vmatprep.subr.bf16.mxu0 %v14052_v23  ;;  %18725 = vst [vmem:[#allocation52_spill] sm:$0xff] %v16328_v50 }
 0x393   : > { %12445 = vmatmul.mubr.bf16.gmra.mrb[12].mxu0 %v16292_v18 }
 0x394   : > { %12448 = vmatprep.mubr.bf16.mxu0 %v16296_v27  ;;  %12477 = vmatpush3.bf16.msra.mxu0 %v14052_v23  ;;  %v4100_v23 = vrot.slane %v16215_v58, 4 }
 0x395   : > { %12478 = vmatprep.subr.bf16.mxu0 %v14053_v59 }
 0x396   : > { %v16340_v61 = vsel %vm2034_vm3, %v4098_v30, %v4100_v23  ;;  %v18731_v30 = vld [vmem:[#allocation29_spill] sm:$0xff] }
 0x397   : > { %18726 = vst [vmem:[#allocation53_spill] sm:$0xff] %v16340_v61 }
 0x398   : > { %12479 = vmatpush3.bf16.msra.mxu0 %v14053_v59  ;;  %v16344_v59 = vsel %vm2034_vm3, %v4100_v23, %v4102_v16  ;;  %v4108_v23 = vrot.slane %v16247_v55, 4 }
 0x399   : > { %12480 = vmatprep.subr.bf16.mxu0 %v14054_v35  ;;  %18727 = vst [vmem:[#allocation54_spill] sm:$0xff] %v16344_v59 }
 0x39b   : > { %12449 = vmatmul.mubr.bf16.gmra.mrb[16].mxu0 %v16308_v4 }
 0x39c   : > { %12452 = vmatprep.mubr.bf16.mxu0 %v16312_v20  ;;  %12481 = vmatpush3.bf16.msra.mxu0 %v14054_v35  ;;  %v4104_v35 = vrot.slane %v16231_v24, 4 }
 0x39d   : > { %12482 = vmatprep.subr.bf16.mxu0 %v14055_v54 }
 0x39e   : > { %v16356_v34 = vsel %vm2034_vm3, %v4104_v35, %v4106_v42 }
 0x39f   : > { %18730 = vst [vmem:[#allocation56_spill] sm:$0xff] %v16356_v34 }
 0x3a0   : > { %12483 = vmatpush3.bf16.msra.mxu0 %v14055_v54  ;;  %v4372_v54 = vmul.bf16 %v16263_v6, %v18728_v32  ;;  %v16363_v6 = vsel %vm2034_vm3, %v4106_v42, %v4108_v23  ;;  %v18734_v32 = vld [vmem:[#allocation20_spill] sm:$0xff]  ;;  %v4112_v42 = vrot.slane %v16255_v22, 4  ;;  %v4377_v22 = vmul.bf16 %v16156_v47, %v15871_v3 }
 0x3a1   : > { %12484 = vmatprep.subr.bf16.mxu0 %v14056_v9  ;;  %18732 = vst [vmem:[#allocation57_spill] sm:$0xff] %v16363_v6 }
 0x3a3   : > { %12453 = vmatmul.mubr.bf16.gmra.mrb[20].mxu0 %v16324_v49 }
 0x3a4   : > { %12456 = vmatprep.mubr.bf16.mxu0 %v16328_v50  ;;  %12485 = vmatpush3.bf16.msra.mxu0 %v14056_v9  ;;  %v16352_v9 = vsel %vm2034_vm3, %v4102_v16, %v4104_v35  ;;  %v16367_v16 = vsel %vm2034_vm3, %v4108_v23, %v16186_v28 }
 0x3a5   : > { %12486 = vmatprep.subr.bf16.mxu0 %v14057_v8  ;;  %18729 = vst [vmem:[#allocation55_spill] sm:$0xff] %v16352_v9  ;;  %18733 = vst [vmem:[#allocation58_spill] sm:$0xff] %v16367_v16 }
 0x3a8   : > { %12487 = vmatpush3.bf16.msra.mxu0 %v14057_v8  ;;  %v4373_v8 = vmul.bf16 %v16136_v37, %v18731_v30 }
 0x3a9   : > { %12520 = vmatprep.subr.bf16.mxu0 %v16334_v5 }
 0x3aa   : > { %v4415_v50 = vshrl.u32 %v4373_v8, 16  ;;  %v4418_v49 = vshll.u32 %v4373_v8, 16 }
 0x3ab   : > { %12457 = vmatmul.mubr.bf16.gmra.mrb[24].mxu0 %v16340_v61  ;;  %v4410_v61 = vshll.u32 %v4372_v54, 16 }
 0x3ac   : > { %12460 = vmatprep.mubr.bf16.mxu0 %v16344_v59  ;;  %v4407_v59 = vshrl.u32 %v4372_v54, 16  ;;  %v4417_v30 = vrot.slane %v4415_v50, 4  ;;  %v4375_v54 = vmul.bf16 %v16146_v33, %v15857_v48 }
 0x3ad   : > { %v4412_v37 = vrot.slane %v4410_v61, 5 }
 0x3ae   : > { %v4409_v35 = vrot.slane %v4407_v59, 4  ;;  %v4433_v59 = vshrl.u32 %v4375_v54, 16  ;;  %v4436_v27 = vshll.u32 %v4375_v54, 16 }
 0x3b0   : > { %v4413_v23 = vor.u32 %v4412_v37, %v4409_v35  ;;  %v4438_v48 = vrot.slane %v4436_v27, 5  ;;  %v4451_v37 = vshrl.u32 %v4377_v22, 16  ;;  %v4378_v27 = vmul.bf16 %v16164_v52, %v15874_v29 }
 0x3b3   : > { %12461 = vmatmul.mubr.bf16.gmra.mrb[28].mxu0 %v16352_v9  ;;  %v4374_v9 = vmul.bf16 %v16144_v60, %v18734_v32  ;;  %v4113_v32 = vsel %vm2034_vm3, %v16186_v28, %v4112_v42  ;;  %v4454_v28 = vshll.u32 %v4377_v22, 16 }
 0x3b4   : > { %12464 = vmatprep.mubr.bf16.mxu0 %v16356_v34  ;;  %v4420_v34 = vrot.slane %v4418_v49, 5  ;;  %v4376_v49 = vmul.bf16 %v16154_v44, %v15860_v15 }
 0x3b5   : > { %v4424_v8 = vshrl.u32 %v4374_v9, 16  ;;  %v4427_v20 = vshll.u32 %v4374_v9, 16 }
 0x3b6   : > { %v4421_v4 = vor.u32 %v4420_v34, %v4417_v30  ;;  %v4442_v34 = vshrl.u32 %v4376_v49, 16  ;;  %v4445_v30 = vshll.u32 %v4376_v49, 16 }
 0x3b7   : > { %v4429_v61 = vrot.slane %v4427_v20, 5  ;;  %v14059_v20 = vld [vmem:[%s18443_s6 + $0x188] sm:$0xff]  }
 0x3b8   : > { %v4422_v50 = vsel %vm2117_vm9, %v4413_v23, %v4421_v4  ;;  %v4444_v54 = vrot.slane %v4442_v34, 4  ;;  %v4447_v42 = vrot.slane %v4445_v30, 5  ;;  %v4456_v23 = vrot.slane %v4454_v28, 5 }
 0x3bb   : > { %12465 = vmatmul.mubr.bf16.gmra.mrb[32].mxu0 %v16363_v6  ;;  %v4426_v6 = vrot.slane %v4424_v8, 4 }
 0x3bc   : > { %12468 = vmatprep.mubr.bf16.mxu0 %v16367_v16  ;;  %v4435_v16 = vrot.slane %v4433_v59, 4  ;;  %v4460_v59 = vshrl.u32 %v4378_v27, 16 }
 0x3bd   : > { %v4430_v9 = vor.u32 %v4429_v61, %v4426_v6  ;;  %v4453_v6 = vrot.slane %v4451_v37, 4  ;;  %v4463_v61 = vshll.u32 %v4378_v27, 16  ;;  %v4380_v37 = vmul.bf16 %v16190_v26, %v15926_v56 }
 0x3be   : > { %v4439_v35 = vor.u32 %v4438_v48, %v4435_v16  ;;  %v4379_v48 = vmul.bf16 %v16166_v43, %v15898_v51  ;;  %v4448_v16 = vor.u32 %v4447_v42, %v4444_v54  ;;  %v4462_v34 = vrot.slane %v4460_v59, 4 }
 0x3bf   : > { %v4457_v49 = vor.u32 %v4456_v23, %v4453_v6  ;;  %v4465_v30 = vrot.slane %v4463_v61, 5  ;;  %v4478_v27 = vshrl.u32 %v4380_v37, 16 }
 0x3c0   : > { %v4440_v8 = vsel %vm2117_vm9, %v4430_v9, %v4439_v35  ;;  %v4472_v22 = vshll.u32 %v4379_v48, 16 }
 0x3c1   : > { %v4458_v28 = vsel %vm2117_vm9, %v4448_v16, %v4457_v49  ;;  %v4466_v42 = vor.u32 %v4465_v30, %v4462_v34 }
 0x3c2   : > { %v4474_v54 = vrot.slane %v4472_v22, 5 }
 0x3c3   : > { %12469 = vmatmul.mubr.bf16.gmra.mrb[36].mxu0 %v4113_v32  ;;  %v4431_v32 = vsel %vm2117_vm9, %v4421_v4, %v4430_v9  ;;  %v14060_v4 = vld [vmem:[%s18443_s6 + $0x190] sm:$0xff]   ;;  %v14061_v9 = vld [vmem:[%s18443_s6 + $0x198] sm:$0xff]   ;;  %v4467_v59 = vsel %vm2117_vm9, %v4457_v49, %v4466_v42 }
 0x3c4   : > { %12488 = vmatprep.mubr.bf16.mxu0 %v4422_v50  ;;  %v4469_v50 = vshrl.u32 %v4379_v48, 16  ;;  %v14064_v49 = vld [vmem:[%s18443_s6 + $0x1b0] sm:$0xff]  }
 0x3cb   : > { %12489 = vmatmul.mubr.bf16.vlgmr.msra.gmra.mrb[8].mxu0 %v4431_v32  ;;  %v4471_v32 = vrot.slane %v4469_v50, 4  ;;  %v4382_v50 = vmul.bf16 %v16215_v58, %v15971_v25 }
 0x3cc   : > { %12521 = vmatpush3.bf16.msra.mxu0 %v16334_v5  ;;  %12492 = vmatprep.mubr.bf16.mxu0 %v4440_v8  ;;  %v4449_v5 = vsel %vm2117_vm9, %v4439_v35, %v4448_v16  ;;  %v14062_v35 = vld [vmem:[%s18443_s6 + $0x1a0] sm:$0xff]   ;;  %v4481_v8 = vshll.u32 %v4380_v37, 16  ;;  %v14063_v16 = vld [vmem:[%s18443_s6 + $0x1a8] sm:$0xff]  }
 0x3cd   : > { %12522 = vmatprep.subr.bf16.mxu0 %v14059_v20  ;;  %v4475_v6 = vor.u32 %v4474_v54, %v4471_v32  ;;  %v4496_v37 = vshrl.u32 %v4382_v50, 16 }
 0x3ce   : > { %v4483_v61 = vrot.slane %v4481_v8, 5 }
 0x3cf   : > { %v4476_v22 = vsel %vm2117_vm9, %v4466_v42, %v4475_v6  ;;  %v14065_v42 = vld [vmem:[%s18443_s6 + $0x1b8] sm:$0xff]  }
 0x3d0   : > { %12523 = vmatpush3.bf16.msra.mxu0 %v14059_v20  ;;  %v4381_v20 = vmul.bf16 %v16193_v38, %v15948_v41 }
 0x3d1   : > { %12524 = vmatprep.subr.bf16.mxu0 %v14060_v4 }
 0x3d2   : > { %v4487_v23 = vshrl.u32 %v4381_v20, 16  ;;  %v4490_v48 = vshll.u32 %v4381_v20, 16 }
 0x3d3   : > { %12493 = vmatmul.mubr.bf16.gmra.mrb[12].mxu0 %v4449_v5 }
 0x3d4   : > { %12496 = vmatprep.mubr.bf16.mxu0 %v4458_v28  ;;  %12525 = vmatpush3.bf16.msra.mxu0 %v14060_v4  ;;  %v4480_v4 = vrot.slane %v4478_v27, 4  ;;  %v4489_v5 = vrot.slane %v4487_v23, 4  ;;  %v4492_v34 = vrot.slane %v4490_v48, 5  ;;  %v4499_v28 = vshll.u32 %v4382_v50, 16 }
 0x3d5   : > { %12526 = vmatprep.subr.bf16.mxu0 %v14061_v9  ;;  %v4384_v23 = vmul.bf16 %v16231_v24, %v16100_v62 }
 0x3d6   : > { %v4484_v30 = vor.u32 %v4483_v61, %v4480_v4  ;;  %v4493_v32 = vor.u32 %v4492_v34, %v4489_v5  ;;  %v4501_v8 = vrot.slane %v4499_v28, 5 }
 0x3d7   : > { %v4514_v50 = vshrl.u32 %v4384_v23, 16 }
 0x3d8   : > { %12527 = vmatpush3.bf16.msra.mxu0 %v14061_v9  ;;  %v4383_v9 = vmul.bf16 %v16217_v57, %v16085_v14  ;;  %v4485_v27 = vsel %vm2117_vm9, %v4475_v6, %v4484_v30  ;;  %v4494_v48 = vsel %vm2117_vm9, %v4484_v30, %v4493_v32  ;;  %v16432_v6 = vld [vmem:[%s18443_s6 + $0x1c0] sm:$0xff]  }
 0x3d9   : > { %12528 = vmatprep.subr.bf16.mxu0 %v14062_v35 }
 0x3da   : > { %v4505_v54 = vshrl.u32 %v4383_v9, 16  ;;  %v4508_v20 = vshll.u32 %v4383_v9, 16 }
 0x3db   : > { %12497 = vmatmul.mubr.bf16.gmra.mrb[16].mxu0 %v4467_v59 }
 0x3dc   : > { %12500 = vmatprep.mubr.bf16.mxu0 %v4476_v22  ;;  %12529 = vmatpush3.bf16.msra.mxu0 %v14062_v35  ;;  %v4498_v35 = vrot.slane %v4496_v37, 4  ;;  %v4507_v59 = vrot.slane %v4505_v54, 4  ;;  %v4510_v4 = vrot.slane %v4508_v20, 5  ;;  %v4517_v22 = vshll.u32 %v4384_v23, 16 }
 0x3dd   : > { %12530 = vmatprep.subr.bf16.mxu0 %v14063_v16  ;;  %v4516_v37 = vrot.slane %v4514_v50, 4 }
 0x3de   : > { %v4502_v61 = vor.u32 %v4501_v8, %v4498_v35  ;;  %v4511_v5 = vor.u32 %v4510_v4, %v4507_v59  ;;  %v4519_v28 = vrot.slane %v4517_v22, 5  ;;  %v4387_v35 = vmul.bf16 %v16174_v12, %v16126_v21 }
 0x3e0   : > { %12531 = vmatpush3.bf16.msra.mxu0 %v14063_v16  ;;  %v4385_v16 = vmul.bf16 %v16233_v36, %v16103_v31  ;;  %v4503_v30 = vsel %vm2117_vm9, %v4493_v32, %v4502_v61  ;;  %v4512_v54 = vsel %vm2117_vm9, %v4502_v61, %v4511_v5  ;;  %v4520_v8 = vor.u32 %v4519_v28, %v4516_v37 }
 0x3e1   : > { %12532 = vmatprep.subr.bf16.mxu0 %v14064_v49  ;;  %v4541_v32 = vshrl.u32 %v4387_v35, 16  ;;  %v4544_v4 = vshll.u32 %v4387_v35, 16  ;;  %v4833_v28 = vmul.bf16 %v16144_v60, %v15526_v1 }
 0x3e2   : > { %v4523_v34 = vshrl.u32 %v4385_v16, 16  ;;  %v4526_v9 = vshll.u32 %v4385_v16, 16  ;;  %v4815_v16 = vld [vmem:[#allocation2 + $0x10] sm:$0xf8]  ;;  %v4521_v22 = vsel %vm2117_vm9, %v4511_v5, %v4520_v8 }
 0x3e3   : > { %12501 = vmatmul.mubr.bf16.gmra.mrb[20].mxu0 %v4485_v27  ;;  %v4546_v37 = vrot.slane %v4544_v4, 5  ;;  %v4875_v5 = vshrl.u32 %v4833_v28, 16 }
 0x3e4   : > { %12504 = vmatprep.mubr.bf16.mxu0 %v4494_v48  ;;  %12533 = vmatpush3.bf16.msra.mxu0 %v14064_v49  ;;  %v4386_v49 = vmul.bf16 %v16247_v55, %v16122_v0  ;;  %v4525_v20 = vrot.slane %v4523_v34, 4  ;;  %v4528_v27 = vrot.slane %v4526_v9, 5  ;;  %v4371_v48 = vld [vmem:[#allocation2 + $0x88] sm:$0x1f]  ;;  %v4832_v34 = vmul.bf16 %v4815_v16, %v15342_v19 }
 0x3e5   : > { %12534 = vmatprep.subr.bf16.mxu0 %v14065_v42  ;;  %v4388_v50 = vmul.bf16 %v4371_v48, %v16114_v11  ;;  %v4877_v4 = vrot.slane %v4875_v5, 3 }
 0x3e6   : > { %v4535_v23 = vshll.u32 %v4386_v49, 16  ;;  %v4529_v59 = vor.u32 %v4528_v27, %v4525_v20  ;;  %v4867_v35 = vshrl.u32 %v4832_v34, 16  ;;  %v4870_v48 = vshll.u32 %v4832_v34, 16 }
 0x3e7   : > { %v4553_v20 = vshll.u32 %v4388_v50, 16 }
 0x3e8   : > { %12535 = vmatpush3.bf16.msra.mxu0 %v14065_v42  ;;  %v4532_v42 = vshrl.u32 %v4386_v49, 16  ;;  %v4537_v61 = vrot.slane %v4535_v23, 5  ;;  %v4530_v9 = vsel %vm2117_vm9, %v4520_v8, %v4529_v59  ;;  %v4550_v49 = vshrl.u32 %v4388_v50, 16 }
 0x3e9   : > { %12568 = vmatprep.subr.bf16.mxu0 %v16432_v6  ;;  %v4555_v21 = vrot.slane %v4553_v20, 5  ;;  %v4872_v8 = vrot.slane %v4870_v48, 4 }
 0x3ea   : > { %v4552_v23 = vrot.slane %v4550_v49, 4 }
 0x3eb   : > { %12505 = vmatmul.mubr.bf16.gmra.mrb[24].mxu0 %v4503_v30  ;;  %v4534_v30 = vrot.slane %v4532_v42, 4  ;;  %v4878_v42 = vshll.u32 %v4833_v28, 16 }
 0x3ec   : > { %12508 = vmatprep.mubr.bf16.mxu0 %v4512_v54  ;;  %v4543_v54 = vrot.slane %v4541_v32, 4  ;;  %v4834_v32 = vmul.bf16 %v16146_v33, %v18657_v2 }
 0x3ed   : > { %v4538_v27 = vor.u32 %v4537_v61, %v4534_v30  ;;  %v4880_v50 = vrot.slane %v4878_v42, 4  ;;  %v4835_v30 = vmul.bf16 %v16154_v44, %v18709_v13  ;;  %v4556_v61 = vor.u32 %v4555_v21, %v4552_v23 }
 0x3ee   : > { %v4547_v11 = vor.u32 %v4546_v37, %v4543_v54  ;;  %v4884_v34 = vshrl.u32 %v4834_v32, 16  ;;  %v4837_v21 = vmul.bf16 %v16164_v52, %v18711_v7 }
 0x3ef   : > { %v4539_v16 = vsel %vm2117_vm9, %v4529_v59, %v4538_v27  ;;  %v4881_v37 = vor.u32 %v4880_v50, %v4877_v4  ;;  %v4893_v59 = vshrl.u32 %v4835_v30, 16  ;;  %v4896_v28 = vshll.u32 %v4835_v30, 16 }
 0x3f0   : > { %v4548_v60 = vsel %vm2117_vm9, %v4538_v27, %v4547_v11  ;;  %v4557_v49 = vsel %vm2117_vm9, %v4547_v11, %v4556_v61  ;;  %v4886_v20 = vrot.slane %v4884_v34, 3  ;;  %v4836_v27 = vmul.bf16 %v16156_v47, %v18710_v39  ;;  %v14068_v34 = vld [vmem:[%s18443_s6 + $0x1d0] sm:$0xff]  }
 0x3f1   : > { %v4895_v48 = vrot.slane %v4893_v59, 3  ;;  %v4898_v44 = vrot.slane %v4896_v28, 4  ;;  %v4914_v11 = vshll.u32 %v4837_v21, 16  ;;  %v4838_v4 = vmul.bf16 %v16166_v43, %v18712_v45 }
 0x3f2   : > { %v4902_v42 = vshrl.u32 %v4836_v27, 16  ;;  %v4905_v23 = vshll.u32 %v4836_v27, 16  ;;  %v4839_v61 = vmul.bf16 %v16190_v26, %v18713_v17  ;;  %v14069_v26 = vld [vmem:[%s18443_s6 + $0x1d8] sm:$0xff]  }
 0x3f3   : > { %12509 = vmatmul.mubr.bf16.gmra.mrb[28].mxu0 %v4521_v22  ;;  %v4869_v22 = vrot.slane %v4867_v35, 3  ;;  %v4916_v30 = vrot.slane %v4914_v11, 4  ;;  %v14071_v11 = vld [vmem:[%s18443_s6 + $0x1e8] sm:$0xff]  }
 0x3f4   : > { %12512 = vmatprep.mubr.bf16.mxu0 %v4530_v9  ;;  %v4887_v9 = vshll.u32 %v4834_v32, 16  ;;  %v4904_v32 = vrot.slane %v4902_v42, 3  ;;  %v4929_v59 = vshrl.u32 %v4839_v61, 16  ;;  %v4932_v28 = vshll.u32 %v4839_v61, 16 }
 0x3f5   : > { %v4873_v54 = vor.u32 %v4872_v8, %v4869_v22  ;;  %v4911_v22 = vshrl.u32 %v4837_v21, 16  ;;  %v14067_v8 = vld [vmem:[%s18443_s6 + $0x1c8] sm:$0xff]   ;;  %v14070_v21 = vld [vmem:[%s18443_s6 + $0x1e0] sm:$0xff]  }
 0x3f6   : > { %v4889_v33 = vrot.slane %v4887_v9, 4 }
 0x3f7   : > { %v4882_v35 = vsel %vm2604_vm11, %v4873_v54, %v4881_v37  ;;  %v4913_v50 = vrot.slane %v4911_v22, 3  ;;  %v4920_v54 = vshrl.u32 %v4838_v4, 16 }
 0x3f8   : > { %v4890_v5 = vor.u32 %v4889_v33, %v4886_v20  ;;  %v4840_v33 = vmul.bf16 %v16193_v38, %v18717_v10 }
 0x3f9   : > { %v4917_v43 = vor.u32 %v4916_v30, %v4913_v50  ;;  %v18736_v30 = vld [vmem:[#allocation21_spill] sm:$0xff] }
 0x3fa   : > { %v4891_v47 = vsel %vm2604_vm11, %v4881_v37, %v4890_v5  ;;  %v4923_v37 = vshll.u32 %v4838_v4, 16  ;;  %v4938_v42 = vshrl.u32 %v4840_v33, 16  ;;  %v4843_v61 = vmul.bf16 %v16231_v24, %v18736_v30 }
 0x3fb   : > { %12513 = vmatmul.mubr.bf16.gmra.mrb[32].mxu0 %v4539_v16  ;;  %v4899_v16 = vor.u32 %v4898_v44, %v4895_v48  ;;  %v4934_v48 = vrot.slane %v4932_v28, 4  ;;  %v4841_v44 = vmul.bf16 %v16215_v58, %v18719_v40  ;;  %v14073_v28 = vld [vmem:[%s18443_s6 + $0x1f8] sm:$0xff]  }
 0x3fc   : > { %12516 = vmatprep.mubr.bf16.mxu0 %v4548_v60  ;;  %v4907_v60 = vrot.slane %v4905_v23, 4  ;;  %v4925_v20 = vrot.slane %v4923_v37, 4  ;;  %v4941_v23 = vshll.u32 %v4840_v33, 16 }
 0x3fd   : > { %v4900_v52 = vsel %vm2604_vm11, %v4890_v5, %v4899_v16  ;;  %v4947_v38 = vshrl.u32 %v4841_v44, 16  ;;  %v4950_v22 = vshll.u32 %v4841_v44, 16 }
 0x3fe   : > { %v4908_v9 = vor.u32 %v4907_v60, %v4904_v32  ;;  %v18735_v32 = vld [vmem:[#allocation28_spill] sm:$0xff] }
 0x3ff   : > { %v4842_v60 = vmul.bf16 %v16217_v57, %v18735_v32  ;;  %v4952_v50 = vrot.slane %v4950_v22, 4  ;;  %v4965_v57 = vshrl.u32 %v4843_v61, 16 }
 0x400   : > { %v4918_v27 = vsel %vm2604_vm11, %v4908_v9, %v4917_v43 }
 0x401   : > { %v4959_v37 = vshll.u32 %v4842_v60, 16 }
 0x403   : > { %12517 = vmatmul.mubr.bf16.gmra.mrb[36].mxu0 %v4557_v49  ;;  %v4922_v49 = vrot.slane %v4920_v54, 3  ;;  %v4956_v54 = vshrl.u32 %v4842_v60, 16 }
 0x404   : > { %12536 = vmatprep.mubr.bf16.mxu0 %v4882_v35  ;;  %v4931_v35 = vrot.slane %v4929_v59, 3  ;;  %v4968_v59 = vshll.u32 %v4843_v61, 16 }
 0x405   : > { %v4926_v5 = vor.u32 %v4925_v20, %v4922_v49  ;;  %v18737_v49 = vld [vmem:[#allocation33_spill] sm:$0xff] }
 0x406   : > { %v4844_v20 = vmul.bf16 %v16233_v36, %v18737_v49 }
 0x407   : > { %v4927_v58 = vsel %vm2604_vm11, %v4917_v43, %v4926_v5 }
 0x40b   : > { %12537 = vmatmul.mubr.bf16.vlgmr.msra.gmra.mrb[8].mxu0 %v4891_v47  ;;  %v4943_v47 = vrot.slane %v4941_v23, 4  ;;  %v4977_v23 = vshll.u32 %v4844_v20, 16 }
 0x40c   : > { %12569 = vmatpush3.bf16.msra.mxu0 %v16432_v6  ;;  %12540 = vmatprep.mubr.bf16.mxu0 %v4900_v52  ;;  %v4909_v6 = vsel %vm2604_vm11, %v4899_v16, %v4908_v9  ;;  %v4935_v16 = vor.u32 %v4934_v48, %v4931_v35  ;;  %v4949_v52 = vrot.slane %v4947_v38, 3  ;;  %v4970_v35 = vrot.slane %v4968_v59, 4  ;;  %v18738_v48 = vld [vmem:[#allocation34_spill] sm:$0xff] }
 0x40d   : > { %12570 = vmatprep.subr.bf16.mxu0 %v14067_v8  ;;  %v4845_v44 = vmul.bf16 %v16247_v55, %v18738_v48  ;;  %v18739_v55 = vld [vmem:[#allocation36_spill] sm:$0xff] }
 0x40e   : > { %v4936_v4 = vsel %vm2604_vm11, %v4926_v5, %v4935_v16  ;;  %v4953_v43 = vor.u32 %v4952_v50, %v4949_v52  ;;  %v18740_v52 = vld [vmem:[#allocation37_spill] sm:$0xff]  ;;  %v18741_v50 = vld [vmem:[#allocation44_spill] sm:$0xff] }
 0x40f   : > { %v4983_v36 = vshrl.u32 %v4845_v44, 16  ;;  %v4986_v38 = vshll.u32 %v4845_v44, 16  ;;  %v4847_v61 = vmul.bf16 %v18741_v50, %v18740_v52  ;;  %v18744_v50 = vld [vmem:[#allocation49_spill] sm:$0xff] }
 0x410   : > { %12571 = vmatpush3.bf16.msra.mxu0 %v14067_v8  ;;  %v4940_v8 = vrot.slane %v4938_v42, 3  ;;  %v4974_v42 = vshrl.u32 %v4844_v20, 16 }
 0x411   : > { %12572 = vmatprep.subr.bf16.mxu0 %v14068_v34  ;;  %v4985_v60 = vrot.slane %v4983_v36, 3 }
 0x412   : > { %v4944_v9 = vor.u32 %v4943_v47, %v4940_v8  ;;  %v4846_v8 = vmul.bf16 %v16174_v12, %v18739_v55  ;;  %v18742_v12 = vld [vmem:[#allocation45_spill] sm:$0xff] }
 0x413   : > { %12541 = vmatmul.mubr.bf16.gmra.mrb[12].mxu0 %v4909_v6  ;;  %v4961_v6 = vrot.slane %v4959_v37, 4 }
 0x414   : > { %12544 = vmatprep.mubr.bf16.mxu0 %v4918_v27  ;;  %12573 = vmatpush3.bf16.msra.mxu0 %v14068_v34  ;;  %v14072_v34 = vld [vmem:[%s18443_s6 + $0x1f0] sm:$0xff]   ;;  %v4945_v24 = vsel %vm2604_vm11, %v4935_v16, %v4944_v9  ;;  %v4954_v33 = vsel %vm2604_vm11, %v4944_v9, %v4953_v43  ;;  %v4967_v27 = vrot.slane %v4965_v57, 3  ;;  %v4992_v9 = vshrl.u32 %v4846_v8, 16 }
 0x415   : > { %12574 = vmatprep.subr.bf16.mxu0 %v14069_v26  ;;  %v5001_v57 = vshrl.u32 %v4847_v61, 16 }
 0x416   : > { %v4971_v16 = vor.u32 %v4970_v35, %v4967_v27 }
 0x417   : > { %v5003_v20 = vrot.slane %v5001_v57, 3  ;;  %v18749_v57 = vld [vmem:[#allocation54_spill] sm:$0xff] }
 0x418   : > { %12575 = vmatpush3.bf16.msra.mxu0 %v14069_v26  ;;  %v4958_v26 = vrot.slane %v4956_v54, 3  ;;  %v4995_v54 = vshll.u32 %v4846_v8, 16 }
 0x419   : > { %12576 = vmatprep.subr.bf16.mxu0 %v14070_v21 }
 0x41a   : > { %v4962_v5 = vor.u32 %v4961_v6, %v4958_v26  ;;  %v4848_v26 = vmul.bf16 %v18742_v12, %v16018_v63  ;;  %v14460_v12 = vld [vmem:[#allocation2 + $0x18] sm:$0xff] }
 0x41b   : > { %12545 = vmatmul.mubr.bf16.gmra.mrb[16].mxu0 %v4927_v58  ;;  %v4979_v58 = vrot.slane %v4977_v23, 4 }
 0x41c   : > { %12548 = vmatprep.mubr.bf16.mxu0 %v4936_v4  ;;  %12577 = vmatpush3.bf16.msra.mxu0 %v14070_v21  ;;  %v14074_v21 = vld [vmem:[%s18443_s6 + $0x200] sm:$0xff]   ;;  %v4963_v22 = vsel %vm2604_vm11, %v4953_v43, %v4962_v5  ;;  %v4972_v47 = vsel %vm2604_vm11, %v4962_v5, %v4971_v16  ;;  %v4988_v4 = vrot.slane %v4986_v38, 4  ;;  %v5004_v43 = vshll.u32 %v4847_v61, 16  ;;  %v5275_v38 = vld [vmem:[#allocation2 + $0x10] sm:$0xf0] }
 0x41d   : > { %12578 = vmatprep.subr.bf16.mxu0 %v14071_v11  ;;  %v5010_v35 = vshrl.u32 %v4848_v26, 16  ;;  %v5013_v44 = vshll.u32 %v4848_v26, 16  ;;  %v18746_v61 = vld [vmem:[#allocation51_spill] sm:$0xff]  ;;  %v18753_v26 = vld [vmem:[#allocation29_spill] sm:$0xff] }
 0x41e   : > { %v4989_v37 = vor.u32 %v4988_v4, %v4985_v60  ;;  %v14076_v60 = vld [vmem:[%s18443_s6 + $0x210] sm:$0xff]   ;;  %v18743_v4 = vld [vmem:[#allocation48_spill] sm:$0xff] }
 0x41f   : > { %v5012_v23 = vrot.slane %v5010_v35, 3  ;;  %v5015_v36 = vrot.slane %v5013_v44, 4 }
 0x420   : > { %12579 = vmatpush3.bf16.msra.mxu0 %v14071_v11  ;;  %v4976_v11 = vrot.slane %v4974_v42, 3 }
 0x421   : > { %12580 = vmatprep.subr.bf16.mxu0 %v14072_v34 }
 0x423   : > { %12549 = vmatmul.mubr.bf16.gmra.mrb[20].mxu0 %v4945_v24  ;;  %v4997_v24 = vrot.slane %v4995_v54, 4  ;;  %v18747_v54 = vld [vmem:[#allocation52_spill] sm:$0xff] }
 0x424   : > { %12552 = vmatprep.mubr.bf16.mxu0 %v4954_v33  ;;  %12581 = vmatpush3.bf16.msra.mxu0 %v14072_v34  ;;  %v4980_v34 = vor.u32 %v4979_v58, %v4976_v11  ;;  %v5006_v33 = vrot.slane %v5004_v43, 4  ;;  %v5310_v11 = vrot.slane %v5275_v38, 4  ;;  %v18750_v43 = vld [vmem:[#allocation55_spill] sm:$0xff] }
 0x425   : > { %12582 = vmatprep.subr.bf16.mxu0 %v14073_v28 }
 0x426   : > { %v4981_v59 = vsel %vm2604_vm11, %v4971_v16, %v4980_v34  ;;  %v4990_v6 = vsel %vm2604_vm11, %v4980_v34, %v4989_v37  ;;  %v5007_v5 = vor.u32 %v5006_v33, %v5003_v20  ;;  %v5312_v8 = vsel %vm2034_vm3, %v5310_v11, %v16270_v53  ;;  %v14077_v53 = vld [vmem:[%s18443_s6 + $0x218] sm:$0xff]   ;;  %v14080_v34 = vld [vmem:[%s18443_s6 + $0x230] sm:$0xff]   ;;  %v18754_v20 = vld [vmem:[#allocation57_spill] sm:$0xff] }
 0x427   : > { %v18757_v11 = vld [vmem:[#allocation58_spill] sm:$0xff] }
 0x428   : > { %12583 = vmatpush3.bf16.msra.mxu0 %v14073_v28  ;;  %v4994_v28 = vrot.slane %v4992_v9, 3  ;;  %v14081_v9 = vld [vmem:[%s18443_s6 + $0x238] sm:$0xff]  }
 0x429   : > { %12616 = vmatprep.subr.bf16.mxu0 %v14074_v21 }
 0x42a   : > { %v4998_v27 = vor.u32 %v4997_v24, %v4994_v28  ;;  %v18752_v24 = vld [vmem:[#allocation56_spill] sm:$0xff] }
 0x42b   : > { %12553 = vmatmul.mubr.bf16.gmra.mrb[24].mxu0 %v4963_v22  ;;  %v5016_v22 = vor.u32 %v5015_v36, %v5012_v23  ;;  %v14462_v36 = vld [vmem:[#allocation2 + $0x28] sm:$0xff] }
 0x42c   : > { %12556 = vmatprep.mubr.bf16.mxu0 %v4972_v47  ;;  %v4999_v42 = vsel %vm2604_vm11, %v4989_v37, %v4998_v27  ;;  %v5008_v16 = vsel %vm2604_vm11, %v4998_v27, %v5007_v5  ;;  %v14075_v47 = vld [vmem:[%s18443_s6 + $0x208] sm:$0xff]   ;;  %v18748_v37 = vld [vmem:[#allocation53_spill] sm:$0xff] }
 0x42d   : > { %v5017_v58 = vsel %vm2604_vm11, %v5007_v5, %v5016_v22  ;;  %v14461_v5 = vld [vmem:[#allocation2 + $0x20] sm:$0xff] }
 0x433   : > { %12557 = vmatmul.mubr.bf16.gmra.mrb[28].mxu0 %v4981_v59  ;;  %v18751_v59 = vld [vmem:[#allocation14_spill] sm:$0xff] }
 0x434   : > { %12560 = vmatprep.mubr.bf16.mxu0 %v4990_v6  ;;  %v5601_v28 = vmul.bf16 %v5275_v38, %v18751_v59  ;;  %v5602_v6 = vmul.bf16 %v14460_v12, %v18753_v26 }
 0x436   : > { %v5636_v33 = vshrl.u32 %v5601_v28, 16  ;;  %v5639_v27 = vshll.u32 %v5601_v28, 16  ;;  %v5644_v35 = vshrl.u32 %v5602_v6, 16  ;;  %v5647_v44 = vshll.u32 %v5602_v6, 16 }
 0x438   : > { %v5638_v38 = vrot.slane %v5636_v33, 4 }
 0x43b   : > { %12561 = vmatmul.mubr.bf16.gmra.mrb[32].mxu0 %v4999_v42  ;;  %v18755_v42 = vld [vmem:[#allocation20_spill] sm:$0xff] }
 0x43c   : > { %12564 = vmatprep.mubr.bf16.mxu0 %v5008_v16  ;;  %v5603_v23 = vmul.bf16 %v14461_v5, %v18755_v42  ;;  %v18756_v16 = vld [vmem:[#allocation30_spill] sm:$0xff] }
 0x43d   : > { %v5604_v22 = vmul.bf16 %v14462_v36, %v18756_v16 }
 0x443   : > { %12565 = vmatmul.mubr.bf16.gmra.mrb[36].mxu0 %v5017_v58  ;;  %v5641_v58 = vrot.slane %v5639_v27, 5 }
 0x444   : > { %12584 = vmatprep.mubr.bf16.mxu0 %v5312_v8  ;;  %v5646_v8 = vrot.slane %v5644_v35, 4 }
 0x44b   : > { %12585 = vmatmul.mubr.bf16.vlgmr.msra.gmra.mrb[8].mxu0 %v16280_v46  ;;  %v14078_v46 = vld [vmem:[%s18443_s6 + $0x220] sm:$0xff]  }
 0x44c   : > { %12617 = vmatpush3.bf16.msra.mxu0 %v14074_v21  ;;  %12588 = vmatprep.mubr.bf16.mxu0 %v16292_v18  ;;  %v14079_v18 = vld [vmem:[%s18443_s6 + $0x228] sm:$0xff]  }
 0x44d   : > { %12618 = vmatprep.subr.bf16.mxu0 %v14075_v47  ;;  %v18745_v21 = vld [vmem:[#allocation50_spill] sm:$0xff] }
 0x450   : > { %12619 = vmatpush3.bf16.msra.mxu0 %v14075_v47  ;;  %v5649_v47 = vrot.slane %v5647_v44, 5 }
 0x451   : > { %12620 = vmatprep.subr.bf16.mxu0 %v14076_v60 }
 0x453   : > { %12589 = vmatmul.mubr.bf16.gmra.mrb[12].mxu0 %v18743_v4  ;;  %v5656_v4 = vshll.u32 %v5603_v23, 16 }
 0x454   : > { %12592 = vmatprep.mubr.bf16.mxu0 %v18744_v50  ;;  %12621 = vmatpush3.bf16.msra.mxu0 %v14076_v60  ;;  %v18758_v60 = vld [vmem:[#allocation46_spill] sm:$0xff]  ;;  %v5642_v50 = vor.u32 %v5641_v58, %v5638_v38 }
 0x455   : > { %12622 = vmatprep.subr.bf16.mxu0 %v14077_v53 }
 0x458   : > { %12623 = vmatpush3.bf16.msra.mxu0 %v14077_v53  ;;  %v5653_v53 = vshrl.u32 %v5603_v23, 16 }
 0x459   : > { %12624 = vmatprep.subr.bf16.mxu0 %v14078_v46 }
 0x45b   : > { %12593 = vmatmul.mubr.bf16.gmra.mrb[16].mxu0 %v18745_v21  ;;  %v5665_v21 = vshll.u32 %v5604_v22, 16 }
 0x45c   : > { %12596 = vmatprep.mubr.bf16.mxu0 %v18746_v61  ;;  %12625 = vmatpush3.bf16.msra.mxu0 %v14078_v46  ;;  %v5650_v46 = vor.u32 %v5649_v47, %v5646_v8  ;;  %v5655_v61 = vrot.slane %v5653_v53, 4  ;;  %v14466_v47 = vld [vmem:[#allocation2 + $0x48] sm:$0xff] }
 0x45d   : > { %12626 = vmatprep.subr.bf16.mxu0 %v14079_v18  ;;  %v5667_v28 = vrot.slane %v5665_v21, 5 }
 0x460   : > { %12627 = vmatpush3.bf16.msra.mxu0 %v14079_v18  ;;  %v5662_v18 = vshrl.u32 %v5604_v22, 16  ;;  %v14465_v22 = vld [vmem:[#allocation2 + $0x40] sm:$0xff] }
 0x461   : > { %12628 = vmatprep.subr.bf16.mxu0 %v14080_v34 }
 0x463   : > { %12597 = vmatmul.mubr.bf16.gmra.mrb[20].mxu0 %v18747_v54 }
 0x464   : > { %12600 = vmatprep.mubr.bf16.mxu0 %v18748_v37  ;;  %12629 = vmatpush3.bf16.msra.mxu0 %v14080_v34  ;;  %v5658_v34 = vrot.slane %v5656_v4, 5  ;;  %v18759_v37 = vld [vmem:[#allocation47_spill] sm:$0xff] }
 0x465   : > { %12630 = vmatprep.subr.bf16.mxu0 %v14081_v9 }
 0x466   : > { %v5659_v6 = vor.u32 %v5658_v34, %v5655_v61 }
 0x468   : > { %12631 = vmatpush3.bf16.msra.mxu0 %v14081_v9  ;;  %v14463_v9 = vld [vmem:[#allocation2 + $0x30] sm:$0xff]  ;;  %v5660_v5 = vsel %vm2117_vm9, %v5650_v46, %v5659_v6 }
 0x469   : > { %v5605_v54 = vmul.bf16 %v14463_v9, %v15860_v15 }
 0x46b   : > { %12601 = vmatmul.mubr.bf16.gmra.mrb[24].mxu0 %v18749_v57  ;;  %v5651_v57 = vsel %vm2117_vm9, %v5642_v50, %v5650_v46  ;;  %v5674_v33 = vshll.u32 %v5605_v54, 16 }
 0x46c   : > { %12604 = vmatprep.mubr.bf16.mxu0 %v18750_v43  ;;  %v5664_v43 = vrot.slane %v5662_v18, 4 }
 0x46d   : > { %v5676_v36 = vrot.slane %v5674_v33, 5 }
 0x46e   : > { %v5668_v27 = vor.u32 %v5667_v28, %v5664_v43 }
 0x470   : > { %v5669_v38 = vsel %vm2117_vm9, %v5659_v6, %v5668_v27 }
 0x473   : > { %12605 = vmatmul.mubr.bf16.gmra.mrb[28].mxu0 %v18752_v24  ;;  %v14464_v24 = vld [vmem:[#allocation2 + $0x38] sm:$0xff] }
 0x474   : > { %12608 = vmatprep.mubr.bf16.mxu0 %v18754_v20  ;;  %v5606_v12 = vmul.bf16 %v14464_v24, %v15871_v3  ;;  %v5671_v20 = vshrl.u32 %v5605_v54, 16  ;;  %v14467_v54 = vld [vmem:[#allocation2 + $0x50] sm:$0xff]  ;;  %v14468_v24 = vld [vmem:[#allocation2 + $0x58] sm:$0xff] }
 0x476   : > { %v5680_v35 = vshrl.u32 %v5606_v12, 16  ;;  %v5683_v44 = vshll.u32 %v5606_v12, 16  ;;  %v5673_v23 = vrot.slane %v5671_v20, 4  ;;  %v5610_v12 = vmul.bf16 %v14468_v24, %v15948_v41  ;;  %v14472_v24 = vld [vmem:[#allocation2 + $0x78] sm:$0xff] }
 0x478   : > { %v5682_v58 = vrot.slane %v5680_v35, 4  ;;  %v5685_v8 = vrot.slane %v5683_v44, 5  ;;  %v5677_v53 = vor.u32 %v5676_v36, %v5673_v23  ;;  %v5716_v44 = vshrl.u32 %v5610_v12, 16 }
 0x47a   : > { %v5686_v18 = vor.u32 %v5685_v8, %v5682_v58  ;;  %v5678_v61 = vsel %vm2117_vm9, %v5668_v27, %v5677_v53  ;;  %v5719_v27 = vshll.u32 %v5610_v12, 16  ;;  %v5718_v58 = vrot.slane %v5716_v44, 4 }
 0x47b   : > { %12609 = vmatmul.mubr.bf16.gmra.mrb[32].mxu0 %v18757_v11  ;;  %v5607_v11 = vmul.bf16 %v14465_v22, %v15874_v29  ;;  %v14469_v22 = vld [vmem:[#allocation2 + $0x60] sm:$0xff]  ;;  %v5614_v12 = vmul.bf16 %v14472_v24, %v16103_v31 }
 0x47c   : > { %12612 = vmatprep.mubr.bf16.mxu0 %v18758_v60  ;;  %v5608_v60 = vmul.bf16 %v14466_v47, %v15898_v51  ;;  %v5721_v8 = vrot.slane %v5719_v27, 5  ;;  %v14470_v47 = vld [vmem:[#allocation2 + $0x68] sm:$0xff] }
 0x47d   : > { %v5689_v4 = vshrl.u32 %v5607_v11, 16  ;;  %v5692_v50 = vshll.u32 %v5607_v11, 16  ;;  %v5611_v11 = vmul.bf16 %v14469_v22, %v15971_v25  ;;  %v5752_v27 = vshrl.u32 %v5614_v12, 16  ;;  %v14473_v22 = vld [vmem:[#allocation2 + $0x80] sm:$0xff] }
 0x47e   : > { %v5698_v21 = vshrl.u32 %v5608_v60, 16  ;;  %v5701_v46 = vshll.u32 %v5608_v60, 16  ;;  %v5612_v60 = vmul.bf16 %v14470_v47, %v16085_v14  ;;  %v14474_v47 = vld [vmem:[#allocation2 + $0x88] sm:$0xff] }
 0x47f   : > { %v5691_v34 = vrot.slane %v5689_v4, 4  ;;  %v5694_v9 = vrot.slane %v5692_v50, 5  ;;  %v5725_v4 = vshrl.u32 %v5611_v11, 16  ;;  %v5728_v50 = vshll.u32 %v5611_v11, 16 }
 0x480   : > { %v5700_v43 = vrot.slane %v5698_v21, 4  ;;  %v5703_v28 = vrot.slane %v5701_v46, 5  ;;  %v5722_v21 = vor.u32 %v5721_v8, %v5718_v58  ;;  %v5734_v46 = vshrl.u32 %v5612_v60, 16 }
 0x481   : > { %v5695_v6 = vor.u32 %v5694_v9, %v5691_v34  ;;  %v5727_v34 = vrot.slane %v5725_v4, 4  ;;  %v5730_v9 = vrot.slane %v5728_v50, 5  ;;  %v5615_v11 = vmul.bf16 %v14473_v22, %v16122_v0 }
 0x482   : > { %v5704_v35 = vor.u32 %v5703_v28, %v5700_v43  ;;  %v5736_v43 = vrot.slane %v5734_v46, 4  ;;  %v5754_v58 = vrot.slane %v5752_v27, 4 }
 0x483   : > { %12613 = vmatmul.mubr.bf16.gmra.mrb[36].mxu0 %v18759_v37  ;;  %v5609_v37 = vmul.bf16 %v14467_v54, %v15926_v56  ;;  %v14471_v54 = vld [vmem:[#allocation2 + $0x70] sm:$0xff]  ;;  %v5761_v50 = vshrl.u32 %v5615_v11, 16  ;;  %v5764_v46 = vshll.u32 %v5615_v11, 16  ;;  %v6123_v11 = vld [vmem:[%s18447_s10] sm:$0xff] }
 0x484   : > { %12632 = vmatprep.mubr.bf16.mxu0 %v5651_v57  ;;  %v5687_v57 = vsel %vm2117_vm9, %v5677_v53, %v5686_v18 }
 0x485   : > { %v5707_v20 = vshrl.u32 %v5609_v37, 16  ;;  %v5710_v33 = vshll.u32 %v5609_v37, 16  ;;  %v5613_v37 = vmul.bf16 %v14471_v54, %v16100_v62  ;;  %v5763_v54 = vrot.slane %v5761_v50, 4  ;;  %v6127_v50 = vld [vmem:[%s18447_s10 + $0x20] sm:$0xff] }
 0x487   : > { %v5709_v23 = vrot.slane %v5707_v20, 4  ;;  %v5712_v36 = vrot.slane %v5710_v33, 5  ;;  %v5743_v20 = vshrl.u32 %v5613_v37, 16  ;;  %v5746_v33 = vshll.u32 %v5613_v37, 16 }
 0x488   : > { %v5766_v37 = vrot.slane %v5764_v46, 5  ;;  %v6128_v46 = vld [vmem:[%s18447_s10 + $0x28] sm:$0xff] }
 0x489   : > { %v5713_v53 = vor.u32 %v5712_v36, %v5709_v23  ;;  %v5745_v23 = vrot.slane %v5743_v20, 4  ;;  %v5748_v36 = vrot.slane %v5746_v33, 5 }
 0x48b   : > { %12633 = vmatmul.mubr.bf16.vlgmr.msra.gmra.mrb[8].mxu0 %v5660_v5  ;;  %v5696_v5 = vsel %vm2117_vm9, %v5686_v18, %v5695_v6  ;;  %v5737_v18 = vshll.u32 %v5612_v60, 16  ;;  %v18760_v60 = vld [vmem:[#allocation43_spill] sm:$0xff]  ;;  %v5749_v4 = vor.u32 %v5748_v36, %v5745_v23 }
 0x48c   : > { %12636 = vmatprep.mubr.bf16.mxu0 %v5669_v38  ;;  %v5705_v38 = vsel %vm2117_vm9, %v5695_v6, %v5704_v35  ;;  %v5731_v6 = vor.u32 %v5730_v9, %v5727_v34  ;;  %v5600_v34 = vld [vmem:[#allocation2 + $0x90] sm:$0x1f] }
 0x48d   : > { %v5739_v28 = vrot.slane %v5737_v18, 5 }
 0x48f   : > { %v5740_v44 = vor.u32 %v5739_v28, %v5736_v43 }
 0x491   : > { %v5750_v9 = vsel %vm2117_vm9, %v5740_v44, %v5749_v4 }
 0x493   : > { %12637 = vmatmul.mubr.bf16.gmra.mrb[12].mxu0 %v5678_v61  ;;  %v5714_v61 = vsel %vm2117_vm9, %v5704_v35, %v5713_v53  ;;  %v5755_v35 = vshll.u32 %v5614_v12, 16 }
 0x494   : > { %12640 = vmatprep.mubr.bf16.mxu0 %v5687_v57  ;;  %v5723_v57 = vsel %vm2117_vm9, %v5713_v53, %v5722_v21  ;;  %v5616_v53 = vmul.bf16 %v14474_v47, %v18760_v60  ;;  %v6125_v47 = vld [vmem:[%s18447_s10 + $0x10] sm:$0xff] }
 0x495   : > { %v5757_v8 = vrot.slane %v5755_v35, 5 }
 0x497   : > { %v5758_v18 = vor.u32 %v5757_v8, %v5754_v58  ;;  %v18762_v8 = vmov 0.0|0.0  }
 0x499   : > { %v5759_v28 = vsel %vm2117_vm9, %v5749_v4, %v5758_v18 }
 0x49b   : > { %12641 = vmatmul.mubr.bf16.gmra.mrb[16].mxu0 %v5696_v5  ;;  %v5732_v5 = vsel %vm2117_vm9, %v5722_v21, %v5731_v6  ;;  %v5773_v21 = vshll.u32 %v5616_v53, 16 }
 0x49c   : > { %12644 = vmatprep.mubr.bf16.mxu0 %v5705_v38  ;;  %v5741_v38 = vsel %vm2117_vm9, %v5731_v6, %v5740_v44  ;;  %v5767_v6 = vor.u32 %v5766_v37, %v5763_v54  ;;  %v6132_v54 = vld [vmem:[%s18447_s10 + $0x48] sm:$0xff] }
 0x49d   : > { %v5775_v12 = vrot.slane %v5773_v21, 5  ;;  %v6130_v21 = vld [vmem:[%s18447_s10 + $0x38] sm:$0xff] }
 0x49e   : > { %v5768_v35 = vsel %vm2117_vm9, %v5758_v18, %v5767_v6  ;;  %v16618_v18 = vpack.c.bf16 %v6128_v46, %v6127_v50 }
 0x4a3   : > { %12645 = vmatmul.mubr.bf16.gmra.mrb[20].mxu0 %v5714_v61  ;;  %v5770_v61 = vshrl.u32 %v5616_v53, 16  ;;  %v6126_v53 = vld [vmem:[%s18447_s10 + $0x18] sm:$0xff] }
 0x4a4   : > { %12648 = vmatprep.mubr.bf16.mxu0 %v5723_v57  ;;  %v18761_v57 = vld [vmem:[#allocation41_spill] sm:$0xff]  ;;  %v16608_v4 = vpack.c.bf16 %v6126_v53, %v6125_v47 }
 0x4a5   : > { %v5617_v43 = vmul.bf16 %v5600_v34, %v18761_v57  ;;  %v5772_v24 = vrot.slane %v5770_v61, 4  ;;  %v6129_v61 = vld [vmem:[%s18447_s10 + $0x30] sm:$0xff]  ;;  %v6131_v34 = vld [vmem:[%s18447_s10 + $0x40] sm:$0xff] }
 0x4a6   : > { %v16637_v37 = vpack.c.bf16 %v6132_v54, %v6131_v34 }
 0x4a7   : > { %v5779_v20 = vshrl.u32 %v5617_v43, 16  ;;  %v5782_v33 = vshll.u32 %v5617_v43, 16  ;;  %v5776_v27 = vor.u32 %v5775_v12, %v5772_v24  ;;  %v6133_v43 = vld [vmem:[%s18447_s10 + $0x50] sm:$0xff]  ;;  %v6135_v12 = vld [vmem:[%s18447_s10 + $0x60] sm:$0xff] }
 0x4a9   : > { %v5784_v23 = vrot.slane %v5782_v33, 5  ;;  %v5777_v44 = vsel %vm2117_vm9, %v5767_v6, %v5776_v27  ;;  %v6136_v6 = vld [vmem:[%s18447_s10 + $0x68] sm:$0xff]  ;;  %v6137_v33 = vld [vmem:[%s18447_s10 + $0x70] sm:$0xff] }
 0x4ab   : > { %12649 = vmatmul.mubr.bf16.gmra.mrb[24].mxu0 %v5732_v5  ;;  %v5781_v5 = vrot.slane %v5779_v20, 4  ;;  %v16657_v20 = vpack.c.bf16 %v6136_v6, %v6135_v12 }
 0x4ac   : > { %12652 = vmatprep.mubr.bf16.mxu0 %v5741_v38  ;;  %v6124_v38 = vld [vmem:[%s18447_s10 + $0x8] sm:$0xff] }
 0x4ad   : > { %v5785_v36 = vor.u32 %v5784_v23, %v5781_v5  ;;  %v16598_v58 = vpack.c.bf16 %v6124_v38, %v6123_v11  ;;  %v16679_v5 = vld [vmem:[%s18444_s7] ss:$0 sm:$0xff] }
 0x4af   : > { %v5786_v22 = vsel %vm2117_vm9, %v5776_v27, %v5785_v36  ;;  %13298 = vmatpush3.bf16.msra.mxu1 %v16598_v58  ;;  %v6138_v27 = vld [vmem:[%s18447_s10 + $0x78] sm:$0xff] }
 0x4b0   : > { %13299 = vmatprep.subr.bf16.mxu1 %v18762_v8 }
 0x4b3   : > { %12653 = vmatmul.mubr.bf16.gmra.mrb[28].mxu0 %v5750_v9  ;;  %13301 = vmatpush3.bf16.msra.mxu1 %v16608_v4  ;;  %v16631_v9 = vpack.c.bf16 %v6130_v21, %v6129_v61 }
 0x4b4   : > { %12656 = vmatprep.mubr.bf16.mxu0 %v5759_v28  ;;  %13302 = vmatprep.subr.bf16.mxu1 %v18762_v8  ;;  %v6134_v28 = vld [vmem:[%s18447_s10 + $0x58] sm:$0xff] }
 0x4b5   : > { %v16647_v24 = vpack.c.bf16 %v6134_v28, %v6133_v43 }
 0x4b7   : > { %13304 = vmatpush3.bf16.msra.mxu1 %v16618_v18 }
 0x4b8   : > { %13305 = vmatprep.subr.bf16.mxu1 %v18762_v8 }
 0x4bb   : > { %12657 = vmatmul.mubr.bf16.gmra.mrb[32].mxu0 %v5768_v35  ;;  %13307 = vmatpush3.bf16.msra.mxu1 %v16631_v9  ;;  %v16667_v35 = vpack.c.bf16 %v6138_v27, %v6137_v33 }
 0x4bc   : > { %12660 = vmatprep.mubr.bf16.mxu0 %v5777_v44  ;;  %13308 = vmatprep.subr.bf16.mxu1 %v18762_v8  ;;  %v16681_v44 = vld [vmem:[%s533_s27] ss:$0 sm:$0xff] }
 0x4bf   : > { %13310 = vmatpush3.bf16.msra.mxu1 %v16637_v37 }
 0x4c0   : > { %13311 = vmatprep.subr.bf16.mxu1 %v18762_v8 }
 0x4c3   : > { %12661 = vmatmul.mubr.bf16.gmra.mrb[36].mxu0 %v5786_v22  ;;  %13313 = vmatpush3.bf16.msra.mxu1 %v16647_v24 }
 0x4c4   : > { %13314 = vmatprep.subr.bf16.mxu1 %v18762_v8 }
 0x4c7   : > { %13316 = vmatpush3.bf16.msra.mxu1 %v16657_v20 }
 0x4c8   : > { %13317 = vmatprep.subr.bf16.mxu1 %v18762_v8 }
 0x4cb   : > { %13319 = vmatpush3.bf16.msra.mxu1 %v16667_v35 }
 0x4cc   : > { %13320 = vmatprep.subr.bf16.mxu1 %v18762_v8 }
 0x55e   : > { %v12634_v23 = vpop.f32.mrb[8].mxu0 }
 0x55f   : > { %v5885_v36 = vpop.f32.mrb[9].mxu0  ;;  %v6052_v22 = vadd.f32 %v12634_v23, %v16679_v5 }
 0x560   : > { %v6050_v11 = vadd.f32 %v16679_v5, %v5885_v36  ;;  %v12635_v38 = vpop.f32.mrb[10].mxu0 }
 0x561   : > { %v6053_v47 = vadd.f32 %v12635_v38, %v16679_v5  ;;  %v5888_v53 = vpop.f32.mrb[11].mxu0  ;;  %v16691_v61 = vadd.f32 %v16681_v44, %v6052_v22 }
 0x562   : > { %v16687_v50 = vadd.f32 %v16681_v44, %v6050_v11  ;;  %v6051_v46 = vadd.f32 %v16679_v5, %v5888_v53 }
 0x563   : > { %v16697_v34 = vadd.f32 %v16681_v44, %v6053_v47  ;;  %v6182_v27 = vmul.f32 %v16691_v61, %v16691_v61 }
 0x564   : > { %v16694_v21 = vadd.f32 %v16681_v44, %v6051_v46  ;;  %v6180_v54 = vmul.f32 %v16687_v50, %v16687_v50 }
 0x565   : > { %v6183_v38 = vmul.f32 %v16697_v34, %v16697_v34 }
 0x566   : > { %v6143_v43 = vadd.f32 %v16694_v21, %v16687_v50  ;;  %v6181_v28 = vmul.f32 %v16694_v21, %v16694_v21  ;;  %v12638_v12 = vpop.f32.mrb[12].mxu0 }
 0x567   : > { %v6056_v6 = vadd.f32 %v12638_v12, %v16679_v5  ;;  %v5901_v33 = vpop.f32.mrb[13].mxu0 }
 0x568   : > { %v6144_v23 = vadd.f32 %v6143_v43, %v16691_v61  ;;  %v6212_v36 = vadd.f32 %v6181_v28, %v6180_v54  ;;  %v6054_v22 = vadd.f32 %v16679_v5, %v5901_v33  ;;  %v12639_v11 = vpop.f32.mrb[14].mxu0 }
 0x569   : > { %v6057_v47 = vadd.f32 %v12639_v11, %v16679_v5  ;;  %v5904_v53 = vpop.f32.mrb[15].mxu0  ;;  %v16719_v43 = vadd.f32 %v16681_v44, %v6056_v6 }
 0x56a   : > { %v6213_v46 = vadd.f32 %v6212_v36, %v6182_v27  ;;  %v16714_v57 = vadd.f32 %v16681_v44, %v6054_v22  ;;  %v6145_v12 = vadd.f32 %v6144_v23, %v16697_v34  ;;  %v6055_v60 = vadd.f32 %v16679_v5, %v5904_v53 }
 0x56b   : > { %v16728_v27 = vadd.f32 %v16681_v44, %v6057_v47  ;;  %v6186_v0 = vmul.f32 %v16719_v43, %v16719_v43 }
 0x56c   : > { %v6146_v54 = vadd.f32 %v6145_v12, %v16714_v57  ;;  %v6184_v28 = vmul.f32 %v16714_v57, %v16714_v57  ;;  %v6214_v33 = vadd.f32 %v6213_v46, %v6183_v38  ;;  %v16725_v11 = vadd.f32 %v16681_v44, %v6055_v60 }
 0x56e   : > { %v6215_v36 = vadd.f32 %v6214_v33, %v6184_v28  ;;  %v6147_v23 = vadd.f32 %v6146_v54, %v16725_v11  ;;  %v6185_v22 = vmul.f32 %v16725_v11, %v16725_v11  ;;  %v12642_v6 = vpop.f32.mrb[16].mxu0  ;;  %v6187_v28 = vmul.f32 %v16728_v27, %v16728_v27 }
 0x56f   : > { %v6060_v53 = vadd.f32 %v12642_v6, %v16679_v5  ;;  %v5917_v12 = vpop.f32.mrb[17].mxu0 }
 0x570   : > { %v6148_v38 = vadd.f32 %v6147_v23, %v16719_v43  ;;  %v6216_v60 = vadd.f32 %v6215_v36, %v6185_v22  ;;  %v6058_v46 = vadd.f32 %v16679_v5, %v5917_v12  ;;  %v12643_v47 = vpop.f32.mrb[18].mxu0 }
 0x571   : > { %v6061_v54 = vadd.f32 %v12643_v47, %v16679_v5  ;;  %v5920_v33 = vpop.f32.mrb[19].mxu0  ;;  %v16747_v23 = vadd.f32 %v16681_v44, %v6060_v53 }
 0x572   : > { %v6217_v31 = vadd.f32 %v6216_v60, %v6186_v0  ;;  %v16742_v62 = vadd.f32 %v16681_v44, %v6058_v46  ;;  %v6149_v6 = vadd.f32 %v6148_v38, %v16728_v27  ;;  %v6059_v14 = vadd.f32 %v16679_v5, %v5920_v33 }
 0x573   : > { %v16756_v0 = vadd.f32 %v16681_v44, %v6061_v54  ;;  %v6190_v25 = vmul.f32 %v16747_v23, %v16747_v23 }
 0x574   : > { %v6150_v36 = vadd.f32 %v6149_v6, %v16742_v62  ;;  %v6188_v22 = vmul.f32 %v16742_v62, %v16742_v62  ;;  %v6218_v12 = vadd.f32 %v6217_v31, %v6187_v28  ;;  %v16753_v47 = vadd.f32 %v16681_v44, %v6059_v14 }
 0x576   : > { %v6219_v60 = vadd.f32 %v6218_v12, %v6188_v22  ;;  %v6151_v38 = vadd.f32 %v6150_v36, %v16753_v47  ;;  %v6189_v46 = vmul.f32 %v16753_v47, %v16753_v47  ;;  %v12646_v53 = vpop.f32.mrb[20].mxu0  ;;  %v6191_v22 = vmul.f32 %v16756_v0, %v16756_v0 }
 0x577   : > { %v6064_v33 = vadd.f32 %v12646_v53, %v16679_v5  ;;  %v5933_v6 = vpop.f32.mrb[21].mxu0 }
 0x578   : > { %v6152_v31 = vadd.f32 %v6151_v38, %v16747_v23  ;;  %v6220_v14 = vadd.f32 %v6219_v60, %v6189_v46  ;;  %v6062_v28 = vadd.f32 %v16679_v5, %v5933_v6  ;;  %v12647_v54 = vpop.f32.mrb[22].mxu0 }
 0x579   : > { %v6065_v36 = vadd.f32 %v12647_v54, %v16679_v5  ;;  %v5936_v12 = vpop.f32.mrb[23].mxu0  ;;  %v16775_v38 = vadd.f32 %v16681_v44, %v6064_v33 }
 0x57a   : > { %v6221_v41 = vadd.f32 %v6220_v14, %v6190_v25  ;;  %v16770_v56 = vadd.f32 %v16681_v44, %v6062_v28  ;;  %v6153_v53 = vadd.f32 %v6152_v31, %v16756_v0  ;;  %v6063_v51 = vadd.f32 %v16679_v5, %v5936_v12 }
 0x57b   : > { %v16784_v25 = vadd.f32 %v16681_v44, %v6065_v36  ;;  %v6194_v29 = vmul.f32 %v16775_v38, %v16775_v38 }
 0x57c   : > { %v6154_v60 = vadd.f32 %v6153_v53, %v16770_v56  ;;  %v6192_v46 = vmul.f32 %v16770_v56, %v16770_v56  ;;  %v6222_v6 = vadd.f32 %v6221_v41, %v6191_v22  ;;  %v16781_v54 = vadd.f32 %v16681_v44, %v6063_v51 }
 0x57e   : > { %v6223_v14 = vadd.f32 %v6222_v6, %v6192_v46  ;;  %v6155_v31 = vadd.f32 %v6154_v60, %v16781_v54  ;;  %v6193_v28 = vmul.f32 %v16781_v54, %v16781_v54  ;;  %v12650_v33 = vpop.f32.mrb[24].mxu0  ;;  %v6195_v46 = vmul.f32 %v16784_v25, %v16784_v25 }
 0x57f   : > { %v6068_v12 = vadd.f32 %v12650_v33, %v16679_v5  ;;  %v5949_v53 = vpop.f32.mrb[25].mxu0 }
 0x580   : > { %v6156_v41 = vadd.f32 %v6155_v31, %v16775_v38  ;;  %v6224_v51 = vadd.f32 %v6223_v14, %v6193_v28  ;;  %v6066_v22 = vadd.f32 %v16679_v5, %v5949_v53  ;;  %v12651_v36 = vpop.f32.mrb[26].mxu0 }
 0x581   : > { %v6069_v60 = vadd.f32 %v12651_v36, %v16679_v5  ;;  %v5952_v6 = vpop.f32.mrb[27].mxu0  ;;  %v16803_v31 = vadd.f32 %v16681_v44, %v6068_v12 }
 0x582   : > { %v6225_v3 = vadd.f32 %v6224_v51, %v6194_v29  ;;  %v16798_v15 = vadd.f32 %v16681_v44, %v6066_v22  ;;  %v6157_v33 = vadd.f32 %v6156_v41, %v16784_v25  ;;  %v6067_v16 = vadd.f32 %v16679_v5, %v5952_v6 }
 0x583   : > { %v16812_v29 = vadd.f32 %v16681_v44, %v6069_v60  ;;  %v6198_v42 = vmul.f32 %v16803_v31, %v16803_v31 }
 0x584   : > { %v6158_v14 = vadd.f32 %v6157_v33, %v16798_v15  ;;  %v6196_v28 = vmul.f32 %v16798_v15, %v16798_v15  ;;  %v6226_v53 = vadd.f32 %v6225_v3, %v6195_v46  ;;  %v16809_v36 = vadd.f32 %v16681_v44, %v6067_v16 }
 0x586   : > { %v6227_v51 = vadd.f32 %v6226_v53, %v6196_v28  ;;  %v6159_v41 = vadd.f32 %v6158_v14, %v16809_v36  ;;  %v6197_v22 = vmul.f32 %v16809_v36, %v16809_v36  ;;  %v12654_v12 = vpop.f32.mrb[28].mxu0  ;;  %v6199_v28 = vmul.f32 %v16812_v29, %v16812_v29 }
 0x587   : > { %v6072_v6 = vadd.f32 %v12654_v12, %v16679_v5  ;;  %v5965_v33 = vpop.f32.mrb[29].mxu0 }
 0x588   : > { %v6160_v3 = vadd.f32 %v6159_v41, %v16803_v31  ;;  %v6228_v16 = vadd.f32 %v6227_v51, %v6197_v22  ;;  %v6070_v46 = vadd.f32 %v16679_v5, %v5965_v33  ;;  %v12655_v60 = vpop.f32.mrb[30].mxu0 }
 0x589   : > { %v5968_v14 = vpop.f32.mrb[31].mxu0  ;;  %v16830_v52 = vadd.f32 %v16681_v44, %v6072_v6  ;;  %v6073_v51 = vadd.f32 %v12655_v60, %v16679_v5 }
 0x58a   : > { %v6229_v53 = vadd.f32 %v6228_v16, %v6198_v42  ;;  %v16825_v26 = vadd.f32 %v16681_v44, %v6070_v46  ;;  %v6161_v12 = vadd.f32 %v6160_v3, %v16812_v29  ;;  %v6071_v63 = vadd.f32 %v16679_v5, %v5968_v14 }
 0x58b   : > { %v16843_v6 = vadd.f32 %v16681_v44, %v6073_v51 }
 0x58c   : > { %v6162_v41 = vadd.f32 %v6161_v12, %v16825_v26  ;;  %v6200_v22 = vmul.f32 %v16825_v26, %v16825_v26  ;;  %v6230_v33 = vadd.f32 %v6229_v53, %v6199_v28  ;;  %v16837_v42 = vadd.f32 %v16681_v44, %v6071_v63 }
 0x58d   : > { %v6202_v12 = vmul.f32 %v16830_v52, %v16830_v52  ;;  %v6203_v30 = vmul.f32 %v16843_v6, %v16843_v6 }
 0x58e   : > { %v6231_v16 = vadd.f32 %v6230_v33, %v6200_v22  ;;  %v6163_v46 = vadd.f32 %v6162_v41, %v16837_v42  ;;  %v6201_v3 = vmul.f32 %v16837_v42, %v16837_v42  ;;  %v12658_v14 = vpop.f32.mrb[32].mxu0 }
 0x58f   : > { %v5981_v60 = vpop.f32.mrb[33].mxu0  ;;  %v6076_v22 = vadd.f32 %v12658_v14, %v16679_v5 }
 0x590   : > { %v6164_v55 = vadd.f32 %v6163_v46, %v16830_v52  ;;  %v6232_v28 = vadd.f32 %v6231_v16, %v6201_v3  ;;  %v6074_v63 = vadd.f32 %v16679_v5, %v5981_v60  ;;  %v12659_v53 = vpop.f32.mrb[34].mxu0 }
 0x591   : > { %v5984_v41 = vpop.f32.mrb[35].mxu0  ;;  %v6077_v16 = vadd.f32 %v12659_v53, %v16679_v5 }
 0x592   : > { %v6233_v33 = vadd.f32 %v6232_v28, %v6202_v12  ;;  %v16851_v48 = vadd.f32 %v16681_v44, %v6074_v63  ;;  %v6165_v51 = vadd.f32 %v6164_v55, %v16843_v6  ;;  %v6075_v49 = vadd.f32 %v16679_v5, %v5984_v41 }
 0x593   : > { %v16865_v12 = vadd.f32 %v16681_v44, %v6076_v22  ;;  %v16869_v41 = vadd.f32 %v16681_v44, %v6077_v16 }
 0x594   : > { %v6166_v46 = vadd.f32 %v6165_v51, %v16851_v48  ;;  %v16860_v3 = vadd.f32 %v16681_v44, %v6075_v49  ;;  %v6204_v14 = vmul.f32 %v16851_v48, %v16851_v48  ;;  %v6234_v60 = vadd.f32 %v6233_v33, %v6203_v30 }
 0x596   : > { %v6167_v55 = vadd.f32 %v6166_v46, %v16860_v3  ;;  %v12662_v28 = vpop.f32.mrb[36].mxu0  ;;  %v6235_v32 = vadd.f32 %v6234_v60, %v6204_v14  ;;  %v6205_v40 = vmul.f32 %v16860_v3, %v16860_v3 }
 0x597   : > { %v5997_v63 = vpop.f32.mrb[37].mxu0  ;;  %v6080_v22 = vadd.f32 %v12662_v28, %v16679_v5 }
 0x598   : > { %v6168_v51 = vadd.f32 %v6167_v55, %v16865_v12  ;;  %v6078_v53 = vadd.f32 %v16679_v5, %v5997_v63  ;;  %v12663_v49 = vpop.f32.mrb[38].mxu0  ;;  %v6236_v14 = vadd.f32 %v6235_v32, %v6205_v40 }
 0x599   : > { %v6000_v30 = vpop.f32.mrb[39].mxu0  ;;  %v6081_v55 = vadd.f32 %v12663_v49, %v16679_v5  ;;  %v16887_v60 = vadd.f32 %v16681_v44, %v6080_v22  ;;  %v6207_v49 = vmul.f32 %v16869_v41, %v16869_v41 }
 0x59a   : > { %v16877_v33 = vadd.f32 %v16681_v44, %v6078_v53  ;;  %v6169_v46 = vadd.f32 %v6168_v51, %v16869_v41  ;;  %v6079_v16 = vadd.f32 %v16679_v5, %v6000_v30  ;;  %v6206_v53 = vmul.f32 %v16865_v12, %v16865_v12 }
 0x59b   : > { %v16893_v51 = vadd.f32 %v16681_v44, %v6081_v55 }
 0x59c   : > { %v6170_v10 = vadd.f32 %v6169_v46, %v16877_v33  ;;  %v16884_v63 = vadd.f32 %v16681_v44, %v6079_v16  ;;  %v6237_v46 = vadd.f32 %v6236_v14, %v6206_v53  ;;  %v6208_v32 = vmul.f32 %v16877_v33, %v16877_v33 }
 0x59d   : > { %v6210_v53 = vmul.f32 %v16887_v60, %v16887_v60 }
 0x59e   : > { %v6171_v28 = vadd.f32 %v6170_v10, %v16884_v63  ;;  %v6238_v22 = vadd.f32 %v6237_v46, %v6207_v49  ;;  %v6209_v44 = vmul.f32 %v16884_v63, %v16884_v63 }
 0x5a0   : > { %v6172_v30 = vadd.f32 %v6171_v28, %v16887_v60  ;;  %v6239_v17 = vadd.f32 %v6238_v22, %v6208_v32  ;;  %v6142_v32 = vld [vmem:[%s18448_s11 + $0x18] sm:$0xff] }
 0x5a2   : > { %v6173_v5 = vadd.f32 %v6172_v30, %v16893_v51  ;;  %v6240_v28 = vadd.f32 %v6239_v17, %v6209_v44  ;;  %v18763_v30 = vmov 0.0  }
 0x5a4   : > { %v6174_v40 = vrot.slane %v6173_v5, 4  ;;  %v6241_v46 = vadd.f32 %v6240_v28, %v6210_v53 }
 0x5a6   : > { %v6175_v10 = vadd.f32 %v6174_v40, %v6173_v5  ;;  %v6211_v5 = vmul.f32 %v16893_v51, %v16893_v51 }
 0x5a8   : > { %v6176_v16 = vrot.slane %v6175_v10, 2  ;;  %v6242_v49 = vadd.f32 %v6241_v46, %v6211_v5 }
 0x5aa   : > { %v6177_v55 = vadd.f32 %v6176_v16, %v6175_v10 }
 0x5ac   : > { %v6178_v45 = vrot.slane %v6177_v55, 1 }
 0x5ae   : > { %v6179_v14 = vadd.f32 %v6178_v45, %v6177_v55  ;;  %v6243_v45 = vrot.slane %v6242_v49, 4 }
 0x5b0   : > { %12697 = vmatmul.mubr.f32.vlgmr.msra.gmra.mrb[2].mxu1 %v6179_v14  ;;  %v6244_v17 = vadd.f32 %v6243_v45, %v6242_v49 }
 0x5b1   : > { %13322 = vmatpush3.bf16.msra.mxu1 %v16598_v58  ;;  %12731 = vmatprep.mubr.msk.f32.mxu1 %vm14571_vm0, %v18763_v30 }
 0x5b2   : > { %13323 = vmatprep.subr.bf16.mxu1 %v18762_v8  ;;  %v6245_v58 = vrot.slane %v6244_v17, 2 }
 0x5b5   : > { %13325 = vmatpush3.bf16.msra.mxu1 %v16608_v4  ;;  %v6246_v4 = vadd.f32 %v6245_v58, %v6244_v17  ;;  %v14084_v58 = vld [vmem:[%s18449_s12] sm:$0xff]  }
 0x5b6   : > { %13326 = vmatprep.subr.bf16.mxu1 %v18762_v8 }
 0x5b9   : > { %13328 = vmatpush3.bf16.msra.mxu1 %v16618_v18  ;;  %v6247_v18 = vrot.slane %v6246_v4, 1 }
 0x5ba   : > { %13329 = vmatprep.subr.bf16.mxu1 %v18762_v8 }
 0x5bd   : > { %13331 = vmatpush3.bf16.msra.mxu1 %v16631_v9  ;;  %v6139_v9 = vld [vmem:[%s18448_s11] sm:$0xff] }
 0x5be   : > { %13332 = vmatprep.subr.bf16.mxu1 %v18762_v8 }
 0x5c1   : > { %13334 = vmatpush3.bf16.msra.mxu1 %v16637_v37  ;;  %v6140_v37 = vld [vmem:[%s18448_s11 + $0x8] sm:$0xff] }
 0x5c2   : > { %13335 = vmatprep.subr.bf16.mxu1 %v18762_v8  ;;  %v13345_v40 = vpack.c.bf16 %v6140_v37, %v6139_v9  ;;  %v14088_v9 = vld [vmem:[%s18449_s12 + $0x10] sm:$0xff]   ;;  %v18764_v37 = vld [vmem:[#allocation12_spill] sm:$0xff] }
 0x5c5   : > { %13337 = vmatpush3.bf16.msra.mxu1 %v16647_v24  ;;  %v6248_v24 = vadd.f32 %v6247_v18, %v6246_v4  ;;  %v14086_v4 = vld [vmem:[%s18449_s12 + $0x8] sm:$0xff]   ;;  %v14085_v18 = vld [vmem:[%s18449_s12 + $0x50] sm:$0xff]  }
 0x5c6   : > { %13338 = vmatprep.subr.bf16.mxu1 %v18762_v8 }
 0x5c9   : > { %13340 = vmatpush3.bf16.msra.mxu1 %v16657_v20  ;;  %v6141_v20 = vld [vmem:[%s18448_s11 + $0x10] sm:$0xff] }
 0x5ca   : > { %13341 = vmatprep.subr.bf16.mxu1 %v18762_v8 }
 0x5cd   : > { %13343 = vmatpush3.bf16.msra.mxu1 %v16667_v35  ;;  %v13348_v35 = vpack.c.bf16 %v6142_v32, %v6141_v20  ;;  %v14090_v20 = vld [vmem:[%s18449_s12 + $0x18] sm:$0xff]  }
 0x5ce   : > { %13344 = vmatprep.subr.bf16.mxu1 %v18762_v8 }
 0x5d0   : > { %12732 = vmatmul.mubr.f32.vlgmr.msra.gmra.mrb[4].mxu1 %v6248_v24  ;;  %v14087_v24 = vld [vmem:[%s18449_s12 + $0x58] sm:$0xff]  }
 0x5d1   : > { %13346 = vmatpush3.bf16.msra.mxu1 %v13345_v40  ;;  %12742 = vmatprep.mubr.msk.f32.mxu1 %vm14571_vm0, %v18763_v30 }
 0x5d2   : > { %13347 = vmatprep.subr.bf16.mxu1 %v18762_v8 }
 0x5d5   : > { %13349 = vmatpush3.bf16.msra.mxu1 %v13348_v35 }
 0x5d6   : > { %13350 = vmatprep.subr.bf16.mxu1 %v18762_v8 }
 0x683   : > { %v6315_v22 = vpop.f32.mrb[2].mxu1 }
 0x684   : > { %v6389_v10 = vmul.f32 0.001953125, %v6315_v22  ;;  %v12698_v16 = vpop.f32.mrb[3].mxu1 }
 0x686   : > { %12743 = vmatmul.mubr.msk.f32.vlgmr.msra.gmra.mrb[6].mxu1 %vm1515_vm1, %v6389_v10  ;;  %v6391_v55 = vmul.f32 %v6389_v10, %v6389_v10 }
 0x687   : > { %13352 = vmatpush3.bf16.msra.mxu1 %v13345_v40  ;;  %12753 = vmatprep.mubr.msk.f32.mxu1 %vm14571_vm0, %v18763_v30  ;;  %v14082_v30 = vld [vmem:[%s18449_s12 + $0x40] sm:$0xff]  }
 0x688   : > { %13353 = vmatprep.subr.bf16.mxu1 %v18762_v8  ;;  %v14083_v8 = vld [vmem:[%s18449_s12 + $0x48] sm:$0xff]   ;;  %12756 = vmatprep.subr.bf16.mxu0 %v14082_v30 }
 0x689   : > { %12757 = vmatpush3.bf16.msra.mxu0 %v14082_v30 }
 0x68a   : > { %12758 = vmatprep.subr.bf16.mxu0 %v14083_v8 }
 0x68b   : > { %13355 = vmatpush3.bf16.msra.mxu1 %v13348_v35 }
 0x68c   : > { %12804 = vmatprep.subr.bf16.mxu1 %v14084_v58 }
 0x68d   : > { %12759 = vmatpush3.bf16.msra.mxu0 %v14083_v8 }
 0x68e   : > { %12760 = vmatprep.subr.bf16.mxu0 %v14085_v18 }
 0x691   : > { %12761 = vmatpush3.bf16.msra.mxu0 %v14085_v18 }
 0x692   : > { %12762 = vmatprep.subr.bf16.mxu0 %v14087_v24 }
 0x695   : > { %12763 = vmatpush3.bf16.msra.mxu0 %v14087_v24 }
 0x6a3   : > { %v6385_v44 = vpop.f32.mrb[4].mxu1 }
 0x6a4   : > { %v6390_v28 = vmul.f32 0.001953125, %v6385_v44  ;;  %v12733_v14 = vpop.f32.mrb[5].mxu1 }
 0x6a6   : > { %v6392_v53 = vsub.f32 %v6390_v28, %v6391_v55 }
 0x6a8   : > { %v6393_v46 = vmax.f32 %v6392_v53, 0.0 }
 0x6aa   : > { %v6394_v5 = vadd.f32 1e-05, %v6393_v46 }
 0x6ac   : > { %14324 = vrsqrt.f32 %v6394_v5 }
 0x6b6   : > { %v14325_v49 = vpop.eup %14324 }
 0x6b7   : > { %12754 = vmatmul.mubr.msk.f32.vlgmr.msra.gmra.mrb[8].mxu1 %vm1515_vm1, %v14325_v49 }
 0x6b8   : > { %12805 = vmatpush3.bf16.msra.mxu1 %v14084_v58 }
 0x6b9   : > { %12806 = vmatprep.subr.bf16.mxu1 %v14086_v4 }
 0x6bc   : > { %12807 = vmatpush3.bf16.msra.mxu1 %v14086_v4 }
 0x6bd   : > { %12808 = vmatprep.subr.bf16.mxu1 %v14088_v9 }
 0x6c0   : > { %12809 = vmatpush3.bf16.msra.mxu1 %v14088_v9 }
 0x6c1   : > { %12810 = vmatprep.subr.bf16.mxu1 %v14090_v20 }
 0x6c4   : > { %12811 = vmatpush3.bf16.msra.mxu1 %v14090_v20 }
 0x759   : > { %v6465_v45 = vpop.f32.mrb[6].mxu1 }
 0x75a   : > { %v12744_v17 = vpop.f32.mrb[7].mxu1  ;;  %v16965_v40 = vrot.slane %v6465_v45, %v18764_v37 }
 0x75c   : > { %v6546_v32 = vsub.f32 %v16687_v50, %v16965_v40  ;;  %v6547_v35 = vsub.f32 %v16694_v21, %v16965_v40  ;;  %v6548_v22 = vsub.f32 %v16691_v61, %v16965_v40  ;;  %v6549_v10 = vsub.f32 %v16697_v34, %v16965_v40  ;;  %v14089_v50 = vld [vmem:[%s18449_s12 + $0x60] sm:$0xff]  }
 0x75d   : > { %v6550_v16 = vsub.f32 %v16714_v57, %v16965_v40  ;;  %v6551_v44 = vsub.f32 %v16725_v11, %v16965_v40  ;;  %v14092_v61 = vld [vmem:[%s18449_s12 + $0x20] sm:$0xff]   ;;  %v6552_v21 = vsub.f32 %v16719_v43, %v16965_v40  ;;  %v6553_v34 = vsub.f32 %v16728_v27, %v16965_v40  ;;  %12764 = vmatprep.subr.bf16.mxu0 %v14089_v50 }
 0x75e   : > { %v6554_v57 = vsub.f32 %v16742_v62, %v16965_v40  ;;  %v6555_v11 = vsub.f32 %v16753_v47, %v16965_v40  ;;  %v6556_v55 = vsub.f32 %v16747_v23, %v16965_v40  ;;  %v6557_v28 = vsub.f32 %v16756_v0, %v16965_v40  ;;  %v6121_v27 = vld [vmem:[%s18445_s8] sm:$0x1]  ;;  %12812 = vmatprep.subr.bf16.mxu1 %v14092_v61 }
 0x75f   : > { %v6558_v14 = vsub.f32 %v16770_v56, %v16965_v40  ;;  %v6559_v43 = vsub.f32 %v16781_v54, %v16965_v40  ;;  %v6560_v62 = vsub.f32 %v16775_v38, %v16965_v40  ;;  %v6561_v47 = vsub.f32 %v16784_v25, %v16965_v40  ;;  %v14091_v38 = vld [vmem:[%s18449_s12 + $0x68] sm:$0xff]   ;;  %12765 = vmatpush3.bf16.msra.mxu0 %v14089_v50 }
 0x760   : > { %v6562_v23 = vsub.f32 %v16798_v15, %v16965_v40  ;;  %v6563_v56 = vsub.f32 %v16809_v36, %v16965_v40  ;;  %v6564_v0 = vsub.f32 %v16803_v31, %v16965_v40  ;;  %v6565_v54 = vsub.f32 %v16812_v29, %v16965_v40  ;;  %v14094_v15 = vld [vmem:[%s18449_s12 + $0x28] sm:$0xff]   ;;  %12813 = vmatpush3.bf16.msra.mxu1 %v14092_v61 }
 0x761   : > { %v6566_v25 = vsub.f32 %v16825_v26, %v16965_v40  ;;  %v6567_v31 = vsub.f32 %v16837_v42, %v16965_v40  ;;  %v6568_v36 = vsub.f32 %v16830_v52, %v16965_v40  ;;  %v6569_v5 = vsub.f32 %v16843_v6, %v16965_v40  ;;  %12766 = vmatprep.subr.bf16.mxu0 %v14091_v38 }
 0x762   : > { %v6570_v49 = vsub.f32 %v16851_v48, %v16965_v40  ;;  %v6571_v45 = vsub.f32 %v16860_v3, %v16965_v40  ;;  %v6572_v26 = vsub.f32 %v16865_v12, %v16965_v40  ;;  %v6573_v42 = vsub.f32 %v16869_v41, %v16965_v40  ;;  %v14093_v12 = vld [vmem:[%s18449_s12 + $0x70] sm:$0xff]   ;;  %12814 = vmatprep.subr.bf16.mxu1 %v14094_v15 }
 0x763   : > { %v6574_v52 = vsub.f32 %v16877_v33, %v16965_v40  ;;  %v6575_v6 = vsub.f32 %v16884_v63, %v16965_v40  ;;  %v6576_v48 = vsub.f32 %v16887_v60, %v16965_v40  ;;  %v6577_v3 = vsub.f32 %v16893_v51, %v16965_v40  ;;  %v14096_v60 = vld [vmem:[%s18449_s12 + $0x30] sm:$0xff]   ;;  %12767 = vmatpush3.bf16.msra.mxu0 %v14091_v38 }
 0x764   : > { %12768 = vmatprep.subr.bf16.mxu0 %v14093_v12  ;;  %12815 = vmatpush3.bf16.msra.mxu1 %v14094_v15 }
 0x765   : > { %12816 = vmatprep.subr.bf16.mxu1 %v14096_v60 }
 0x767   : > { %12769 = vmatpush3.bf16.msra.mxu0 %v14093_v12 }
 0x768   : > { %12817 = vmatpush3.bf16.msra.mxu1 %v14096_v60 }
 0x78a   : > { %v6538_v53 = vpop.f32.mrb[8].mxu1 }
 0x78b   : > { %v6578_v29 = vmul.f32 %v6538_v53, %v6121_v27  ;;  %v12755_v46 = vpop.f32.mrb[9].mxu1 }
 0x78d   : > { %v6582_v17 = vrot.slane %v6578_v29, %v18764_v37 }
 0x78f   : > { %v6583_v41 = vmul.f32 %v6582_v17, %v6546_v32  ;;  %v6584_v33 = vmul.f32 %v6582_v17, %v6547_v35  ;;  %v6585_v30 = vmul.f32 %v6582_v17, %v6548_v22  ;;  %v6586_v8 = vmul.f32 %v6582_v17, %v6549_v10  ;;  %v14095_v35 = vld [vmem:[%s18449_s12 + $0x78] sm:$0xff]  }
 0x790   : > { %v6587_v58 = vmul.f32 %v6582_v17, %v6550_v16  ;;  %v6588_v4 = vmul.f32 %v6582_v17, %v6551_v44  ;;  %v6589_v18 = vmul.f32 %v6582_v17, %v6552_v21  ;;  %v6590_v63 = vmul.f32 %v6582_v17, %v6553_v34  ;;  %12770 = vmatprep.subr.bf16.mxu0 %v14095_v35 }
 0x791   : > { %v6591_v9 = vmul.f32 %v6582_v17, %v6554_v57  ;;  %v6592_v51 = vmul.f32 %v6582_v17, %v6555_v11  ;;  %v6593_v37 = vmul.f32 %v6582_v17, %v6556_v55  ;;  %v6594_v40 = vmul.f32 %v6582_v17, %v6557_v28  ;;  %v14097_v11 = vld [vmem:[%s18449_s12 + $0x38] sm:$0xff]   ;;  %12771 = vmatpush3.bf16.msra.mxu0 %v14095_v35 }
 0x792   : > { %v6595_v24 = vmul.f32 %v6582_v17, %v6558_v14  ;;  %v6596_v20 = vmul.f32 %v6582_v17, %v6559_v43  ;;  %v17059_v50 = vmul.f32 %v6582_v17, %v6560_v62  ;;  %v17061_v32 = vmul.f32 %v6582_v17, %v6561_v47  ;;  %12818 = vmatprep.subr.bf16.mxu1 %v14097_v11 }
 0x793   : > { %v17066_v22 = vmul.f32 %v6582_v17, %v6562_v23  ;;  %v17068_v10 = vmul.f32 %v6582_v17, %v6563_v56  ;;  %v17070_v16 = vmul.f32 %v6582_v17, %v6564_v0  ;;  %v17072_v44 = vmul.f32 %v6582_v17, %v6565_v54  ;;  %v17104_v56 = vld [vmem:[%s18449_s12 + $0x80] sm:$0xff]   ;;  %12819 = vmatpush3.bf16.msra.mxu1 %v14097_v11 }
 0x794   : > { %v17074_v61 = vmul.f32 %v6582_v17, %v6566_v25  ;;  %v17076_v21 = vmul.f32 %v6582_v17, %v6567_v31  ;;  %v17078_v34 = vmul.f32 %v6582_v17, %v6568_v36  ;;  %v17080_v57 = vmul.f32 %v6582_v17, %v6569_v5  ;;  %18765 = vst [vmem:[#allocation44_spill] sm:$0xff] %v17104_v56  ;;  %v17109_v0 = vld [vmem:[%s18446_s9] ss:$0 sm:$0xff] }
 0x795   : > { %v17085_v55 = vmul.f32 %v6582_v17, %v6570_v49  ;;  %v17087_v28 = vmul.f32 %v6582_v17, %v6571_v45  ;;  %v17089_v14 = vmul.f32 %v6582_v17, %v6572_v26  ;;  %v17091_v43 = vmul.f32 %v6582_v17, %v6573_v42  ;;  %12852 = vmatprep.subr.bf16.mxu1 %v17104_v56 }
 0x796   : > { %v17093_v27 = vmul.f32 %v6582_v17, %v6574_v52  ;;  %v17095_v62 = vmul.f32 %v6582_v17, %v6575_v6  ;;  %v17097_v47 = vmul.f32 %v6582_v17, %v6576_v48  ;;  %v17099_v23 = vmul.f32 %v6582_v17, %v6577_v3 }
 0x797   : > { %v17113_v54 = vadd.f32 %v17109_v0, %v6583_v41  ;;  %v17116_v53 = vadd.f32 %v17109_v0, %v6584_v33  ;;  %v17119_v38 = vadd.f32 %v17109_v0, %v6585_v30  ;;  %v17122_v15 = vadd.f32 %v17109_v0, %v6586_v8 }
 0x798   : > { %v17125_v25 = vadd.f32 %v17109_v0, %v6587_v58  ;;  %v17128_v31 = vadd.f32 %v17109_v0, %v6588_v4  ;;  %v17131_v36 = vadd.f32 %v17109_v0, %v6589_v18  ;;  %v17137_v49 = vadd.f32 %v17109_v0, %v6590_v63 }
 0x799   : > { %v6653_v29 = vsub.f32 0.0, %v17113_v54  ;;  %v6654_v46 = vsub.f32 0.0, %v17116_v53  ;;  %v6655_v5 = vsub.f32 0.0, %v17119_v38  ;;  %v6656_v45 = vsub.f32 0.0, %v17122_v15 }
 0x79a   : > { %v17141_v26 = vadd.f32 %v17109_v0, %v6591_v9  ;;  %v6657_v42 = vsub.f32 0.0, %v17125_v25  ;;  %v17145_v52 = vadd.f32 %v17109_v0, %v6592_v51  ;;  %v6658_v17 = vsub.f32 0.0, %v17128_v31 }
 0x79b   : > { %v6659_v6 = vsub.f32 0.0, %v17131_v36  ;;  %v17150_v48 = vadd.f32 %v17109_v0, %v6593_v37  ;;  %v6685_v3 = vmul.f32 1.442695, %v6653_v29  ;;  %v6687_v12 = vmul.f32 1.442695, %v6654_v46 }
 0x79c   : > { %v6689_v41 = vmul.f32 1.442695, %v6655_v5  ;;  %v17153_v33 = vadd.f32 %v17109_v0, %v6594_v40  ;;  %v6660_v30 = vsub.f32 0.0, %v17137_v49  ;;  %v6691_v8 = vmul.f32 1.442695, %v6656_v45 }
 0x79d   : > { %v17157_v58 = vadd.f32 %v17109_v0, %v6595_v24  ;;  %v6661_v4 = vsub.f32 0.0, %v17141_v26  ;;  %14326 = vpow2.f32 %v6685_v3  ;;  %v6693_v18 = vmul.f32 1.442695, %v6657_v42 }
 0x79e   : > { %v17161_v63 = vadd.f32 %v17109_v0, %v6596_v20  ;;  %v6662_v60 = vsub.f32 0.0, %v17145_v52  ;;  %14328 = vpow2.f32 %v6687_v12  ;;  %v6695_v9 = vmul.f32 1.442695, %v6658_v17 }
 0x79f   : > { %v17166_v51 = vadd.f32 %v17109_v0, %v17059_v50  ;;  %v6663_v37 = vsub.f32 0.0, %v17150_v48  ;;  %14330 = vpow2.f32 %v6689_v41  ;;  %v6697_v40 = vmul.f32 1.442695, %v6659_v6 }
 0x7a0   : > { %v17171_v24 = vadd.f32 %v17109_v0, %v17061_v32  ;;  %v6664_v35 = vsub.f32 0.0, %v17153_v33  ;;  %14332 = vpow2.f32 %v6691_v8  ;;  %v6699_v20 = vmul.f32 1.442695, %v6660_v30 }
 0x7a1   : > { %v17176_v11 = vadd.f32 %v17109_v0, %v17066_v22  ;;  %v6665_v29 = vsub.f32 0.0, %v17157_v58  ;;  %14334 = vpow2.f32 %v6693_v18  ;;  %v6701_v50 = vmul.f32 1.442695, %v6661_v4 }
 0x7a2   : > { %v17181_v46 = vadd.f32 %v17109_v0, %v17068_v10  ;;  %v6666_v5 = vsub.f32 0.0, %v17161_v63  ;;  %14336 = vpow2.f32 %v6695_v9  ;;  %v6703_v32 = vmul.f32 1.442695, %v6662_v60 }
 0x7a3   : > { %v17186_v45 = vadd.f32 %v17109_v0, %v17070_v16  ;;  %v6667_v42 = vsub.f32 0.0, %v17166_v51  ;;  %14338 = vpow2.f32 %v6697_v40  ;;  %v6705_v22 = vmul.f32 1.442695, %v6663_v37 }
 0x7a4   : > { %v17191_v17 = vadd.f32 %v17109_v0, %v17072_v44  ;;  %v6668_v6 = vsub.f32 0.0, %v17171_v24  ;;  %14340 = vpow2.f32 %v6699_v20  ;;  %v6707_v10 = vmul.f32 1.442695, %v6664_v35 }
 0x7a5   : > { %v17196_v3 = vadd.f32 %v17109_v0, %v17074_v61  ;;  %v6669_v12 = vsub.f32 0.0, %v17176_v11  ;;  %14342 = vpow2.f32 %v6701_v50  ;;  %v6709_v16 = vmul.f32 1.442695, %v6665_v29 }
 0x7a6   : > { %v17201_v41 = vadd.f32 %v17109_v0, %v17076_v21  ;;  %v6670_v30 = vsub.f32 0.0, %v17181_v46  ;;  %14344 = vpow2.f32 %v6703_v32  ;;  %v6711_v44 = vmul.f32 1.442695, %v6666_v5 }
 0x7a7   : > { %v17204_v8 = vpop.eup %14326  ;;  %v17208_v4 = vadd.f32 %v17109_v0, %v17078_v34  ;;  %v6671_v61 = vsub.f32 0.0, %v17186_v45  ;;  %14346 = vpow2.f32 %v6705_v22  ;;  %v6713_v18 = vmul.f32 1.442695, %v6667_v42 }
 0x7a8   : > { %v17211_v60 = vpop.eup %14328  ;;  %v17215_v21 = vadd.f32 %v17109_v0, %v17080_v57  ;;  %v6672_v9 = vsub.f32 0.0, %v17191_v17  ;;  %14348 = vpow2.f32 %v6707_v10  ;;  %v6715_v37 = vmul.f32 1.442695, %v6668_v6 }
 0x7a9   : > { %v17218_v40 = vpop.eup %14330  ;;  %v17222_v34 = vadd.f32 %v17109_v0, %v17085_v55  ;;  %v6673_v35 = vsub.f32 0.0, %v17196_v3  ;;  %14350 = vpow2.f32 %v6709_v16  ;;  %v6717_v20 = vmul.f32 1.442695, %v6669_v12 }
 0x7aa   : > { %v17225_v29 = vpop.eup %14332  ;;  %v17229_v57 = vadd.f32 %v17109_v0, %v17087_v28  ;;  %v6674_v50 = vsub.f32 0.0, %v17201_v41  ;;  %14352 = vpow2.f32 %v6711_v44  ;;  %v6719_v5 = vmul.f32 1.442695, %v6670_v30 }
 0x7ab   : > { %18766 = vst [vmem:[#allocation45_spill] sm:$0xff] %v17222_v34  ;;  %v17232_v32 = vpop.eup %14334  ;;  %v17236_v55 = vadd.f32 %v17109_v0, %v17089_v14  ;;  %v6675_v42 = vsub.f32 0.0, %v17208_v4  ;;  %14354 = vpow2.f32 %v6713_v18  ;;  %v6721_v22 = vmul.f32 1.442695, %v6671_v61 }
 0x7ac   : > { %18767 = vst [vmem:[#allocation48_spill] sm:$0xff] %v17229_v57  ;;  %v17239_v6 = vpop.eup %14336  ;;  %v17243_v28 = vadd.f32 %v17109_v0, %v17091_v43  ;;  %v6676_v10 = vsub.f32 0.0, %v17215_v21  ;;  %14356 = vpow2.f32 %v6715_v37  ;;  %v6723_v12 = vmul.f32 1.442695, %v6672_v9 }
 0x7ad   : > { %18768 = vst [vmem:[#allocation49_spill] sm:$0xff] %v17236_v55  ;;  %v17246_v16 = vpop.eup %14338  ;;  %v17250_v14 = vadd.f32 %v17109_v0, %v17093_v27  ;;  %v6677_v30 = vsub.f32 0.0, %v17222_v34  ;;  %14358 = vpow2.f32 %v6717_v20  ;;  %v6725_v44 = vmul.f32 1.442695, %v6673_v35 }
 0x7ae   : > { %18769 = vst [vmem:[#allocation50_spill] sm:$0xff] %v17243_v28  ;;  %v17253_v61 = vpop.eup %14340  ;;  %v17257_v43 = vadd.f32 %v17109_v0, %v17095_v62  ;;  %v6678_v18 = vsub.f32 0.0, %v17229_v57  ;;  %14360 = vpow2.f32 %v6719_v5  ;;  %v6727_v9 = vmul.f32 1.442695, %v6674_v50  ;;  %v17295_v57 = vld [vmem:[#allocation3] sm:$0xf0] }
 0x7af   : > { %18770 = vst [vmem:[#allocation51_spill] sm:$0xff] %v17250_v14  ;;  %v17260_v37 = vpop.eup %14342  ;;  %v17264_v27 = vadd.f32 %v17109_v0, %v17097_v47  ;;  %v6679_v7 = vsub.f32 0.0, %v17236_v55  ;;  %14362 = vpow2.f32 %v6721_v22  ;;  %v6729_v35 = vmul.f32 1.442695, %v6675_v42 }
 0x7b0   : > { %18771 = vst [vmem:[#allocation52_spill] sm:$0xff] %v17257_v43  ;;  %v17267_v20 = vpop.eup %14344  ;;  %v17271_v62 = vadd.f32 %v17109_v0, %v17099_v23  ;;  %v6680_v39 = vsub.f32 0.0, %v17243_v28  ;;  %14364 = vpow2.f32 %v6723_v12  ;;  %v6731_v50 = vmul.f32 1.442695, %v6676_v10  ;;  %v6979_v28 = vld [vmem:[#allocation3] sm:$0xf8] }
 0x7b1   : > { %18772 = vst [vmem:[#allocation53_spill] sm:$0xff] %v17264_v27  ;;  %v17274_v5 = vpop.eup %14346  ;;  %v6681_v56 = vsub.f32 0.0, %v17250_v14  ;;  %14366 = vpow2.f32 %v6725_v44  ;;  %v6733_v47 = vmul.f32 1.442695, %v6677_v30  ;;  %v6682_v42 = vsub.f32 0.0, %v17257_v43 }
 0x7b2   : > { %18773 = vst [vmem:[#allocation54_spill] sm:$0xff] %v17271_v62  ;;  %v17277_v13 = vpop.eup %14348  ;;  %14368 = vpow2.f32 %v6727_v9  ;;  %v6735_v22 = vmul.f32 1.442695, %v6678_v18  ;;  %v6683_v23 = vsub.f32 0.0, %v17264_v27  ;;  %v6737_v0 = vmul.f32 1.442695, %v6679_v7 }
 0x7b3   : > { %v17280_v55 = vpop.eup %14350  ;;  %14370 = vpow2.f32 %v6729_v35  ;;  %v6684_v10 = vsub.f32 0.0, %v17271_v62  ;;  %v6739_v14 = vmul.f32 1.442695, %v6680_v39  ;;  %v6741_v30 = vmul.f32 1.442695, %v6681_v56 }
 0x7b4   : > { %v17283_v12 = vpop.eup %14352  ;;  %14372 = vpow2.f32 %v6731_v50  ;;  %v6743_v18 = vmul.f32 1.442695, %v6682_v42  ;;  %v6745_v35 = vmul.f32 1.442695, %v6683_v23  ;;  %v6996_v62 = vmul.bf16 %v6979_v28, %v15342_v19 }
 0x7b5   : > { %v17286_v44 = vpop.eup %14354  ;;  %14374 = vpow2.f32 %v6733_v47  ;;  %v6747_v27 = vmul.f32 1.442695, %v6684_v10  ;;  %v6749_v39 = vadd.f32 1.0, %v17204_v8  ;;  %v6750_v56 = vadd.f32 1.0, %v17211_v60 }
 0x7b6   : > { %v17288_v43 = vpop.eup %14356  ;;  %14376 = vpow2.f32 %v6735_v22  ;;  %v6751_v22 = vadd.f32 1.0, %v17218_v40  ;;  %v7326_v28 = vshll.u32 %v6996_v62, 16  ;;  %v7700_v8 = vmul.bf16 %v17295_v57, %v18751_v59 }
 0x7b7   : > { %v17290_v9 = vpop.eup %14358  ;;  %14378 = vpow2.f32 %v6737_v0  ;;  %v7323_v0 = vshrl.u32 %v6996_v62, 16  ;;  %v6755_v40 = vadd.f32 1.0, %v17246_v16 }
 0x7b8   : > { %v14361_v7 = vpop.eup %14360  ;;  %14380 = vpow2.f32 %v6739_v14  ;;  %v6752_v14 = vadd.f32 1.0, %v17225_v29  ;;  %v6756_v29 = vadd.f32 1.0, %v17253_v61  ;;  %v17307_v19 = vrot.slane %v7326_v28, 4 }
 0x7b9   : > { %v14363_v50 = vpop.eup %14362  ;;  %14382 = vpow2.f32 %v6741_v30  ;;  %v6753_v30 = vadd.f32 1.0, %v17232_v32  ;;  %v17305_v62 = vrot.slane %v7323_v0, 3  ;;  %v7735_v59 = vshrl.u32 %v7700_v8, 16 }
 0x7ba   : > { %v14365_v47 = vpop.eup %14364  ;;  %14384 = vpow2.f32 %v6743_v18  ;;  %v6754_v18 = vadd.f32 1.0, %v17239_v6  ;;  %18775 = vst [vmem:[#allocation56_spill] sm:$0xff] %v17307_v19  ;;  %v7738_v34 = vshll.u32 %v7700_v8, 16  ;;  %v6765_v0 = vadd.f32 1.0, %v17290_v9 }
 0x7bb   : > { %v14367_v42 = vpop.eup %14366  ;;  %14386 = vpow2.f32 %v6745_v35  ;;  %18774 = vst [vmem:[#allocation55_spill] sm:$0xff] %v17305_v62  ;;  %v17317_v8 = vrot.slane %v7735_v59, 4  ;;  %v6767_v62 = vadd.f32 1.0, %v14363_v50 }
 0x7bc   : > { %v14369_v23 = vpop.eup %14368  ;;  %14388 = vpow2.f32 %v6747_v27  ;;  %v6769_v59 = vadd.f32 1.0, %v14367_v42 }
 0x7bd   : > { %v14371_v10 = vpop.eup %14370  ;;  %14390 = vrcp.f32 %v6749_v39  ;;  %v6757_v39 = vadd.f32 1.0, %v17260_v37  ;;  %18776 = vst [vmem:[#allocation57_spill] sm:$0xff] %v17317_v8  ;;  %v6766_v37 = vadd.f32 1.0, %v14361_v7  ;;  %v6770_v8 = vadd.f32 1.0, %v14369_v23 }
 0x7be   : > { %v14373_v60 = vpop.eup %14372  ;;  %14392 = vrcp.f32 %v6750_v56  ;;  %v6758_v56 = vadd.f32 1.0, %v17267_v20  ;;  %v17319_v20 = vrot.slane %v7738_v34, 5 }
 0x7bf   : > { %v14375_v35 = vpop.eup %14374  ;;  %14394 = vrcp.f32 %v6751_v22  ;;  %v6759_v22 = vadd.f32 1.0, %v17274_v5  ;;  %v6762_v5 = vadd.f32 1.0, %v17283_v12  ;;  %v6771_v12 = vadd.f32 1.0, %v14371_v10 }
 0x7c0   : > { %v14377_v27 = vpop.eup %14376  ;;  %14396 = vrcp.f32 %v6752_v14  ;;  %v6760_v14 = vadd.f32 1.0, %v17277_v13  ;;  %18777 = vst [vmem:[#allocation58_spill] sm:$0xff] %v17319_v20  ;;  %v6764_v13 = vadd.f32 1.0, %v17288_v43  ;;  %v6773_v19 = vadd.f32 1.0, %v14375_v35 }
 0x7c1   : > { %v14379_v32 = vpop.eup %14378  ;;  %14398 = vrcp.f32 %v6753_v30  ;;  %v6761_v30 = vadd.f32 1.0, %v17280_v55  ;;  %v6774_v50 = vadd.f32 1.0, %v14377_v27 }
 0x7c2   : > { %v14381_v6 = vpop.eup %14380  ;;  %14400 = vrcp.f32 %v6754_v18 }
 0x7c3   : > { %v14383_v16 = vpop.eup %14382  ;;  %14402 = vrcp.f32 %v6755_v40  ;;  %v6763_v40 = vadd.f32 1.0, %v17286_v44 }
 0x7c4   : > { %v14385_v61 = vpop.eup %14384  ;;  %14404 = vrcp.f32 %v6756_v29 }
 0x7c5   : > { %v14387_v28 = vpop.eup %14386  ;;  %14406 = vrcp.f32 %v6757_v39  ;;  %v6768_v39 = vadd.f32 1.0, %v14365_v47  ;;  %v17333_v27 = vadd.f32 1.0, %v14385_v61 }
 0x7c6   : > { %v14389_v18 = vpop.eup %14388  ;;  %14408 = vrcp.f32 %v6758_v56  ;;  %v6772_v56 = vadd.f32 1.0, %v14373_v60 }
 0x7c7   : > { %v14391_v29 = vpop.eup %14390  ;;  %14410 = vrcp.f32 %v6759_v22 }
 0x7c8   : > { %v14393_v55 = vpop.eup %14392  ;;  %14412 = vrcp.f32 %v6760_v14  ;;  %v6845_v34 = vmul.f32 %v14391_v29, %v17113_v54  ;;  %v6775_v54 = vadd.f32 1.0, %v14379_v32  ;;  %v17329_v14 = vadd.f32 1.0, %v14381_v6 }
 0x7c9   : > { %v14395_v20 = vpop.eup %14394  ;;  %14414 = vrcp.f32 %v6761_v30  ;;  %v6846_v44 = vmul.f32 %v14393_v55, %v17116_v53  ;;  %v6777_v30 = vadd.f32 1.0, %v14383_v16 }
 0x7ca   : > { %v14397_v43 = vpop.eup %14396  ;;  %14416 = vrcp.f32 %v6762_v5  ;;  %v6847_v9 = vmul.f32 %v14395_v20, %v17119_v38 }
 0x7cb   : > { %v14399_v7 = vpop.eup %14398  ;;  %14418 = vrcp.f32 %v6763_v40  ;;  %v6848_v47 = vmul.f32 %v14397_v43, %v17122_v15  ;;  %v6877_v42 = vpack.c.bf16 %v6846_v44, %v6845_v34  ;;  %v17337_v40 = vadd.f32 1.0, %v14389_v18 }
 0x7cc   : > { %v14401_v22 = vpop.eup %14400  ;;  %14420 = vrcp.f32 %v6764_v13  ;;  %v6849_v23 = vmul.f32 %v14399_v7, %v17125_v25 }
 0x7cd   : > { %v14403_v53 = vpop.eup %14402  ;;  %14422 = vrcp.f32 %v6765_v0  ;;  %v6850_v10 = vmul.f32 %v14401_v22, %v17128_v31  ;;  %v6878_v60 = vpack.c.bf16 %v6848_v47, %v6847_v9  ;;  %v6914_v35 = vrot.slane %v6877_v42, 4 }
 0x7ce   : > { %v14405_v38 = vpop.eup %14404  ;;  %14424 = vrcp.f32 %v6766_v37  ;;  %v6851_v15 = vmul.f32 %v14403_v53, %v17131_v36  ;;  %v6779_v0 = vadd.f32 1.0, %v14387_v28 }
 0x7cf   : > { %v14407_v20 = vpop.eup %14406  ;;  %14426 = vrcp.f32 %v6767_v62  ;;  %v6852_v32 = vmul.f32 %v14405_v38, %v17137_v49  ;;  %v6879_v6 = vpack.c.bf16 %v6850_v10, %v6849_v23  ;;  %v6915_v5 = vrot.slane %v6878_v60, 4  ;;  %6962 = vst [vmem:[#allocation3 + $0x8] sm:$0xf0] %v6914_v35 }
 0x7d0   : > { %v14409_v25 = vpop.eup %14408  ;;  %14428 = vrcp.f32 %v6768_v39  ;;  %v6853_v31 = vmul.f32 %v14407_v20, %v17141_v26  ;;  %v18778_v60 = vrot.slane %v17295_v57, 4 }
 0x7d1   : > { %v14411_v16 = vpop.eup %14410  ;;  %14430 = vrcp.f32 %v6769_v59  ;;  %v6854_v61 = vmul.f32 %v14409_v25, %v17145_v52  ;;  %v6880_v37 = vpack.c.bf16 %v6852_v32, %v6851_v15  ;;  %v17342_v36 = vsel %vm2034_vm3, %v6914_v35, %v6915_v5 }
 0x7d2   : > { %v14413_v62 = vpop.eup %14412  ;;  %14432 = vrcp.f32 %v6770_v8  ;;  %v6855_v49 = vmul.f32 %v14411_v16, %v17150_v48  ;;  %v6917_v13 = vrot.slane %v6879_v6, 4  ;;  %6963 = vst [vmem:[#allocation3 + $0x10] sm:$0xff] %v17342_v36  ;;  %v7067_v28 = vrot.slane %v17342_v36, 4 }
 0x7d3   : > { %v14415_v18 = vpop.eup %14414  ;;  %14434 = vrcp.f32 %v6771_v12  ;;  %v6856_v26 = vmul.f32 %v14413_v62, %v17153_v33  ;;  %v6881_v29 = vpack.c.bf16 %v6854_v61, %v6853_v31  ;;  %v6919_v55 = vrot.slane %v6880_v37, 4 }
 0x7d4   : > { %v14417_v52 = vpop.eup %14416  ;;  %14436 = vrcp.f32 %v6772_v56  ;;  %v6857_v39 = vmul.f32 %v14415_v18, %v17157_v58  ;;  %v17350_v59 = vsel %vm2034_vm3, %v6915_v5, %v6917_v13  ;;  %v17354_v48 = vmul.bf16 %v17342_v36, %v18657_v2 }
 0x7d5   : > { %v14419_v8 = vpop.eup %14418  ;;  %14438 = vrcp.f32 %v6773_v19  ;;  %v6858_v34 = vmul.f32 %v14417_v52, %v17161_v63  ;;  %v6882_v12 = vpack.c.bf16 %v6856_v26, %v6855_v49  ;;  %v17358_v33 = vsel %vm2034_vm3, %v6917_v13, %v6919_v55  ;;  %6964 = vst [vmem:[#allocation3 + $0x18] sm:$0xff] %v17350_v59  ;;  %v18779_v13 = vld [vmem:[#allocation45_spill] sm:$0xff]  ;;  %v18780_v52 = vld [vmem:[#allocation48_spill] sm:$0xff] }
 0x7d6   : > { %v14421_v44 = vpop.eup %14420  ;;  %14440 = vrcp.f32 %v6774_v50  ;;  %v6859_v58 = vmul.f32 %v14419_v8, %v17166_v51  ;;  %v6921_v43 = vrot.slane %v6881_v29, 4  ;;  %6965 = vst [vmem:[#allocation3 + $0x20] sm:$0xff] %v17358_v33  ;;  %v17363_v56 = vld [vmem:[#allocation3 + $0x8] sm:$0xff]  ;;  %v7069_v9 = vrot.slane %v17350_v59, 4 }
 0x7d7   : > { %v14423_v19 = vpop.eup %14422  ;;  %14442 = vrcp.f32 %v6775_v54  ;;  %v6860_v63 = vmul.f32 %v14421_v44, %v17171_v24  ;;  %v6883_v7 = vpack.c.bf16 %v6858_v34, %v6857_v39  ;;  %v6923_v47 = vrot.slane %v6882_v12, 4  ;;  %v18781_v44 = vld [vmem:[#allocation49_spill] sm:$0xff] }
 0x7d8   : > { %v14425_v42 = vpop.eup %14424  ;;  %14444 = vrcp.f32 %v17329_v14  ;;  %v6861_v50 = vmul.f32 %v14423_v19, %v17176_v11  ;;  %v17370_v51 = vsel %vm2034_vm3, %v6919_v55, %v6921_v43  ;;  %v7065_v22 = vrot.slane %v17363_v56, 4 }
 0x7d9   : > { %v14427_v23 = vpop.eup %14426  ;;  %14446 = vrcp.f32 %v6777_v30  ;;  %v6862_v53 = vmul.f32 %v14425_v42, %v17181_v46  ;;  %v6884_v10 = vpack.c.bf16 %v6860_v63, %v6859_v58  ;;  %v17375_v54 = vsel %vm2034_vm3, %v6921_v43, %v6923_v47  ;;  %6966 = vst [vmem:[#allocation3 + $0x28] sm:$0xff] %v17370_v51 }
 0x7da   : > { %v14429_v24 = vpop.eup %14428  ;;  %14448 = vrcp.f32 %v17333_v27  ;;  %v6863_v11 = vmul.f32 %v14427_v23, %v17186_v45  ;;  %v6925_v14 = vrot.slane %v6883_v7, 4  ;;  %6967 = vst [vmem:[#allocation3 + $0x30] sm:$0xff] %v17375_v54  ;;  %v7066_v35 = vsel %vm2034_vm3, %v18778_v60, %v7065_v22  ;;  %v18784_v60 = vld [vmem:[#allocation22_spill] sm:$0xff] }
 0x7db   : > { %v14431_v38 = vpop.eup %14430  ;;  %14450 = vrcp.f32 %v6779_v0  ;;  %v6864_v46 = vmul.f32 %v14429_v24, %v17191_v17  ;;  %v6885_v30 = vpack.c.bf16 %v6862_v53, %v6861_v50  ;;  %v6927_v15 = vrot.slane %v6884_v10, 4  ;;  %12772 = vmatprep.mubr.bf16.mxu0 %v7066_v35  ;;  %v18783_v10 = vld [vmem:[#allocation51_spill] sm:$0xff] }
 0x7dc   : > { %v14433_v20 = vpop.eup %14432  ;;  %14452 = vrcp.f32 %v17337_v40  ;;  %v6865_v27 = vmul.f32 %v14431_v38, %v17196_v3  ;;  %v17388_v45 = vsel %vm2034_vm3, %v6923_v47, %v6925_v14  ;;  %v7068_v57 = vsel %vm2034_vm3, %v7065_v22, %v7067_v28  ;;  %v18782_v47 = vld [vmem:[#allocation50_spill] sm:$0xff] }
 0x7dd   : > { %v14435_v32 = vpop.eup %14434  ;;  %v6866_v6 = vmul.f32 %v14433_v20, %v17201_v41  ;;  %v6886_v5 = vpack.c.bf16 %v6864_v46, %v6863_v11  ;;  %v17395_v17 = vsel %vm2034_vm3, %v6925_v14, %v6927_v15  ;;  %v6929_v25 = vrot.slane %v6885_v30, 4  ;;  %6968 = vst [vmem:[#allocation3 + $0x38] sm:$0xff] %v17388_v45  ;;  %12773 = vmatmul.mubr.bf16.vlgmr.msra.gmra.mrb[40].mxu0 %v7068_v57  ;;  %v18786_v57 = vld [vmem:[#allocation53_spill] sm:$0xff] }
 0x7de   : > { %v14437_v0 = vpop.eup %14436  ;;  %v6867_v3 = vmul.f32 %v14435_v32, %v17208_v4  ;;  %6969 = vst [vmem:[#allocation3 + $0x40] sm:$0xff] %v17395_v17  ;;  %v7070_v40 = vsel %vm2034_vm3, %v7067_v28, %v7069_v9  ;;  %v6997_v41 = vmul.bf16 %v17363_v56, %v15526_v1  ;;  %v7340_v31 = vshrl.u32 %v17354_v48, 16 }
 0x7df   : > { %v14439_v16 = vpop.eup %14438  ;;  %v6868_v61 = vmul.f32 %v14437_v0, %v17215_v21  ;;  %v6887_v37 = vpack.c.bf16 %v6866_v6, %v6865_v27  ;;  %v17410_v62 = vsel %vm2034_vm3, %v6927_v15, %v6929_v25  ;;  %v6931_v4 = vrot.slane %v6886_v5, 4  ;;  %12776 = vmatprep.mubr.bf16.mxu0 %v7070_v40  ;;  %v18787_v6 = vld [vmem:[#allocation56_spill] sm:$0xff]  ;;  %v18788_v5 = vld [vmem:[#allocation55_spill] sm:$0xff] }
 0x7e0   : > { %v14441_v49 = vpop.eup %14440  ;;  %v6869_v18 = vmul.f32 %v14439_v16, %v18779_v13  ;;  %6970 = vst [vmem:[#allocation3 + $0x48] sm:$0xff] %v17410_v62  ;;  %v7331_v28 = vshrl.u32 %v6997_v41, 16  ;;  %v7334_v26 = vshll.u32 %v6997_v41, 16  ;;  %v7342_v29 = vrot.slane %v7340_v31, 3  ;;  %v18790_v41 = vld [vmem:[#allocation54_spill] sm:$0xff] }
 0x7e1   : > { %v14443_v55 = vpop.eup %14442  ;;  %v6870_v39 = vmul.f32 %v14441_v49, %v18780_v52  ;;  %v6888_v8 = vpack.c.bf16 %v6868_v61, %v6867_v3  ;;  %v17416_v21 = vsel %vm2034_vm3, %v6929_v25, %v6931_v4  ;;  %v6933_v34 = vrot.slane %v6887_v37, 4 }
 0x7e2   : > { %v14445_v12 = vpop.eup %14444  ;;  %v6871_v58 = vmul.f32 %v14443_v55, %v18781_v44  ;;  %6971 = vst [vmem:[#allocation3 + $0x50] sm:$0xff] %v17416_v21  ;;  %v7333_v43 = vrot.slane %v7331_v28, 3  ;;  %v7336_v19 = vrot.slane %v7334_v26, 4  ;;  %v7343_v63 = vshll.u32 %v17354_v48, 16  ;;  %v18785_v48 = vld [vmem:[#allocation52_spill] sm:$0xff] }
 0x7e3   : > { %v14447_v7 = vpop.eup %14446  ;;  %v6872_v42 = vmul.f32 %v14445_v12, %v18782_v47  ;;  %v6889_v50 = vpack.c.bf16 %v6870_v39, %v6869_v18  ;;  %v17423_v22 = vsel %vm2034_vm3, %v6931_v4, %v6933_v34  ;;  %v6935_v23 = vrot.slane %v6888_v8, 4  ;;  %v14099_v4 = vld [vmem:[%s18449_s12 + $0x88] sm:$0xff]   ;;  %v18791_v39 = vld [vmem:[#allocation44_spill] sm:$0xff] }
 0x7e4   : > { %v14449_v53 = vpop.eup %14448  ;;  %v6873_v24 = vmul.f32 %v14447_v7, %v18783_v10  ;;  %6972 = vst [vmem:[#allocation3 + $0x58] sm:$0xff] %v17423_v22  ;;  %v7337_v11 = vor.u32 %v7336_v19, %v7333_v43  ;;  %v7345_v14 = vrot.slane %v7343_v63, 4  ;;  %v6999_v35 = vmul.bf16 %v17350_v59, %v18784_v60  ;;  %v18792_v12 = vld [vmem:[#allocation24_spill] sm:$0xff] }
 0x7e5   : > { %v14451_v38 = vpop.eup %14450  ;;  %v6874_v46 = vmul.f32 %v14449_v53, %v18785_v48  ;;  %v6890_v30 = vpack.c.bf16 %v6872_v42, %v6871_v58  ;;  %v17431_v15 = vsel %vm2034_vm3, %v6933_v34, %v6935_v23  ;;  %v6937_v20 = vrot.slane %v6889_v50, 4  ;;  %v18793_v58 = vld [vmem:[#allocation25_spill] sm:$0xff] }
 0x7e6   : > { %v14453_v27 = vpop.eup %14452  ;;  %v6875_v32 = vmul.f32 %v14451_v38, %v18786_v57  ;;  %6973 = vst [vmem:[#allocation3 + $0x60] sm:$0xff] %v17431_v15  ;;  %v18789_v25 = vor.u32 %v18787_v6, %v18788_v5  ;;  %v7346_v3 = vor.u32 %v7345_v14, %v7342_v29  ;;  %v7349_v40 = vshrl.u32 %v6999_v35, 16 }
 0x7e7   : > { %v6876_v31 = vmul.f32 %v14453_v27, %v18790_v41  ;;  %v6891_v16 = vpack.c.bf16 %v6874_v46, %v6873_v24  ;;  %v17441_v61 = vsel %vm2034_vm3, %v6935_v23, %v6937_v20  ;;  %v6939_v37 = vrot.slane %v6890_v30, 4  ;;  %v18794_v27 = vld [vmem:[#allocation23_spill] sm:$0xff] }
 0x7e8   : > { %v7338_v0 = vsel %vm2604_vm11, %v18789_v25, %v7337_v11  ;;  %6974 = vst [vmem:[#allocation3 + $0x68] sm:$0xff] %v17441_v61  ;;  %v7347_v49 = vsel %vm2604_vm11, %v7337_v11, %v7346_v3  ;;  %v7351_v13 = vrot.slane %v7349_v40, 3  ;;  %v7352_v18 = vshll.u32 %v6999_v35, 16 }
 0x7e9   : > { %12820 = vmatprep.mubr.bf16.mxu1 %v7338_v0  ;;  %v7071_v28 = vrot.slane %v17358_v33, 4  ;;  %v6892_v26 = vpack.c.bf16 %v6876_v31, %v6875_v32  ;;  %v17450_v29 = vsel %vm2034_vm3, %v6937_v20, %v6939_v37  ;;  %v6941_v55 = vrot.slane %v6891_v16, 4  ;;  %v18795_v32 = vld [vmem:[#allocation11_spill] sm:$0xff] }
 0x7ea   : > { %12821 = vmatmul.mubr.bf16.vlgmr.msra.gmra.mrb[12].mxu1 %v7347_v49  ;;  %v7073_v52 = vrot.slane %v17370_v51, 4  ;;  %6975 = vst [vmem:[#allocation3 + $0x70] sm:$0xff] %v17450_v29  ;;  %v7354_v8 = vrot.slane %v7352_v18, 4  ;;  %v7000_v44 = vmul.bf16 %v17358_v33, %v18792_v12  ;;  %v7001_v43 = vmul.bf16 %v17370_v51, %v18793_v58 }
 0x7eb   : > { %12853 = vmatpush3.bf16.msra.mxu1 %v18791_v39  ;;  %v7072_v34 = vsel %vm2034_vm3, %v7069_v9, %v7071_v28  ;;  %v17463_v19 = vsel %vm2034_vm3, %v6939_v37, %v6941_v55  ;;  %v6943_v63 = vrot.slane %v6892_v26, 4  ;;  %v7075_v47 = vrot.slane %v17375_v54, 4  ;;  %v14100_v9 = vld [vmem:[%s18449_s12 + $0x90] sm:$0xff]  }
 0x7ec   : > { %12777 = vmatmul.mubr.bf16.gmra.mrb[44].mxu0 %v7072_v34  ;;  %v7074_v7 = vsel %vm2034_vm3, %v7071_v28, %v7073_v52  ;;  %12854 = vmatprep.subr.bf16.mxu1 %v14099_v4  ;;  %6976 = vst [vmem:[#allocation3 + $0x78] sm:$0xff] %v17463_v19  ;;  %v7355_v42 = vor.u32 %v7354_v8, %v7351_v13  ;;  %v7358_v50 = vshrl.u32 %v7000_v44, 16  ;;  %v7361_v23 = vshll.u32 %v7000_v44, 16  ;;  %v14102_v8 = vld [vmem:[%s18449_s12 + $0xa0] sm:$0xff]  }
 0x7ed   : > { %12780 = vmatprep.mubr.bf16.mxu0 %v7074_v7  ;;  %v7367_v53 = vshrl.u32 %v7001_v43, 16  ;;  %v6944_v10 = vsel %vm2034_vm3, %v6941_v55, %v6943_v63  ;;  %6978 = vst [vmem:[#allocation3 + $0x88] sm:$0xf] %v6943_v63  ;;  %v7370_v24 = vshll.u32 %v7001_v43, 16  ;;  %v7076_v11 = vsel %vm2034_vm3, %v7073_v52, %v7075_v47  ;;  %v18797_v63 = vld [vmem:[#allocation27_spill] sm:$0xff] }
 0x7ee   : > { %v7077_v14 = vrot.slane %v17388_v45, 4  ;;  %6977 = vst [vmem:[#allocation3 + $0x80] sm:$0xff] %v6944_v10  ;;  %v7356_v35 = vsel %vm2604_vm11, %v7346_v3, %v7355_v42  ;;  %v7360_v38 = vrot.slane %v7358_v50, 3  ;;  %v7363_v48 = vrot.slane %v7361_v23, 4  ;;  %v18796_v3 = vld [vmem:[#allocation13_spill] sm:$0xff]  ;;  %v18798_v50 = vld [vmem:[#allocation28_spill] sm:$0xff] }
 0x7ef   : > { %12855 = vmatpush3.bf16.msra.mxu1 %v14099_v4  ;;  %v7369_v46 = vrot.slane %v7367_v53, 3  ;;  %12824 = vmatprep.mubr.bf16.mxu1 %v7356_v35  ;;  %v7372_v30 = vrot.slane %v7370_v24, 4  ;;  %v7002_v57 = vmul.bf16 %v17375_v54, %v18794_v27  ;;  %v7003_v6 = vmul.bf16 %v17388_v45, %v18795_v32  ;;  %v14101_v4 = vld [vmem:[%s18449_s12 + $0x98] sm:$0xff]  }
 0x7f0   : > { %v7078_v20 = vsel %vm2034_vm3, %v7075_v47, %v7077_v14  ;;  %12856 = vmatprep.subr.bf16.mxu1 %v14100_v9  ;;  %v7364_v5 = vor.u32 %v7363_v48, %v7360_v38  ;;  %v7079_v25 = vrot.slane %v17395_v17, 4  ;;  %v7081_v0 = vrot.slane %v17410_v62, 4 }
 0x7f1   : > { %v7004_v40 = vmul.bf16 %v17395_v17, %v18796_v3  ;;  %v7373_v41 = vor.u32 %v7372_v30, %v7369_v46  ;;  %v7376_v31 = vshrl.u32 %v7002_v57, 16  ;;  %v7379_v16 = vshll.u32 %v7002_v57, 16 }
 0x7f2   : > { %v7385_v37 = vshrl.u32 %v7003_v6, 16  ;;  %v7365_v49 = vsel %vm2604_vm11, %v7355_v42, %v7364_v5  ;;  %v7388_v13 = vshll.u32 %v7003_v6, 16  ;;  %v7080_v18 = vsel %vm2034_vm3, %v7077_v14, %v7079_v25 }
 0x7f3   : > { %12857 = vmatpush3.bf16.msra.mxu1 %v14100_v9  ;;  %v7082_v28 = vsel %vm2034_vm3, %v7079_v25, %v7081_v0  ;;  %v7374_v26 = vsel %vm2604_vm11, %v7364_v5, %v7373_v41  ;;  %v7378_v55 = vrot.slane %v7376_v31, 3  ;;  %v7381_v52 = vrot.slane %v7379_v16, 4  ;;  %v18799_v25 = vld [vmem:[#allocation21_spill] sm:$0xff] }
 0x7f4   : > { %12825 = vmatmul.mubr.bf16.gmra.mrb[16].mxu1 %v7365_v49  ;;  %12781 = vmatmul.mubr.bf16.gmra.mrb[48].mxu0 %v7076_v11  ;;  %v7387_v39 = vrot.slane %v7385_v37, 3  ;;  %v7390_v34 = vrot.slane %v7388_v13, 4  ;;  %v7394_v44 = vshrl.u32 %v7004_v40, 16  ;;  %v7397_v43 = vshll.u32 %v7004_v40, 16 }
 0x7f5   : > { %12828 = vmatprep.mubr.bf16.mxu1 %v7374_v26  ;;  %12784 = vmatprep.mubr.bf16.mxu0 %v7078_v20  ;;  %v7005_v7 = vmul.bf16 %v17410_v62, %v18797_v63  ;;  %v7382_v47 = vor.u32 %v7381_v52, %v7378_v55  ;;  %v7083_v9 = vrot.slane %v17416_v21, 4  ;;  %v7085_v42 = vrot.slane %v17423_v22, 4 }
 0x7f6   : > { %12858 = vmatprep.subr.bf16.mxu1 %v14101_v4  ;;  %v7006_v23 = vmul.bf16 %v17416_v21, %v18798_v50  ;;  %v7391_v53 = vor.u32 %v7390_v34, %v7387_v39  ;;  %v7396_v10 = vrot.slane %v7394_v44, 3  ;;  %v7399_v24 = vrot.slane %v7397_v43, 4  ;;  %v14104_v39 = vld [vmem:[%s18449_s12 + $0xb0] sm:$0xff]  }
 0x7f7   : > { %12859 = vmatpush3.bf16.msra.mxu1 %v14101_v4  ;;  %v7403_v11 = vshrl.u32 %v7005_v7, 16  ;;  %v7383_v14 = vsel %vm2604_vm11, %v7373_v41, %v7382_v47  ;;  %v7406_v35 = vshll.u32 %v7005_v7, 16  ;;  %v7084_v38 = vsel %vm2034_vm3, %v7081_v0, %v7083_v9  ;;  %v14103_v0 = vld [vmem:[%s18449_s12 + $0xa8] sm:$0xff]   ;;  %v18800_v4 = vld [vmem:[#allocation33_spill] sm:$0xff] }
 0x7f8   : > { %v17503_v48 = vsel %vm2034_vm3, %v7083_v9, %v7085_v42  ;;  %12860 = vmatprep.subr.bf16.mxu1 %v14102_v8  ;;  %v7392_v46 = vsel %vm2604_vm11, %v7382_v47, %v7391_v53  ;;  %v7400_v30 = vor.u32 %v7399_v24, %v7396_v10  ;;  %v7412_v57 = vshrl.u32 %v7006_v23, 16  ;;  %v18801_v10 = vld [vmem:[#allocation34_spill] sm:$0xff] }
 0x7f9   : > { %v7405_v20 = vrot.slane %v7403_v11, 3  ;;  %v7408_v6 = vrot.slane %v7406_v35, 4  ;;  %v7415_v5 = vshll.u32 %v7006_v23, 16  ;;  %v7007_v40 = vmul.bf16 %v17423_v22, %v18799_v25  ;;  %v18802_v35 = vld [vmem:[#allocation36_spill] sm:$0xff] }
 0x7fa   : > { %v7087_v31 = vrot.slane %v17431_v15, 4  ;;  %v7401_v41 = vsel %vm2604_vm11, %v7391_v53, %v7400_v30  ;;  %v7414_v16 = vrot.slane %v7412_v57, 3  ;;  %v7089_v37 = vrot.slane %v17441_v61, 4 }
 0x7fb   : > { %12861 = vmatpush3.bf16.msra.mxu1 %v14102_v8  ;;  %v7008_v49 = vmul.bf16 %v17431_v15, %v18800_v4  ;;  %v7409_v13 = vor.u32 %v7408_v6, %v7405_v20  ;;  %v7417_v26 = vrot.slane %v7415_v5, 4  ;;  %v7421_v55 = vshrl.u32 %v7007_v40, 16  ;;  %v6995_v5 = vld [vmem:[#allocation3 + $0x80] sm:$0xf] }
 0x7fc   : > { %12829 = vmatmul.mubr.bf16.gmra.mrb[20].mxu1 %v7383_v14  ;;  %12785 = vmatmul.mubr.bf16.gmra.mrb[52].mxu0 %v7080_v18  ;;  %v7424_v52 = vshll.u32 %v7007_v40, 16  ;;  %v17520_v34 = vsel %vm2034_vm3, %v7085_v42, %v7087_v31  ;;  %v17523_v8 = vsel %vm2034_vm3, %v7087_v31, %v7089_v37  ;;  %v7091_v42 = vrot.slane %v17450_v29, 4 }
 0x7fd   : > { %12832 = vmatprep.mubr.bf16.mxu1 %v7392_v46  ;;  %12788 = vmatprep.mubr.bf16.mxu0 %v7082_v28  ;;  %v7430_v44 = vshrl.u32 %v7008_v49, 16  ;;  %v7433_v43 = vshll.u32 %v7008_v49, 16  ;;  %v7410_v18 = vsel %vm2604_vm11, %v7400_v30, %v7409_v13  ;;  %v7418_v7 = vor.u32 %v7417_v26, %v7414_v16  ;;  %v14105_v49 = vld [vmem:[%s18449_s12 + $0xb8] sm:$0xff]  }
 0x7fe   : > { %v7423_v47 = vrot.slane %v7421_v55, 3  ;;  %v7426_v9 = vrot.slane %v7424_v52, 4  ;;  %12862 = vmatprep.subr.bf16.mxu1 %v14103_v0  ;;  %v7009_v28 = vmul.bf16 %v17441_v61, %v18801_v10  ;;  %v7093_v14 = vrot.slane %v17463_v19, 4 }
 0x7ff   : > { %v7432_v23 = vrot.slane %v7430_v44, 3  ;;  %v7435_v53 = vrot.slane %v7433_v43, 4  ;;  %12863 = vmatpush3.bf16.msra.mxu1 %v14103_v0  ;;  %v7419_v24 = vsel %vm2604_vm11, %v7409_v13, %v7418_v7  ;;  %v7010_v46 = vmul.bf16 %v17450_v29, %v18802_v35 }
 0x800   : > { %v7427_v11 = vor.u32 %v7426_v9, %v7423_v47  ;;  %12864 = vmatprep.subr.bf16.mxu1 %v14104_v39  ;;  %v7439_v20 = vshrl.u32 %v7009_v28, 16  ;;  %v7442_v57 = vshll.u32 %v7009_v28, 16  ;;  %v17534_v6 = vsel %vm2034_vm3, %v7089_v37, %v7091_v42  ;;  %v18803_v37 = vld [vmem:[#allocation37_spill] sm:$0xff] }
 0x801   : > { %v7436_v30 = vor.u32 %v7435_v53, %v7432_v23  ;;  %v17538_v31 = vsel %vm2034_vm3, %v7091_v42, %v7093_v14  ;;  %v7448_v0 = vshrl.u32 %v7010_v46, 16  ;;  %v7451_v16 = vshll.u32 %v7010_v46, 16  ;;  %v18805_v9 = vld [vmem:[#allocation57_spill] sm:$0xff]  ;;  %v18806_v23 = vld [vmem:[#allocation58_spill] sm:$0xff] }
 0x802   : > { %v7428_v40 = vsel %vm2604_vm11, %v7418_v7, %v7427_v11  ;;  %v7441_v26 = vrot.slane %v7439_v20, 3  ;;  %v7444_v55 = vrot.slane %v7442_v57, 4  ;;  %v7011_v52 = vmul.bf16 %v17463_v19, %v18803_v37  ;;  %v18804_v7 = vld [vmem:[#allocation35_spill] sm:$0xff]  ;;  %v17554_v28 = vld [vmem:[%s18449_s12 + $0xc0] sm:$0xff]  }
 0x803   : > { %v17544_v13 = vsel %vm2604_vm11, %v7427_v11, %v7436_v30  ;;  %12865 = vmatpush3.bf16.msra.mxu1 %v14104_v39  ;;  %v7450_v44 = vrot.slane %v7448_v0, 3  ;;  %v7453_v43 = vrot.slane %v7451_v16, 4  ;;  %v7012_v47 = vmul.bf16 %v6995_v5, %v18804_v7 }
 0x804   : > { %12833 = vmatmul.mubr.bf16.gmra.mrb[24].mxu1 %v7401_v41  ;;  %12789 = vmatmul.mubr.bf16.gmra.mrb[56].mxu0 %v7084_v38  ;;  %v7741_v53 = vor.u32 %v18806_v23, %v18805_v9  ;;  %v7445_v39 = vor.u32 %v7444_v55, %v7441_v26  ;;  %v7457_v42 = vshrl.u32 %v7011_v52, 16  ;;  %v7460_v11 = vshll.u32 %v7011_v52, 16  ;;  %v18807_v41 = vld [vmem:[#allocation29_spill] sm:$0xff] }
 0x805   : > { %12836 = vmatprep.mubr.bf16.mxu1 %v7410_v18  ;;  %12792 = vmatprep.mubr.bf16.mxu0 %v17503_v48  ;;  %v7701_v38 = vmul.bf16 %v17363_v56, %v18807_v41  ;;  %v7454_v46 = vor.u32 %v7453_v43, %v7450_v44  ;;  %v7095_v20 = vrot.slane %v6995_v5, 4  ;;  %v7466_v57 = vshrl.u32 %v7012_v47, 16  ;;  %v18808_v44 = vld [vmem:[#allocation20_spill] sm:$0xff]  ;;  %v18809_v43 = vld [vmem:[#allocation30_spill] sm:$0xff] }
 0x806   : > { %12866 = vmatprep.subr.bf16.mxu1 %v14105_v49  ;;  %v7469_v0 = vshll.u32 %v7012_v47, 16  ;;  %v17560_v16 = vsel %vm2604_vm11, %v7436_v30, %v7445_v39  ;;  %v7459_v9 = vrot.slane %v7457_v42, 3  ;;  %v7462_v23 = vrot.slane %v7460_v11, 4  ;;  %v18810_v42 = vld [vmem:[#allocation19_spill] sm:$0xff] }
 0x807   : > { %12867 = vmatpush3.bf16.msra.mxu1 %v14105_v49  ;;  %v7743_v18 = vshrl.u32 %v7701_v38, 16  ;;  %v17563_v48 = vsel %vm2604_vm11, %v7445_v39, %v7454_v46  ;;  %v17565_v26 = vrot.slane %v7466_v57, 3  ;;  %v7746_v56 = vshll.u32 %v7701_v38, 16  ;;  %v18811_v57 = vld [vmem:[#allocation31_spill] sm:$0xff] }
 0x808   : > { %v17567_v55 = vrot.slane %v7469_v0, 4  ;;  %12900 = vmatprep.subr.bf16.mxu1 %v17554_v28  ;;  %v17570_v5 = vor.u32 %v7462_v23, %v7459_v9  ;;  %v7702_v30 = vmul.bf16 %v17342_v36, %v18808_v44  ;;  %v7703_v49 = vmul.bf16 %v17350_v59, %v18809_v43  ;;  %v18812_v59 = vld [vmem:[#allocation32_spill] sm:$0xff] }
 0x809   : > { %v7745_v52 = vrot.slane %v7743_v18, 4  ;;  %v17577_v47 = vsel %vm2034_vm3, %v7093_v14, %v7095_v20  ;;  %v7748_v39 = vrot.slane %v7746_v56, 5  ;;  %v7704_v11 = vmul.bf16 %v17358_v33, %v18810_v42 }
 0x80a   : > { %v7705_v38 = vmul.bf16 %v17370_v51, %v18811_v57  ;;  %v17585_v0 = vsel %vm2604_vm11, %v7454_v46, %v17570_v5  ;;  %v7752_v9 = vshrl.u32 %v7702_v30, 16  ;;  %v7755_v23 = vshll.u32 %v7702_v30, 16 }
 0x80b   : > { %v7761_v36 = vshrl.u32 %v7703_v49, 16  ;;  %v7749_v14 = vor.u32 %v7748_v39, %v7745_v52  ;;  %v7764_v20 = vshll.u32 %v7703_v49, 16  ;;  %v7770_v18 = vshrl.u32 %v7704_v11, 16  ;;  %v18813_v39 = vld [vmem:[#allocation17_spill] sm:$0xff] }
 0x80c   : > { %12837 = vmatmul.mubr.bf16.gmra.mrb[28].mxu1 %v7419_v24  ;;  %12793 = vmatmul.mubr.bf16.gmra.mrb[60].mxu0 %v17520_v34  ;;  %v7754_v33 = vrot.slane %v7752_v9, 4  ;;  %v7757_v51 = vrot.slane %v7755_v23, 5  ;;  %v7773_v46 = vshll.u32 %v7704_v11, 16  ;;  %v7779_v42 = vshrl.u32 %v7705_v38, 16  ;;  %v18814_v9 = vld [vmem:[#allocation15_spill] sm:$0xff] }
 0x80d   : > { %12840 = vmatprep.mubr.bf16.mxu1 %v7428_v40  ;;  %12796 = vmatprep.mubr.bf16.mxu0 %v17523_v8  ;;  %v7763_v56 = vrot.slane %v7761_v36, 4  ;;  %v17592_v57 = vsel %vm2117_vm9, %v7741_v53, %v7749_v14  ;;  %v7766_v30 = vrot.slane %v7764_v20, 5  ;;  %v7772_v24 = vrot.slane %v7770_v18, 4 }
 0x80e   : > { %v7758_v34 = vor.u32 %v7757_v51, %v7754_v33  ;;  %v7775_v43 = vrot.slane %v7773_v46, 5  ;;  %v7782_v44 = vshll.u32 %v7705_v38, 16  ;;  %v7706_v52 = vmul.bf16 %v17375_v54, %v18812_v59 }
 0x80f   : > { %v7767_v49 = vor.u32 %v7766_v30, %v7763_v56  ;;  %v7781_v40 = vrot.slane %v7779_v42, 4  ;;  %v7707_v8 = vmul.bf16 %v17388_v45, %v18813_v39  ;;  %v7708_v11 = vmul.bf16 %v17395_v17, %v18814_v9 }
 0x810   : > { %v17601_v53 = vsel %vm2117_vm9, %v7749_v14, %v7758_v34  ;;  %v7776_v23 = vor.u32 %v7775_v43, %v7772_v24  ;;  %v7784_v36 = vrot.slane %v7782_v44, 5  ;;  %v7788_v20 = vshrl.u32 %v7706_v52, 16  ;;  %v18815_v24 = vld [vmem:[#allocation18_spill] sm:$0xff] }
 0x811   : > { %v17604_v18 = vsel %vm2117_vm9, %v7758_v34, %v7767_v49  ;;  %v7791_v38 = vshll.u32 %v7706_v52, 16  ;;  %v7797_v33 = vshrl.u32 %v7707_v8, 16  ;;  %v7800_v54 = vshll.u32 %v7707_v8, 16  ;;  %v18816_v52 = vld [vmem:[#allocation16_spill] sm:$0xff]  ;;  %v18817_v8 = vld [vmem:[#allocation38_spill] sm:$0xff] }
 0x812   : > { %v17607_v42 = vsel %vm2117_vm9, %v7767_v49, %v7776_v23  ;;  %v7785_v51 = vor.u32 %v7784_v36, %v7781_v40  ;;  %v7790_v45 = vrot.slane %v7788_v20, 4  ;;  %v7806_v56 = vshrl.u32 %v7708_v11, 16 }
 0x813   : > { %v7793_v17 = vrot.slane %v7791_v38, 5  ;;  %v7799_v43 = vrot.slane %v7797_v33, 4  ;;  %v7802_v44 = vrot.slane %v7800_v54, 5  ;;  %v7809_v14 = vshll.u32 %v7708_v11, 16 }
 0x814   : > { %12841 = vmatmul.mubr.bf16.gmra.mrb[32].mxu1 %v17544_v13  ;;  %12797 = vmatmul.mubr.bf16.gmra.mrb[64].mxu0 %v17534_v6  ;;  %v17614_v46 = vsel %vm2117_vm9, %v7776_v23, %v7785_v51  ;;  %v7808_v30 = vrot.slane %v7806_v56, 4  ;;  %v7709_v34 = vmul.bf16 %v17410_v62, %v18815_v24  ;;  %v7710_v13 = vmul.bf16 %v17416_v21, %v18816_v52 }
 0x815   : > { %12844 = vmatprep.mubr.bf16.mxu1 %v17560_v16  ;;  %12800 = vmatprep.mubr.bf16.mxu0 %v17538_v31  ;;  %v7794_v49 = vor.u32 %v7793_v17, %v7790_v45  ;;  %v7803_v6 = vor.u32 %v7802_v44, %v7799_v43  ;;  %v7811_v40 = vrot.slane %v7809_v14, 5  ;;  %v7711_v11 = vmul.bf16 %v17423_v22, %v18817_v8  ;;  %v18818_v44 = vld [vmem:[#allocation39_spill] sm:$0xff]  ;;  %v18820_v8 = vld [vmem:[#allocation42_spill] sm:$0xff] }
 0x816   : > { %v7815_v36 = vshrl.u32 %v7709_v34, 16  ;;  %v7818_v16 = vshll.u32 %v7709_v34, 16  ;;  %v7824_v20 = vshrl.u32 %v7710_v13, 16  ;;  %v7827_v31 = vshll.u32 %v7710_v13, 16  ;;  %v18819_v13 = vld [vmem:[#allocation40_spill] sm:$0xff] }
 0x817   : > { %v17623_v23 = vsel %vm2117_vm9, %v7785_v51, %v7794_v49  ;;  %v17626_v38 = vsel %vm2117_vm9, %v7794_v49, %v7803_v6  ;;  %v7812_v62 = vor.u32 %v7811_v40, %v7808_v30  ;;  %v7833_v33 = vshrl.u32 %v7711_v11, 16 }
 0x818   : > { %v7817_v54 = vrot.slane %v7815_v36, 4  ;;  %v7820_v21 = vrot.slane %v7818_v16, 5  ;;  %v7826_v45 = vrot.slane %v7824_v20, 4  ;;  %v7829_v56 = vrot.slane %v7827_v31, 5  ;;  %v18821_v16 = vld [vmem:[#allocation43_spill] sm:$0xff] }
 0x819   : > { %v17629_v17 = vsel %vm2117_vm9, %v7803_v6, %v7812_v62  ;;  %v7835_v22 = vrot.slane %v7833_v33, 4  ;;  %v7836_v43 = vshll.u32 %v7711_v11, 16  ;;  %v7712_v14 = vmul.bf16 %v17431_v15, %v18818_v44 }
 0x81a   : > { %v7821_v34 = vor.u32 %v7820_v21, %v7817_v54  ;;  %v7830_v51 = vor.u32 %v7829_v56, %v7826_v45  ;;  %v7713_v49 = vmul.bf16 %v17441_v61, %v18819_v13  ;;  %v7714_v30 = vmul.bf16 %v17450_v29, %v18820_v8 }
 0x81b   : > { %v7838_v40 = vrot.slane %v7836_v43, 5  ;;  %v7842_v6 = vshrl.u32 %v7712_v14, 16  ;;  %v7845_v36 = vshll.u32 %v7712_v14, 16  ;;  %v7715_v11 = vmul.bf16 %v17463_v19, %v18821_v16 }
 0x81c   : > { %12845 = vmatmul.mubr.bf16.gmra.mrb[36].mxu1 %v17563_v48  ;;  %12801 = vmatmul.mubr.bf16.gmra.mrb[68].mxu0 %v17577_v47  ;;  %v7822_v15 = vsel %vm2117_vm9, %v7812_v62, %v7821_v34  ;;  %v7831_v20 = vsel %vm2117_vm9, %v7821_v34, %v7830_v51  ;;  %v7851_v61 = vshrl.u32 %v7713_v49, 16  ;;  %v7854_v31 = vshll.u32 %v7713_v49, 16 }
 0x81d   : > { %12848 = vmatprep.mubr.bf16.mxu1 %v17585_v0  ;;  %v7839_v33 = vor.u32 %v7838_v40, %v7835_v22  ;;  %v7844_v29 = vrot.slane %v7842_v6, 4  ;;  %v7847_v54 = vrot.slane %v7845_v36, 5  ;;  %v7860_v48 = vshrl.u32 %v7714_v30, 16 }
 0x81e   : > { %v7853_v21 = vrot.slane %v7851_v61, 4  ;;  %v7856_v47 = vrot.slane %v7854_v31, 5  ;;  %v7863_v45 = vshll.u32 %v7714_v30, 16  ;;  %v7869_v56 = vshrl.u32 %v7715_v11, 16 }
 0x81f   : > { %v7840_v43 = vsel %vm2117_vm9, %v7830_v51, %v7839_v33  ;;  %v7848_v14 = vor.u32 %v7847_v54, %v7844_v29  ;;  %v7862_v19 = vrot.slane %v7860_v48, 4  ;;  %v7872_v16 = vshll.u32 %v7715_v11, 16  ;;  %v17699_v54 = vld [vmem:[#allocation3 + $0x18] sm:$0xff]  ;;  %v17701_v48 = vld [vmem:[#allocation3 + $0x20] sm:$0xff] }
 0x820   : > { %v7857_v0 = vor.u32 %v7856_v47, %v7853_v21  ;;  %v7865_v8 = vrot.slane %v7863_v45, 5  ;;  %v7871_v62 = vrot.slane %v7869_v56, 4  ;;  %v18822_v22 = vor.u32 %v17567_v55, %v17565_v26  ;;  %v14107_v26 = vld [vmem:[%s18449_s12 + $0xc8] sm:$0xff]   ;;  %v14108_v55 = vld [vmem:[%s18449_s12 + $0xd0] sm:$0xff]  }
 0x821   : > { %v7849_v34 = vsel %vm2117_vm9, %v7839_v33, %v7848_v14  ;;  %v7874_v13 = vrot.slane %v7872_v16, 5  ;;  %v8162_v56 = vmul.bf16 %v17699_v54, %v18657_v2 }
 0x822   : > { %v7473_v49 = vsel %vm2604_vm11, %v17570_v5, %v18822_v22  ;;  %v7858_v30 = vsel %vm2117_vm9, %v7848_v14, %v7857_v0  ;;  %v7866_v40 = vor.u32 %v7865_v8, %v7862_v19  ;;  %v14109_v5 = vld [vmem:[%s18449_s12 + $0xd8] sm:$0xff]   ;;  %v8143_v8 = vld [vmem:[#allocation3 + $0x8] sm:$0xf8] }
 0x823   : > { %v17652_v51 = vor.u32 %v7874_v13, %v7871_v62  ;;  %v8215_v22 = vshll.u32 %v8162_v56, 16 }
 0x824   : > { %12849 = vmatmul.mubr.bf16.gmra.mrb[40].mxu1 %v7473_v49  ;;  %v7867_v6 = vsel %vm2117_vm9, %v7857_v0, %v7866_v40  ;;  %v8163_v0 = vmul.bf16 %v17701_v48, %v18784_v60 }
 0x825   : > { %12868 = vmatprep.mubr.bf16.mxu1 %v17592_v57  ;;  %v7876_v36 = vsel %vm2117_vm9, %v7866_v40, %v17652_v51  ;;  %v14111_v57 = vld [vmem:[%s18449_s12 + $0xe8] sm:$0xff]  }
 0x826   : > { %v8221_v40 = vshrl.u32 %v8163_v0, 16 }
 0x82c   : > { %12869 = vmatmul.mubr.bf16.vlgmr.msra.gmra.mrb[12].mxu1 %v17601_v53  ;;  %v14112_v53 = vld [vmem:[%s18449_s12 + $0xf0] sm:$0xff]  }
 0x82d   : > { %12901 = vmatpush3.bf16.msra.mxu1 %v17554_v28  ;;  %12872 = vmatprep.mubr.bf16.mxu1 %v17604_v18  ;;  %v14110_v28 = vld [vmem:[%s18449_s12 + $0xe0] sm:$0xff]   ;;  %v14113_v18 = vld [vmem:[%s18449_s12 + $0xf8] sm:$0xff]  }
 0x82e   : > { %12902 = vmatprep.subr.bf16.mxu1 %v14107_v26 }
 0x831   : > { %12903 = vmatpush3.bf16.msra.mxu1 %v14107_v26  ;;  %v8224_v26 = vshll.u32 %v8163_v0, 16  ;;  %v14116_v0 = vld [vmem:[%s18449_s12 + $0x110] sm:$0xff]  }
 0x832   : > { %12904 = vmatprep.subr.bf16.mxu1 %v14108_v55 }
 0x834   : > { %12873 = vmatmul.mubr.bf16.gmra.mrb[16].mxu1 %v17607_v42  ;;  %v17690_v42 = vld [vmem:[%s18449_s12 + $0x100] sm:$0xff]  }
 0x835   : > { %12876 = vmatprep.mubr.bf16.mxu1 %v17614_v46  ;;  %12905 = vmatpush3.bf16.msra.mxu1 %v14108_v55  ;;  %v7699_v46 = vld [vmem:[#allocation3 + $0x80] sm:$0x1f]  ;;  %v17707_v55 = vld [vmem:[#allocation3 + $0x28] sm:$0xff] }
 0x836   : > { %12906 = vmatprep.subr.bf16.mxu1 %v14109_v5 }
 0x839   : > { %12907 = vmatpush3.bf16.msra.mxu1 %v14109_v5  ;;  %v17709_v5 = vld [vmem:[#allocation3 + $0x30] sm:$0xff] }
 0x83a   : > { %12908 = vmatprep.subr.bf16.mxu1 %v14110_v28 }
 0x83c   : > { %12877 = vmatmul.mubr.bf16.gmra.mrb[20].mxu1 %v17623_v23  ;;  %v17693_v23 = vld [vmem:[#allocation3 + $0x10] sm:$0xff] }
 0x83d   : > { %12880 = vmatprep.mubr.bf16.mxu1 %v17626_v38  ;;  %12909 = vmatpush3.bf16.msra.mxu1 %v14110_v28  ;;  %v18823_v38 = vld [vmem:[#allocation41_spill] sm:$0xff]  ;;  %v8161_v11 = vmul.bf16 %v17693_v23, %v15526_v1 }
 0x83e   : > { %12910 = vmatprep.subr.bf16.mxu1 %v14111_v57  ;;  %v7716_v13 = vmul.bf16 %v7699_v46, %v18823_v38  ;;  %v8226_v46 = vrot.slane %v8224_v26, 4  ;;  %v17735_v26 = vld [vmem:[#allocation3 + $0x48] sm:$0xff] }
 0x83f   : > { %v8203_v29 = vshrl.u32 %v8161_v11, 16 }
 0x840   : > { %v7881_v61 = vshll.u32 %v7716_v13, 16 }
 0x841   : > { %12911 = vmatpush3.bf16.msra.mxu1 %v14111_v57  ;;  %v8205_v14 = vrot.slane %v8203_v29, 3  ;;  %v8217_v57 = vrot.slane %v8215_v22, 4  ;;  %v14115_v29 = vld [vmem:[%s18449_s12 + $0x108] sm:$0xff]  }
 0x842   : > { %12912 = vmatprep.subr.bf16.mxu1 %v14112_v53  ;;  %v7883_v47 = vrot.slane %v7881_v61, 5 }
 0x844   : > { %12881 = vmatmul.mubr.bf16.gmra.mrb[24].mxu1 %v17629_v17  ;;  %v18824_v17 = vld [vmem:[#allocation26_spill] sm:$0xff] }
 0x845   : > { %12884 = vmatprep.mubr.bf16.mxu1 %v7822_v15  ;;  %12913 = vmatpush3.bf16.msra.mxu1 %v14112_v53  ;;  %v8160_v16 = vmul.bf16 %v8143_v8, %v18824_v17  ;;  %v7878_v15 = vshrl.u32 %v7716_v13, 16  ;;  %v8164_v53 = vmul.bf16 %v17707_v55, %v18792_v12  ;;  %v8165_v8 = vmul.bf16 %v17709_v5, %v18793_v58 }
 0x846   : > { %12914 = vmatprep.subr.bf16.mxu1 %v14113_v18 }
 0x847   : > { %v8195_v31 = vshrl.u32 %v8160_v16, 16  ;;  %v8198_v33 = vshll.u32 %v8160_v16, 16  ;;  %v7880_v21 = vrot.slane %v7878_v15, 4  ;;  %v8230_v16 = vshrl.u32 %v8164_v53, 16 }
 0x848   : > { %v8239_v61 = vshrl.u32 %v8165_v8, 16 }
 0x849   : > { %12915 = vmatpush3.bf16.msra.mxu1 %v14113_v18  ;;  %v8197_v45 = vrot.slane %v8195_v31, 3  ;;  %v7884_v62 = vor.u32 %v7883_v47, %v7880_v21  ;;  %v8223_v18 = vrot.slane %v8221_v40, 3  ;;  %v17718_v31 = vld [vmem:[#allocation3 + $0x38] sm:$0xff]  ;;  %v8232_v21 = vrot.slane %v8230_v16, 3  ;;  %v14118_v16 = vld [vmem:[%s18449_s12 + $0x120] sm:$0xff]  }
 0x84a   : > { %12948 = vmatprep.subr.bf16.mxu1 %v17690_v42 }
 0x84b   : > { %v8227_v15 = vor.u32 %v8226_v46, %v8223_v18 }
 0x84c   : > { %12885 = vmatmul.mubr.bf16.gmra.mrb[28].mxu1 %v7831_v20  ;;  %v8206_v20 = vshll.u32 %v8161_v11, 16  ;;  %v8233_v11 = vshll.u32 %v8164_v53, 16 }
 0x84d   : > { %12888 = vmatprep.mubr.bf16.mxu1 %v7840_v43  ;;  %v8200_v43 = vrot.slane %v8198_v33, 4  ;;  %v17720_v33 = vld [vmem:[#allocation3 + $0x40] sm:$0xff] }
 0x84e   : > { %v8208_v19 = vrot.slane %v8206_v20, 4  ;;  %v8235_v47 = vrot.slane %v8233_v11, 4 }
 0x84f   : > { %v8201_v49 = vor.u32 %v8200_v43, %v8197_v45  ;;  %v8166_v45 = vmul.bf16 %v17718_v31, %v18794_v27  ;;  %v8241_v43 = vrot.slane %v8239_v61, 3 }
 0x851   : > { %v8251_v22 = vshll.u32 %v8166_v45, 16 }
 0x853   : > { %v8253_v53 = vrot.slane %v8251_v22, 4 }
 0x854   : > { %12889 = vmatmul.mubr.bf16.gmra.mrb[32].mxu1 %v7849_v34  ;;  %v8212_v34 = vshrl.u32 %v8162_v56, 16 }
 0x855   : > { %12892 = vmatprep.mubr.bf16.mxu1 %v7858_v30  ;;  %v8209_v30 = vor.u32 %v8208_v19, %v8205_v14  ;;  %v8167_v19 = vmul.bf16 %v17720_v33, %v18795_v32 }
 0x856   : > { %v8214_v28 = vrot.slane %v8212_v34, 3  ;;  %v8248_v34 = vshrl.u32 %v8166_v45, 16  ;;  %v14119_v45 = vld [vmem:[%s18449_s12 + $0x128] sm:$0xff]  }
 0x857   : > { %v8260_v40 = vshll.u32 %v8167_v19, 16 }
 0x858   : > { %v8218_v13 = vor.u32 %v8217_v57, %v8214_v28  ;;  %v8250_v57 = vrot.slane %v8248_v34, 3 }
 0x85a   : > { %v8219_v20 = vsel %vm2604_vm11, %v8209_v30, %v8218_v13  ;;  %v8228_v56 = vsel %vm2604_vm11, %v8218_v13, %v8227_v15  ;;  %v8254_v11 = vor.u32 %v8253_v53, %v8250_v57 }
 0x85c   : > { %12893 = vmatmul.mubr.bf16.gmra.mrb[36].mxu1 %v7867_v6  ;;  %v7885_v6 = vsel %vm2117_vm9, %v17652_v51, %v7884_v62  ;;  %v8242_v51 = vshll.u32 %v8165_v8, 16  ;;  %v8236_v62 = vor.u32 %v8235_v47, %v8232_v21  ;;  %v8262_v8 = vrot.slane %v8260_v40, 4  ;;  %v17751_v21 = vld [vmem:[#allocation3 + $0x58] sm:$0xff]  ;;  %v17753_v47 = vld [vmem:[#allocation3 + $0x60] sm:$0xff] }
 0x85d   : > { %12896 = vmatprep.mubr.bf16.mxu1 %v7876_v36  ;;  %v8210_v36 = vsel %vm2604_vm11, %v8201_v49, %v8209_v30  ;;  %v8257_v30 = vshrl.u32 %v8167_v19, 16  ;;  %v8170_v19 = vmul.bf16 %v17751_v21, %v18798_v50  ;;  %v8171_v22 = vmul.bf16 %v17753_v47, %v18799_v25 }
 0x85e   : > { %v8244_v14 = vrot.slane %v8242_v51, 4  ;;  %v8237_v28 = vsel %vm2604_vm11, %v8227_v15, %v8236_v62 }
 0x85f   : > { %v8259_v46 = vrot.slane %v8257_v30, 3  ;;  %v8284_v40 = vshrl.u32 %v8170_v19, 16  ;;  %v8293_v53 = vshrl.u32 %v8171_v22, 16 }
 0x860   : > { %v8245_v49 = vor.u32 %v8244_v14, %v8241_v43 }
 0x861   : > { %v8263_v51 = vor.u32 %v8262_v8, %v8259_v46  ;;  %v17773_v8 = vld [vmem:[#allocation3 + $0x80] sm:$0xff] }
 0x862   : > { %v8246_v18 = vsel %vm2604_vm11, %v8236_v62, %v8245_v49 }
 0x864   : > { %12897 = vmatmul.mubr.bf16.gmra.mrb[40].mxu1 %v7885_v6  ;;  %v17737_v6 = vld [vmem:[#allocation3 + $0x50] sm:$0xff] }
 0x865   : > { %12916 = vmatprep.mubr.bf16.mxu1 %v8210_v36  ;;  %v8168_v36 = vmul.bf16 %v17735_v26, %v18796_v3  ;;  %v8169_v13 = vmul.bf16 %v17737_v6, %v18797_v63 }
 0x867   : > { %v8266_v15 = vshrl.u32 %v8168_v36, 16  ;;  %v8269_v61 = vshll.u32 %v8168_v36, 16  ;;  %v8296_v36 = vshll.u32 %v8171_v22, 16 }
 0x869   : > { %v8268_v43 = vrot.slane %v8266_v15, 3  ;;  %v8271_v14 = vrot.slane %v8269_v61, 4 }
 0x86b   : > { %v8272_v30 = vor.u32 %v8271_v14, %v8268_v43  ;;  %v17784_v43 = vld [vmem:[#allocation3 + $0x90] sm:$0xf]  ;;  %v17787_v14 = vrot.slane %v17773_v8, 4 }
 0x86c   : > { %12917 = vmatmul.mubr.bf16.vlgmr.msra.gmra.mrb[12].mxu1 %v8219_v20  ;;  %v8278_v20 = vshll.u32 %v8169_v13, 16  ;;  %18826 = vst [vmem:[#allocation47_spill] sm:$0xff] %v17784_v43  ;;  %v9898_v22 = vrot.slane %v17784_v43, 4 }
 0x86d   : > { %12949 = vmatpush3.bf16.msra.mxu1 %v17690_v42  ;;  %12920 = vmatprep.mubr.bf16.mxu1 %v8228_v56  ;;  %v14117_v42 = vld [vmem:[%s18449_s12 + $0x118] sm:$0xff]   ;;  %v8255_v56 = vsel %vm2604_vm11, %v8245_v49, %v8254_v11  ;;  %v14120_v49 = vld [vmem:[%s18449_s12 + $0x130] sm:$0xff]  }
 0x86e   : > { %12950 = vmatprep.subr.bf16.mxu1 %v14115_v29  ;;  %v8280_v34 = vrot.slane %v8278_v20, 4  ;;  %v8298_v20 = vrot.slane %v8296_v36, 4 }
 0x871   : > { %12951 = vmatpush3.bf16.msra.mxu1 %v14115_v29  ;;  %v8275_v29 = vshrl.u32 %v8169_v13, 16  ;;  %v14121_v13 = vld [vmem:[%s18449_s12 + $0x138] sm:$0xff]  }
 0x872   : > { %12952 = vmatprep.subr.bf16.mxu1 %v14116_v0 }
 0x873   : > { %v8277_v62 = vrot.slane %v8275_v29, 3  ;;  %v8295_v29 = vrot.slane %v8293_v53, 3 }
 0x874   : > { %12921 = vmatmul.mubr.bf16.gmra.mrb[16].mxu1 %v8237_v28  ;;  %v17767_v28 = vld [vmem:[#allocation3 + $0x68] sm:$0xff] }
 0x875   : > { %12924 = vmatprep.mubr.bf16.mxu1 %v8246_v18  ;;  %12953 = vmatpush3.bf16.msra.mxu1 %v14116_v0  ;;  %v8264_v0 = vsel %vm2604_vm11, %v8254_v11, %v8263_v51  ;;  %v8281_v57 = vor.u32 %v8280_v34, %v8277_v62  ;;  %v17769_v18 = vld [vmem:[#allocation3 + $0x70] sm:$0xff]  ;;  %v8172_v46 = vmul.bf16 %v17767_v28, %v18800_v4  ;;  %v8286_v11 = vrot.slane %v8284_v40, 3 }
 0x876   : > { %12954 = vmatprep.subr.bf16.mxu1 %v14117_v42 }
 0x877   : > { %v8282_v61 = vsel %vm2604_vm11, %v8272_v30, %v8281_v57  ;;  %v8305_v62 = vshll.u32 %v8172_v46, 16 }
 0x879   : > { %12955 = vmatpush3.bf16.msra.mxu1 %v14117_v42  ;;  %v8287_v42 = vshll.u32 %v8170_v19, 16  ;;  %v17792_v19 = vld [vmem:[%s18449_s12 + $0x140] sm:$0xff]  }
 0x87a   : > { %12956 = vmatprep.subr.bf16.mxu1 %v14118_v16 }
 0x87b   : > { %v8289_v15 = vrot.slane %v8287_v42, 4 }
 0x87c   : > { %12925 = vmatmul.mubr.bf16.gmra.mrb[20].mxu1 %v8255_v56  ;;  %v17782_v56 = vld [vmem:[#allocation3 + $0x88] sm:$0xff] }
 0x87d   : > { %12928 = vmatprep.mubr.bf16.mxu1 %v8264_v0  ;;  %12957 = vmatpush3.bf16.msra.mxu1 %v14118_v16  ;;  %v8273_v16 = vsel %vm2604_vm11, %v8263_v51, %v8272_v30  ;;  %18825 = vst [vmem:[#allocation46_spill] sm:$0xff] %v17782_v56  ;;  %v8302_v51 = vshrl.u32 %v8172_v46, 16  ;;  %v8290_v0 = vor.u32 %v8289_v15, %v8286_v11  ;;  %v9896_v34 = vrot.slane %v17782_v56, 4 }
 0x87e   : > { %12958 = vmatprep.subr.bf16.mxu1 %v14119_v45  ;;  %v8299_v30 = vor.u32 %v8298_v20, %v8295_v29  ;;  %v8307_v11 = vrot.slane %v8305_v62, 4  ;;  %v8175_v20 = vmul.bf16 %v17773_v8, %v18803_v37 }
 0x87f   : > { %v17800_v53 = vsel %vm2034_vm3, %v17787_v14, %v9896_v34  ;;  %v17803_v36 = vsel %vm2034_vm3, %v9896_v34, %v9898_v22  ;;  %v8291_v46 = vsel %vm2604_vm11, %v8281_v57, %v8290_v0 }
 0x880   : > { %18827 = vst [vmem:[#allocation12_spill] sm:$0xff] %v17800_v53  ;;  %18828 = vst [vmem:[#allocation45_spill] sm:$0xff] %v17803_v36  ;;  %v8329_v53 = vshrl.u32 %v8175_v20, 16  ;;  %v8332_v57 = vshll.u32 %v8175_v20, 16 }
 0x881   : > { %12959 = vmatpush3.bf16.msra.mxu1 %v14119_v45  ;;  %v8173_v45 = vmul.bf16 %v17769_v18, %v18801_v10 }
 0x882   : > { %12960 = vmatprep.subr.bf16.mxu1 %v14120_v49 }
 0x883   : > { %v8311_v40 = vshrl.u32 %v8173_v45, 16  ;;  %v8314_v42 = vshll.u32 %v8173_v45, 16 }
 0x884   : > { %12929 = vmatmul.mubr.bf16.gmra.mrb[24].mxu1 %v8273_v16  ;;  %v8304_v16 = vrot.slane %v8302_v51, 3  ;;  %v17812_v51 = vld [vmem:[#allocation3 + $0x88] sm:$0xf] }
 0x885   : > { %12932 = vmatprep.mubr.bf16.mxu1 %v8282_v61  ;;  %12961 = vmatpush3.bf16.msra.mxu1 %v14120_v49  ;;  %v17796_v49 = vld [vmem:[#allocation3 + $0x78] sm:$0xff]  ;;  %v8300_v61 = vsel %vm2604_vm11, %v8290_v0, %v8299_v30  ;;  %v8316_v29 = vrot.slane %v8314_v42, 4  ;;  %v8176_v0 = vmul.bf16 %v17812_v51, %v18804_v7  ;;  %v8331_v42 = vrot.slane %v8329_v53, 3 }
 0x886   : > { %12962 = vmatprep.subr.bf16.mxu1 %v14121_v13  ;;  %v8174_v15 = vmul.bf16 %v17796_v49, %v18802_v35  ;;  %v8308_v45 = vor.u32 %v8307_v11, %v8304_v16  ;;  %v8639_v53 = vrot.slane %v17693_v23, 4 }
 0x887   : > { %v8338_v11 = vshrl.u32 %v8176_v0, 16 }
 0x888   : > { %v8320_v34 = vshrl.u32 %v8174_v15, 16  ;;  %v8323_v22 = vshll.u32 %v8174_v15, 16  ;;  %v8309_v62 = vsel %vm2604_vm11, %v8299_v30, %v8308_v45  ;;  %v8341_v15 = vshll.u32 %v8176_v0, 16 }
 0x889   : > { %12963 = vmatpush3.bf16.msra.mxu1 %v14121_v13  ;;  %v8313_v13 = vrot.slane %v8311_v40, 3  ;;  %v8340_v20 = vrot.slane %v8338_v11, 3 }
 0x88a   : > { %12996 = vmatprep.subr.bf16.mxu1 %v17792_v19  ;;  %v8322_v43 = vrot.slane %v8320_v34, 3  ;;  %v8343_v56 = vrot.slane %v8341_v15, 4  ;;  %v17820_v34 = vld [vmem:[#allocation3 + $0x8] sm:$0xf0] }
 0x88b   : > { %v8317_v36 = vor.u32 %v8316_v29, %v8313_v13 }
 0x88c   : > { %12933 = vmatmul.mubr.bf16.gmra.mrb[28].mxu1 %v8291_v46  ;;  %v8325_v46 = vrot.slane %v8323_v22, 4  ;;  %v8344_v22 = vor.u32 %v8343_v56, %v8340_v20 }
 0x88d   : > { %12936 = vmatprep.mubr.bf16.mxu1 %v8300_v61  ;;  %v8318_v40 = vsel %vm2604_vm11, %v8308_v45, %v8317_v36  ;;  %v8334_v61 = vrot.slane %v8332_v57, 4  ;;  %v8638_v45 = vrot.slane %v17820_v34, 4 }
 0x88e   : > { %v8326_v16 = vor.u32 %v8325_v46, %v8322_v43  ;;  %v14123_v46 = vld [vmem:[%s18449_s12 + $0x148] sm:$0xff]  }
 0x88f   : > { %v8335_v13 = vor.u32 %v8334_v61, %v8331_v42  ;;  %v8640_v57 = vsel %vm2034_vm3, %v8638_v45, %v8639_v53  ;;  %v8645_v42 = vrot.slane %v17707_v55, 4  ;;  %v8647_v61 = vrot.slane %v17709_v5, 4 }
 0x890   : > { %v8327_v29 = vsel %vm2604_vm11, %v8317_v36, %v8326_v16  ;;  %v8641_v36 = vrot.slane %v17699_v54, 4  ;;  %v8651_v45 = vrot.slane %v17720_v33, 4 }
 0x891   : > { %v8336_v30 = vsel %vm2604_vm11, %v8326_v16, %v8335_v13  ;;  %v8345_v43 = vsel %vm2604_vm11, %v8335_v13, %v8344_v22  ;;  %v17856_v22 = vrot.slane %v17718_v31, 4 }
 0x892   : > { %v8642_v56 = vsel %vm2034_vm3, %v8639_v53, %v8641_v36  ;;  %v14127_v53 = vld [vmem:[%s18449_s12 + $0x168] sm:$0xff]  }
 0x894   : > { %12937 = vmatmul.mubr.bf16.gmra.mrb[32].mxu1 %v8309_v62  ;;  %v8643_v62 = vrot.slane %v17701_v48, 4 }
 0x895   : > { %12940 = vmatprep.mubr.bf16.mxu1 %v8318_v40  ;;  %v14124_v40 = vld [vmem:[%s18449_s12 + $0x150] sm:$0xff]  }
 0x896   : > { %v8644_v0 = vsel %vm2034_vm3, %v8641_v36, %v8643_v62  ;;  %v8646_v15 = vsel %vm2034_vm3, %v8643_v62, %v8645_v42  ;;  %v14128_v36 = vld [vmem:[%s18449_s12 + $0x170] sm:$0xff]  }
 0x89c   : > { %12941 = vmatmul.mubr.bf16.gmra.mrb[36].mxu1 %v8327_v29  ;;  %v8648_v29 = vsel %vm2034_vm3, %v8645_v42, %v8647_v61 }
 0x89d   : > { %12944 = vmatprep.mubr.bf16.mxu1 %v8336_v30  ;;  %v14126_v30 = vld [vmem:[%s18449_s12 + $0x160] sm:$0xff]  }
 0x8a4   : > { %12945 = vmatmul.mubr.bf16.gmra.mrb[40].mxu1 %v8345_v43  ;;  %v8650_v43 = vsel %vm2034_vm3, %v8647_v61, %v17856_v22  ;;  %v14129_v61 = vld [vmem:[%s18449_s12 + $0x178] sm:$0xff]  }
 0x8a5   : > { %12964 = vmatprep.mubr.bf16.mxu1 %v8640_v57  ;;  %v17866_v57 = vsel %vm2034_vm3, %v17856_v22, %v8651_v45 }
 0x8a6   : > { %18833 = vst [vmem:[#allocation22_spill] sm:$0xff] %v17866_v57 }
 0x8ac   : > { %12965 = vmatmul.mubr.bf16.vlgmr.msra.gmra.mrb[12].mxu1 %v8642_v56 }
 0x8ad   : > { %12997 = vmatpush3.bf16.msra.mxu1 %v17792_v19  ;;  %12968 = vmatprep.mubr.bf16.mxu1 %v8644_v0  ;;  %v14125_v19 = vld [vmem:[%s18449_s12 + $0x158] sm:$0xff]   ;;  %v8655_v0 = vrot.slane %v17737_v6, 4 }
 0x8ae   : > { %12998 = vmatprep.subr.bf16.mxu1 %v14123_v46 }
 0x8b0   : > { %v17839_v16 = vpop.f32.mrb[40].mxu0 }
 0x8b1   : > { %12999 = vmatpush3.bf16.msra.mxu1 %v14123_v46  ;;  %18829 = vst [vmem:[#allocation48_spill] sm:$0xff] %v17839_v16  ;;  %v17841_v11 = vpop.f32.mrb[41].mxu0  ;;  %v8653_v46 = vrot.slane %v17735_v26, 4 }
 0x8b2   : > { %18830 = vst [vmem:[#allocation49_spill] sm:$0xff] %v17841_v11  ;;  %13000 = vmatprep.subr.bf16.mxu1 %v14124_v40  ;;  %v17847_v13 = vpop.f32.mrb[42].mxu0 }
 0x8b3   : > { %18831 = vst [vmem:[#allocation50_spill] sm:$0xff] %v17847_v13  ;;  %v17850_v20 = vpop.f32.mrb[43].mxu0 }
 0x8b4   : > { %12969 = vmatmul.mubr.bf16.gmra.mrb[16].mxu1 %v8646_v15  ;;  %18832 = vst [vmem:[#allocation51_spill] sm:$0xff] %v17850_v20  ;;  %v17890_v15 = vsel %vm2034_vm3, %v8653_v46, %v8655_v0 }
 0x8b5   : > { %12972 = vmatprep.mubr.bf16.mxu1 %v8648_v29  ;;  %13001 = vmatpush3.bf16.msra.mxu1 %v14124_v40  ;;  %18839 = vst [vmem:[#allocation44_spill] sm:$0xff] %v17890_v15  ;;  %v17896_v29 = vld [vmem:[%s18449_s12 + $0x180] sm:$0xff]  }
 0x8b6   : > { %13002 = vmatprep.subr.bf16.mxu1 %v14125_v19 }
 0x8b9   : > { %13003 = vmatpush3.bf16.msra.mxu1 %v14125_v19  ;;  %v17886_v19 = vsel %vm2034_vm3, %v8651_v45, %v8653_v46 }
 0x8ba   : > { %13004 = vmatprep.subr.bf16.mxu1 %v14126_v30  ;;  %18838 = vst [vmem:[#allocation54_spill] sm:$0xff] %v17886_v19 }
 0x8bc   : > { %12973 = vmatmul.mubr.bf16.gmra.mrb[20].mxu1 %v8650_v43  ;;  %v8659_v43 = vrot.slane %v17753_v47, 4 }
 0x8bd   : > { %12976 = vmatprep.mubr.bf16.mxu1 %v17866_v57  ;;  %13005 = vmatpush3.bf16.msra.mxu1 %v14126_v30 }
 0x8be   : > { %13006 = vmatprep.subr.bf16.mxu1 %v14127_v53 }
 0x8bf   : > { %v17872_v62 = vpop.f32.mrb[44].mxu0 }
 0x8c0   : > { %18834 = vst [vmem:[#allocation52_spill] sm:$0xff] %v17872_v62  ;;  %v17875_v56 = vpop.f32.mrb[45].mxu0  ;;  %v18851_v62 = vld [vmem:[#allocation14_spill] sm:$0xff] }
 0x8c1   : > { %18835 = vst [vmem:[#allocation53_spill] sm:$0xff] %v17875_v56  ;;  %v17878_v40 = vpop.f32.mrb[46].mxu0  ;;  %13007 = vmatpush3.bf16.msra.mxu1 %v14127_v53  ;;  %v8657_v53 = vrot.slane %v17751_v21, 4 }
 0x8c2   : > { %18836 = vst [vmem:[#allocation56_spill] sm:$0xff] %v17878_v40  ;;  %v17880_v42 = vpop.f32.mrb[47].mxu0  ;;  %13008 = vmatprep.subr.bf16.mxu1 %v14128_v36  ;;  %v8661_v40 = vrot.slane %v17767_v28, 4 }
 0x8c3   : > { %18837 = vst [vmem:[#allocation55_spill] sm:$0xff] %v17880_v42 }
 0x8c4   : > { %12977 = vmatmul.mubr.bf16.gmra.mrb[24].mxu1 %v17886_v19 }
 0x8c5   : > { %12980 = vmatprep.mubr.bf16.mxu1 %v17890_v15  ;;  %13009 = vmatpush3.bf16.msra.mxu1 %v14128_v36  ;;  %v17910_v36 = vsel %vm2034_vm3, %v8655_v0, %v8657_v53  ;;  %v17928_v0 = vsel %vm2034_vm3, %v8659_v43, %v8661_v40 }
 0x8c6   : > { %13010 = vmatprep.subr.bf16.mxu1 %v14129_v61  ;;  %18844 = vst [vmem:[#allocation13_spill] sm:$0xff] %v17910_v36  ;;  %18850 = vst [vmem:[#allocation36_spill] sm:$0xff] %v17928_v0 }
 0x8c7   : > { %v17898_v30 = vpop.f32.mrb[48].mxu0 }
 0x8c8   : > { %18840 = vst [vmem:[#allocation24_spill] sm:$0xff] %v17898_v30  ;;  %v17901_v45 = vpop.f32.mrb[49].mxu0  ;;  %v17914_v30 = vsel %vm2034_vm3, %v8657_v53, %v8659_v43  ;;  %v8929_v53 = vmul.bf16 %v17820_v34, %v18851_v62 }
 0x8c9   : > { %18841 = vst [vmem:[#allocation25_spill] sm:$0xff] %v17901_v45  ;;  %v17904_v42 = vpop.f32.mrb[50].mxu0  ;;  %13011 = vmatpush3.bf16.msra.mxu1 %v14129_v61  ;;  %18845 = vst [vmem:[#allocation27_spill] sm:$0xff] %v17914_v30  ;;  %v8663_v61 = vrot.slane %v17769_v18, 4 }
 0x8ca   : > { %18842 = vst [vmem:[#allocation23_spill] sm:$0xff] %v17904_v42  ;;  %v17906_v46 = vpop.f32.mrb[51].mxu0  ;;  %13044 = vmatprep.subr.bf16.mxu1 %v17896_v29  ;;  %v8964_v43 = vshrl.u32 %v8929_v53, 16  ;;  %v8967_v16 = vshll.u32 %v8929_v53, 16 }
 0x8cb   : > { %18843 = vst [vmem:[#allocation11_spill] sm:$0xff] %v17906_v46 }
 0x8cc   : > { %12981 = vmatmul.mubr.bf16.gmra.mrb[28].mxu1 %v17910_v36  ;;  %v8969_v53 = vrot.slane %v8967_v16, 5 }
 0x8cd   : > { %12984 = vmatprep.mubr.bf16.mxu1 %v17914_v30 }
 0x8cf   : > { %v17917_v45 = vpop.f32.mrb[52].mxu0 }
 0x8d0   : > { %18846 = vst [vmem:[#allocation28_spill] sm:$0xff] %v17917_v45  ;;  %v17920_v42 = vpop.f32.mrb[53].mxu0  ;;  %v17934_v45 = vsel %vm2034_vm3, %v8661_v40, %v8663_v61 }
 0x8d1   : > { %18847 = vst [vmem:[#allocation21_spill] sm:$0xff] %v17920_v42  ;;  %v17923_v46 = vpop.f32.mrb[54].mxu0  ;;  %18852 = vst [vmem:[#allocation37_spill] sm:$0xff] %v17934_v45  ;;  %v8930_v42 = vmul.bf16 %v17693_v23, %v18807_v41 }
 0x8d2   : > { %18848 = vst [vmem:[#allocation33_spill] sm:$0xff] %v17923_v46  ;;  %v17925_v56 = vpop.f32.mrb[55].mxu0 }
 0x8d3   : > { %18849 = vst [vmem:[#allocation34_spill] sm:$0xff] %v17925_v56  ;;  %v8665_v56 = vrot.slane %v17796_v49, 4  ;;  %v8972_v20 = vshrl.u32 %v8930_v42, 16  ;;  %v8975_v34 = vshll.u32 %v8930_v42, 16  ;;  %v8966_v42 = vrot.slane %v8964_v43, 4 }
 0x8d4   : > { %12985 = vmatmul.mubr.bf16.gmra.mrb[32].mxu1 %v17928_v0 }
 0x8d5   : > { %12988 = vmatprep.mubr.bf16.mxu1 %v17934_v45  ;;  %v17949_v40 = vsel %vm2034_vm3, %v8663_v61, %v8665_v56  ;;  %v17953_v23 = vsel %vm2034_vm3, %v8665_v56, %v17787_v14  ;;  %v18858_v45 = vld [vmem:[#allocation30_spill] sm:$0xff]  ;;  %v8977_v0 = vrot.slane %v8975_v34, 5 }
 0x8d7   : > { %v17939_v11 = vpop.f32.mrb[56].mxu0 }
 0x8d8   : > { %18853 = vst [vmem:[#allocation35_spill] sm:$0xff] %v17939_v11  ;;  %v17942_v46 = vpop.f32.mrb[57].mxu0  ;;  %v18857_v11 = vld [vmem:[#allocation20_spill] sm:$0xff] }
 0x8d9   : > { %18854 = vst [vmem:[#allocation57_spill] sm:$0xff] %v17942_v46  ;;  %v17944_v13 = vpop.f32.mrb[58].mxu0  ;;  %v8931_v41 = vmul.bf16 %v17699_v54, %v18857_v11  ;;  %v8932_v46 = vmul.bf16 %v17701_v48, %v18858_v45  ;;  %v8970_v11 = vor.u32 %v8969_v53, %v8966_v42 }
 0x8da   : > { %18855 = vst [vmem:[#allocation58_spill] sm:$0xff] %v17944_v13  ;;  %v17946_v62 = vpop.f32.mrb[59].mxu0  ;;  %v8974_v13 = vrot.slane %v8972_v20, 4 }
 0x8db   : > { %18856 = vst [vmem:[#allocation32_spill] sm:$0xff] %v17946_v62  ;;  %v8669_v62 = vrot.slane %v17812_v51, 4  ;;  %v8981_v56 = vshrl.u32 %v8931_v41, 16  ;;  %v8984_v30 = vshll.u32 %v8931_v41, 16  ;;  %v8990_v19 = vshrl.u32 %v8932_v46, 16 }
 0x8dc   : > { %12989 = vmatmul.mubr.bf16.gmra.mrb[36].mxu1 %v17949_v40  ;;  %v8978_v15 = vor.u32 %v8977_v0, %v8974_v13  ;;  %v8993_v45 = vshll.u32 %v8932_v46, 16  ;;  %v18864_v13 = vld [vmem:[#allocation31_spill] sm:$0xff] }
 0x8dd   : > { %12992 = vmatprep.mubr.bf16.mxu1 %v17953_v23  ;;  %v8670_v16 = vsel %vm2034_vm3, %v17787_v14, %v8669_v62  ;;  %v8983_v20 = vrot.slane %v8981_v56, 4  ;;  %v8986_v34 = vrot.slane %v8984_v30, 5  ;;  %v8934_v46 = vmul.bf16 %v17709_v5, %v18864_v13 }
 0x8de   : > { %v8979_v41 = vsel %vm2117_vm9, %v8970_v11, %v8978_v15  ;;  %v8995_v42 = vrot.slane %v8993_v45, 5  ;;  %v14131_v11 = vld [vmem:[%s18449_s12 + $0x188] sm:$0xff]  }
 0x8df   : > { %v17961_v61 = vpop.f32.mrb[60].mxu0  ;;  %v8987_v53 = vor.u32 %v8986_v34, %v8983_v20  ;;  %v9008_v30 = vshrl.u32 %v8934_v46, 16  ;;  %v9011_v56 = vshll.u32 %v8934_v46, 16  ;;  %v8935_v20 = vmul.bf16 %v17718_v31, %v18812_v59 }
 0x8e0   : > { %18859 = vst [vmem:[#allocation17_spill] sm:$0xff] %v17961_v61  ;;  %v17964_v36 = vpop.f32.mrb[61].mxu0  ;;  %v18863_v61 = vld [vmem:[#allocation19_spill] sm:$0xff] }
 0x8e1   : > { %18860 = vst [vmem:[#allocation15_spill] sm:$0xff] %v17964_v36  ;;  %v17966_v57 = vpop.f32.mrb[62].mxu0  ;;  %v8933_v51 = vmul.bf16 %v17707_v55, %v18863_v61  ;;  %v8992_v36 = vrot.slane %v8990_v19, 4  ;;  %v8988_v19 = vsel %vm2117_vm9, %v8978_v15, %v8987_v53  ;;  %v9010_v34 = vrot.slane %v9008_v30, 4  ;;  %v14132_v15 = vld [vmem:[%s18449_s12 + $0x190] sm:$0xff]  }
 0x8e2   : > { %18861 = vst [vmem:[#allocation41_spill] sm:$0xff] %v17966_v57  ;;  %v17968_v43 = vpop.f32.mrb[63].mxu0  ;;  %v9017_v46 = vshrl.u32 %v8935_v20, 16 }
 0x8e3   : > { %18862 = vst [vmem:[#allocation26_spill] sm:$0xff] %v17968_v43  ;;  %v8999_v43 = vshrl.u32 %v8933_v51, 16  ;;  %v9002_v57 = vshll.u32 %v8933_v51, 16  ;;  %v8996_v62 = vor.u32 %v8995_v42, %v8992_v36  ;;  %v9013_v51 = vrot.slane %v9011_v56, 5 }
 0x8e4   : > { %12993 = vmatmul.mubr.bf16.gmra.mrb[40].mxu1 %v8670_v16  ;;  %v8936_v42 = vmul.bf16 %v17720_v33, %v18813_v39 }
 0x8e5   : > { %13012 = vmatprep.mubr.bf16.mxu1 %v8979_v41  ;;  %v9001_v45 = vrot.slane %v8999_v43, 4  ;;  %v9004_v41 = vrot.slane %v9002_v57, 5  ;;  %v8997_v36 = vsel %vm2117_vm9, %v8987_v53, %v8996_v62  ;;  %v9014_v53 = vor.u32 %v9013_v51, %v9010_v34 }
 0x8e6   : > { %v9026_v30 = vshrl.u32 %v8936_v42, 16  ;;  %v9029_v56 = vshll.u32 %v8936_v42, 16 }
 0x8e7   : > { %v17977_v0 = vpop.f32.mrb[64].mxu0  ;;  %v9005_v43 = vor.u32 %v9004_v41, %v9001_v45  ;;  %v9019_v45 = vrot.slane %v9017_v46, 4 }
 0x8e8   : > { %18865 = vst [vmem:[#allocation31_spill] sm:$0xff] %v17977_v0  ;;  %v17979_v14 = vpop.f32.mrb[65].mxu0  ;;  %v9028_v51 = vrot.slane %v9026_v30, 4  ;;  %v9031_v42 = vrot.slane %v9029_v56, 5 }
 0x8e9   : > { %18866 = vst [vmem:[#allocation59_spill] sm:$0xff] %v17979_v14  ;;  %v17981_v61 = vpop.f32.mrb[66].mxu0  ;;  %v9015_v34 = vsel %vm2117_vm9, %v9005_v43, %v9014_v53 }
 0x8ea   : > { %18867 = vst [vmem:[#allocation60_spill] sm:$0xff] %v17981_v61  ;;  %v17983_v16 = vpop.f32.mrb[67].mxu0 }
 0x8eb   : > { %18868 = vst [vmem:[#allocation61_spill] sm:$0xff] %v17983_v16 }
 0x8ec   : > { %13013 = vmatmul.mubr.bf16.vlgmr.msra.gmra.mrb[12].mxu1 %v8988_v19  ;;  %v9020_v19 = vshll.u32 %v8935_v20, 16  ;;  %v8937_v20 = vmul.bf16 %v17735_v26, %v18814_v9 }
 0x8ed   : > { %13045 = vmatpush3.bf16.msra.mxu1 %v17896_v29  ;;  %13016 = vmatprep.mubr.bf16.mxu1 %v8997_v36  ;;  %v14133_v36 = vld [vmem:[%s18449_s12 + $0x198] sm:$0xff]  }
 0x8ee   : > { %13046 = vmatprep.subr.bf16.mxu1 %v14131_v11  ;;  %v9022_v41 = vrot.slane %v9020_v19, 5  ;;  %v9035_v19 = vshrl.u32 %v8937_v20, 16 }
 0x8ef   : > { %v17998_v57 = vpop.f32.mrb[68].mxu0 }
 0x8f0   : > { %18869 = vst [vmem:[#allocation62_spill] sm:$0xff] %v17998_v57  ;;  %v18000_v16 = vpop.f32.mrb[69].mxu0  ;;  %v9006_v57 = vsel %vm2117_vm9, %v8996_v62, %v9005_v43  ;;  %v14134_v62 = vld [vmem:[%s18449_s12 + $0x1a0] sm:$0xff]   ;;  %v9023_v46 = vor.u32 %v9022_v41, %v9019_v45  ;;  %v14135_v43 = vld [vmem:[%s18449_s12 + $0x1a8] sm:$0xff]  }
 0x8f1   : > { %18870 = vst [vmem:[#allocation63_spill] sm:$0xff] %v18000_v16  ;;  %v18002_v61 = vpop.f32.mrb[70].mxu0  ;;  %13047 = vmatpush3.bf16.msra.mxu1 %v14131_v11  ;;  %v8938_v11 = vmul.bf16 %v17737_v6, %v18815_v24 }
 0x8f2   : > { %18871 = vst [vmem:[#allocation64_spill] sm:$0xff] %v18002_v61  ;;  %v18004_v29 = vpop.f32.mrb[71].mxu0  ;;  %13048 = vmatprep.subr.bf16.mxu1 %v14132_v15  ;;  %v9032_v61 = vor.u32 %v9031_v42, %v9028_v51  ;;  %v9024_v30 = vsel %vm2117_vm9, %v9014_v53, %v9023_v46  ;;  %v18873_v51 = vld [vmem:[#allocation38_spill] sm:$0xff]  ;;  %v14136_v53 = vld [vmem:[%s18449_s12 + $0x1b0] sm:$0xff]  }
 0x8f3   : > { %18872 = vst [vmem:[#allocation65_spill] sm:$0xff] %v18004_v29  ;;  %v9038_v29 = vshll.u32 %v8937_v20, 16  ;;  %v9044_v16 = vshrl.u32 %v8938_v11, 16 }
 0x8f4   : > { %13017 = vmatmul.mubr.bf16.gmra.mrb[16].mxu1 %v9006_v57  ;;  %v9047_v57 = vshll.u32 %v8938_v11, 16  ;;  %v9033_v45 = vsel %vm2117_vm9, %v9023_v46, %v9032_v61 }
 0x8f5   : > { %13020 = vmatprep.mubr.bf16.mxu1 %v9015_v34  ;;  %13049 = vmatpush3.bf16.msra.mxu1 %v14132_v15  ;;  %v9037_v15 = vrot.slane %v9035_v19, 4  ;;  %v9040_v56 = vrot.slane %v9038_v29, 5  ;;  %v8939_v34 = vmul.bf16 %v17751_v21, %v18816_v52  ;;  %v9046_v41 = vrot.slane %v9044_v16, 4  ;;  %v14137_v16 = vld [vmem:[%s18449_s12 + $0x1b8] sm:$0xff]   ;;  %v9372_v52 = vld [vmem:[#allocation3 + $0x10] sm:$0xf8] }
 0x8f6   : > { %13050 = vmatprep.subr.bf16.mxu1 %v14133_v36  ;;  %v9049_v20 = vrot.slane %v9047_v57, 5 }
 0x8f7   : > { %v9041_v42 = vor.u32 %v9040_v56, %v9037_v15  ;;  %v9053_v29 = vshrl.u32 %v8939_v34, 16  ;;  %v9056_v11 = vshll.u32 %v8939_v34, 16 }
 0x8f8   : > { %v9050_v19 = vor.u32 %v9049_v20, %v9046_v41  ;;  %v18874_v41 = vld [vmem:[#allocation40_spill] sm:$0xff] }
 0x8f9   : > { %13051 = vmatpush3.bf16.msra.mxu1 %v14133_v36  ;;  %v8940_v36 = vmul.bf16 %v17753_v47, %v18873_v51  ;;  %v9042_v46 = vsel %vm2117_vm9, %v9032_v61, %v9041_v42  ;;  %v9058_v57 = vrot.slane %v9056_v11, 5  ;;  %v18042_v61 = vld [vmem:[%s18449_s12 + $0x1c0] sm:$0xff]  }
 0x8fa   : > { %13052 = vmatprep.subr.bf16.mxu1 %v14134_v62  ;;  %v9051_v15 = vsel %vm2117_vm9, %v9041_v42, %v9050_v19 }
 0x8fb   : > { %v9062_v14 = vshrl.u32 %v8940_v36, 16 }
 0x8fc   : > { %13021 = vmatmul.mubr.bf16.gmra.mrb[20].mxu1 %v9024_v30  ;;  %v9065_v30 = vshll.u32 %v8940_v36, 16 }
 0x8fd   : > { %13024 = vmatprep.mubr.bf16.mxu1 %v9033_v45  ;;  %13053 = vmatpush3.bf16.msra.mxu1 %v14134_v62  ;;  %v9055_v62 = vrot.slane %v9053_v29, 4  ;;  %v8941_v45 = vmul.bf16 %v17767_v28, %v18818_v44  ;;  %v9064_v56 = vrot.slane %v9062_v14, 4  ;;  %v18875_v14 = vld [vmem:[#allocation42_spill] sm:$0xff] }
 0x8fe   : > { %13054 = vmatprep.subr.bf16.mxu1 %v14135_v43  ;;  %v9067_v34 = vrot.slane %v9065_v30, 5  ;;  %v8943_v42 = vmul.bf16 %v17796_v49, %v18875_v14 }
 0x8ff   : > { %v9059_v20 = vor.u32 %v9058_v57, %v9055_v62  ;;  %v9071_v36 = vshrl.u32 %v8941_v45, 16  ;;  %v9074_v29 = vshll.u32 %v8941_v45, 16 }
 0x900   : > { %v9068_v11 = vor.u32 %v9067_v34, %v9064_v56  ;;  %v9089_v56 = vshrl.u32 %v8943_v42, 16 }
 0x901   : > { %13055 = vmatpush3.bf16.msra.mxu1 %v14135_v43  ;;  %v8942_v43 = vmul.bf16 %v17769_v18, %v18874_v41  ;;  %v9073_v30 = vrot.slane %v9071_v36, 4  ;;  %v18876_v41 = vld [vmem:[#allocation43_spill] sm:$0xff] }
 0x902   : > { %13056 = vmatprep.subr.bf16.mxu1 %v14136_v53  ;;  %v8944_v44 = vmul.bf16 %v17773_v8, %v18876_v41  ;;  %v9069_v62 = vsel %vm2117_vm9, %v9059_v20, %v9068_v11 }
 0x903   : > { %v9083_v0 = vshll.u32 %v8942_v43, 16 }
 0x904   : > { %13025 = vmatmul.mubr.bf16.gmra.mrb[24].mxu1 %v9042_v46  ;;  %v9080_v46 = vshrl.u32 %v8942_v43, 16  ;;  %v9092_v43 = vshll.u32 %v8943_v42, 16  ;;  %v9098_v14 = vshrl.u32 %v8944_v44, 16  ;;  %v9101_v51 = vshll.u32 %v8944_v44, 16 }
 0x905   : > { %13028 = vmatprep.mubr.bf16.mxu1 %v9051_v15  ;;  %13057 = vmatpush3.bf16.msra.mxu1 %v14136_v53  ;;  %v9060_v53 = vsel %vm2117_vm9, %v9050_v19, %v9059_v20  ;;  %v9076_v15 = vrot.slane %v9074_v29, 5  ;;  %v9085_v45 = vrot.slane %v9083_v0, 5  ;;  %v9091_v19 = vrot.slane %v9089_v56, 4 }
 0x906   : > { %13058 = vmatprep.subr.bf16.mxu1 %v14137_v16  ;;  %v9082_v57 = vrot.slane %v9080_v46, 4  ;;  %v9389_v29 = vmul.bf16 %v9372_v52, %v18824_v17  ;;  %v9094_v41 = vrot.slane %v9092_v43, 5  ;;  %v9100_v20 = vrot.slane %v9098_v14, 4 }
 0x907   : > { %v9077_v34 = vor.u32 %v9076_v15, %v9073_v30  ;;  %v9103_v46 = vrot.slane %v9101_v51, 5  ;;  %v9390_v42 = vmul.bf16 %v17699_v54, %v15526_v1 }
 0x908   : > { %v9086_v24 = vor.u32 %v9085_v45, %v9082_v57  ;;  %v9095_v15 = vor.u32 %v9094_v41, %v9091_v19  ;;  %v9424_v57 = vshrl.u32 %v9389_v29, 16  ;;  %v9427_v45 = vshll.u32 %v9389_v29, 16 }
 0x909   : > { %13059 = vmatpush3.bf16.msra.mxu1 %v14137_v16  ;;  %v8928_v16 = vld [vmem:[#allocation3 + $0x88] sm:$0x1f]  ;;  %v9432_v56 = vshrl.u32 %v9390_v42, 16  ;;  %v9435_v52 = vshll.u32 %v9390_v42, 16  ;;  %v9392_v41 = vmul.bf16 %v17707_v55, %v18784_v60  ;;  %v9394_v55 = vmul.bf16 %v17718_v31, %v18793_v58 }
 0x90a   : > { %13092 = vmatprep.subr.bf16.mxu1 %v18042_v61  ;;  %v8945_v36 = vmul.bf16 %v8928_v16, %v18823_v38  ;;  %v9087_v0 = vsel %vm2117_vm9, %v9077_v34, %v9086_v24  ;;  %v9096_v14 = vsel %vm2117_vm9, %v9086_v24, %v9095_v15  ;;  %v9426_v16 = vrot.slane %v9424_v57, 3 }
 0x90b   : > { %v9429_v1 = vrot.slane %v9427_v45, 4  ;;  %v9434_v54 = vrot.slane %v9432_v56, 3  ;;  %v9437_v43 = vrot.slane %v9435_v52, 4  ;;  %v9450_v24 = vshrl.u32 %v9392_v41, 16 }
 0x90c   : > { %13029 = vmatmul.mubr.bf16.gmra.mrb[28].mxu1 %v9060_v53  ;;  %v9078_v53 = vsel %vm2117_vm9, %v9068_v11, %v9077_v34  ;;  %v9107_v44 = vshrl.u32 %v8945_v36, 16  ;;  %v9110_v30 = vshll.u32 %v8945_v36, 16  ;;  %v9391_v34 = vmul.bf16 %v17701_v48, %v18657_v2 }
 0x90d   : > { %13032 = vmatprep.mubr.bf16.mxu1 %v9069_v62  ;;  %v9104_v62 = vor.u32 %v9103_v46, %v9100_v20  ;;  %v9438_v20 = vor.u32 %v9437_v43, %v9434_v54  ;;  %v9453_v46 = vshll.u32 %v9392_v41, 16  ;;  %v9393_v2 = vmul.bf16 %v17709_v5, %v18792_v12 }
 0x90e   : > { %v9109_v17 = vrot.slane %v9107_v44, 4  ;;  %v9112_v11 = vrot.slane %v9110_v30, 5  ;;  %v9441_v36 = vshrl.u32 %v9391_v34, 16  ;;  %v9444_v29 = vshll.u32 %v9391_v34, 16  ;;  %v14140_v34 = vld [vmem:[%s18449_s12 + $0x1d0] sm:$0xff]  }
 0x90f   : > { %v9105_v51 = vsel %vm2117_vm9, %v9095_v15, %v9104_v62  ;;  %v9452_v30 = vrot.slane %v9450_v24, 3  ;;  %v9455_v60 = vrot.slane %v9453_v46, 4  ;;  %v9459_v57 = vshrl.u32 %v9393_v2, 16  ;;  %v14142_v46 = vld [vmem:[%s18449_s12 + $0x1e0] sm:$0xff]  }
 0x910   : > { %v9113_v19 = vor.u32 %v9112_v11, %v9109_v17  ;;  %v9443_v42 = vrot.slane %v9441_v36, 3  ;;  %v9446_v44 = vrot.slane %v9444_v29, 4  ;;  %v9462_v45 = vshll.u32 %v9393_v2, 16  ;;  %v14139_v17 = vld [vmem:[%s18449_s12 + $0x1c8] sm:$0xff]  }
 0x911   : > { %v9456_v56 = vor.u32 %v9455_v60, %v9452_v30  ;;  %v9468_v52 = vshrl.u32 %v9394_v55, 16  ;;  %v9461_v5 = vrot.slane %v9459_v57, 3  ;;  %v9397_v36 = vmul.bf16 %v17737_v6, %v18796_v3 }
 0x912   : > { %v9447_v15 = vor.u32 %v9446_v44, %v9443_v42  ;;  %v9464_v11 = vrot.slane %v9462_v45, 4  ;;  %v9398_v24 = vmul.bf16 %v17751_v21, %v18797_v63  ;;  %v9399_v60 = vmul.bf16 %v17753_v47, %v18798_v50 }
 0x913   : > { %v9470_v31 = vrot.slane %v9468_v52, 3  ;;  %v9495_v42 = vshrl.u32 %v9397_v36, 16  ;;  %v9498_v44 = vshll.u32 %v9397_v36, 16  ;;  %v9400_v45 = vmul.bf16 %v17767_v28, %v18799_v25 }
 0x914   : > { %13033 = vmatmul.mubr.bf16.gmra.mrb[32].mxu1 %v9078_v53  ;;  %v9430_v53 = vor.u32 %v9429_v1, %v9426_v16  ;;  %v9448_v12 = vsel %vm2604_vm11, %v9438_v20, %v9447_v15  ;;  %v9457_v58 = vsel %vm2604_vm11, %v9447_v15, %v9456_v56  ;;  %v9396_v16 = vmul.bf16 %v17735_v26, %v18795_v32  ;;  %v14141_v32 = vld [vmem:[%s18449_s12 + $0x1d8] sm:$0xff]  }
 0x915   : > { %13036 = vmatprep.mubr.bf16.mxu1 %v9087_v0  ;;  %v9114_v0 = vsel %vm2117_vm9, %v9104_v62, %v9113_v19  ;;  %v9471_v62 = vshll.u32 %v9394_v55, 16  ;;  %v9465_v1 = vor.u32 %v9464_v11, %v9461_v5  ;;  %v9504_v3 = vshrl.u32 %v9398_v24, 16  ;;  %v14145_v5 = vld [vmem:[%s18449_s12 + $0x1f8] sm:$0xff]  }
 0x916   : > { %v9439_v48 = vsel %vm2604_vm11, %v9430_v53, %v9438_v20  ;;  %v9489_v41 = vshll.u32 %v9396_v16, 16  ;;  %v9507_v6 = vshll.u32 %v9398_v24, 16  ;;  %v9497_v21 = vrot.slane %v9495_v42, 3 }
 0x917   : > { %v9466_v26 = vsel %vm2604_vm11, %v9456_v56, %v9465_v1  ;;  %v9500_v30 = vrot.slane %v9498_v44, 4  ;;  %v9506_v15 = vrot.slane %v9504_v3, 3  ;;  %v14144_v56 = vld [vmem:[%s18449_s12 + $0x1f0] sm:$0xff]   ;;  %v9522_v50 = vshrl.u32 %v9400_v45, 16 }
 0x918   : > { %v9491_v20 = vrot.slane %v9489_v41, 4  ;;  %v9509_v57 = vrot.slane %v9507_v6, 4  ;;  %v9525_v47 = vshll.u32 %v9400_v45, 16  ;;  %v9832_v45 = vld [vmem:[#allocation3 + $0x10] sm:$0xf0] }
 0x919   : > { %v9501_v52 = vor.u32 %v9500_v30, %v9497_v21 }
 0x91c   : > { %13037 = vmatmul.mubr.bf16.gmra.mrb[36].mxu1 %v9096_v14  ;;  %v9395_v14 = vmul.bf16 %v17720_v33, %v18794_v27  ;;  %v9486_v33 = vshrl.u32 %v9396_v16, 16  ;;  %v9402_v16 = vmul.bf16 %v17796_v49, %v18801_v10  ;;  %v9403_v10 = vmul.bf16 %v17773_v8, %v18802_v35  ;;  %v18878_v35 = vld [vmem:[#allocation47_spill] sm:$0xff] }
 0x91d   : > { %13040 = vmatprep.mubr.bf16.mxu1 %v9105_v51  ;;  %v9473_v51 = vrot.slane %v9471_v62, 4  ;;  %v9513_v62 = vshrl.u32 %v9399_v60, 16  ;;  %v9405_v8 = vmul.bf16 %v18878_v35, %v18804_v7 }
 0x91e   : > { %v9477_v54 = vshrl.u32 %v9395_v14, 16  ;;  %v9480_v43 = vshll.u32 %v9395_v14, 16  ;;  %v9488_v53 = vrot.slane %v9486_v33, 3  ;;  %v9401_v14 = vmul.bf16 %v17769_v18, %v18800_v4 }
 0x91f   : > { %v9474_v27 = vor.u32 %v9473_v51, %v9470_v31  ;;  %v9515_v28 = vrot.slane %v9513_v62, 3  ;;  %v9524_v31 = vrot.slane %v9522_v50, 3  ;;  %v9527_v51 = vrot.slane %v9525_v47, 4  ;;  %v14476_v50 = vld [vmem:[#allocation3 + $0x20] sm:$0xff] }
 0x920   : > { %v9482_v19 = vrot.slane %v9480_v43, 4  ;;  %v9492_v2 = vor.u32 %v9491_v20, %v9488_v53  ;;  %v9534_v43 = vshll.u32 %v9401_v14, 16  ;;  %v9540_v4 = vshrl.u32 %v9402_v16, 16 }
 0x921   : > { %v9475_v29 = vsel %vm2604_vm11, %v9465_v1, %v9474_v27  ;;  %v9543_v18 = vshll.u32 %v9402_v16, 16  ;;  %v9549_v53 = vshrl.u32 %v9403_v10, 16  ;;  %v9552_v20 = vshll.u32 %v9403_v10, 16  ;;  %v14149_v16 = vld [vmem:[%s18449_s12 + $0x218] sm:$0xff]   ;;  %v18883_v10 = vld [vmem:[#allocation27_spill] sm:$0xff] }
 0x922   : > { %v9502_v25 = vsel %vm2604_vm11, %v9492_v2, %v9501_v52  ;;  %v9570_v21 = vshll.u32 %v9405_v8, 16  ;;  %v9870_v47 = vrot.slane %v14476_v50, 4 }
 0x923   : > { %v9551_v44 = vrot.slane %v9549_v53, 3 }
 0x924   : > { %13041 = vmatmul.mubr.bf16.gmra.mrb[40].mxu1 %v9114_v0 }
 0x925   : > { %13060 = vmatprep.mubr.bf16.mxu1 %v9439_v48  ;;  %v14143_v48 = vld [vmem:[%s18449_s12 + $0x1e8] sm:$0xff]  }
 0x92c   : > { %13061 = vmatmul.mubr.bf16.vlgmr.msra.gmra.mrb[12].mxu1 %v9448_v12  ;;  %v9510_v12 = vor.u32 %v9509_v57, %v9506_v15  ;;  %v9572_v15 = vrot.slane %v9570_v21, 4 }
 0x92d   : > { %13093 = vmatpush3.bf16.msra.mxu1 %v18042_v61  ;;  %13064 = vmatprep.mubr.bf16.mxu1 %v9457_v58  ;;  %v9479_v61 = vrot.slane %v9477_v54, 3  ;;  %v9531_v54 = vshrl.u32 %v9401_v14, 16 }
 0x92e   : > { %13094 = vmatprep.subr.bf16.mxu1 %v14139_v17  ;;  %v9511_v58 = vsel %vm2604_vm11, %v9501_v52, %v9510_v12  ;;  %v14475_v52 = vld [vmem:[#allocation3 + $0x18] sm:$0xff] }
 0x92f   : > { %v9483_v0 = vor.u32 %v9482_v19, %v9479_v61  ;;  %v9533_v41 = vrot.slane %v9531_v54, 3  ;;  %v9545_v61 = vrot.slane %v9543_v18, 4  ;;  %v18877_v19 = vld [vmem:[#allocation46_spill] sm:$0xff]  ;;  %v9868_v62 = vrot.slane %v14475_v52, 4  ;;  %v14150_v54 = vld [vmem:[%s18449_s12 + $0x220] sm:$0xff]   ;;  %v14153_v18 = vld [vmem:[%s18449_s12 + $0x238] sm:$0xff]  }
 0x930   : > { %v9404_v36 = vmul.bf16 %v18877_v19, %v18803_v37  ;;  %v18886_v19 = vld [vmem:[#allocation37_spill] sm:$0xff] }
 0x931   : > { %13095 = vmatpush3.bf16.msra.mxu1 %v14139_v17  ;;  %v9484_v63 = vsel %vm2604_vm11, %v9474_v27, %v9483_v0  ;;  %v9493_v55 = vsel %vm2604_vm11, %v9483_v0, %v9492_v2  ;;  %v9516_v17 = vshll.u32 %v9399_v60, 16  ;;  %v9528_v27 = vor.u32 %v9527_v51, %v9524_v31  ;;  %v14478_v31 = vld [vmem:[#allocation3 + $0x30] sm:$0xff] }
 0x932   : > { %13096 = vmatprep.subr.bf16.mxu1 %v14140_v34  ;;  %v9561_v0 = vshll.u32 %v9404_v36, 16  ;;  %v9554_v2 = vrot.slane %v9552_v20, 4  ;;  %v9874_v51 = vrot.slane %v14478_v31, 4 }
 0x933   : > { %v9518_v11 = vrot.slane %v9516_v17, 4 }
 0x934   : > { %13065 = vmatmul.mubr.bf16.gmra.mrb[16].mxu1 %v9466_v26  ;;  %v9542_v26 = vrot.slane %v9540_v4, 3  ;;  %v9555_v37 = vor.u32 %v9554_v2, %v9551_v44  ;;  %v18880_v4 = vld [vmem:[#allocation54_spill] sm:$0xff] }
 0x935   : > { %13068 = vmatprep.mubr.bf16.mxu1 %v9475_v29  ;;  %13097 = vmatpush3.bf16.msra.mxu1 %v14140_v34  ;;  %v14146_v34 = vld [vmem:[%s18449_s12 + $0x200] sm:$0xff]   ;;  %v9519_v1 = vor.u32 %v9518_v11, %v9515_v28  ;;  %v14147_v28 = vld [vmem:[%s18449_s12 + $0x208] sm:$0xff]   ;;  %v9871_v11 = vsel %vm2034_vm3, %v9868_v62, %v9870_v47 }
 0x936   : > { %13098 = vmatprep.subr.bf16.mxu1 %v14141_v32  ;;  %v9546_v24 = vor.u32 %v9545_v61, %v9542_v26  ;;  %v18885_v26 = vld [vmem:[#allocation14_spill] sm:$0xff] }
 0x937   : > { %v9520_v33 = vsel %vm2604_vm11, %v9510_v12, %v9519_v1  ;;  %v9529_v49 = vsel %vm2604_vm11, %v9519_v1, %v9528_v27  ;;  %v10158_v61 = vmul.bf16 %v9832_v45, %v18885_v26  ;;  %v18889_v44 = vld [vmem:[#allocation30_spill] sm:$0xff] }
 0x938   : > { %v9556_v60 = vsel %vm2604_vm11, %v9546_v24, %v9555_v37  ;;  %v14482_v26 = vld [vmem:[#allocation3 + $0x50] sm:$0xff] }
 0x939   : > { %13099 = vmatpush3.bf16.msra.mxu1 %v14141_v32  ;;  %v9536_v32 = vrot.slane %v9534_v43, 4  ;;  %v14151_v43 = vld [vmem:[%s18449_s12 + $0x228] sm:$0xff]   ;;  %v10193_v53 = vshrl.u32 %v10158_v61, 16  ;;  %v10196_v20 = vshll.u32 %v10158_v61, 16  ;;  %v10166_v61 = vmul.bf16 %v14482_v26, %v18814_v9  ;;  %v14489_v26 = vld [vmem:[#allocation3 + $0x88] sm:$0xff] }
 0x93a   : > { %13100 = vmatprep.subr.bf16.mxu1 %v14142_v46 }
 0x93b   : > { %v9537_v29 = vor.u32 %v9536_v32, %v9533_v41  ;;  %v18882_v41 = vld [vmem:[#allocation13_spill] sm:$0xff]  ;;  %v10195_v35 = vrot.slane %v10193_v53, 4  ;;  %v14483_v53 = vld [vmem:[#allocation3 + $0x58] sm:$0xff] }
 0x93c   : > { %13069 = vmatmul.mubr.bf16.gmra.mrb[20].mxu1 %v9484_v63  ;;  %v9567_v63 = vshrl.u32 %v9405_v8, 16  ;;  %v14154_v32 = vld [vmem:[%s18451_s14] sm:$0xff]   ;;  %v10198_v8 = vrot.slane %v10196_v20, 5  ;;  %v18893_v20 = vld [vmem:[#allocation18_spill] sm:$0xff] }
 0x93d   : > { %13072 = vmatprep.mubr.bf16.mxu1 %v9493_v55  ;;  %13101 = vmatpush3.bf16.msra.mxu1 %v14142_v46  ;;  %v9558_v46 = vshrl.u32 %v9404_v36, 16  ;;  %v9538_v42 = vsel %vm2604_vm11, %v9528_v27, %v9537_v29  ;;  %v9547_v3 = vsel %vm2604_vm11, %v9537_v29, %v9546_v24  ;;  %v18879_v27 = vld [vmem:[#allocation22_spill] sm:$0xff]  ;;  %v18887_v36 = vld [vmem:[#allocation29_spill] sm:$0xff] }
 0x93e   : > { %13102 = vmatprep.subr.bf16.mxu1 %v14143_v48  ;;  %v9569_v55 = vrot.slane %v9567_v63, 3  ;;  %v10159_v29 = vmul.bf16 %v14475_v52, %v18887_v36  ;;  %v10199_v21 = vor.u32 %v10198_v8, %v10195_v35  ;;  %v14159_v8 = vld [vmem:[%s18451_s14 + $0x28] sm:$0xff]  }
 0x93f   : > { %v9560_v6 = vrot.slane %v9558_v46, 3 }
 0x940   : > { %v9573_v7 = vor.u32 %v9572_v15, %v9569_v55  ;;  %v10201_v24 = vshrl.u32 %v10159_v29, 16  ;;  %v10204_v46 = vshll.u32 %v10159_v29, 16 }
 0x941   : > { %13103 = vmatpush3.bf16.msra.mxu1 %v14143_v48  ;;  %v9563_v48 = vrot.slane %v9561_v0, 4  ;;  %v18888_v0 = vld [vmem:[#allocation20_spill] sm:$0xff] }
 0x942   : > { %13104 = vmatprep.subr.bf16.mxu1 %v14144_v56 }
 0x943   : > { %v9564_v30 = vor.u32 %v9563_v48, %v9560_v6  ;;  %v10206_v6 = vrot.slane %v10204_v46, 5  ;;  %v18890_v48 = vld [vmem:[#allocation12_spill] sm:$0xff]  ;;  %v14158_v46 = vld [vmem:[%s18451_s14 + $0x20] sm:$0xff]  }
 0x944   : > { %13073 = vmatmul.mubr.bf16.gmra.mrb[24].mxu1 %v9502_v25 }
 0x945   : > { %13076 = vmatprep.mubr.bf16.mxu1 %v9511_v58  ;;  %13105 = vmatpush3.bf16.msra.mxu1 %v14144_v56  ;;  %v9565_v57 = vsel %vm2604_vm11, %v9555_v37, %v9564_v30  ;;  %v9867_v56 = vrot.slane %v9832_v45, 4  ;;  %v9574_v17 = vsel %vm2604_vm11, %v9564_v30, %v9573_v7  ;;  %v14148_v58 = vld [vmem:[%s18449_s12 + $0x210] sm:$0xff]   ;;  %v18892_v7 = vld [vmem:[#allocation45_spill] sm:$0xff] }
 0x946   : > { %13106 = vmatprep.subr.bf16.mxu1 %v14145_v5 }
 0x947   : > { %v9869_v12 = vsel %vm2034_vm3, %v9867_v56, %v9868_v62  ;;  %v14479_v62 = vld [vmem:[#allocation3 + $0x38] sm:$0xff] }
 0x949   : > { %13107 = vmatpush3.bf16.msra.mxu1 %v14145_v5  ;;  %v14477_v5 = vld [vmem:[#allocation3 + $0x28] sm:$0xff] }
 0x94a   : > { %13140 = vmatprep.subr.bf16.mxu1 %v14146_v34  ;;  %v9872_v25 = vrot.slane %v14477_v5, 4  ;;  %v10161_v2 = vmul.bf16 %v14477_v5, %v18889_v44  ;;  %v10267_v44 = vshll.u32 %v10166_v61, 16 }
 0x94c   : > { %13077 = vmatmul.mubr.bf16.gmra.mrb[28].mxu1 %v9520_v33  ;;  %v9873_v14 = vsel %vm2034_vm3, %v9870_v47, %v9872_v25  ;;  %v9875_v1 = vsel %vm2034_vm3, %v9872_v25, %v9874_v51  ;;  %v18881_v33 = vld [vmem:[#allocation44_spill] sm:$0xff]  ;;  %v10219_v30 = vshrl.u32 %v10161_v2, 16 }
 0x94d   : > { %13080 = vmatprep.mubr.bf16.mxu1 %v9529_v49  ;;  %v18884_v49 = vld [vmem:[#allocation36_spill] sm:$0xff] }
 0x94e   : > { %v10221_v56 = vrot.slane %v10219_v30, 4 }
 0x954   : > { %13081 = vmatmul.mubr.bf16.gmra.mrb[32].mxu1 %v9538_v42  ;;  %v10160_v42 = vmul.bf16 %v14476_v50, %v18888_v0 }
 0x955   : > { %13084 = vmatprep.mubr.bf16.mxu1 %v9547_v3  ;;  %v10203_v3 = vrot.slane %v10201_v24, 4  ;;  %v10167_v24 = vmul.bf16 %v14483_v53, %v18893_v20 }
 0x956   : > { %v10210_v37 = vshrl.u32 %v10160_v42, 16  ;;  %v10213_v63 = vshll.u32 %v10160_v42, 16  ;;  %v10264_v42 = vshrl.u32 %v10166_v61, 16  ;;  %v18899_v61 = vld [vmem:[#allocation43_spill] sm:$0xff] }
 0x957   : > { %v10273_v9 = vshrl.u32 %v10167_v24, 16  ;;  %v10276_v35 = vshll.u32 %v10167_v24, 16 }
 0x958   : > { %v10212_v55 = vrot.slane %v10210_v37, 4  ;;  %v10215_v15 = vrot.slane %v10213_v63, 5  ;;  %v14484_v37 = vld [vmem:[#allocation3 + $0x60] sm:$0xff] }
 0x959   : > { %v18894_v63 = vld [vmem:[#allocation16_spill] sm:$0xff]  ;;  %v10275_v30 = vrot.slane %v10273_v9, 4 }
 0x95c   : > { %13085 = vmatmul.mubr.bf16.gmra.mrb[36].mxu1 %v9556_v60  ;;  %v10222_v60 = vshll.u32 %v10161_v2, 16 }
 0x95d   : > { %13088 = vmatprep.mubr.bf16.mxu1 %v9565_v57  ;;  %v18891_v57 = vld [vmem:[#allocation19_spill] sm:$0xff] }
 0x95e   : > { %v10162_v45 = vmul.bf16 %v14478_v31, %v18891_v57  ;;  %v10224_v52 = vrot.slane %v10222_v60, 5  ;;  %v10278_v60 = vrot.slane %v10276_v35, 5 }
 0x960   : > { %v10228_v50 = vshrl.u32 %v10162_v45, 16  ;;  %v10231_v47 = vshll.u32 %v10162_v45, 16  ;;  %v10225_v5 = vor.u32 %v10224_v52, %v10221_v56  ;;  %v14160_v45 = vld [vmem:[%s18451_s14 + $0x30] sm:$0xff]   ;;  %v10279_v52 = vor.u32 %v10278_v60, %v10275_v30 }
 0x962   : > { %v10233_v31 = vrot.slane %v10231_v47, 5 }
 0x964   : > { %13089 = vmatmul.mubr.bf16.gmra.mrb[40].mxu1 %v9574_v17  ;;  %v10163_v17 = vmul.bf16 %v14479_v62, %v18864_v13 }
 0x965   : > { %13108 = vmatprep.mubr.bf16.mxu1 %v9869_v12  ;;  %v10216_v12 = vor.u32 %v10215_v15, %v10212_v55  ;;  %v14485_v55 = vld [vmem:[#allocation3 + $0x68] sm:$0xff]  ;;  %v18895_v15 = vld [vmem:[#allocation38_spill] sm:$0xff] }
 0x966   : > { %v10237_v25 = vshrl.u32 %v10163_v17, 16  ;;  %v10169_v57 = vmul.bf16 %v14485_v55, %v18895_v15  ;;  %v14490_v55 = vld [vmem:[%s14745_s17] sm:$0xff]  }
 0x967   : > { %v10226_v13 = vsel %vm2117_vm9, %v10216_v12, %v10225_v5 }
 0x968   : > { %v10291_v62 = vshrl.u32 %v10169_v57, 16 }
 0x96c   : > { %13109 = vmatmul.mubr.bf16.vlgmr.msra.gmra.mrb[12].mxu1 %v9871_v11  ;;  %v14155_v11 = vld [vmem:[%s18451_s14 + $0x8] sm:$0xff]  }
 0x96d   : > { %13141 = vmatpush3.bf16.msra.mxu1 %v14146_v34  ;;  %13112 = vmatprep.mubr.bf16.mxu1 %v9873_v14  ;;  %v9877_v34 = vsel %vm2034_vm3, %v9874_v51, %v17856_v22  ;;  %v14152_v22 = vld [vmem:[%s18449_s12 + $0x230] sm:$0xff]   ;;  %v14480_v51 = vld [vmem:[#allocation3 + $0x40] sm:$0xff] }
 0x96e   : > { %13142 = vmatprep.subr.bf16.mxu1 %v14147_v28 }
 0x971   : > { %13143 = vmatpush3.bf16.msra.mxu1 %v14147_v28  ;;  %v10240_v28 = vshll.u32 %v10163_v17, 16  ;;  %v10294_v17 = vshll.u32 %v10169_v57, 16  ;;  %v14491_v57 = vld [vmem:[%s14745_s17 + $0x8] sm:$0xff]  }
 0x972   : > { %13144 = vmatprep.subr.bf16.mxu1 %v14148_v58 }
 0x974   : > { %13113 = vmatmul.mubr.bf16.gmra.mrb[16].mxu1 %v9875_v1  ;;  %v10239_v1 = vrot.slane %v10237_v25, 4  ;;  %v14486_v25 = vld [vmem:[#allocation3 + $0x70] sm:$0xff] }
 0x975   : > { %13116 = vmatprep.mubr.bf16.mxu1 %v9877_v34  ;;  %13145 = vmatpush3.bf16.msra.mxu1 %v14148_v58  ;;  %v10230_v58 = vrot.slane %v10228_v50, 4  ;;  %v10242_v34 = vrot.slane %v10240_v28, 5  ;;  %v18896_v28 = vld [vmem:[#allocation39_spill] sm:$0xff] }
 0x976   : > { %13146 = vmatprep.subr.bf16.mxu1 %v14149_v16 }
 0x979   : > { %13147 = vmatpush3.bf16.msra.mxu1 %v14149_v16  ;;  %v10164_v16 = vmul.bf16 %v14480_v51, %v18812_v59  ;;  %v14487_v51 = vld [vmem:[#allocation3 + $0x78] sm:$0xff] }
 0x97a   : > { %13148 = vmatprep.subr.bf16.mxu1 %v14150_v54 }
 0x97c   : > { %13117 = vmatmul.mubr.bf16.gmra.mrb[20].mxu1 %v18879_v27  ;;  %v14156_v27 = vld [vmem:[%s18451_s14 + $0x10] sm:$0xff]  }
 0x97d   : > { %13120 = vmatprep.mubr.bf16.mxu1 %v18880_v4  ;;  %13149 = vmatpush3.bf16.msra.mxu1 %v14150_v54  ;;  %v14481_v54 = vld [vmem:[#allocation3 + $0x48] sm:$0xff]  ;;  %v10234_v4 = vor.u32 %v10233_v31, %v10230_v58  ;;  %v10293_v58 = vrot.slane %v10291_v62, 4  ;;  %v10296_v31 = vrot.slane %v10294_v17, 5  ;;  %v14497_v62 = vld [vmem:[%s14745_s17 + $0x38] sm:$0xff]  }
 0x97e   : > { %13150 = vmatprep.subr.bf16.mxu1 %v14151_v43  ;;  %v14498_v17 = vld [vmem:[%s14745_s17 + $0x40] sm:$0xff]  }
 0x981   : > { %13151 = vmatpush3.bf16.msra.mxu1 %v14151_v43  ;;  %v10165_v43 = vmul.bf16 %v14481_v54, %v18813_v39  ;;  %v10235_v39 = vsel %vm2117_vm9, %v10225_v5, %v10234_v4 }
 0x982   : > { %13152 = vmatprep.subr.bf16.mxu1 %v14152_v22 }
 0x983   : > { %v10255_v59 = vshrl.u32 %v10165_v43, 16 }
 0x984   : > { %13121 = vmatmul.mubr.bf16.gmra.mrb[24].mxu1 %v18881_v33  ;;  %v10243_v33 = vor.u32 %v10242_v34, %v10239_v1 }
 0x985   : > { %13124 = vmatprep.mubr.bf16.mxu1 %v18882_v41  ;;  %13153 = vmatpush3.bf16.msra.mxu1 %v14152_v22  ;;  %v10246_v22 = vshrl.u32 %v10164_v16, 16  ;;  %v10258_v41 = vshll.u32 %v10165_v43, 16  ;;  %v10257_v36 = vrot.slane %v10255_v59, 4  ;;  %v10297_v43 = vor.u32 %v10296_v31, %v10293_v58  ;;  %v14488_v59 = vld [vmem:[#allocation3 + $0x80] sm:$0xff]  ;;  %v18900_v58 = vld [vmem:[#allocation50_spill] sm:$0xff] }
 0x986   : > { %13154 = vmatprep.subr.bf16.mxu1 %v14153_v18 }
 0x987   : > { %v10260_v29 = vrot.slane %v10258_v41, 5  ;;  %v18898_v41 = vld [vmem:[#allocation42_spill] sm:$0xff] }
 0x989   : > { %13155 = vmatpush3.bf16.msra.mxu1 %v14153_v18  ;;  %v10249_v18 = vshll.u32 %v10164_v16, 16  ;;  %v10261_v2 = vor.u32 %v10260_v29, %v10257_v36  ;;  %v18897_v16 = vld [vmem:[#allocation40_spill] sm:$0xff] }
 0x98a   : > { %13188 = vmatprep.subr.bf16.mxu1 %v14154_v32 }
 0x98c   : > { %13125 = vmatmul.mubr.bf16.gmra.mrb[28].mxu1 %v18883_v10  ;;  %v14157_v10 = vld [vmem:[%s18451_s14 + $0x18] sm:$0xff]  }
 0x98d   : > { %13128 = vmatprep.mubr.bf16.mxu1 %v18884_v49  ;;  %v10251_v49 = vrot.slane %v10249_v18, 5 }
 0x994   : > { %13129 = vmatmul.mubr.bf16.gmra.mrb[32].mxu1 %v18886_v19  ;;  %v10244_v19 = vsel %vm2117_vm9, %v10234_v4, %v10243_v33 }
 0x995   : > { %13132 = vmatprep.mubr.bf16.mxu1 %v17949_v40  ;;  %v10207_v40 = vor.u32 %v10206_v6, %v10203_v3  ;;  %v10266_v6 = vrot.slane %v10264_v42, 4 }
 0x997   : > { %v10217_v14 = vsel %vm2117_vm9, %v10207_v40, %v10216_v12  ;;  %v14161_v12 = vld [vmem:[%s18451_s14 + $0x38] sm:$0xff]  }
 0x99c   : > { %13133 = vmatmul.mubr.bf16.gmra.mrb[36].mxu1 %v17953_v23  ;;  %v10208_v23 = vsel %vm2117_vm9, %v10199_v21, %v10207_v40  ;;  %v10168_v21 = vmul.bf16 %v14484_v37, %v18894_v63 }
 0x99d   : > { %13136 = vmatprep.mubr.bf16.mxu1 %v18890_v48  ;;  %v10269_v48 = vrot.slane %v10267_v44, 5 }
 0x99e   : > { %v10285_v56 = vshll.u32 %v10168_v21, 16 }
 0x9a0   : > { %v10287_v5 = vrot.slane %v10285_v56, 5  ;;  %v14495_v56 = vld [vmem:[%s14745_s17 + $0x28] sm:$0xff]  }
 0x9a4   : > { %13137 = vmatmul.mubr.bf16.gmra.mrb[40].mxu1 %v18892_v7  ;;  %v10270_v7 = vor.u32 %v10269_v48, %v10266_v6 }
 0x9a5   : > { %13156 = vmatprep.mubr.bf16.mxu1 %v10208_v23  ;;  %v10282_v23 = vshrl.u32 %v10168_v21, 16 }
 0x9a6   : > { %v10271_v50 = vsel %vm2117_vm9, %v10261_v2, %v10270_v7 }
 0x9a7   : > { %v10284_v47 = vrot.slane %v10282_v23, 4  ;;  %v14494_v23 = vld [vmem:[%s14745_s17 + $0x20] sm:$0xff]  }
 0x9a9   : > { %v10288_v1 = vor.u32 %v10287_v5, %v10284_v47  ;;  %v14501_v47 = vld [vmem:[%s14745_s17 + $0x58] sm:$0xff]   ;;  %v14502_v5 = vld [vmem:[%s14745_s17 + $0x60] sm:$0xff]  }
 0x9ac   : > { %13157 = vmatmul.mubr.bf16.vlgmr.msra.gmra.mrb[12].mxu1 %v10217_v14  ;;  %v10280_v14 = vsel %vm2117_vm9, %v10270_v7, %v10279_v52  ;;  %v14493_v7 = vld [vmem:[%s14745_s17 + $0x18] sm:$0xff]  }
 0x9ad   : > { %13189 = vmatpush3.bf16.msra.mxu1 %v14154_v32  ;;  %13160 = vmatprep.mubr.bf16.mxu1 %v10226_v13  ;;  %v10248_v32 = vrot.slane %v10246_v22, 4  ;;  %v10171_v13 = vmul.bf16 %v14487_v51, %v18897_v16  ;;  %v10289_v22 = vsel %vm2117_vm9, %v10279_v52, %v10288_v1  ;;  %v14496_v52 = vld [vmem:[%s14745_s17 + $0x30] sm:$0xff]  }
 0x9ae   : > { %13190 = vmatprep.subr.bf16.mxu1 %v14155_v11  ;;  %v18901_v51 = vld [vmem:[#allocation51_spill] sm:$0xff] }
 0x9af   : > { %v10252_v0 = vor.u32 %v10251_v49, %v10248_v32  ;;  %v10312_v4 = vshll.u32 %v10171_v13, 16 }
 0x9b1   : > { %13191 = vmatpush3.bf16.msra.mxu1 %v14155_v11  ;;  %v10253_v3 = vsel %vm2117_vm9, %v10243_v33, %v10252_v0  ;;  %v10262_v40 = vsel %vm2117_vm9, %v10252_v0, %v10261_v2  ;;  %v10170_v11 = vmul.bf16 %v14486_v25, %v18896_v28  ;;  %v10314_v49 = vrot.slane %v10312_v4, 5  ;;  %v10157_v0 = vld [vmem:[#allocation3 + $0x90] sm:$0x1f]  ;;  %v14504_v28 = vld [vmem:[%s14745_s17 + $0x70] sm:$0xff]  }
 0x9b2   : > { %13192 = vmatprep.subr.bf16.mxu1 %v14156_v27  ;;  %v10174_v9 = vmul.bf16 %v10157_v0, %v18823_v38  ;;  %v14503_v25 = vld [vmem:[%s14745_s17 + $0x68] sm:$0xff]  }
 0x9b3   : > { %v10300_v34 = vshrl.u32 %v10170_v11, 16  ;;  %v10303_v54 = vshll.u32 %v10170_v11, 16  ;;  %v14505_v11 = vld [vmem:[%s14745_s17 + $0x78] sm:$0xff]  }
 0x9b4   : > { %13161 = vmatmul.mubr.bf16.gmra.mrb[16].mxu1 %v10235_v39  ;;  %v10298_v39 = vsel %vm2117_vm9, %v10288_v1, %v10297_v43  ;;  %v10336_v48 = vshrl.u32 %v10174_v9, 16  ;;  %v10339_v37 = vshll.u32 %v10174_v9, 16  ;;  %v18902_v1 = vld [vmem:[#allocation48_spill] sm:$0xff] }
 0x9b5   : > { %13164 = vmatprep.mubr.bf16.mxu1 %v10244_v19  ;;  %13193 = vmatpush3.bf16.msra.mxu1 %v14156_v27  ;;  %v10309_v27 = vshrl.u32 %v10171_v13, 16  ;;  %v10302_v18 = vrot.slane %v10300_v34, 4  ;;  %v10305_v33 = vrot.slane %v10303_v54, 5  ;;  %v10173_v19 = vmul.bf16 %v14489_v26, %v18899_v61  ;;  %v18255_v13 = vld [vmem:[%s18452_s15] ss:$0 sm:$0xff] }
 0x9b6   : > { %13194 = vmatprep.subr.bf16.mxu1 %v14157_v10  ;;  %v10341_v30 = vrot.slane %v10339_v37, 5  ;;  %v18903_v54 = vld [vmem:[#allocation49_spill] sm:$0xff] }
 0x9b7   : > { %v10311_v32 = vrot.slane %v10309_v27, 4  ;;  %v10306_v36 = vor.u32 %v10305_v33, %v10302_v18  ;;  %v10327_v24 = vshrl.u32 %v10173_v19, 16  ;;  %v18905_v61 = vld [vmem:[#allocation53_spill] sm:$0xff] }
 0x9b9   : > { %13195 = vmatpush3.bf16.msra.mxu1 %v14157_v10  ;;  %v10172_v10 = vmul.bf16 %v14488_v59, %v18898_v41  ;;  %v10315_v20 = vor.u32 %v10314_v49, %v10311_v32  ;;  %v10307_v42 = vsel %vm2117_vm9, %v10297_v43, %v10306_v36 }
 0x9ba   : > { %13196 = vmatprep.subr.bf16.mxu1 %v14158_v46 }
 0x9bb   : > { %v10318_v29 = vshrl.u32 %v10172_v10, 16  ;;  %v10321_v53 = vshll.u32 %v10172_v10, 16  ;;  %v10316_v35 = vsel %vm2117_vm9, %v10306_v36, %v10315_v20  ;;  %v18904_v10 = vld [vmem:[#allocation52_spill] sm:$0xff] }
 0x9bc   : > { %13165 = vmatmul.mubr.bf16.gmra.mrb[20].mxu1 %v10253_v3 }
 0x9bd   : > { %13168 = vmatprep.mubr.bf16.mxu1 %v10262_v40  ;;  %13197 = vmatpush3.bf16.msra.mxu1 %v14158_v46  ;;  %v10330_v46 = vshll.u32 %v10173_v19, 16  ;;  %v10320_v44 = vrot.slane %v10318_v29, 4  ;;  %v10323_v2 = vrot.slane %v10321_v53, 5  ;;  %v10338_v40 = vrot.slane %v10336_v48, 4  ;;  %v18906_v53 = vld [vmem:[#allocation56_spill] sm:$0xff] }
 0x9be   : > { %13198 = vmatprep.subr.bf16.mxu1 %v14159_v8  ;;  %v18908_v48 = vld [vmem:[#allocation24_spill] sm:$0xff] }
 0x9bf   : > { %v10332_v3 = vrot.slane %v10330_v46, 5  ;;  %v10324_v6 = vor.u32 %v10323_v2, %v10320_v44  ;;  %v10342_v60 = vor.u32 %v10341_v30, %v10338_v40  ;;  %v18909_v40 = vld [vmem:[#allocation25_spill] sm:$0xff] }
 0x9c1   : > { %13199 = vmatpush3.bf16.msra.mxu1 %v14159_v8  ;;  %v10329_v8 = vrot.slane %v10327_v24, 4  ;;  %v10325_v21 = vsel %vm2117_vm9, %v10315_v20, %v10324_v6  ;;  %v18907_v24 = vld [vmem:[#allocation55_spill] sm:$0xff] }
 0x9c2   : > { %13200 = vmatprep.subr.bf16.mxu1 %v14160_v45 }
 0x9c3   : > { %v10333_v63 = vor.u32 %v10332_v3, %v10329_v8 }
 0x9c4   : > { %13169 = vmatmul.mubr.bf16.gmra.mrb[24].mxu1 %v10271_v50  ;;  %v14500_v50 = vld [vmem:[%s14745_s17 + $0x50] sm:$0xff]  }
 0x9c5   : > { %13172 = vmatprep.mubr.bf16.mxu1 %v10280_v14  ;;  %13201 = vmatpush3.bf16.msra.mxu1 %v14160_v45  ;;  %v10334_v38 = vsel %vm2117_vm9, %v10324_v6, %v10333_v63  ;;  %v10343_v15 = vsel %vm2117_vm9, %v10333_v63, %v10342_v60  ;;  %v14492_v45 = vld [vmem:[%s14745_s17 + $0x10] sm:$0xff]   ;;  %v18245_v14 = vld [vmem:[%s18450_s13] ss:$0 sm:$0xff] }
 0x9c6   : > { %13202 = vmatprep.subr.bf16.mxu1 %v14161_v12  ;;  %v13362_v31 = vadd.f32 %v18900_v58, %v18245_v14  ;;  %v13365_v16 = vadd.f32 %v18245_v14, %v18901_v51  ;;  %v13356_v34 = vadd.f32 %v18902_v1, %v18245_v14  ;;  %v13359_v43 = vadd.f32 %v18245_v14, %v18903_v54  ;;  %v18910_v60 = vld [vmem:[#allocation23_spill] sm:$0xff]  ;;  %v18914_v51 = vld [vmem:[#allocation33_spill] sm:$0xff]  ;;  %v18915_v1 = vld [vmem:[#allocation34_spill] sm:$0xff] }
 0x9c7   : > { %v13371_v19 = vadd.f32 %v18245_v14, %v18905_v61  ;;  %v13374_v20 = vadd.f32 %v18906_v53, %v18245_v14  ;;  %v13377_v46 = vadd.f32 %v18245_v14, %v18907_v24  ;;  %v13380_v37 = vadd.f32 %v18908_v48, %v18245_v14  ;;  %v18919_v53 = vld [vmem:[#allocation32_spill] sm:$0xff] }
 0x9c8   : > { %v13363_v18 = vadd.f32 %v13362_v31, %v18255_v13  ;;  %v13366_v41 = vadd.f32 %v13365_v16, %v18255_v13  ;;  %v13383_v30 = vadd.f32 %v18245_v14, %v18909_v40  ;;  %v13398_v16 = vadd.f32 %v18914_v51, %v18245_v14  ;;  %v18927_v51 = vld [vmem:[#allocation61_spill] sm:$0xff] }
 0x9c9   : > { %13203 = vmatpush3.bf16.msra.mxu1 %v14161_v12  ;;  %v14499_v12 = vld [vmem:[%s14745_s17 + $0x48] sm:$0xff]   ;;  %s11120_s17 = sshll.u32 %s523_s30, 8  ;;  %v13372_v44 = vadd.f32 %v13371_v19, %v18255_v13  ;;  %v13378_v6 = vadd.f32 %v13377_v46, %v18255_v13 }
 0x9ca   : > { %s18273_s27 = scalar_lea.vmem [#allocation4], %s11120_s17  ;;  %s14510_s17 = sshll.u32 %s14575_s20, 4  ;;  %s14511_s17 = int_to_ptr.vmem [resolvable:$false] %s14510_s17 }
 0x9cb   : > { %s11045_s28 = sshll.u32 %s18273_s27, 4  ;;  %s14512_s26 = scalar_lea.vmem %s14511_s17, 8192  ;;  %s18389_s28 = int_to_ptr.vmem [resolvable:$true] %s11045_s28 }
 0x9cc   : > { %13173 = vmatmul.mubr.bf16.gmra.mrb[28].mxu1 %v10289_v22  ;;  %s14506_s19 = scalar_lea.vmem %s18389_s28, 4096  ;;  %p14513_p0 = scmp.lt.s32.totalorder %s18389_s28, %s14511_s17 }
 0x9cd   : > { %13176 = vmatprep.mubr.bf16.mxu1 %v10298_v39  ;;  %v13368_v39 = vadd.f32 %v18904_v10, %v18245_v14  ;;  %v18916_v10 = vld [vmem:[#allocation35_spill] sm:$0xff]  ;;  %p14507_p11 = scmp.ne.s32.totalorder %s18389_s28, %s14506_s19  ;;  %p14514_p1 = scmp.lt.s32.totalorder %s14512_s26, %s14506_s19 }
 0x9cf   : > { %v13369_v0 = vadd.f32 %v13368_v39, %v18255_v13  ;;  %v13404_v39 = vadd.f32 %v18916_v10, %v18245_v14  ;;  %p14508_p12 = pnand %p14507_p11, %p14701_p5  ;;  %p14515_p2 = por %p14514_p1, %p14513_p0 }
 0x9d1   : > { %v13405_v24 = vadd.f32 %v13404_v39, %v18255_v13  ;;  %p14509_p13 = pneg %p14508_p12 }
 0x9d3   : > { %p14516_p3 = pnand %p14515_p2, %p14509_p13 }
 0x9d4   : > { %13177 = vmatmul.mubr.bf16.gmra.mrb[32].mxu1 %v10307_v42 }
 0x9d5   : > { %13180 = vmatprep.mubr.bf16.mxu1 %v10316_v35  ;;  %v13375_v35 = vadd.f32 %v13374_v20, %v18255_v13  ;;  %v13413_v20 = vadd.f32 %v18245_v14, %v18919_v53 }
 0x9dc   : > { %13181 = vmatmul.mubr.bf16.gmra.mrb[36].mxu1 %v10325_v21 }
 0x9dd   : > { %13184 = vmatprep.mubr.bf16.mxu1 %v10334_v38 }
 0x9e4   : > { %13185 = vmatmul.mubr.bf16.gmra.mrb[40].mxu1 %v10343_v15  ;;  %v18911_v15 = vld [vmem:[#allocation11_spill] sm:$0xff] }
 0x9e5   : > { %13204 = vmatprep.mubr.bf16.mxu1 %v14490_v55  ;;  %v13386_v55 = vadd.f32 %v18910_v60, %v18245_v14  ;;  %v18923_v60 = vld [vmem:[#allocation26_spill] sm:$0xff] }
 0x9ec   : > { %13205 = vmatmul.mubr.bf16.vlgmr.msra.gmra.mrb[12].mxu1 %v14491_v57  ;;  %v13389_v57 = vadd.f32 %v18245_v14, %v18911_v15 }
 0x9ed   : > { %13208 = vmatprep.mubr.bf16.mxu1 %v14492_v45  ;;  %v13381_v45 = vadd.f32 %v13380_v37, %v18255_v13 }
 0x9f4   : > { %13209 = vmatmul.mubr.bf16.gmra.mrb[16].mxu1 %v14493_v7 }
 0x9f5   : > { %13212 = vmatprep.mubr.bf16.mxu1 %v14494_v23  ;;  %v13384_v23 = vadd.f32 %v13383_v30, %v18255_v13  ;;  %v18922_v30 = vld [vmem:[#allocation41_spill] sm:$0xff] }
 0x9fc   : > { %13213 = vmatmul.mubr.bf16.gmra.mrb[20].mxu1 %v14495_v56 }
 0x9fd   : > { %13216 = vmatprep.mubr.bf16.mxu1 %v14496_v52 }
 0xa04   : > { %13217 = vmatmul.mubr.bf16.gmra.mrb[24].mxu1 %v14497_v62  ;;  %v13387_v62 = vadd.f32 %v13386_v55, %v18255_v13  ;;  %v13425_v55 = vadd.f32 %v18245_v14, %v18923_v60 }
 0xa05   : > { %13220 = vmatprep.mubr.bf16.mxu1 %v14498_v17 }
 0xa0c   : > { %13221 = vmatmul.mubr.bf16.gmra.mrb[28].mxu1 %v14499_v12 }
 0xa0d   : > { %13224 = vmatprep.mubr.bf16.mxu1 %v14500_v50  ;;  %v13390_v50 = vadd.f32 %v13389_v57, %v18255_v13 }
 0xa14   : > { %13225 = vmatmul.mubr.bf16.gmra.mrb[32].mxu1 %v14501_v47  ;;  %v18912_v47 = vld [vmem:[#allocation28_spill] sm:$0xff] }
 0xa15   : > { %13228 = vmatprep.mubr.bf16.mxu1 %v14502_v5  ;;  %v13392_v5 = vadd.f32 %v18912_v47, %v18245_v14 }
 0xa17   : > { %v13393_v54 = vadd.f32 %v13392_v5, %v18255_v13 }
 0xa1c   : > { %13229 = vmatmul.mubr.bf16.gmra.mrb[36].mxu1 %v14503_v25 }
 0xa1d   : > { %13232 = vmatprep.mubr.bf16.mxu1 %v14504_v28 }
 0xa24   : > { %13233 = vmatmul.mubr.bf16.gmra.mrb[40].mxu1 %v14505_v11  ;;  %v18913_v11 = vld [vmem:[#allocation21_spill] sm:$0xff] }
 0xa25   : > { %v13395_v58 = vadd.f32 %v18245_v14, %v18913_v11 }
 0xabf   : > { %v13206_v27 = vpop.f32.mrb[12].mxu1 }
 0xac0   : > { %v13357_v4 = vadd.f32 %v13356_v34, %v13206_v27  ;;  %v10840_v22 = vpop.f32.mrb[13].mxu1  ;;  %v13401_v34 = vadd.f32 %v18245_v14, %v18915_v1  ;;  %v13396_v27 = vadd.f32 %v13395_v58, %v18255_v13  ;;  %v18926_v58 = vld [vmem:[#allocation60_spill] sm:$0xff] }
 0xac1   : > { %v13360_v33 = vadd.f32 %v13359_v43, %v10840_v22  ;;  %v13207_v59 = vpop.f32.mrb[14].mxu1 }
 0xac2   : > { %v13358_v32 = vadd.f32 %v13357_v4, %v18255_v13  ;;  %v13364_v49 = vadd.f32 %v13363_v18, %v13207_v59  ;;  %v10843_v26 = vpop.f32.mrb[15].mxu1  ;;  %v13399_v18 = vadd.f32 %v13398_v16, %v18255_v13  ;;  %v13437_v16 = vadd.f32 %v18245_v14, %v18927_v51 }
 0xac3   : > { %v13361_v36 = vadd.f32 %v13360_v33, %v18255_v13  ;;  %v13367_v29 = vadd.f32 %v13366_v41, %v10843_v26  ;;  %v13402_v41 = vadd.f32 %v13401_v34, %v18255_v13  ;;  %v18917_v26 = vld [vmem:[#allocation57_spill] sm:$0xff] }
 0xac4   : > { %11001 = vst [vmem:[%s18273_s27 + $0x10] sm:$0xff] %v13358_v32  ;;  %11002 = vst [vmem:[%s18273_s27 + $0x18] sm:$0xff] %v13364_v49  ;;  %v13407_v61 = vadd.f32 %v18245_v14, %v18917_v26 }
 0xac5   : > { %10999 = vst [vmem:[%s18273_s27] sm:$0xff] %v13361_v36  ;;  %11000 = vst [vmem:[%s18273_s27 + $0x8] sm:$0xff] %v13367_v29  ;;  %v18918_v36 = vld [vmem:[#allocation58_spill] sm:$0xff] }
 0xac6   : > { %v13410_v29 = vadd.f32 %v18918_v36, %v18245_v14  ;;  %v18931_v36 = vld [vmem:[#allocation65_spill] sm:$0xff] }
 0xac7   : > { %v13210_v42 = vpop.f32.mrb[16].mxu1 }
 0xac8   : > { %v13370_v2 = vadd.f32 %v13369_v0, %v13210_v42  ;;  %v10856_v9 = vpop.f32.mrb[17].mxu1  ;;  %v13408_v0 = vadd.f32 %v13407_v61, %v18255_v13  ;;  %v18930_v61 = vld [vmem:[#allocation64_spill] sm:$0xff] }
 0xac9   : > { %v13373_v8 = vadd.f32 %v13372_v44, %v10856_v9  ;;  %v13211_v3 = vpop.f32.mrb[18].mxu1 }
 0xaca   : > { %11005 = vst [vmem:[%s18273_s27 + $0x30] sm:$0xff] %v13370_v2  ;;  %v13376_v63 = vadd.f32 %v13375_v35, %v13211_v3  ;;  %v10859_v21 = vpop.f32.mrb[19].mxu1  ;;  %v13411_v2 = vadd.f32 %v13410_v29, %v18255_v13  ;;  %v18920_v3 = vld [vmem:[#allocation17_spill] sm:$0xff]  ;;  %v13449_v29 = vadd.f32 %v18245_v14, %v18931_v36 }
 0xacb   : > { %11003 = vst [vmem:[%s18273_s27 + $0x20] sm:$0xff] %v13373_v8  ;;  %v13379_v38 = vadd.f32 %v13378_v6, %v10859_v21  ;;  %v13414_v8 = vadd.f32 %v13413_v20, %v18255_v13  ;;  %v13416_v6 = vadd.f32 %v18920_v3, %v18245_v14 }
 0xacc   : > { %11006 = vst [vmem:[%s18273_s27 + $0x38] sm:$0xff] %v13376_v63  ;;  %v18921_v63 = vld [vmem:[#allocation15_spill] sm:$0xff] }
 0xacd   : > { %11004 = vst [vmem:[%s18273_s27 + $0x28] sm:$0xff] %v13379_v38  ;;  %v13419_v21 = vadd.f32 %v18245_v14, %v18921_v63  ;;  %v13422_v38 = vadd.f32 %v18922_v30, %v18245_v14  ;;  %v13417_v15 = vadd.f32 %v13416_v6, %v18255_v13 }
 0xacf   : > { %v13214_v7 = vpop.f32.mrb[20].mxu1 }
 0xad0   : > { %v13382_v56 = vadd.f32 %v13381_v45, %v13214_v7  ;;  %v10872_v52 = vpop.f32.mrb[21].mxu1  ;;  %v13420_v45 = vadd.f32 %v13419_v21, %v18255_v13 }
 0xad1   : > { %v13385_v17 = vadd.f32 %v13384_v23, %v10872_v52  ;;  %v13215_v12 = vpop.f32.mrb[22].mxu1 }
 0xad2   : > { %11009 = vst [vmem:[%s18273_s27 + $0x50] sm:$0xff] %v13382_v56  ;;  %v13388_v25 = vadd.f32 %v13387_v62, %v13215_v12  ;;  %v10875_v28 = vpop.f32.mrb[23].mxu1  ;;  %v13423_v56 = vadd.f32 %v13422_v38, %v18255_v13  ;;  %v18924_v12 = vld [vmem:[#allocation31_spill] sm:$0xff] }
 0xad3   : > { %11007 = vst [vmem:[%s18273_s27 + $0x40] sm:$0xff] %v13385_v17  ;;  %v13391_v31 = vadd.f32 %v13390_v50, %v10875_v28  ;;  %v13426_v17 = vadd.f32 %v13425_v55, %v18255_v13  ;;  %v13428_v50 = vadd.f32 %v18924_v12, %v18245_v14 }
 0xad4   : > { %11010 = vst [vmem:[%s18273_s27 + $0x58] sm:$0xff] %v13388_v25  ;;  %v18925_v25 = vld [vmem:[#allocation59_spill] sm:$0xff] }
 0xad5   : > { %11008 = vst [vmem:[%s18273_s27 + $0x48] sm:$0xff] %v13391_v31  ;;  %v13431_v28 = vadd.f32 %v18245_v14, %v18925_v25  ;;  %v13434_v31 = vadd.f32 %v18926_v58, %v18245_v14  ;;  %v13429_v1 = vadd.f32 %v13428_v50, %v18255_v13 }
 0xad7   : > { %v13218_v43 = vpop.f32.mrb[24].mxu1 }
 0xad8   : > { %v13394_v4 = vadd.f32 %v13393_v54, %v13218_v43  ;;  %v10888_v22 = vpop.f32.mrb[25].mxu1  ;;  %v13432_v54 = vadd.f32 %v13431_v28, %v18255_v13 }
 0xad9   : > { %v13397_v33 = vadd.f32 %v13396_v27, %v10888_v22  ;;  %v13219_v59 = vpop.f32.mrb[26].mxu1 }
 0xada   : > { %11013 = vst [vmem:[%s18273_s27 + $0x70] sm:$0xff] %v13394_v4  ;;  %v13400_v32 = vadd.f32 %v13399_v18, %v13219_v59  ;;  %v10891_v49 = vpop.f32.mrb[27].mxu1  ;;  %v13435_v4 = vadd.f32 %v13434_v31, %v18255_v13  ;;  %v18928_v59 = vld [vmem:[#allocation62_spill] sm:$0xff] }
 0xadb   : > { %11011 = vst [vmem:[%s18273_s27 + $0x60] sm:$0xff] %v13397_v33  ;;  %v13403_v19 = vadd.f32 %v13402_v41, %v10891_v49  ;;  %v13438_v33 = vadd.f32 %v13437_v16, %v18255_v13  ;;  %v13440_v41 = vadd.f32 %v18928_v59, %v18245_v14 }
 0xadc   : > { %11014 = vst [vmem:[%s18273_s27 + $0x78] sm:$0xff] %v13400_v32  ;;  %v18929_v32 = vld [vmem:[#allocation63_spill] sm:$0xff] }
 0xadd   : > { %11012 = vst [vmem:[%s18273_s27 + $0x68] sm:$0xff] %v13403_v19  ;;  %v13443_v49 = vadd.f32 %v18245_v14, %v18929_v32  ;;  %v13446_v19 = vadd.f32 %v18930_v61, %v18245_v14  ;;  %v13441_v53 = vadd.f32 %v13440_v41, %v18255_v13  ;;  %v13450_v14 = vadd.f32 %v13449_v29, %v18255_v13 }
 0xadf   : > { %v13222_v46 = vpop.f32.mrb[28].mxu1 }
 0xae0   : > { %v13406_v42 = vadd.f32 %v13405_v24, %v13222_v46  ;;  %v10904_v44 = vpop.f32.mrb[29].mxu1  ;;  %v13444_v24 = vadd.f32 %v13443_v49, %v18255_v13 }
 0xae1   : > { %v13409_v9 = vadd.f32 %v13408_v0, %v10904_v44  ;;  %v13223_v35 = vpop.f32.mrb[30].mxu1 }
 0xae2   : > { %11017 = vst [vmem:[%s18273_s27 + $0x90] sm:$0xff] %v13406_v42  ;;  %v13412_v48 = vadd.f32 %v13411_v2, %v13223_v35  ;;  %v10907_v37 = vpop.f32.mrb[31].mxu1  ;;  %v13447_v42 = vadd.f32 %v13446_v19, %v18255_v13 }
 0xae3   : > { %11015 = vst [vmem:[%s18273_s27 + $0x80] sm:$0xff] %v13409_v9  ;;  %v13415_v40 = vadd.f32 %v13414_v8, %v10907_v37 }
 0xae4   : > { %11018 = vst [vmem:[%s18273_s27 + $0x98] sm:$0xff] %v13412_v48 }
 0xae5   : > { %11016 = vst [vmem:[%s18273_s27 + $0x88] sm:$0xff] %v13415_v40 }
 0xae7   : > { %v13226_v57 = vpop.f32.mrb[32].mxu1 }
 0xae8   : > { %v13418_v7 = vadd.f32 %v13417_v15, %v13226_v57  ;;  %v10920_v23 = vpop.f32.mrb[33].mxu1 }
 0xae9   : > { %v13421_v52 = vadd.f32 %v13420_v45, %v10920_v23  ;;  %v13227_v62 = vpop.f32.mrb[34].mxu1 }
 0xaea   : > { %11021 = vst [vmem:[%s18273_s27 + $0xb0] sm:$0xff] %v13418_v7  ;;  %v13424_v47 = vadd.f32 %v13423_v56, %v13227_v62  ;;  %v10923_v5 = vpop.f32.mrb[35].mxu1 }
 0xaeb   : > { %11019 = vst [vmem:[%s18273_s27 + $0xa0] sm:$0xff] %v13421_v52  ;;  %v13427_v11 = vadd.f32 %v13426_v17, %v10923_v5 }
 0xaec   : > { %11022 = vst [vmem:[%s18273_s27 + $0xb8] sm:$0xff] %v13424_v47 }
 0xaed   : > { %11020 = vst [vmem:[%s18273_s27 + $0xa8] sm:$0xff] %v13427_v11 }
 0xaef   : > { %v13230_v34 = vpop.f32.mrb[36].mxu1 }
 0xaf0   : > { %v13430_v43 = vadd.f32 %v13429_v1, %v13230_v34  ;;  %v10936_v27 = vpop.f32.mrb[37].mxu1 }
 0xaf1   : > { %v13433_v22 = vadd.f32 %v13432_v54, %v10936_v27  ;;  %v13231_v18 = vpop.f32.mrb[38].mxu1 }
 0xaf2   : > { %11025 = vst [vmem:[%s18273_s27 + $0xd0] sm:$0xff] %v13430_v43  ;;  %v13436_v10 = vadd.f32 %v13435_v4, %v13231_v18  ;;  %v10939_v39 = vpop.f32.mrb[39].mxu1 }
 0xaf3   : > { %11023 = vst [vmem:[%s18273_s27 + $0xc0] sm:$0xff] %v13433_v22  ;;  %v13439_v26 = vadd.f32 %v13438_v33, %v10939_v39 }
 0xaf4   : > { %11026 = vst [vmem:[%s18273_s27 + $0xd8] sm:$0xff] %v13436_v10 }
 0xaf5   : > { %11024 = vst [vmem:[%s18273_s27 + $0xc8] sm:$0xff] %v13439_v26 }
 0xaf7   : > { %v13234_v20 = vpop.f32.mrb[40].mxu1 }
 0xaf8   : > { %v13442_v46 = vadd.f32 %v13441_v53, %v13234_v20  ;;  %v10952_v0 = vpop.f32.mrb[41].mxu1 }
 0xaf9   : > { %v13445_v44 = vadd.f32 %v13444_v24, %v10952_v0  ;;  %v13235_v2 = vpop.f32.mrb[42].mxu1 }
 0xafa   : > { %11029 = vst [vmem:[%s18273_s27 + $0xf0] sm:$0xff] %v13442_v46  ;;  %v13448_v9 = vadd.f32 %v13447_v42, %v13235_v2  ;;  %v10955_v35 = vpop.f32.mrb[43].mxu1 }
 0xafb   : > { %11027 = vst [vmem:[%s18273_s27 + $0xe0] sm:$0xff] %v13445_v44  ;;  %v13451_v8 = vadd.f32 %v13450_v14, %v10955_v35 }
 0xafc   : > { %11030 = vst [vmem:[%s18273_s27 + $0xf8] sm:$0xff] %v13448_v9 }
 0xafd   : > { %11028 = vst [vmem:[%s18273_s27 + $0xe8] sm:$0xff] %v13451_v8 }
 0xafe   : > { %14519 = shalt.err (!%p14516_p3)
}
 0xaff   : > { %s14520_s30 = scalar_lea.hbm %s18387_s23, 4096  ;;  %s14524_s29 = scalar_lea.hbm %s18453_s16, 8192 }
 0xb00   : > { %p14521_p4 = scmp.ne.s32.totalorder %s18387_s23, %s14520_s30  ;;  %p14525_p9 = scmp.lt.u32.totalorder %s18387_s23, %s18453_s16 }
 0xb01   : > { %p14526_p10 = scmp.lt.u32.totalorder %s14524_s29, %s14520_s30  ;;  %p14528_p12 = scmp.lt.u32.totalorder %s14520_s30, %s18387_s23 }
 0xb02   : > { %p14522_p7 = pnand %p14521_p4, %p14701_p5 }
 0xb03   : > { %p14527_p11 = por %p14526_p10, %p14525_p9 }
 0xb04   : > { %p14523_p8 = pneg %p14522_p7 }
 0xb05   : > { %p14529_p13 = por %p14528_p12, %p14527_p11 }
 0xb07   : > { %p14530_p0 = pnand %p14529_p13, %p14523_p8 }
 0xb09   : > { %14533 = shalt.err (!%p14530_p0)
}
 0xb0a   : > { %s14576_s19 = smov 128   ;;  %s14577_s26 = smov 8  }
 0xb0b   : > { %13964 = dma.vmem_to_hbm [thread:$0]  (%p14701_p5), %s18389_s28, 4096, %s18387_s23, %s18396_s25, %s14576_s19, %s14576_s19, %s14577_s26  }
 0xb0c PF: > { %p13970_p1 = scmp.ge.s32.totalorder %s14568_s24, 2  ;;  %s11060_s18 = sand.u32 1, %s14556_s21  }
 0xb0d   : > { %s11061_s30 = scalar_lea.sflag [#allocation5], %s11060_s18 }
 0xb0e   : > { %p13967_p2 = pnand %p13970_p1, %p14705_p6 }
 0xb10   : > { %14551 = dma.done.wait (!%p13967_p2), %s11061_s30, 4096  }
 0xb11   : > { %14553 = vsyncadd (!%p13967_p2), %s11061_s30, 4294963200  ;;  %s18933_s24 = sld [smem:[#allocation8_spill]]  ;;  %s18934_s29 = sld [smem:[#allocation7_spill]] }
 0xb12   : > { %s18935_s23 = sld [smem:[#allocation9_spill]]  ;;  %s18936_s21 = smov %s14560_s22 }
 0xb17   : > { %p26_p3 = scmp.ge.s32.totalorder %s18933_s24, 4   ;;  %s18937_s22 = smov %s18934_s29 }
 0xb19   :  { %28 = sbr.rel (!%p26_p3) target bundleno = 5 (0x5), region = 138 }
 0xb20   :  { %11066 = vsyncpa [#allocation5], 1 }
 0xb21   :  { %11068 = vsyncpa [#allocation5 + $0x1], 1 }

</bundles_post_ra>
